<compile_context>
chip_gen: v7x
topology: tpu7x:2x2x1
jax: 0.10.0
libtpu: 0.0.40
codegen_flags: <defaults>
</compile_context>

<pallas_src>
import functools

import jax
import jax.numpy as jnp
from jax import lax
from jax.experimental import pallas as pl
from jax.experimental.pallas import tpu as pltpu

MATMUL_DTYPE = jnp.bfloat16   # operands of the image-tensor GEMMs (f32 accumulate)
FC_DTYPE = jnp.float32        # tiny FC / attention GEMMs stay f32
TM_MAX = 512                  # rows per tile (sized for v7x 64 MiB VMEM)
BN_EPS = 1e-5
LANE = 128


def _round_up(x, m):
    return (x + m - 1) // m * m


def _act(y, act):
    if act == "identity":
        return y
    if act == "relu":
        return jnp.maximum(y, 0.0)
    if act == "silu":
        return y * (1.0 / (1.0 + jnp.exp(-y)))
    if act == "sigmoid":
        return 1.0 / (1.0 + jnp.exp(-y))
    raise ValueError(f"unknown act {act!r}")


# ----------------------------------------------------------------------------
# Pallas kernels
# ----------------------------------------------------------------------------
def _gemm_stats_kernel(p_ref, w_ref, conv_ref, sum_ref, sq_ref, acc_s, acc_q):
    """conv tile = patches @ W (single MXU matmul); fuse per-channel sum/sumsq."""
    i = pl.program_id(0)

    @pl.when(i == 0)
    def _init():
        acc_s[...] = jnp.zeros_like(acc_s)
        acc_q[...] = jnp.zeros_like(acc_q)

    conv = jnp.dot(p_ref[...], w_ref[...], preferred_element_type=jnp.float32)
    conv_ref[...] = conv
    acc_s[...] += jnp.sum(conv, axis=0, keepdims=True)
    acc_q[...] += jnp.sum(conv * conv, axis=0, keepdims=True)

    @pl.when(i == pl.num_programs(0) - 1)
    def _finalize():
        sum_ref[...] = acc_s[...]
        sq_ref[...] = acc_q[...]


def _affine_act_kernel(x_ref, sb_ref, o_ref, *, act):
    y = x_ref[...] * sb_ref[0:1, :] + sb_ref[1:2, :]
    o_ref[...] = _act(y, act)


def _gemm_affine_act_kernel(p_ref, w_ref, sb_ref, o_ref, *, act):
    y = jnp.dot(p_ref[...], w_ref[...], preferred_element_type=jnp.float32)
    y = y * sb_ref[0:1, :] + sb_ref[1:2, :]
    o_ref[...] = _act(y, act)


# ----------------------------------------------------------------------------
# pallas_call wrappers
# ----------------------------------------------------------------------------
def _compiler_params(semantics):
    return pltpu.CompilerParams(dimension_semantics=semantics,
                                vmem_limit_bytes=32 * 1024 * 1024)


def _gemm_with_stats(patches, wmat, tm):
    rp, k = patches.shape
    cp = wmat.shape[1]
    conv, s, q = pl.pallas_call(
        _gemm_stats_kernel,
        out_shape=(jax.ShapeDtypeStruct((rp, cp), jnp.float32),
                   jax.ShapeDtypeStruct((1, cp), jnp.float32),
                   jax.ShapeDtypeStruct((1, cp), jnp.float32)),
        grid=(rp // tm,),
        in_specs=[pl.BlockSpec((tm, k), lambda i: (i, 0)),
                  pl.BlockSpec((k, cp), lambda i: (0, 0))],
        out_specs=(pl.BlockSpec((tm, cp), lambda i: (i, 0)),
                   pl.BlockSpec((1, cp), lambda i: (0, 0)),
                   pl.BlockSpec((1, cp), lambda i: (0, 0))),
        scratch_shapes=[pltpu.VMEM((1, cp), jnp.float32),
                        pltpu.VMEM((1, cp), jnp.float32)],
        compiler_params=_compiler_params(("arbitrary",)),  # stats reduce over tiles
    )(patches, wmat)
    return conv, s[0], q[0]


def _affine_act(conv, sb, tm, act):
    rp, cp = conv.shape
    return pl.pallas_call(
        functools.partial(_affine_act_kernel, act=act),
        out_shape=jax.ShapeDtypeStruct((rp, cp), jnp.float32),
        grid=(rp // tm,),
        in_specs=[pl.BlockSpec((tm, cp), lambda i: (i, 0)),
                  pl.BlockSpec((2, cp), lambda i: (0, 0))],
        out_specs=pl.BlockSpec((tm, cp), lambda i: (i, 0)),
        compiler_params=_compiler_params(("parallel",)),
    )(conv, sb)


def _gemm_affine_act(patches, wmat, sb, tm, act):
    rp, k = patches.shape
    cp = wmat.shape[1]
    return pl.pallas_call(
        functools.partial(_gemm_affine_act_kernel, act=act),
        out_shape=jax.ShapeDtypeStruct((rp, cp), jnp.float32),
        grid=(rp // tm,),
        in_specs=[pl.BlockSpec((tm, k), lambda i: (i, 0)),
                  pl.BlockSpec((k, cp), lambda i: (0, 0)),
                  pl.BlockSpec((2, cp), lambda i: (0, 0))],
        out_specs=pl.BlockSpec((tm, cp), lambda i: (i, 0)),
        compiler_params=_compiler_params(("parallel",)),
    )(patches, wmat, sb)


# ----------------------------------------------------------------------------
# wrapper-side im2col / weight packing (layout plumbing, not compute)
# ----------------------------------------------------------------------------
def _im2col_nhwc(x_nhwc, kh, kw, stride, pad):
    n, h, w, c = x_nhwc.shape
    xp = jnp.pad(x_nhwc, ((0, 0), (pad, pad), (pad, pad), (0, 0)))
    ho = (h + 2 * pad - kh) // stride + 1
    wo = (w + 2 * pad - kw) // stride + 1
    taps = []
    for ih in range(kh):
        for iw in range(kw):
            taps.append(xp[:, ih:ih + (ho - 1) * stride + 1:stride,
                           iw:iw + (wo - 1) * stride + 1:stride, :])
    patches = jnp.stack(taps, axis=3)                  # (N, Ho, Wo, KH*KW, C)
    return patches.reshape(n * ho * wo, kh * kw * c), ho, wo


def _dense_weight(w_oihw, groups):
    cout, cin_g, kh, kw = w_oihw.shape
    if groups == 1:
        return jnp.transpose(w_oihw, (2, 3, 1, 0)).reshape(kh * kw * cin_g, cout)
    # Full depthwise: block-diagonal dense matrix -> still ONE MXU GEMM per tile.
    assert cin_g == 1 and groups == cout, "only groups=1 or full depthwise"
    wt = jnp.transpose(w_oihw[:, 0], (1, 2, 0)).reshape(kh * kw, cout)   # (T, C)
    eye = jnp.eye(cout, dtype=w_oihw.dtype)
    return (wt[:, :, None] * eye[None, :, :]).reshape(kh * kw * cout, cout)


def _pad_rows_cols(patches, wmat, cout):
    r, _ = patches.shape
    cp = _round_up(max(cout, LANE), LANE)              # lane-dense output channels
    tm = min(TM_MAX, _round_up(r, 8))
    rp = _round_up(r, tm)
    patches = jnp.pad(patches, ((0, rp - r), (0, 0)))  # padded rows are exact zeros
    wmat = jnp.pad(wmat, ((0, 0), (0, cp - cout)))
    return patches, wmat, tm, r, cp


# ----------------------------------------------------------------------------
# Pallas-backed ops used by the CRA forward
# ----------------------------------------------------------------------------
def pallas_conv_bn_act(x_nchw, w_oihw, groups, gamma, beta, act):
    """Conv2d(bias=False, stride=1, pad=k//2) -> BatchNorm2d(batch stats) -> act."""
    n, _, _, _ = x_nchw.shape
    cout, _, kh, kw = w_oihw.shape
    pad = kh // 2                                      # autopad, dilation 1
    x_nhwc = jnp.transpose(x_nchw, (0, 2, 3, 1))
    patches, ho, wo = _im2col_nhwc(x_nhwc, kh, kw, 1, pad)
    wmat = _dense_weight(w_oihw, groups)
    patches, wmat, tm, r, cp = _pad_rows_cols(patches, wmat, cout)

    conv, csum, csq = _gemm_with_stats(patches.astype(MATMUL_DTYPE),
                                       wmat.astype(MATMUL_DTYPE), tm)

    # BatchNorm training stats (biased variance); padded rows contribute zeros.
    mean = csum[:cout] / r
    var = csq[:cout] / r - mean * mean
    scale = gamma * lax.rsqrt(var + BN_EPS)
    bias = beta - mean * scale
    sb = jnp.zeros((2, cp), jnp.float32)
    sb = sb.at[0, :cout].set(scale).at[1, :cout].set(bias)

    y = _affine_act(conv, sb, tm, act)
    y = y[:r, :cout].reshape(n, ho, wo, cout)
    return jnp.transpose(y, (0, 3, 1, 2))


def pallas_avgpool_3x3_s2(x_nchw):
    """nn.AvgPool2d(kernel_size=3, stride=2, padding=1), count_include_pad=True."""
    n, c, _, _ = x_nchw.shape
    x_nhwc = jnp.transpose(x_nchw, (0, 2, 3, 1))
    patches, ho, wo = _im2col_nhwc(x_nhwc, 3, 3, 2, 1)
    wmat = _dense_weight(jnp.ones((c, 1, 3, 3), jnp.float32), c)  # sum of 9 taps
    patches, wmat, tm, r, cp = _pad_rows_cols(patches, wmat, c)
    sb = jnp.zeros((2, cp), jnp.float32).at[0, :].set(1.0 / 9.0)  # exact 1/9 in f32
    y = _gemm_affine_act(patches.astype(MATMUL_DTYPE), wmat.astype(MATMUL_DTYPE),
                         sb, tm, "identity")
    y = y[:r, :c].reshape(n, ho, wo, c)
    return jnp.transpose(y, (0, 3, 1, 2))


def pallas_linear(x, w, b, act):
    """torch.nn.Linear: act(x @ w.T + b)."""
    fout = w.shape[0]
    patches, wmat, tm, r, cp = _pad_rows_cols(x, jnp.transpose(w), fout)
    sb = jnp.zeros((2, cp), jnp.float32)
    sb = sb.at[0, :].set(1.0).at[1, :fout].set(b)
    y = _gemm_affine_act(patches.astype(FC_DTYPE), wmat.astype(FC_DTYPE), sb, tm, act)
    return y[:r, :fout]


def pallas_ca_fc(pooled, w, b):
    """ChannelAttention fc: sigmoid(Conv2d(C, C, 1, bias=True)) on pooled (B, C)."""
    return pallas_linear(pooled, w[:, :, 0, 0], b, "sigmoid")


# ----------------------------------------------------------------------------
# pure-f32 JAX reference ops (mirror the PyTorch module)
# ----------------------------------------------------------------------------
def ref_conv_bn_act(x, w, groups, gamma, beta, act):
    pad = w.shape[2] // 2
    y = lax.conv_general_dilated(
        x, w, window_strides=(1, 1), padding=((pad, pad), (pad, pad)),
        dimension_numbers=("NCHW", "OIHW", "NCHW"), feature_group_count=groups)
    mean = jnp.mean(y, axis=(0, 2, 3), keepdims=True)
    var = jnp.mean((y - mean) ** 2, axis=(0, 2, 3), keepdims=True)
    y = (y - mean) * lax.rsqrt(var + BN_EPS) * gamma.reshape(1, -1, 1, 1) \
        + beta.reshape(1, -1, 1, 1)
    return _act(y, act)


def ref_avgpool_3x3_s2(x):
    s = lax.reduce_window(x, 0.0, lax.add, (1, 1, 3, 3), (1, 1, 2, 2),
                          ((0, 0), (0, 0), (1, 1), (1, 1)))
    return s / 9.0


def ref_linear(x, w, b, act):
    return _act(x @ w.T + b, act)


def ref_ca_fc(pooled, w, b):
    return _act(pooled @ w[:, :, 0, 0].T + b, "sigmoid")


PALLAS_OPS = dict(conv_bn_act=pallas_conv_bn_act, avgpool=pallas_avgpool_3x3_s2,
                  linear=pallas_linear, ca_fc=pallas_ca_fc)
REF_OPS = dict(conv_bn_act=ref_conv_bn_act, avgpool=ref_avgpool_3x3_s2,
               linear=ref_linear, ca_fc=ref_ca_fc)


# ----------------------------------------------------------------------------
# CRA forward (shared glue; compute ops supplied by `ops`)
# ----------------------------------------------------------------------------
def cra_forward(x, p, ops, depth, c, training=True):
    conv_bn_act = ops["conv_bn_act"]
    avgpool = ops["avgpool"]
    linear = ops["linear"]
    ca_fc = ops["ca_fc"]

    # conv_wh = LightConv(c, c_out, 3): 1x1 Conv (Identity) -> depthwise 3x3 (ReLU)
    x = conv_bn_act(x, p["wh1_w"], 1, p["wh1_g"], p["wh1_b"], "identity")
    x = conv_bn_act(x, p["wh2_w"], x.shape[1], p["wh2_g"], p["wh2_b"], "relu")
    x = avgpool(x)                                     # nn.AvgPool2d(3, 2, 1)

    bs_depth, c_out, h, w = x.shape
    if training:
        batch_size = bs_depth // depth
    else:
        batch_size, depth = 1, bs_depth

    x_ = x.reshape(batch_size, depth, c_out, h, w)

    # ----- branch over (h, c_out, depth, w) -----
    x1 = jnp.transpose(x_, (0, 3, 2, 1, 4)).reshape(-1, c_out, depth, w)
    B = x1
    A1 = conv_bn_act(x1[:, :c], p["dw_w"], c, p["dw_g"], p["dw_b"], "silu")      # dw_conv
    A2 = conv_bn_act(x1[:, c:], p["dw1_w"], c, p["dw1_g"], p["dw1_b"], "silu")   # dw_conv1
    A_pool = A1.reshape(batch_size, w, c, h, depth).mean(axis=(1, 2, 4))
    A2_pool = A2.reshape(batch_size, w, c, h, depth).mean(axis=(1, 2, 4))
    a = linear(jnp.concatenate([A_pool, A2_pool], axis=1), p["fca_w"], p["fca_b"], "relu")
    a_list = [linear(a, wi, bi, "identity") for wi, bi in p["fca_heads"]]
    B_list = [conv_bn_act(B, wi, 2 * c, gi, bi, "silu") for wi, gi, bi in p["ms1"]]
    B_list = [b.reshape(batch_size, h, 2 * c, depth, w).transpose(0, 3, 2, 1, 4)
              .reshape(bs_depth, 2 * c, h, w) for b in B_list]

    # ----- branch over (w, c_out, h, depth) -----
    x2 = jnp.transpose(x_, (0, 4, 2, 3, 1)).reshape(-1, c_out, h, depth)
    B_prime = x2
    A1_prime = conv_bn_act(x2[:, :c], p["dw_w"], c, p["dw_g"], p["dw_b"], "silu")    # shared dw_conv
    A2_prime = conv_bn_act(x2[:, c:], p["dw2_w"], c, p["dw2_g"], p["dw2_b"], "silu") # dw_conv2
    A_pool_p = A1_prime.reshape(batch_size, w, c, h, depth).mean(axis=(1, 2, 4))
    A2_pool_p = A2_prime.reshape(batch_size, w, c, h, depth).mean(axis=(1, 2, 4))
    a_prime = linear(jnp.concatenate([A_pool_p, A2_pool_p], axis=1),
                     p["fcap_w"], p["fcap_b"], "relu")
    a_prime_list = [linear(a_prime, wi, bi, "identity") for wi, bi in p["fcap_heads"]]
    B_prime_list = [conv_bn_act(B_prime, wi, 2 * c, gi, bi, "silu")
                    for wi, gi, bi in p["ms2"]]
    B_prime_list = [b.reshape(batch_size, w, 2 * c, h, depth).transpose(0, 4, 2, 3, 1)
                    .reshape(bs_depth, 2 * c, h, w) for b in B_prime_list]

    # ----- spatial attention maps -----
    W_list = [jnp.einsum("bw,bh->bhw", av, apv) for av, apv in zip(a_list, a_prime_list)]

    def expand_attention(wm):
        return jnp.broadcast_to(wm[:, None], (batch_size, depth, h, w)).reshape(-1, 1, h, w)

    X1 = sum(expand_attention(wm) * bv for wm, bv in zip(W_list[:3], B_list))
    X2 = sum(expand_attention(wm) * bv for wm, bv in zip(W_list[3:], B_prime_list))

    A1_final = (jnp.concatenate([A1, A2], axis=1)
                .reshape(batch_size, h, 2 * c, depth, w)
                .transpose(0, 3, 2, 1, 4).reshape(bs_depth, 2 * c, h, w))
    A1_prime_final = (jnp.concatenate([A1_prime, A2_prime], axis=1)
                      .reshape(batch_size, w, 2 * c, h, depth)
                      .transpose(0, 4, 2, 3, 1).reshape(bs_depth, 2 * c, h, w))
    X1_concat = A1_final + X1
    X2_concat = A1_prime_final + X2

    def channel_attention(t, wi, bi):
        att = ca_fc(jnp.mean(t, axis=(2, 3)), wi, bi)   # AdaptiveAvgPool2d(1) + fc + sigmoid
        return t * att[:, :, None, None]

    X1_concat = channel_attention(X1_concat, p["ca_hd_w"], p["ca_hd_b"])
    X2_concat = channel_attention(X2_concat, p["ca_dw_w"], p["ca_dw_b"])
    X3 = channel_attention(x, p["ca_hw_w"], p["ca_hw_b"])
    return X1_concat + X2_concat + X3


# ----------------------------------------------------------------------------
# parameter construction + test
# ----------------------------------------------------------------------------
def init_params(key, c, c_out, hw):
    it = iter(jax.random.split(key, 64))

    def nrm(shape, s):
        return s * jax.random.normal(next(it), shape)

    def bn(ch):
        return 1.0 + 0.1 * nrm((ch,), 1.0), nrm((ch,), 0.05)

    p = {}
    p["wh1_w"] = nrm((c_out, c, 1, 1), 0.3)
    p["wh1_g"], p["wh1_b"] = bn(c_out)
    p["wh2_w"] = nrm((c_out, 1, 3, 3), 0.3)
    p["wh2_g"], p["wh2_b"] = bn(c_out)
    for name in ("dw", "dw1", "dw2"):
        p[f"{name}_w"] = nrm((c, 1, 3, 3), 0.3)
        p[f"{name}_g"], p[f"{name}_b"] = bn(c)
    p["fca_w"] = nrm((256, 2 * hw), 0.2)
    p["fca_b"] = nrm((256,), 0.05)
    p["fca_heads"] = [(nrm((hw, 256), 0.08), nrm((hw,), 0.05)) for _ in range(4)]
    p["ms1"] = [(nrm((2 * c, 1, 3, 3), 0.3),) + bn(2 * c),
                (nrm((2 * c, 1, 5, 5), 0.3),) + bn(2 * c)]
    p["fcap_w"] = nrm((256, 2 * hw), 0.2)
    p["fcap_b"] = nrm((256,), 0.05)
    p["fcap_heads"] = [(nrm((hw, 256), 0.08), nrm((hw,), 0.05)) for _ in range(4)]
    p["ms2"] = [(nrm((2 * c, 1, 3, 3), 0.3),) + bn(2 * c),
                (nrm((2 * c, 1, 5, 5), 0.3),) + bn(2 * c)]
    for name in ("ca_hd", "ca_dw", "ca_hw"):
        p[f"{name}_w"] = nrm((c_out, c_out, 1, 1), 0.3)
        p[f"{name}_b"] = nrm((c_out,), 0.1)
    return p


if __name__ == "__main__":
    # CRA(c=4, c_out=8, h=16, w=16, depth=6); training mode -> bs_depth = 1 * 6.
    C, C_OUT, H, W, DEPTH = 4, 8, 16, 16, 6
    key = jax.random.PRNGKey(0)
    kx, kp = jax.random.split(key)
    x = jax.random.normal(kx, (DEPTH, C, H, W), jnp.float32)
    params = init_params(kp, C, C_OUT, H // 2)

    fwd = jax.jit(functools.partial(cra_forward, ops=PALLAS_OPS, depth=DEPTH, c=C))
    out = jax.block_until_ready(fwd(x, params))

    ref = cra_forward(x, params, REF_OPS, DEPTH, C)

    assert out.shape == (DEPTH, C_OUT, H // 2, W // 2), out.shape
    # bf16 conv-GEMM operands vs. a pure-f32 reference across ~5 stacked conv/BN
    # stages: check the max error normalized by the output magnitude.
    err = float(jnp.max(jnp.abs(out - ref)) / (jnp.max(jnp.abs(ref)) + 1e-6))
    assert err < 6e-2, f"normalized max error too large: {err}"
    print("KERNEL_OK")
</pallas_src>

<mosaic_0001>
module attributes {stable_mosaic.version = 11 : i64} {
  func.func @_gemm_stats_kernel(%arg0: i32, %arg1: memref<512x4xbf16, #tpu.memory_space<vmem>>, %arg2: memref<4x128xbf16, #tpu.memory_space<vmem>>, %arg3: memref<512x128xf32, #tpu.memory_space<vmem>>, %arg4: memref<1x128xf32, #tpu.memory_space<vmem>>, %arg5: memref<1x128xf32, #tpu.memory_space<vmem>>, %arg6: memref<1x128xf32, #tpu.memory_space<vmem>>, %arg7: memref<1x128xf32, #tpu.memory_space<vmem>>) attributes {dimension_semantics = [#tpu.dimension_semantics<arbitrary>], iteration_bounds = array<i64: 3>, scalar_prefetch = 0 : i64, scratch_operands = 2 : i64, tpu.core_type = #tpu.core_type<tc>, window_params = [{transform_indices = @transform_0, window_bounds = array<i64: 512, 4>}, {pipeline_mode = #tpu.pipeline_mode<synchronous>, transform_indices = @transform_1, window_bounds = array<i64: 4, 128>}, {transform_indices = @transform_2, window_bounds = array<i64: 512, 128>}, {pipeline_mode = #tpu.pipeline_mode<synchronous>, transform_indices = @transform_3, window_bounds = array<i64: 1, 128>}, {pipeline_mode = #tpu.pipeline_mode<synchronous>, transform_indices = @transform_4, window_bounds = array<i64: 1, 128>}]} {
    %c0_i32 = arith.constant 0 : i32
    %0 = arith.cmpi eq, %arg0, %c0_i32 : i32
    %1 = arith.extui %0 : i1 to i32
    %c0_i32_0 = arith.constant 0 : i32
    %2 = arith.cmpi ne, %1, %c0_i32_0 : i32
    scf.if %2 {
      %cst_17 = arith.constant 0.000000e+00 : f32
      %21 = vector.broadcast %cst_17 : f32 to vector<1x128xf32>
      %c0_18 = arith.constant 0 : index
      %c0_19 = arith.constant 0 : index
      %22 = vector.load %arg6[%c0_18, %c0_19] : memref<1x128xf32, #tpu.memory_space<vmem>>, vector<1x128xf32>
      tpu.vector_store %arg6[%c0_18, %c0_19], %21 {strides = array<i32>} : memref<1x128xf32, #tpu.memory_space<vmem>>, vector<1x128xf32>,
      %cst_20 = arith.constant 0.000000e+00 : f32
      %23 = vector.broadcast %cst_20 : f32 to vector<1x128xf32>
      %c0_21 = arith.constant 0 : index
      %c0_22 = arith.constant 0 : index
      %24 = vector.load %arg7[%c0_21, %c0_22] : memref<1x128xf32, #tpu.memory_space<vmem>>, vector<1x128xf32>
      tpu.vector_store %arg7[%c0_21, %c0_22], %23 {strides = array<i32>} : memref<1x128xf32, #tpu.memory_space<vmem>>, vector<1x128xf32>,
    } else {
    }
    %c0 = arith.constant 0 : index
    %c0_1 = arith.constant 0 : index
    %3 = vector.load %arg1[%c0, %c0_1] : memref<512x4xbf16, #tpu.memory_space<vmem>>, vector<512x4xbf16>
    %c0_2 = arith.constant 0 : index
    %c0_3 = arith.constant 0 : index
    %4 = vector.load %arg2[%c0_2, %c0_3] : memref<4x128xbf16, #tpu.memory_space<vmem>>, vector<4x128xbf16>
    %cst = arith.constant dense<0.000000e+00> : vector<512x128xf32>
    %5 = tpu.matmul %3, %4, %cst {dimension_numbers = #tpu.dot_dimension_numbers<[1], [0], [0], [1], [0, 0, 1, 1], [], []>} : vector<512x4xbf16>, vector<4x128xbf16>, vector<512x128xf32> -> vector<512x128xf32>
    %c0_4 = arith.constant 0 : index
    %c0_5 = arith.constant 0 : index
    %6 = vector.load %arg3[%c0_4, %c0_5] : memref<512x128xf32, #tpu.memory_space<vmem>>, vector<512x128xf32>
    tpu.vector_store %arg3[%c0_4, %c0_5], %5 {strides = array<i32>} : memref<512x128xf32, #tpu.memory_space<vmem>>, vector<512x128xf32>,
    %c0_6 = arith.constant 0 : index
    %c0_7 = arith.constant 0 : index
    %7 = vector.load %arg6[%c0_6, %c0_7] : memref<1x128xf32, #tpu.memory_space<vmem>>, vector<1x128xf32>
    %cst_8 = arith.constant dense<0.000000e+00> : vector<128xf32>
    %8 = vector.multi_reduction <add>, %5, %cst_8 [0] : vector<512x128xf32> to vector<128xf32>
    %9 = vector.shape_cast %8 : vector<128xf32> to vector<1x128xf32>
    %10 = arith.addf %7, %9 : vector<1x128xf32>
    %c0_9 = arith.constant 0 : index
    %c0_10 = arith.constant 0 : index
    %11 = vector.load %arg6[%c0_9, %c0_10] : memref<1x128xf32, #tpu.memory_space<vmem>>, vector<1x128xf32>
    tpu.vector_store %arg6[%c0_9, %c0_10], %10 {strides = array<i32>} : memref<1x128xf32, #tpu.memory_space<vmem>>, vector<1x128xf32>,
    %c0_11 = arith.constant 0 : index
    %c0_12 = arith.constant 0 : index
    %12 = vector.load %arg7[%c0_11, %c0_12] : memref<1x128xf32, #tpu.memory_space<vmem>>, vector<1x128xf32>
    %13 = arith.mulf %5, %5 : vector<512x128xf32>
    %cst_13 = arith.constant dense<0.000000e+00> : vector<128xf32>
    %14 = vector.multi_reduction <add>, %13, %cst_13 [0] : vector<512x128xf32> to vector<128xf32>
    %15 = vector.shape_cast %14 : vector<128xf32> to vector<1x128xf32>
    %16 = arith.addf %12, %15 : vector<1x128xf32>
    %c0_14 = arith.constant 0 : index
    %c0_15 = arith.constant 0 : index
    %17 = vector.load %arg7[%c0_14, %c0_15] : memref<1x128xf32, #tpu.memory_space<vmem>>, vector<1x128xf32>
    tpu.vector_store %arg7[%c0_14, %c0_15], %16 {strides = array<i32>} : memref<1x128xf32, #tpu.memory_space<vmem>>, vector<1x128xf32>,
    %c2_i32 = arith.constant 2 : i32
    %18 = arith.cmpi eq, %arg0, %c2_i32 : i32
    %19 = arith.extui %18 : i1 to i32
    %c0_i32_16 = arith.constant 0 : i32
    %20 = arith.cmpi ne, %19, %c0_i32_16 : i32
    scf.if %20 {
      %c0_17 = arith.constant 0 : index
      %c0_18 = arith.constant 0 : index
      %21 = vector.load %arg6[%c0_17, %c0_18] : memref<1x128xf32, #tpu.memory_space<vmem>>, vector<1x128xf32>
      %c0_19 = arith.constant 0 : index
      %c0_20 = arith.constant 0 : index
      %22 = vector.load %arg4[%c0_19, %c0_20] : memref<1x128xf32, #tpu.memory_space<vmem>>, vector<1x128xf32>
      tpu.vector_store %arg4[%c0_19, %c0_20], %21 {strides = array<i32>} : memref<1x128xf32, #tpu.memory_space<vmem>>, vector<1x128xf32>,
      %c0_21 = arith.constant 0 : index
      %c0_22 = arith.constant 0 : index
      %23 = vector.load %arg7[%c0_21, %c0_22] : memref<1x128xf32, #tpu.memory_space<vmem>>, vector<1x128xf32>
      %c0_23 = arith.constant 0 : index
      %c0_24 = arith.constant 0 : index
      %24 = vector.load %arg5[%c0_23, %c0_24] : memref<1x128xf32, #tpu.memory_space<vmem>>, vector<1x128xf32>
      tpu.vector_store %arg5[%c0_23, %c0_24], %23 {strides = array<i32>} : memref<1x128xf32, #tpu.memory_space<vmem>>, vector<1x128xf32>,
    } else {
    }
    return
  }
  func.func @transform_0(%arg0: i32) -> (i32, i32) {
    %c0_i32 = arith.constant 0 : i32
    %c0_i32_0 = arith.constant 0 : i32
    return %arg0, %c0_i32 : i32, i32
  }
  func.func @transform_1(%arg0: i32) -> (i32, i32) {
    %c0_i32 = arith.constant 0 : i32
    %c0_i32_0 = arith.constant 0 : i32
    %c0_i32_1 = arith.constant 0 : i32
    return %c0_i32, %c0_i32_0 : i32, i32
  }
  func.func @transform_2(%arg0: i32) -> (i32, i32) {
    %c0_i32 = arith.constant 0 : i32
    %c0_i32_0 = arith.constant 0 : i32
    return %arg0, %c0_i32 : i32, i32
  }
  func.func @transform_3(%arg0: i32) -> (i32, i32) {
    %c0_i32 = arith.constant 0 : i32
    %c0_i32_0 = arith.constant 0 : i32
    %c0_i32_1 = arith.constant 0 : i32
    return %c0_i32, %c0_i32_0 : i32, i32
  }
  func.func @transform_4(%arg0: i32) -> (i32, i32) {
    %c0_i32 = arith.constant 0 : i32
    %c0_i32_0 = arith.constant 0 : i32
    %c0_i32_1 = arith.constant 0 : i32
    return %c0_i32, %c0_i32_0 : i32, i32
  }
}

module attributes {stable_mosaic.version = 11 : i64} {
  func.func @_affine_act_kernel(%arg0: i32, %arg1: memref<512x128xf32, #tpu.memory_space<vmem>>, %arg2: memref<2x128xf32, #tpu.memory_space<vmem>>, %arg3: memref<512x128xf32, #tpu.memory_space<vmem>>) attributes {dimension_semantics = [#tpu.dimension_semantics<parallel>], iteration_bounds = array<i64: 3>, scalar_prefetch = 0 : i64, scratch_operands = 0 : i64, tpu.core_type = #tpu.core_type<tc>, window_params = [{transform_indices = @transform_0, window_bounds = array<i64: 512, 128>}, {pipeline_mode = #tpu.pipeline_mode<synchronous>, transform_indices = @transform_1, window_bounds = array<i64: 2, 128>}, {transform_indices = @transform_2, window_bounds = array<i64: 512, 128>}]} {
    %c0 = arith.constant 0 : index
    %c0_0 = arith.constant 0 : index
    %0 = vector.load %arg1[%c0, %c0_0] : memref<512x128xf32, #tpu.memory_space<vmem>>, vector<512x128xf32>
    %c0_1 = arith.constant 0 : index
    %c0_2 = arith.constant 0 : index
    %1 = vector.load %arg2[%c0_1, %c0_2] : memref<2x128xf32, #tpu.memory_space<vmem>>, vector<1x128xf32>
    %2 = vector.broadcast %1 : vector<1x128xf32> to vector<512x128xf32>
    %3 = arith.mulf %0, %2 : vector<512x128xf32>
    %c1 = arith.constant 1 : index
    %c0_3 = arith.constant 0 : index
    %4 = vector.load %arg2[%c1, %c0_3] : memref<2x128xf32, #tpu.memory_space<vmem>>, vector<1x128xf32>
    %5 = vector.broadcast %4 : vector<1x128xf32> to vector<512x128xf32>
    %6 = arith.addf %3, %5 : vector<512x128xf32>
    %c0_4 = arith.constant 0 : index
    %c0_5 = arith.constant 0 : index
    %7 = vector.load %arg3[%c0_4, %c0_5] : memref<512x128xf32, #tpu.memory_space<vmem>>, vector<512x128xf32>
    tpu.vector_store %arg3[%c0_4, %c0_5], %6 {strides = array<i32>} : memref<512x128xf32, #tpu.memory_space<vmem>>, vector<512x128xf32>,
    return
  }
  func.func @transform_0(%arg0: i32) -> (i32, i32) {
    %c0_i32 = arith.constant 0 : i32
    %c0_i32_0 = arith.constant 0 : i32
    return %arg0, %c0_i32 : i32, i32
  }
  func.func @transform_1(%arg0: i32) -> (i32, i32) {
    %c0_i32 = arith.constant 0 : i32
    %c0_i32_0 = arith.constant 0 : i32
    %c0_i32_1 = arith.constant 0 : i32
    return %c0_i32, %c0_i32_0 : i32, i32
  }
  func.func @transform_2(%arg0: i32) -> (i32, i32) {
    %c0_i32 = arith.constant 0 : i32
    %c0_i32_0 = arith.constant 0 : i32
    return %arg0, %c0_i32 : i32, i32
  }
}

module attributes {stable_mosaic.version = 11 : i64} {
  func.func @_gemm_stats_kernel(%arg0: i32, %arg1: memref<512x72xbf16, #tpu.memory_space<vmem>>, %arg2: memref<72x128xbf16, #tpu.memory_space<vmem>>, %arg3: memref<512x128xf32, #tpu.memory_space<vmem>>, %arg4: memref<1x128xf32, #tpu.memory_space<vmem>>, %arg5: memref<1x128xf32, #tpu.memory_space<vmem>>, %arg6: memref<1x128xf32, #tpu.memory_space<vmem>>, %arg7: memref<1x128xf32, #tpu.memory_space<vmem>>) attributes {dimension_semantics = [#tpu.dimension_semantics<arbitrary>], iteration_bounds = array<i64: 3>, scalar_prefetch = 0 : i64, scratch_operands = 2 : i64, tpu.core_type = #tpu.core_type<tc>, window_params = [{transform_indices = @transform_0, window_bounds = array<i64: 512, 72>}, {pipeline_mode = #tpu.pipeline_mode<synchronous>, transform_indices = @transform_1, window_bounds = array<i64: 72, 128>}, {transform_indices = @transform_2, window_bounds = array<i64: 512, 128>}, {pipeline_mode = #tpu.pipeline_mode<synchronous>, transform_indices = @transform_3, window_bounds = array<i64: 1, 128>}, {pipeline_mode = #tpu.pipeline_mode<synchronous>, transform_indices = @transform_4, window_bounds = array<i64: 1, 128>}]} {
    %c0_i32 = arith.constant 0 : i32
    %0 = arith.cmpi eq, %arg0, %c0_i32 : i32
    %1 = arith.extui %0 : i1 to i32
    %c0_i32_0 = arith.constant 0 : i32
    %2 = arith.cmpi ne, %1, %c0_i32_0 : i32
    scf.if %2 {
      %cst_17 = arith.constant 0.000000e+00 : f32
      %21 = vector.broadcast %cst_17 : f32 to vector<1x128xf32>
      %c0_18 = arith.constant 0 : index
      %c0_19 = arith.constant 0 : index
      %22 = vector.load %arg6[%c0_18, %c0_19] : memref<1x128xf32, #tpu.memory_space<vmem>>, vector<1x128xf32>
      tpu.vector_store %arg6[%c0_18, %c0_19], %21 {strides = array<i32>} : memref<1x128xf32, #tpu.memory_space<vmem>>, vector<1x128xf32>,
      %cst_20 = arith.constant 0.000000e+00 : f32
      %23 = vector.broadcast %cst_20 : f32 to vector<1x128xf32>
      %c0_21 = arith.constant 0 : index
      %c0_22 = arith.constant 0 : index
      %24 = vector.load %arg7[%c0_21, %c0_22] : memref<1x128xf32, #tpu.memory_space<vmem>>, vector<1x128xf32>
      tpu.vector_store %arg7[%c0_21, %c0_22], %23 {strides = array<i32>} : memref<1x128xf32, #tpu.memory_space<vmem>>, vector<1x128xf32>,
    } else {
    }
    %c0 = arith.constant 0 : index
    %c0_1 = arith.constant 0 : index
    %3 = vector.load %arg1[%c0, %c0_1] : memref<512x72xbf16, #tpu.memory_space<vmem>>, vector<512x72xbf16>
    %c0_2 = arith.constant 0 : index
    %c0_3 = arith.constant 0 : index
    %4 = vector.load %arg2[%c0_2, %c0_3] : memref<72x128xbf16, #tpu.memory_space<vmem>>, vector<72x128xbf16>
    %cst = arith.constant dense<0.000000e+00> : vector<512x128xf32>
    %5 = tpu.matmul %3, %4, %cst {dimension_numbers = #tpu.dot_dimension_numbers<[1], [0], [0], [1], [0, 0, 1, 1], [], []>} : vector<512x72xbf16>, vector<72x128xbf16>, vector<512x128xf32> -> vector<512x128xf32>
    %c0_4 = arith.constant 0 : index
    %c0_5 = arith.constant 0 : index
    %6 = vector.load %arg3[%c0_4, %c0_5] : memref<512x128xf32, #tpu.memory_space<vmem>>, vector<512x128xf32>
    tpu.vector_store %arg3[%c0_4, %c0_5], %5 {strides = array<i32>} : memref<512x128xf32, #tpu.memory_space<vmem>>, vector<512x128xf32>,
    %c0_6 = arith.constant 0 : index
    %c0_7 = arith.constant 0 : index
    %7 = vector.load %arg6[%c0_6, %c0_7] : memref<1x128xf32, #tpu.memory_space<vmem>>, vector<1x128xf32>
    %cst_8 = arith.constant dense<0.000000e+00> : vector<128xf32>
    %8 = vector.multi_reduction <add>, %5, %cst_8 [0] : vector<512x128xf32> to vector<128xf32>
    %9 = vector.shape_cast %8 : vector<128xf32> to vector<1x128xf32>
    %10 = arith.addf %7, %9 : vector<1x128xf32>
    %c0_9 = arith.constant 0 : index
    %c0_10 = arith.constant 0 : index
    %11 = vector.load %arg6[%c0_9, %c0_10] : memref<1x128xf32, #tpu.memory_space<vmem>>, vector<1x128xf32>
    tpu.vector_store %arg6[%c0_9, %c0_10], %10 {strides = array<i32>} : memref<1x128xf32, #tpu.memory_space<vmem>>, vector<1x128xf32>,
    %c0_11 = arith.constant 0 : index
    %c0_12 = arith.constant 0 : index
    %12 = vector.load %arg7[%c0_11, %c0_12] : memref<1x128xf32, #tpu.memory_space<vmem>>, vector<1x128xf32>
    %13 = arith.mulf %5, %5 : vector<512x128xf32>
    %cst_13 = arith.constant dense<0.000000e+00> : vector<128xf32>
    %14 = vector.multi_reduction <add>, %13, %cst_13 [0] : vector<512x128xf32> to vector<128xf32>
    %15 = vector.shape_cast %14 : vector<128xf32> to vector<1x128xf32>
    %16 = arith.addf %12, %15 : vector<1x128xf32>
    %c0_14 = arith.constant 0 : index
    %c0_15 = arith.constant 0 : index
    %17 = vector.load %arg7[%c0_14, %c0_15] : memref<1x128xf32, #tpu.memory_space<vmem>>, vector<1x128xf32>
    tpu.vector_store %arg7[%c0_14, %c0_15], %16 {strides = array<i32>} : memref<1x128xf32, #tpu.memory_space<vmem>>, vector<1x128xf32>,
    %c2_i32 = arith.constant 2 : i32
    %18 = arith.cmpi eq, %arg0, %c2_i32 : i32
    %19 = arith.extui %18 : i1 to i32
    %c0_i32_16 = arith.constant 0 : i32
    %20 = arith.cmpi ne, %19, %c0_i32_16 : i32
    scf.if %20 {
      %c0_17 = arith.constant 0 : index
      %c0_18 = arith.constant 0 : index
      %21 = vector.load %arg6[%c0_17, %c0_18] : memref<1x128xf32, #tpu.memory_space<vmem>>, vector<1x128xf32>
      %c0_19 = arith.constant 0 : index
      %c0_20 = arith.constant 0 : index
      %22 = vector.load %arg4[%c0_19, %c0_20] : memref<1x128xf32, #tpu.memory_space<vmem>>, vector<1x128xf32>
      tpu.vector_store %arg4[%c0_19, %c0_20], %21 {strides = array<i32>} : memref<1x128xf32, #tpu.memory_space<vmem>>, vector<1x128xf32>,
      %c0_21 = arith.constant 0 : index
      %c0_22 = arith.constant 0 : index
      %23 = vector.load %arg7[%c0_21, %c0_22] : memref<1x128xf32, #tpu.memory_space<vmem>>, vector<1x128xf32>
      %c0_23 = arith.constant 0 : index
      %c0_24 = arith.constant 0 : index
      %24 = vector.load %arg5[%c0_23, %c0_24] : memref<1x128xf32, #tpu.memory_space<vmem>>, vector<1x128xf32>
      tpu.vector_store %arg5[%c0_23, %c0_24], %23 {strides = array<i32>} : memref<1x128xf32, #tpu.memory_space<vmem>>, vector<1x128xf32>,
    } else {
    }
    return
  }
  func.func @transform_0(%arg0: i32) -> (i32, i32) {
    %c0_i32 = arith.constant 0 : i32
    %c0_i32_0 = arith.constant 0 : i32
    return %arg0, %c0_i32 : i32, i32
  }
  func.func @transform_1(%arg0: i32) -> (i32, i32) {
    %c0_i32 = arith.constant 0 : i32
    %c0_i32_0 = arith.constant 0 : i32
    %c0_i32_1 = arith.constant 0 : i32
    return %c0_i32, %c0_i32_0 : i32, i32
  }
  func.func @transform_2(%arg0: i32) -> (i32, i32) {
    %c0_i32 = arith.constant 0 : i32
    %c0_i32_0 = arith.constant 0 : i32
    return %arg0, %c0_i32 : i32, i32
  }
  func.func @transform_3(%arg0: i32) -> (i32, i32) {
    %c0_i32 = arith.constant 0 : i32
    %c0_i32_0 = arith.constant 0 : i32
    %c0_i32_1 = arith.constant 0 : i32
    return %c0_i32, %c0_i32_0 : i32, i32
  }
  func.func @transform_4(%arg0: i32) -> (i32, i32) {
    %c0_i32 = arith.constant 0 : i32
    %c0_i32_0 = arith.constant 0 : i32
    %c0_i32_1 = arith.constant 0 : i32
    return %c0_i32, %c0_i32_0 : i32, i32
  }
}

module attributes {stable_mosaic.version = 11 : i64} {
  func.func @_affine_act_kernel(%arg0: i32, %arg1: memref<512x128xf32, #tpu.memory_space<vmem>>, %arg2: memref<2x128xf32, #tpu.memory_space<vmem>>, %arg3: memref<512x128xf32, #tpu.memory_space<vmem>>) attributes {dimension_semantics = [#tpu.dimension_semantics<parallel>], iteration_bounds = array<i64: 3>, scalar_prefetch = 0 : i64, scratch_operands = 0 : i64, tpu.core_type = #tpu.core_type<tc>, window_params = [{transform_indices = @transform_0, window_bounds = array<i64: 512, 128>}, {pipeline_mode = #tpu.pipeline_mode<synchronous>, transform_indices = @transform_1, window_bounds = array<i64: 2, 128>}, {transform_indices = @transform_2, window_bounds = array<i64: 512, 128>}]} {
    %c0 = arith.constant 0 : index
    %c0_0 = arith.constant 0 : index
    %0 = vector.load %arg1[%c0, %c0_0] : memref<512x128xf32, #tpu.memory_space<vmem>>, vector<512x128xf32>
    %c0_1 = arith.constant 0 : index
    %c0_2 = arith.constant 0 : index
    %1 = vector.load %arg2[%c0_1, %c0_2] : memref<2x128xf32, #tpu.memory_space<vmem>>, vector<1x128xf32>
    %2 = vector.broadcast %1 : vector<1x128xf32> to vector<512x128xf32>
    %3 = arith.mulf %0, %2 : vector<512x128xf32>
    %c1 = arith.constant 1 : index
    %c0_3 = arith.constant 0 : index
    %4 = vector.load %arg2[%c1, %c0_3] : memref<2x128xf32, #tpu.memory_space<vmem>>, vector<1x128xf32>
    %5 = vector.broadcast %4 : vector<1x128xf32> to vector<512x128xf32>
    %6 = arith.addf %3, %5 : vector<512x128xf32>
    %cst = arith.constant 0.000000e+00 : f32
    %7 = vector.broadcast %cst : f32 to vector<512x128xf32>
    %8 = arith.maximumf %6, %7 : vector<512x128xf32>
    %c0_4 = arith.constant 0 : index
    %c0_5 = arith.constant 0 : index
    %9 = vector.load %arg3[%c0_4, %c0_5] : memref<512x128xf32, #tpu.memory_space<vmem>>, vector<512x128xf32>
    tpu.vector_store %arg3[%c0_4, %c0_5], %8 {strides = array<i32>} : memref<512x128xf32, #tpu.memory_space<vmem>>, vector<512x128xf32>,
    return
  }
  func.func @transform_0(%arg0: i32) -> (i32, i32) {
    %c0_i32 = arith.constant 0 : i32
    %c0_i32_0 = arith.constant 0 : i32
    return %arg0, %c0_i32 : i32, i32
  }
  func.func @transform_1(%arg0: i32) -> (i32, i32) {
    %c0_i32 = arith.constant 0 : i32
    %c0_i32_0 = arith.constant 0 : i32
    %c0_i32_1 = arith.constant 0 : i32
    return %c0_i32, %c0_i32_0 : i32, i32
  }
  func.func @transform_2(%arg0: i32) -> (i32, i32) {
    %c0_i32 = arith.constant 0 : i32
    %c0_i32_0 = arith.constant 0 : i32
    return %arg0, %c0_i32 : i32, i32
  }
}

module attributes {stable_mosaic.version = 11 : i64} {
  func.func @_gemm_affine_act_kernel(%arg0: i32, %arg1: memref<384x72xbf16, #tpu.memory_space<vmem>>, %arg2: memref<72x128xbf16, #tpu.memory_space<vmem>>, %arg3: memref<2x128xf32, #tpu.memory_space<vmem>>, %arg4: memref<384x128xf32, #tpu.memory_space<vmem>>) attributes {dimension_semantics = [#tpu.dimension_semantics<parallel>], iteration_bounds = array<i64: 1>, scalar_prefetch = 0 : i64, scratch_operands = 0 : i64, tpu.core_type = #tpu.core_type<tc>, window_params = [{transform_indices = @transform_0, window_bounds = array<i64: 384, 72>}, {pipeline_mode = #tpu.pipeline_mode<synchronous>, transform_indices = @transform_1, window_bounds = array<i64: 72, 128>}, {pipeline_mode = #tpu.pipeline_mode<synchronous>, transform_indices = @transform_2, window_bounds = array<i64: 2, 128>}, {transform_indices = @transform_3, window_bounds = array<i64: 384, 128>}]} {
    %c0 = arith.constant 0 : index
    %c0_0 = arith.constant 0 : index
    %0 = vector.load %arg1[%c0, %c0_0] : memref<384x72xbf16, #tpu.memory_space<vmem>>, vector<384x72xbf16>
    %c0_1 = arith.constant 0 : index
    %c0_2 = arith.constant 0 : index
    %1 = vector.load %arg2[%c0_1, %c0_2] : memref<72x128xbf16, #tpu.memory_space<vmem>>, vector<72x128xbf16>
    %cst = arith.constant dense<0.000000e+00> : vector<384x128xf32>
    %2 = tpu.matmul %0, %1, %cst {dimension_numbers = #tpu.dot_dimension_numbers<[1], [0], [0], [1], [0, 0, 1, 1], [], []>} : vector<384x72xbf16>, vector<72x128xbf16>, vector<384x128xf32> -> vector<384x128xf32>
    %c0_3 = arith.constant 0 : index
    %c0_4 = arith.constant 0 : index
    %3 = vector.load %arg3[%c0_3, %c0_4] : memref<2x128xf32, #tpu.memory_space<vmem>>, vector<1x128xf32>
    %4 = vector.broadcast %3 : vector<1x128xf32> to vector<384x128xf32>
    %5 = arith.mulf %2, %4 : vector<384x128xf32>
    %c1 = arith.constant 1 : index
    %c0_5 = arith.constant 0 : index
    %6 = vector.load %arg3[%c1, %c0_5] : memref<2x128xf32, #tpu.memory_space<vmem>>, vector<1x128xf32>
    %7 = vector.broadcast %6 : vector<1x128xf32> to vector<384x128xf32>
    %8 = arith.addf %5, %7 : vector<384x128xf32>
    %c0_6 = arith.constant 0 : index
    %c0_7 = arith.constant 0 : index
    %9 = vector.load %arg4[%c0_6, %c0_7] : memref<384x128xf32, #tpu.memory_space<vmem>>, vector<384x128xf32>
    tpu.vector_store %arg4[%c0_6, %c0_7], %8 {strides = array<i32>} : memref<384x128xf32, #tpu.memory_space<vmem>>, vector<384x128xf32>,
    return
  }
  func.func @transform_0(%arg0: i32) -> (i32, i32) {
    %c0_i32 = arith.constant 0 : i32
    %c0_i32_0 = arith.constant 0 : i32
    return %arg0, %c0_i32 : i32, i32
  }
  func.func @transform_1(%arg0: i32) -> (i32, i32) {
    %c0_i32 = arith.constant 0 : i32
    %c0_i32_0 = arith.constant 0 : i32
    %c0_i32_1 = arith.constant 0 : i32
    return %c0_i32, %c0_i32_0 : i32, i32
  }
  func.func @transform_2(%arg0: i32) -> (i32, i32) {
    %c0_i32 = arith.constant 0 : i32
    %c0_i32_0 = arith.constant 0 : i32
    %c0_i32_1 = arith.constant 0 : i32
    return %c0_i32, %c0_i32_0 : i32, i32
  }
  func.func @transform_3(%arg0: i32) -> (i32, i32) {
    %c0_i32 = arith.constant 0 : i32
    %c0_i32_0 = arith.constant 0 : i32
    return %arg0, %c0_i32 : i32, i32
  }
}

module attributes {stable_mosaic.version = 11 : i64} {
  func.func @_gemm_stats_kernel(%arg0: i32, %arg1: memref<384x200xbf16, #tpu.memory_space<vmem>>, %arg2: memref<200x128xbf16, #tpu.memory_space<vmem>>, %arg3: memref<384x128xf32, #tpu.memory_space<vmem>>, %arg4: memref<1x128xf32, #tpu.memory_space<vmem>>, %arg5: memref<1x128xf32, #tpu.memory_space<vmem>>, %arg6: memref<1x128xf32, #tpu.memory_space<vmem>>, %arg7: memref<1x128xf32, #tpu.memory_space<vmem>>) attributes {dimension_semantics = [#tpu.dimension_semantics<arbitrary>], iteration_bounds = array<i64: 1>, scalar_prefetch = 0 : i64, scratch_operands = 2 : i64, tpu.core_type = #tpu.core_type<tc>, window_params = [{transform_indices = @transform_0, window_bounds = array<i64: 384, 200>}, {pipeline_mode = #tpu.pipeline_mode<synchronous>, transform_indices = @transform_1, window_bounds = array<i64: 200, 128>}, {transform_indices = @transform_2, window_bounds = array<i64: 384, 128>}, {pipeline_mode = #tpu.pipeline_mode<synchronous>, transform_indices = @transform_3, window_bounds = array<i64: 1, 128>}, {pipeline_mode = #tpu.pipeline_mode<synchronous>, transform_indices = @transform_4, window_bounds = array<i64: 1, 128>}]} {
    %c0_i32 = arith.constant 0 : i32
    %0 = arith.cmpi eq, %arg0, %c0_i32 : i32
    %1 = arith.extui %0 : i1 to i32
    %c0_i32_0 = arith.constant 0 : i32
    %2 = arith.cmpi ne, %1, %c0_i32_0 : i32
    scf.if %2 {
      %cst_18 = arith.constant 0.000000e+00 : f32
      %21 = vector.broadcast %cst_18 : f32 to vector<1x128xf32>
      %c0_19 = arith.constant 0 : index
      %c0_20 = arith.constant 0 : index
      %22 = vector.load %arg6[%c0_19, %c0_20] : memref<1x128xf32, #tpu.memory_space<vmem>>, vector<1x128xf32>
      tpu.vector_store %arg6[%c0_19, %c0_20], %21 {strides = array<i32>} : memref<1x128xf32, #tpu.memory_space<vmem>>, vector<1x128xf32>,
      %cst_21 = arith.constant 0.000000e+00 : f32
      %23 = vector.broadcast %cst_21 : f32 to vector<1x128xf32>
      %c0_22 = arith.constant 0 : index
      %c0_23 = arith.constant 0 : index
      %24 = vector.load %arg7[%c0_22, %c0_23] : memref<1x128xf32, #tpu.memory_space<vmem>>, vector<1x128xf32>
      tpu.vector_store %arg7[%c0_22, %c0_23], %23 {strides = array<i32>} : memref<1x128xf32, #tpu.memory_space<vmem>>, vector<1x128xf32>,
    } else {
    }
    %c0 = arith.constant 0 : index
    %c0_1 = arith.constant 0 : index
    %3 = vector.load %arg1[%c0, %c0_1] : memref<384x200xbf16, #tpu.memory_space<vmem>>, vector<384x200xbf16>
    %c0_2 = arith.constant 0 : index
    %c0_3 = arith.constant 0 : index
    %4 = vector.load %arg2[%c0_2, %c0_3] : memref<200x128xbf16, #tpu.memory_space<vmem>>, vector<200x128xbf16>
    %cst = arith.constant dense<0.000000e+00> : vector<384x128xf32>
    %5 = tpu.matmul %3, %4, %cst {dimension_numbers = #tpu.dot_dimension_numbers<[1], [0], [0], [1], [0, 0, 1, 1], [], []>} : vector<384x200xbf16>, vector<200x128xbf16>, vector<384x128xf32> -> vector<384x128xf32>
    %c0_4 = arith.constant 0 : index
    %c0_5 = arith.constant 0 : index
    %6 = vector.load %arg3[%c0_4, %c0_5] : memref<384x128xf32, #tpu.memory_space<vmem>>, vector<384x128xf32>
    tpu.vector_store %arg3[%c0_4, %c0_5], %5 {strides = array<i32>} : memref<384x128xf32, #tpu.memory_space<vmem>>, vector<384x128xf32>,
    %c0_6 = arith.constant 0 : index
    %c0_7 = arith.constant 0 : index
    %7 = vector.load %arg6[%c0_6, %c0_7] : memref<1x128xf32, #tpu.memory_space<vmem>>, vector<1x128xf32>
    %cst_8 = arith.constant dense<0.000000e+00> : vector<128xf32>
    %8 = vector.multi_reduction <add>, %5, %cst_8 [0] : vector<384x128xf32> to vector<128xf32>
    %9 = vector.shape_cast %8 : vector<128xf32> to vector<1x128xf32>
    %10 = arith.addf %7, %9 : vector<1x128xf32>
    %c0_9 = arith.constant 0 : index
    %c0_10 = arith.constant 0 : index
    %11 = vector.load %arg6[%c0_9, %c0_10] : memref<1x128xf32, #tpu.memory_space<vmem>>, vector<1x128xf32>
    tpu.vector_store %arg6[%c0_9, %c0_10], %10 {strides = array<i32>} : memref<1x128xf32, #tpu.memory_space<vmem>>, vector<1x128xf32>,
    %c0_11 = arith.constant 0 : index
    %c0_12 = arith.constant 0 : index
    %12 = vector.load %arg7[%c0_11, %c0_12] : memref<1x128xf32, #tpu.memory_space<vmem>>, vector<1x128xf32>
    %13 = arith.mulf %5, %5 : vector<384x128xf32>
    %cst_13 = arith.constant dense<0.000000e+00> : vector<128xf32>
    %14 = vector.multi_reduction <add>, %13, %cst_13 [0] : vector<384x128xf32> to vector<128xf32>
    %15 = vector.shape_cast %14 : vector<128xf32> to vector<1x128xf32>
    %16 = arith.addf %12, %15 : vector<1x128xf32>
    %c0_14 = arith.constant 0 : index
    %c0_15 = arith.constant 0 : index
    %17 = vector.load %arg7[%c0_14, %c0_15] : memref<1x128xf32, #tpu.memory_space<vmem>>, vector<1x128xf32>
    tpu.vector_store %arg7[%c0_14, %c0_15], %16 {strides = array<i32>} : memref<1x128xf32, #tpu.memory_space<vmem>>, vector<1x128xf32>,
    %c0_i32_16 = arith.constant 0 : i32
    %18 = arith.cmpi eq, %arg0, %c0_i32_16 : i32
    %19 = arith.extui %18 : i1 to i32
    %c0_i32_17 = arith.constant 0 : i32
    %20 = arith.cmpi ne, %19, %c0_i32_17 : i32
    scf.if %20 {
      %c0_18 = arith.constant 0 : index
      %c0_19 = arith.constant 0 : index
      %21 = vector.load %arg6[%c0_18, %c0_19] : memref<1x128xf32, #tpu.memory_space<vmem>>, vector<1x128xf32>
      %c0_20 = arith.constant 0 : index
      %c0_21 = arith.constant 0 : index
      %22 = vector.load %arg4[%c0_20, %c0_21] : memref<1x128xf32, #tpu.memory_space<vmem>>, vector<1x128xf32>
      tpu.vector_store %arg4[%c0_20, %c0_21], %21 {strides = array<i32>} : memref<1x128xf32, #tpu.memory_space<vmem>>, vector<1x128xf32>,
      %c0_22 = arith.constant 0 : index
      %c0_23 = arith.constant 0 : index
      %23 = vector.load %arg7[%c0_22, %c0_23] : memref<1x128xf32, #tpu.memory_space<vmem>>, vector<1x128xf32>
      %c0_24 = arith.constant 0 : index
      %c0_25 = arith.constant 0 : index
      %24 = vector.load %arg5[%c0_24, %c0_25] : memref<1x128xf32, #tpu.memory_space<vmem>>, vector<1x128xf32>
      tpu.vector_store %arg5[%c0_24, %c0_25], %23 {strides = array<i32>} : memref<1x128xf32, #tpu.memory_space<vmem>>, vector<1x128xf32>,
    } else {
    }
    return
  }
  func.func @transform_0(%arg0: i32) -> (i32, i32) {
    %c0_i32 = arith.constant 0 : i32
    %c0_i32_0 = arith.constant 0 : i32
    return %arg0, %c0_i32 : i32, i32
  }
  func.func @transform_1(%arg0: i32) -> (i32, i32) {
    %c0_i32 = arith.constant 0 : i32
    %c0_i32_0 = arith.constant 0 : i32
    %c0_i32_1 = arith.constant 0 : i32
    return %c0_i32, %c0_i32_0 : i32, i32
  }
  func.func @transform_2(%arg0: i32) -> (i32, i32) {
    %c0_i32 = arith.constant 0 : i32
    %c0_i32_0 = arith.constant 0 : i32
    return %arg0, %c0_i32 : i32, i32
  }
  func.func @transform_3(%arg0: i32) -> (i32, i32) {
    %c0_i32 = arith.constant 0 : i32
    %c0_i32_0 = arith.constant 0 : i32
    %c0_i32_1 = arith.constant 0 : i32
    return %c0_i32, %c0_i32_0 : i32, i32
  }
  func.func @transform_4(%arg0: i32) -> (i32, i32) {
    %c0_i32 = arith.constant 0 : i32
    %c0_i32_0 = arith.constant 0 : i32
    %c0_i32_1 = arith.constant 0 : i32
    return %c0_i32, %c0_i32_0 : i32, i32
  }
}

module attributes {stable_mosaic.version = 11 : i64} {
  func.func @_affine_act_kernel(%arg0: i32, %arg1: memref<384x128xf32, #tpu.memory_space<vmem>>, %arg2: memref<2x128xf32, #tpu.memory_space<vmem>>, %arg3: memref<384x128xf32, #tpu.memory_space<vmem>>) attributes {dimension_semantics = [#tpu.dimension_semantics<parallel>], iteration_bounds = array<i64: 1>, scalar_prefetch = 0 : i64, scratch_operands = 0 : i64, tpu.core_type = #tpu.core_type<tc>, window_params = [{transform_indices = @transform_0, window_bounds = array<i64: 384, 128>}, {pipeline_mode = #tpu.pipeline_mode<synchronous>, transform_indices = @transform_1, window_bounds = array<i64: 2, 128>}, {transform_indices = @transform_2, window_bounds = array<i64: 384, 128>}]} {
    %c0 = arith.constant 0 : index
    %c0_0 = arith.constant 0 : index
    %0 = vector.load %arg1[%c0, %c0_0] : memref<384x128xf32, #tpu.memory_space<vmem>>, vector<384x128xf32>
    %c0_1 = arith.constant 0 : index
    %c0_2 = arith.constant 0 : index
    %1 = vector.load %arg2[%c0_1, %c0_2] : memref<2x128xf32, #tpu.memory_space<vmem>>, vector<1x128xf32>
    %2 = vector.broadcast %1 : vector<1x128xf32> to vector<384x128xf32>
    %3 = arith.mulf %0, %2 : vector<384x128xf32>
    %c1 = arith.constant 1 : index
    %c0_3 = arith.constant 0 : index
    %4 = vector.load %arg2[%c1, %c0_3] : memref<2x128xf32, #tpu.memory_space<vmem>>, vector<1x128xf32>
    %5 = vector.broadcast %4 : vector<1x128xf32> to vector<384x128xf32>
    %6 = arith.addf %3, %5 : vector<384x128xf32>
    %cst = arith.constant 0.000000e+00 : f32
    %7 = vector.broadcast %cst : f32 to vector<384x128xf32>
    %8 = arith.subf %7, %6 : vector<384x128xf32>
    %9 = math.exp %8 : vector<384x128xf32>
    %cst_4 = arith.constant 1.000000e+00 : f32
    %10 = vector.broadcast %cst_4 : f32 to vector<384x128xf32>
    %11 = arith.addf %10, %9 : vector<384x128xf32>
    %cst_5 = arith.constant 1.000000e+00 : f32
    %12 = vector.broadcast %cst_5 : f32 to vector<384x128xf32>
    %13 = arith.divf %12, %11 : vector<384x128xf32>
    %14 = arith.mulf %6, %13 : vector<384x128xf32>
    %c0_6 = arith.constant 0 : index
    %c0_7 = arith.constant 0 : index
    %15 = vector.load %arg3[%c0_6, %c0_7] : memref<384x128xf32, #tpu.memory_space<vmem>>, vector<384x128xf32>
    tpu.vector_store %arg3[%c0_6, %c0_7], %14 {strides = array<i32>} : memref<384x128xf32, #tpu.memory_space<vmem>>, vector<384x128xf32>,
    return
  }
  func.func @transform_0(%arg0: i32) -> (i32, i32) {
    %c0_i32 = arith.constant 0 : i32
    %c0_i32_0 = arith.constant 0 : i32
    return %arg0, %c0_i32 : i32, i32
  }
  func.func @transform_1(%arg0: i32) -> (i32, i32) {
    %c0_i32 = arith.constant 0 : i32
    %c0_i32_0 = arith.constant 0 : i32
    %c0_i32_1 = arith.constant 0 : i32
    return %c0_i32, %c0_i32_0 : i32, i32
  }
  func.func @transform_2(%arg0: i32) -> (i32, i32) {
    %c0_i32 = arith.constant 0 : i32
    %c0_i32_0 = arith.constant 0 : i32
    return %arg0, %c0_i32 : i32, i32
  }
}

module attributes {stable_mosaic.version = 11 : i64} {
  func.func @_gemm_stats_kernel(%arg0: i32, %arg1: memref<384x36xbf16, #tpu.memory_space<vmem>>, %arg2: memref<36x128xbf16, #tpu.memory_space<vmem>>, %arg3: memref<384x128xf32, #tpu.memory_space<vmem>>, %arg4: memref<1x128xf32, #tpu.memory_space<vmem>>, %arg5: memref<1x128xf32, #tpu.memory_space<vmem>>, %arg6: memref<1x128xf32, #tpu.memory_space<vmem>>, %arg7: memref<1x128xf32, #tpu.memory_space<vmem>>) attributes {dimension_semantics = [#tpu.dimension_semantics<arbitrary>], iteration_bounds = array<i64: 1>, scalar_prefetch = 0 : i64, scratch_operands = 2 : i64, tpu.core_type = #tpu.core_type<tc>, window_params = [{transform_indices = @transform_0, window_bounds = array<i64: 384, 36>}, {pipeline_mode = #tpu.pipeline_mode<synchronous>, transform_indices = @transform_1, window_bounds = array<i64: 36, 128>}, {transform_indices = @transform_2, window_bounds = array<i64: 384, 128>}, {pipeline_mode = #tpu.pipeline_mode<synchronous>, transform_indices = @transform_3, window_bounds = array<i64: 1, 128>}, {pipeline_mode = #tpu.pipeline_mode<synchronous>, transform_indices = @transform_4, window_bounds = array<i64: 1, 128>}]} {
    %c0_i32 = arith.constant 0 : i32
    %0 = arith.cmpi eq, %arg0, %c0_i32 : i32
    %1 = arith.extui %0 : i1 to i32
    %c0_i32_0 = arith.constant 0 : i32
    %2 = arith.cmpi ne, %1, %c0_i32_0 : i32
    scf.if %2 {
      %cst_18 = arith.constant 0.000000e+00 : f32
      %21 = vector.broadcast %cst_18 : f32 to vector<1x128xf32>
      %c0_19 = arith.constant 0 : index
      %c0_20 = arith.constant 0 : index
      %22 = vector.load %arg6[%c0_19, %c0_20] : memref<1x128xf32, #tpu.memory_space<vmem>>, vector<1x128xf32>
      tpu.vector_store %arg6[%c0_19, %c0_20], %21 {strides = array<i32>} : memref<1x128xf32, #tpu.memory_space<vmem>>, vector<1x128xf32>,
      %cst_21 = arith.constant 0.000000e+00 : f32
      %23 = vector.broadcast %cst_21 : f32 to vector<1x128xf32>
      %c0_22 = arith.constant 0 : index
      %c0_23 = arith.constant 0 : index
      %24 = vector.load %arg7[%c0_22, %c0_23] : memref<1x128xf32, #tpu.memory_space<vmem>>, vector<1x128xf32>
      tpu.vector_store %arg7[%c0_22, %c0_23], %23 {strides = array<i32>} : memref<1x128xf32, #tpu.memory_space<vmem>>, vector<1x128xf32>,
    } else {
    }
    %c0 = arith.constant 0 : index
    %c0_1 = arith.constant 0 : index
    %3 = vector.load %arg1[%c0, %c0_1] : memref<384x36xbf16, #tpu.memory_space<vmem>>, vector<384x36xbf16>
    %c0_2 = arith.constant 0 : index
    %c0_3 = arith.constant 0 : index
    %4 = vector.load %arg2[%c0_2, %c0_3] : memref<36x128xbf16, #tpu.memory_space<vmem>>, vector<36x128xbf16>
    %cst = arith.constant dense<0.000000e+00> : vector<384x128xf32>
    %5 = tpu.matmul %3, %4, %cst {dimension_numbers = #tpu.dot_dimension_numbers<[1], [0], [0], [1], [0, 0, 1, 1], [], []>} : vector<384x36xbf16>, vector<36x128xbf16>, vector<384x128xf32> -> vector<384x128xf32>
    %c0_4 = arith.constant 0 : index
    %c0_5 = arith.constant 0 : index
    %6 = vector.load %arg3[%c0_4, %c0_5] : memref<384x128xf32, #tpu.memory_space<vmem>>, vector<384x128xf32>
    tpu.vector_store %arg3[%c0_4, %c0_5], %5 {strides = array<i32>} : memref<384x128xf32, #tpu.memory_space<vmem>>, vector<384x128xf32>,
    %c0_6 = arith.constant 0 : index
    %c0_7 = arith.constant 0 : index
    %7 = vector.load %arg6[%c0_6, %c0_7] : memref<1x128xf32, #tpu.memory_space<vmem>>, vector<1x128xf32>
    %cst_8 = arith.constant dense<0.000000e+00> : vector<128xf32>
    %8 = vector.multi_reduction <add>, %5, %cst_8 [0] : vector<384x128xf32> to vector<128xf32>
    %9 = vector.shape_cast %8 : vector<128xf32> to vector<1x128xf32>
    %10 = arith.addf %7, %9 : vector<1x128xf32>
    %c0_9 = arith.constant 0 : index
    %c0_10 = arith.constant 0 : index
    %11 = vector.load %arg6[%c0_9, %c0_10] : memref<1x128xf32, #tpu.memory_space<vmem>>, vector<1x128xf32>
    tpu.vector_store %arg6[%c0_9, %c0_10], %10 {strides = array<i32>} : memref<1x128xf32, #tpu.memory_space<vmem>>, vector<1x128xf32>,
    %c0_11 = arith.constant 0 : index
    %c0_12 = arith.constant 0 : index
    %12 = vector.load %arg7[%c0_11, %c0_12] : memref<1x128xf32, #tpu.memory_space<vmem>>, vector<1x128xf32>
    %13 = arith.mulf %5, %5 : vector<384x128xf32>
    %cst_13 = arith.constant dense<0.000000e+00> : vector<128xf32>
    %14 = vector.multi_reduction <add>, %13, %cst_13 [0] : vector<384x128xf32> to vector<128xf32>
    %15 = vector.shape_cast %14 : vector<128xf32> to vector<1x128xf32>
    %16 = arith.addf %12, %15 : vector<1x128xf32>
    %c0_14 = arith.constant 0 : index
    %c0_15 = arith.constant 0 : index
    %17 = vector.load %arg7[%c0_14, %c0_15] : memref<1x128xf32, #tpu.memory_space<vmem>>, vector<1x128xf32>
    tpu.vector_store %arg7[%c0_14, %c0_15], %16 {strides = array<i32>} : memref<1x128xf32, #tpu.memory_space<vmem>>, vector<1x128xf32>,
    %c0_i32_16 = arith.constant 0 : i32
    %18 = arith.cmpi eq, %arg0, %c0_i32_16 : i32
    %19 = arith.extui %18 : i1 to i32
    %c0_i32_17 = arith.constant 0 : i32
    %20 = arith.cmpi ne, %19, %c0_i32_17 : i32
    scf.if %20 {
      %c0_18 = arith.constant 0 : index
      %c0_19 = arith.constant 0 : index
      %21 = vector.load %arg6[%c0_18, %c0_19] : memref<1x128xf32, #tpu.memory_space<vmem>>, vector<1x128xf32>
      %c0_20 = arith.constant 0 : index
      %c0_21 = arith.constant 0 : index
      %22 = vector.load %arg4[%c0_20, %c0_21] : memref<1x128xf32, #tpu.memory_space<vmem>>, vector<1x128xf32>
      tpu.vector_store %arg4[%c0_20, %c0_21], %21 {strides = array<i32>} : memref<1x128xf32, #tpu.memory_space<vmem>>, vector<1x128xf32>,
      %c0_22 = arith.constant 0 : index
      %c0_23 = arith.constant 0 : index
      %23 = vector.load %arg7[%c0_22, %c0_23] : memref<1x128xf32, #tpu.memory_space<vmem>>, vector<1x128xf32>
      %c0_24 = arith.constant 0 : index
      %c0_25 = arith.constant 0 : index
      %24 = vector.load %arg5[%c0_24, %c0_25] : memref<1x128xf32, #tpu.memory_space<vmem>>, vector<1x128xf32>
      tpu.vector_store %arg5[%c0_24, %c0_25], %23 {strides = array<i32>} : memref<1x128xf32, #tpu.memory_space<vmem>>, vector<1x128xf32>,
    } else {
    }
    return
  }
  func.func @transform_0(%arg0: i32) -> (i32, i32) {
    %c0_i32 = arith.constant 0 : i32
    %c0_i32_0 = arith.constant 0 : i32
    return %arg0, %c0_i32 : i32, i32
  }
  func.func @transform_1(%arg0: i32) -> (i32, i32) {
    %c0_i32 = arith.constant 0 : i32
    %c0_i32_0 = arith.constant 0 : i32
    %c0_i32_1 = arith.constant 0 : i32
    return %c0_i32, %c0_i32_0 : i32, i32
  }
  func.func @transform_2(%arg0: i32) -> (i32, i32) {
    %c0_i32 = arith.constant 0 : i32
    %c0_i32_0 = arith.constant 0 : i32
    return %arg0, %c0_i32 : i32, i32
  }
  func.func @transform_3(%arg0: i32) -> (i32, i32) {
    %c0_i32 = arith.constant 0 : i32
    %c0_i32_0 = arith.constant 0 : i32
    %c0_i32_1 = arith.constant 0 : i32
    return %c0_i32, %c0_i32_0 : i32, i32
  }
  func.func @transform_4(%arg0: i32) -> (i32, i32) {
    %c0_i32 = arith.constant 0 : i32
    %c0_i32_0 = arith.constant 0 : i32
    %c0_i32_1 = arith.constant 0 : i32
    return %c0_i32, %c0_i32_0 : i32, i32
  }
}

module attributes {stable_mosaic.version = 11 : i64} {
  func.func @_gemm_affine_act_kernel(%arg0: i32, %arg1: memref<8x16xf32, #tpu.memory_space<vmem>>, %arg2: memref<16x256xf32, #tpu.memory_space<vmem>>, %arg3: memref<2x256xf32, #tpu.memory_space<vmem>>, %arg4: memref<8x256xf32, #tpu.memory_space<vmem>>) attributes {dimension_semantics = [#tpu.dimension_semantics<parallel>], iteration_bounds = array<i64: 1>, scalar_prefetch = 0 : i64, scratch_operands = 0 : i64, tpu.core_type = #tpu.core_type<tc>, window_params = [{transform_indices = @transform_0, window_bounds = array<i64: 8, 16>}, {pipeline_mode = #tpu.pipeline_mode<synchronous>, transform_indices = @transform_1, window_bounds = array<i64: 16, 256>}, {pipeline_mode = #tpu.pipeline_mode<synchronous>, transform_indices = @transform_2, window_bounds = array<i64: 2, 256>}, {transform_indices = @transform_3, window_bounds = array<i64: 8, 256>}]} {
    %c0 = arith.constant 0 : index
    %c0_0 = arith.constant 0 : index
    %0 = vector.load %arg1[%c0, %c0_0] : memref<8x16xf32, #tpu.memory_space<vmem>>, vector<8x16xf32>
    %c0_1 = arith.constant 0 : index
    %c0_2 = arith.constant 0 : index
    %1 = vector.load %arg2[%c0_1, %c0_2] : memref<16x256xf32, #tpu.memory_space<vmem>>, vector<16x256xf32>
    %cst = arith.constant dense<0.000000e+00> : vector<8x256xf32>
    %2 = tpu.matmul %0, %1, %cst {dimension_numbers = #tpu.dot_dimension_numbers<[1], [0], [0], [1], [0, 0, 1, 1], [], []>} : vector<8x16xf32>, vector<16x256xf32>, vector<8x256xf32> -> vector<8x256xf32>
    %c0_3 = arith.constant 0 : index
    %c0_4 = arith.constant 0 : index
    %3 = vector.load %arg3[%c0_3, %c0_4] : memref<2x256xf32, #tpu.memory_space<vmem>>, vector<1x256xf32>
    %4 = vector.broadcast %3 : vector<1x256xf32> to vector<8x256xf32>
    %5 = arith.mulf %2, %4 : vector<8x256xf32>
    %c1 = arith.constant 1 : index
    %c0_5 = arith.constant 0 : index
    %6 = vector.load %arg3[%c1, %c0_5] : memref<2x256xf32, #tpu.memory_space<vmem>>, vector<1x256xf32>
    %7 = vector.broadcast %6 : vector<1x256xf32> to vector<8x256xf32>
    %8 = arith.addf %5, %7 : vector<8x256xf32>
    %cst_6 = arith.constant 0.000000e+00 : f32
    %9 = vector.broadcast %cst_6 : f32 to vector<8x256xf32>
    %10 = arith.maximumf %8, %9 : vector<8x256xf32>
    %c0_7 = arith.constant 0 : index
    %c0_8 = arith.constant 0 : index
    %11 = vector.load %arg4[%c0_7, %c0_8] : memref<8x256xf32, #tpu.memory_space<vmem>>, vector<8x256xf32>
    tpu.vector_store %arg4[%c0_7, %c0_8], %10 {strides = array<i32>} : memref<8x256xf32, #tpu.memory_space<vmem>>, vector<8x256xf32>,
    return
  }
  func.func @transform_0(%arg0: i32) -> (i32, i32) {
    %c0_i32 = arith.constant 0 : i32
    %c0_i32_0 = arith.constant 0 : i32
    return %arg0, %c0_i32 : i32, i32
  }
  func.func @transform_1(%arg0: i32) -> (i32, i32) {
    %c0_i32 = arith.constant 0 : i32
    %c0_i32_0 = arith.constant 0 : i32
    %c0_i32_1 = arith.constant 0 : i32
    return %c0_i32, %c0_i32_0 : i32, i32
  }
  func.func @transform_2(%arg0: i32) -> (i32, i32) {
    %c0_i32 = arith.constant 0 : i32
    %c0_i32_0 = arith.constant 0 : i32
    %c0_i32_1 = arith.constant 0 : i32
    return %c0_i32, %c0_i32_0 : i32, i32
  }
  func.func @transform_3(%arg0: i32) -> (i32, i32) {
    %c0_i32 = arith.constant 0 : i32
    %c0_i32_0 = arith.constant 0 : i32
    return %arg0, %c0_i32 : i32, i32
  }
}

module attributes {stable_mosaic.version = 11 : i64} {
  func.func @_gemm_affine_act_kernel(%arg0: i32, %arg1: memref<8x256xf32, #tpu.memory_space<vmem>>, %arg2: memref<256x128xf32, #tpu.memory_space<vmem>>, %arg3: memref<2x128xf32, #tpu.memory_space<vmem>>, %arg4: memref<8x128xf32, #tpu.memory_space<vmem>>) attributes {dimension_semantics = [#tpu.dimension_semantics<parallel>], iteration_bounds = array<i64: 1>, scalar_prefetch = 0 : i64, scratch_operands = 0 : i64, tpu.core_type = #tpu.core_type<tc>, window_params = [{transform_indices = @transform_0, window_bounds = array<i64: 8, 256>}, {pipeline_mode = #tpu.pipeline_mode<synchronous>, transform_indices = @transform_1, window_bounds = array<i64: 256, 128>}, {pipeline_mode = #tpu.pipeline_mode<synchronous>, transform_indices = @transform_2, window_bounds = array<i64: 2, 128>}, {transform_indices = @transform_3, window_bounds = array<i64: 8, 128>}]} {
    %c0 = arith.constant 0 : index
    %c0_0 = arith.constant 0 : index
    %0 = vector.load %arg1[%c0, %c0_0] : memref<8x256xf32, #tpu.memory_space<vmem>>, vector<8x256xf32>
    %c0_1 = arith.constant 0 : index
    %c0_2 = arith.constant 0 : index
    %1 = vector.load %arg2[%c0_1, %c0_2] : memref<256x128xf32, #tpu.memory_space<vmem>>, vector<256x128xf32>
    %cst = arith.constant dense<0.000000e+00> : vector<8x128xf32>
    %2 = tpu.matmul %0, %1, %cst {dimension_numbers = #tpu.dot_dimension_numbers<[1], [0], [0], [1], [0, 0, 1, 1], [], []>} : vector<8x256xf32>, vector<256x128xf32>, vector<8x128xf32> -> vector<8x128xf32>
    %c0_3 = arith.constant 0 : index
    %c0_4 = arith.constant 0 : index
    %3 = vector.load %arg3[%c0_3, %c0_4] : memref<2x128xf32, #tpu.memory_space<vmem>>, vector<1x128xf32>
    %4 = vector.broadcast %3 : vector<1x128xf32> to vector<8x128xf32>
    %5 = arith.mulf %2, %4 : vector<8x128xf32>
    %c1 = arith.constant 1 : index
    %c0_5 = arith.constant 0 : index
    %6 = vector.load %arg3[%c1, %c0_5] : memref<2x128xf32, #tpu.memory_space<vmem>>, vector<1x128xf32>
    %7 = vector.broadcast %6 : vector<1x128xf32> to vector<8x128xf32>
    %8 = arith.addf %5, %7 : vector<8x128xf32>
    %c0_6 = arith.constant 0 : index
    %c0_7 = arith.constant 0 : index
    %9 = vector.load %arg4[%c0_6, %c0_7] : memref<8x128xf32, #tpu.memory_space<vmem>>, vector<8x128xf32>
    tpu.vector_store %arg4[%c0_6, %c0_7], %8 {strides = array<i32>} : memref<8x128xf32, #tpu.memory_space<vmem>>, vector<8x128xf32>,
    return
  }
  func.func @transform_0(%arg0: i32) -> (i32, i32) {
    %c0_i32 = arith.constant 0 : i32
    %c0_i32_0 = arith.constant 0 : i32
    return %arg0, %c0_i32 : i32, i32
  }
  func.func @transform_1(%arg0: i32) -> (i32, i32) {
    %c0_i32 = arith.constant 0 : i32
    %c0_i32_0 = arith.constant 0 : i32
    %c0_i32_1 = arith.constant 0 : i32
    return %c0_i32, %c0_i32_0 : i32, i32
  }
  func.func @transform_2(%arg0: i32) -> (i32, i32) {
    %c0_i32 = arith.constant 0 : i32
    %c0_i32_0 = arith.constant 0 : i32
    %c0_i32_1 = arith.constant 0 : i32
    return %c0_i32, %c0_i32_0 : i32, i32
  }
  func.func @transform_3(%arg0: i32) -> (i32, i32) {
    %c0_i32 = arith.constant 0 : i32
    %c0_i32_0 = arith.constant 0 : i32
    return %arg0, %c0_i32 : i32, i32
  }
}

module attributes {stable_mosaic.version = 11 : i64} {
  func.func @_gemm_stats_kernel(%arg0: i32, %arg1: memref<384x72xbf16, #tpu.memory_space<vmem>>, %arg2: memref<72x128xbf16, #tpu.memory_space<vmem>>, %arg3: memref<384x128xf32, #tpu.memory_space<vmem>>, %arg4: memref<1x128xf32, #tpu.memory_space<vmem>>, %arg5: memref<1x128xf32, #tpu.memory_space<vmem>>, %arg6: memref<1x128xf32, #tpu.memory_space<vmem>>, %arg7: memref<1x128xf32, #tpu.memory_space<vmem>>) attributes {dimension_semantics = [#tpu.dimension_semantics<arbitrary>], iteration_bounds = array<i64: 1>, scalar_prefetch = 0 : i64, scratch_operands = 2 : i64, tpu.core_type = #tpu.core_type<tc>, window_params = [{transform_indices = @transform_0, window_bounds = array<i64: 384, 72>}, {pipeline_mode = #tpu.pipeline_mode<synchronous>, transform_indices = @transform_1, window_bounds = array<i64: 72, 128>}, {transform_indices = @transform_2, window_bounds = array<i64: 384, 128>}, {pipeline_mode = #tpu.pipeline_mode<synchronous>, transform_indices = @transform_3, window_bounds = array<i64: 1, 128>}, {pipeline_mode = #tpu.pipeline_mode<synchronous>, transform_indices = @transform_4, window_bounds = array<i64: 1, 128>}]} {
    %c0_i32 = arith.constant 0 : i32
    %0 = arith.cmpi eq, %arg0, %c0_i32 : i32
    %1 = arith.extui %0 : i1 to i32
    %c0_i32_0 = arith.constant 0 : i32
    %2 = arith.cmpi ne, %1, %c0_i32_0 : i32
    scf.if %2 {
      %cst_18 = arith.constant 0.000000e+00 : f32
      %21 = vector.broadcast %cst_18 : f32 to vector<1x128xf32>
      %c0_19 = arith.constant 0 : index
      %c0_20 = arith.constant 0 : index
      %22 = vector.load %arg6[%c0_19, %c0_20] : memref<1x128xf32, #tpu.memory_space<vmem>>, vector<1x128xf32>
      tpu.vector_store %arg6[%c0_19, %c0_20], %21 {strides = array<i32>} : memref<1x128xf32, #tpu.memory_space<vmem>>, vector<1x128xf32>,
      %cst_21 = arith.constant 0.000000e+00 : f32
      %23 = vector.broadcast %cst_21 : f32 to vector<1x128xf32>
      %c0_22 = arith.constant 0 : index
      %c0_23 = arith.constant 0 : index
      %24 = vector.load %arg7[%c0_22, %c0_23] : memref<1x128xf32, #tpu.memory_space<vmem>>, vector<1x128xf32>
      tpu.vector_store %arg7[%c0_22, %c0_23], %23 {strides = array<i32>} : memref<1x128xf32, #tpu.memory_space<vmem>>, vector<1x128xf32>,
    } else {
    }
    %c0 = arith.constant 0 : index
    %c0_1 = arith.constant 0 : index
    %3 = vector.load %arg1[%c0, %c0_1] : memref<384x72xbf16, #tpu.memory_space<vmem>>, vector<384x72xbf16>
    %c0_2 = arith.constant 0 : index
    %c0_3 = arith.constant 0 : index
    %4 = vector.load %arg2[%c0_2, %c0_3] : memref<72x128xbf16, #tpu.memory_space<vmem>>, vector<72x128xbf16>
    %cst = arith.constant dense<0.000000e+00> : vector<384x128xf32>
    %5 = tpu.matmul %3, %4, %cst {dimension_numbers = #tpu.dot_dimension_numbers<[1], [0], [0], [1], [0, 0, 1, 1], [], []>} : vector<384x72xbf16>, vector<72x128xbf16>, vector<384x128xf32> -> vector<384x128xf32>
    %c0_4 = arith.constant 0 : index
    %c0_5 = arith.constant 0 : index
    %6 = vector.load %arg3[%c0_4, %c0_5] : memref<384x128xf32, #tpu.memory_space<vmem>>, vector<384x128xf32>
    tpu.vector_store %arg3[%c0_4, %c0_5], %5 {strides = array<i32>} : memref<384x128xf32, #tpu.memory_space<vmem>>, vector<384x128xf32>,
    %c0_6 = arith.constant 0 : index
    %c0_7 = arith.constant 0 : index
    %7 = vector.load %arg6[%c0_6, %c0_7] : memref<1x128xf32, #tpu.memory_space<vmem>>, vector<1x128xf32>
    %cst_8 = arith.constant dense<0.000000e+00> : vector<128xf32>
    %8 = vector.multi_reduction <add>, %5, %cst_8 [0] : vector<384x128xf32> to vector<128xf32>
    %9 = vector.shape_cast %8 : vector<128xf32> to vector<1x128xf32>
    %10 = arith.addf %7, %9 : vector<1x128xf32>
    %c0_9 = arith.constant 0 : index
    %c0_10 = arith.constant 0 : index
    %11 = vector.load %arg6[%c0_9, %c0_10] : memref<1x128xf32, #tpu.memory_space<vmem>>, vector<1x128xf32>
    tpu.vector_store %arg6[%c0_9, %c0_10], %10 {strides = array<i32>} : memref<1x128xf32, #tpu.memory_space<vmem>>, vector<1x128xf32>,
    %c0_11 = arith.constant 0 : index
    %c0_12 = arith.constant 0 : index
    %12 = vector.load %arg7[%c0_11, %c0_12] : memref<1x128xf32, #tpu.memory_space<vmem>>, vector<1x128xf32>
    %13 = arith.mulf %5, %5 : vector<384x128xf32>
    %cst_13 = arith.constant dense<0.000000e+00> : vector<128xf32>
    %14 = vector.multi_reduction <add>, %13, %cst_13 [0] : vector<384x128xf32> to vector<128xf32>
    %15 = vector.shape_cast %14 : vector<128xf32> to vector<1x128xf32>
    %16 = arith.addf %12, %15 : vector<1x128xf32>
    %c0_14 = arith.constant 0 : index
    %c0_15 = arith.constant 0 : index
    %17 = vector.load %arg7[%c0_14, %c0_15] : memref<1x128xf32, #tpu.memory_space<vmem>>, vector<1x128xf32>
    tpu.vector_store %arg7[%c0_14, %c0_15], %16 {strides = array<i32>} : memref<1x128xf32, #tpu.memory_space<vmem>>, vector<1x128xf32>,
    %c0_i32_16 = arith.constant 0 : i32
    %18 = arith.cmpi eq, %arg0, %c0_i32_16 : i32
    %19 = arith.extui %18 : i1 to i32
    %c0_i32_17 = arith.constant 0 : i32
    %20 = arith.cmpi ne, %19, %c0_i32_17 : i32
    scf.if %20 {
      %c0_18 = arith.constant 0 : index
      %c0_19 = arith.constant 0 : index
      %21 = vector.load %arg6[%c0_18, %c0_19] : memref<1x128xf32, #tpu.memory_space<vmem>>, vector<1x128xf32>
      %c0_20 = arith.constant 0 : index
      %c0_21 = arith.constant 0 : index
      %22 = vector.load %arg4[%c0_20, %c0_21] : memref<1x128xf32, #tpu.memory_space<vmem>>, vector<1x128xf32>
      tpu.vector_store %arg4[%c0_20, %c0_21], %21 {strides = array<i32>} : memref<1x128xf32, #tpu.memory_space<vmem>>, vector<1x128xf32>,
      %c0_22 = arith.constant 0 : index
      %c0_23 = arith.constant 0 : index
      %23 = vector.load %arg7[%c0_22, %c0_23] : memref<1x128xf32, #tpu.memory_space<vmem>>, vector<1x128xf32>
      %c0_24 = arith.constant 0 : index
      %c0_25 = arith.constant 0 : index
      %24 = vector.load %arg5[%c0_24, %c0_25] : memref<1x128xf32, #tpu.memory_space<vmem>>, vector<1x128xf32>
      tpu.vector_store %arg5[%c0_24, %c0_25], %23 {strides = array<i32>} : memref<1x128xf32, #tpu.memory_space<vmem>>, vector<1x128xf32>,
    } else {
    }
    return
  }
  func.func @transform_0(%arg0: i32) -> (i32, i32) {
    %c0_i32 = arith.constant 0 : i32
    %c0_i32_0 = arith.constant 0 : i32
    return %arg0, %c0_i32 : i32, i32
  }
  func.func @transform_1(%arg0: i32) -> (i32, i32) {
    %c0_i32 = arith.constant 0 : i32
    %c0_i32_0 = arith.constant 0 : i32
    %c0_i32_1 = arith.constant 0 : i32
    return %c0_i32, %c0_i32_0 : i32, i32
  }
  func.func @transform_2(%arg0: i32) -> (i32, i32) {
    %c0_i32 = arith.constant 0 : i32
    %c0_i32_0 = arith.constant 0 : i32
    return %arg0, %c0_i32 : i32, i32
  }
  func.func @transform_3(%arg0: i32) -> (i32, i32) {
    %c0_i32 = arith.constant 0 : i32
    %c0_i32_0 = arith.constant 0 : i32
    %c0_i32_1 = arith.constant 0 : i32
    return %c0_i32, %c0_i32_0 : i32, i32
  }
  func.func @transform_4(%arg0: i32) -> (i32, i32) {
    %c0_i32 = arith.constant 0 : i32
    %c0_i32_0 = arith.constant 0 : i32
    %c0_i32_1 = arith.constant 0 : i32
    return %c0_i32, %c0_i32_0 : i32, i32
  }
}

module attributes {stable_mosaic.version = 11 : i64} {
  func.func @_gemm_affine_act_kernel(%arg0: i32, %arg1: memref<8x8xf32, #tpu.memory_space<vmem>>, %arg2: memref<8x128xf32, #tpu.memory_space<vmem>>, %arg3: memref<2x128xf32, #tpu.memory_space<vmem>>, %arg4: memref<8x128xf32, #tpu.memory_space<vmem>>) attributes {dimension_semantics = [#tpu.dimension_semantics<parallel>], iteration_bounds = array<i64: 1>, scalar_prefetch = 0 : i64, scratch_operands = 0 : i64, tpu.core_type = #tpu.core_type<tc>, window_params = [{transform_indices = @transform_0, window_bounds = array<i64: 8, 8>}, {pipeline_mode = #tpu.pipeline_mode<synchronous>, transform_indices = @transform_1, window_bounds = array<i64: 8, 128>}, {pipeline_mode = #tpu.pipeline_mode<synchronous>, transform_indices = @transform_2, window_bounds = array<i64: 2, 128>}, {transform_indices = @transform_3, window_bounds = array<i64: 8, 128>}]} {
    %c0 = arith.constant 0 : index
    %c0_0 = arith.constant 0 : index
    %0 = vector.load %arg1[%c0, %c0_0] : memref<8x8xf32, #tpu.memory_space<vmem>>, vector<8x8xf32>
    %c0_1 = arith.constant 0 : index
    %c0_2 = arith.constant 0 : index
    %1 = vector.load %arg2[%c0_1, %c0_2] : memref<8x128xf32, #tpu.memory_space<vmem>>, vector<8x128xf32>
    %cst = arith.constant dense<0.000000e+00> : vector<8x128xf32>
    %2 = tpu.matmul %0, %1, %cst {dimension_numbers = #tpu.dot_dimension_numbers<[1], [0], [0], [1], [0, 0, 1, 1], [], []>} : vector<8x8xf32>, vector<8x128xf32>, vector<8x128xf32> -> vector<8x128xf32>
    %c0_3 = arith.constant 0 : index
    %c0_4 = arith.constant 0 : index
    %3 = vector.load %arg3[%c0_3, %c0_4] : memref<2x128xf32, #tpu.memory_space<vmem>>, vector<1x128xf32>
    %4 = vector.broadcast %3 : vector<1x128xf32> to vector<8x128xf32>
    %5 = arith.mulf %2, %4 : vector<8x128xf32>
    %c1 = arith.constant 1 : index
    %c0_5 = arith.constant 0 : index
    %6 = vector.load %arg3[%c1, %c0_5] : memref<2x128xf32, #tpu.memory_space<vmem>>, vector<1x128xf32>
    %7 = vector.broadcast %6 : vector<1x128xf32> to vector<8x128xf32>
    %8 = arith.addf %5, %7 : vector<8x128xf32>
    %cst_6 = arith.constant 0.000000e+00 : f32
    %9 = vector.broadcast %cst_6 : f32 to vector<8x128xf32>
    %10 = arith.subf %9, %8 : vector<8x128xf32>
    %11 = math.exp %10 : vector<8x128xf32>
    %cst_7 = arith.constant 1.000000e+00 : f32
    %12 = vector.broadcast %cst_7 : f32 to vector<8x128xf32>
    %13 = arith.addf %12, %11 : vector<8x128xf32>
    %cst_8 = arith.constant 1.000000e+00 : f32
    %14 = vector.broadcast %cst_8 : f32 to vector<8x128xf32>
    %15 = arith.divf %14, %13 : vector<8x128xf32>
    %c0_9 = arith.constant 0 : index
    %c0_10 = arith.constant 0 : index
    %16 = vector.load %arg4[%c0_9, %c0_10] : memref<8x128xf32, #tpu.memory_space<vmem>>, vector<8x128xf32>
    tpu.vector_store %arg4[%c0_9, %c0_10], %15 {strides = array<i32>} : memref<8x128xf32, #tpu.memory_space<vmem>>, vector<8x128xf32>,
    return
  }
  func.func @transform_0(%arg0: i32) -> (i32, i32) {
    %c0_i32 = arith.constant 0 : i32
    %c0_i32_0 = arith.constant 0 : i32
    return %arg0, %c0_i32 : i32, i32
  }
  func.func @transform_1(%arg0: i32) -> (i32, i32) {
    %c0_i32 = arith.constant 0 : i32
    %c0_i32_0 = arith.constant 0 : i32
    %c0_i32_1 = arith.constant 0 : i32
    return %c0_i32, %c0_i32_0 : i32, i32
  }
  func.func @transform_2(%arg0: i32) -> (i32, i32) {
    %c0_i32 = arith.constant 0 : i32
    %c0_i32_0 = arith.constant 0 : i32
    %c0_i32_1 = arith.constant 0 : i32
    return %c0_i32, %c0_i32_0 : i32, i32
  }
  func.func @transform_3(%arg0: i32) -> (i32, i32) {
    %c0_i32 = arith.constant 0 : i32
    %c0_i32_0 = arith.constant 0 : i32
    return %arg0, %c0_i32 : i32, i32
  }
}

</mosaic_0001>

<bundles_post_ra>
// kernel: cra_forward.31
= control target key start
LH: loop header
LB: loop body
LE: loop exit
PB: predicated region body
PF: predicated region fallthrough
CT: control target
= control target key end

     0   :  { %s513_s9 = smov 0   ;;  %s800_s0 = inlined_call_operand.vmem [shape: f32[1536,128], index: 0, kind: input, shape index: {}]   ;;  %s801_s1 = inlined_call_operand.vmem [shape: f32[2,128], index: 1, kind: input, shape index: {}]   ;;  %s802_s2 = inlined_call_operand.vmem [shape: f32[1536,128], index: 2, kind: output, shape index: {}]  }
   0x1 LB: > { %s469_s10 = sadd.s32 4294967295, %s496_s9   ;;  %p473_p0 = scmp.ge.s32.totalorder %s496_s9, 1  ;;  %s496_s9 = sphi %s513_s9, %s12_s9  }
   0x2   : > { %p113_p1 = scmp.lt.s32.totalorder %s496_s9, 4 }
   0x4   : > { %p114_p2 = pnand %p473_p0, %p113_p1 }
   0x5   : > { %s474_s11 = sshll.u32 (!%p114_p2), %s469_s10, 6  ;;  %v524_v0 = vld [vmem:[%s801_s1] ss:$0 sm:$0xff] (!%p114_p2)  ;;  %v534_v1 = vld [vmem:[%s801_s1 + $0x1] ss:$0 sm:$0xff] (!%p114_p2) }
   0x6   : > { %117 = sbr.rel (%p114_p2) target bundleno = 59 (0x3b), region = 28  ;;  %p136_p3 = scmp.lt.s32.totalorder (!%p114_p2), %s474_s11, 191 }
   0xd   : > { %s804_s11 = smov (!%p136_p3, %s474_s11), 191 }
   0xe   : > { %s475_s12 = sshll.u32 %s804_s11, 3 }
   0xf   : > { %s529_s17 = scalar_lea.vmem %s800_s0, %s475_s12  ;;  %s548_s22 = scalar_lea.vmem %s802_s2, %s475_s12 }
  0x10   : > { %v147_v2 = vld [vmem:[%s529_s17] sm:$0xff]  ;;  %v148_v3 = vld [vmem:[%s529_s17 + $0x8] sm:$0xff]  ;;  %v149_v4 = vld [vmem:[%s529_s17 + $0x10] sm:$0xff] }
  0x11   : > { %v216_v5 = vmul.f32 %v524_v0, %v147_v2  ;;  %v217_v6 = vmul.f32 %v524_v0, %v148_v3  ;;  %v218_v7 = vmul.f32 %v524_v0, %v149_v4  ;;  %v150_v8 = vld [vmem:[%s529_s17 + $0x18] sm:$0xff]  ;;  %v151_v9 = vld [vmem:[%s529_s17 + $0x20] sm:$0xff]  ;;  %v152_v10 = vld [vmem:[%s529_s17 + $0x28] sm:$0xff] }
  0x12   : > { %v219_v11 = vmul.f32 %v524_v0, %v150_v8  ;;  %v220_v12 = vmul.f32 %v524_v0, %v151_v9  ;;  %v221_v13 = vmul.f32 %v524_v0, %v152_v10  ;;  %v153_v14 = vld [vmem:[%s529_s17 + $0x30] sm:$0xff]  ;;  %v154_v15 = vld [vmem:[%s529_s17 + $0x38] sm:$0xff]  ;;  %v155_v16 = vld [vmem:[%s529_s17 + $0x40] sm:$0xff] }
  0x13   : > { %v285_v17 = vadd.f32 %v534_v1, %v216_v5  ;;  %v286_v18 = vadd.f32 %v534_v1, %v217_v6  ;;  %v287_v19 = vadd.f32 %v534_v1, %v218_v7  ;;  %v222_v20 = vmul.f32 %v524_v0, %v153_v14  ;;  %v156_v21 = vld [vmem:[%s529_s17 + $0x48] sm:$0xff]  ;;  %v157_v22 = vld [vmem:[%s529_s17 + $0x50] sm:$0xff]  ;;  %v158_v23 = vld [vmem:[%s529_s17 + $0x58] sm:$0xff] }
  0x14   : > { %v288_v24 = vadd.f32 %v534_v1, %v219_v11  ;;  %v289_v25 = vadd.f32 %v534_v1, %v220_v12  ;;  %v290_v26 = vadd.f32 %v534_v1, %v221_v13  ;;  %v223_v27 = vmul.f32 %v524_v0, %v154_v15  ;;  %v159_v28 = vld [vmem:[%s529_s17 + $0x60] sm:$0xff]  ;;  %v160_v29 = vld [vmem:[%s529_s17 + $0x68] sm:$0xff]  ;;  %v161_v30 = vld [vmem:[%s529_s17 + $0x70] sm:$0xff] }
  0x15   : > { %349 = vst [vmem:[%s548_s22] sm:$0xff] %v285_v17  ;;  %350 = vst [vmem:[%s548_s22 + $0x8] sm:$0xff] %v286_v18  ;;  %v291_v31 = vadd.f32 %v534_v1, %v222_v20  ;;  %v224_v32 = vmul.f32 %v524_v0, %v155_v16  ;;  %v225_v33 = vmul.f32 %v524_v0, %v156_v21  ;;  %v162_v35 = vld [vmem:[%s529_s17 + $0x78] sm:$0xff]  ;;  %v163_v40 = vld [vmem:[%s529_s17 + $0x80] sm:$0xff] }
  0x16   : > { %351 = vst [vmem:[%s548_s22 + $0x10] sm:$0xff] %v287_v19  ;;  %v226_v34 = vmul.f32 %v524_v0, %v157_v22  ;;  %352 = vst [vmem:[%s548_s22 + $0x18] sm:$0xff] %v288_v24  ;;  %v292_v36 = vadd.f32 %v534_v1, %v223_v27  ;;  %v227_v37 = vmul.f32 %v524_v0, %v158_v23  ;;  %v164_v41 = vld [vmem:[%s529_s17 + $0x88] sm:$0xff]  ;;  %v165_v42 = vld [vmem:[%s529_s17 + $0x90] sm:$0xff] }
  0x17   : > { %353 = vst [vmem:[%s548_s22 + $0x20] sm:$0xff] %v289_v25  ;;  %354 = vst [vmem:[%s548_s22 + $0x28] sm:$0xff] %v290_v26  ;;  %v228_v38 = vmul.f32 %v524_v0, %v159_v28  ;;  %v229_v39 = vmul.f32 %v524_v0, %v160_v29  ;;  %v293_v43 = vadd.f32 %v534_v1, %v224_v32  ;;  %v166_v47 = vld [vmem:[%s529_s17 + $0x98] sm:$0xff]  ;;  %v167_v48 = vld [vmem:[%s529_s17 + $0xa0] sm:$0xff] }
  0x18   : > { %355 = vst [vmem:[%s548_s22 + $0x30] sm:$0xff] %v291_v31  ;;  %v294_v44 = vadd.f32 %v534_v1, %v225_v33  ;;  %v295_v45 = vadd.f32 %v534_v1, %v226_v34  ;;  %v230_v46 = vmul.f32 %v524_v0, %v161_v30  ;;  %v168_v49 = vld [vmem:[%s529_s17 + $0xa8] sm:$0xff]  ;;  %356 = vst [vmem:[%s548_s22 + $0x38] sm:$0xff] %v292_v36  ;;  %v169_v54 = vld [vmem:[%s529_s17 + $0xb0] sm:$0xff] }
  0x19   : > { %v296_v50 = vadd.f32 %v534_v1, %v227_v37  ;;  %v297_v51 = vadd.f32 %v534_v1, %v228_v38  ;;  %v298_v52 = vadd.f32 %v534_v1, %v229_v39  ;;  %v231_v53 = vmul.f32 %v524_v0, %v162_v35  ;;  %357 = vst [vmem:[%s548_s22 + $0x40] sm:$0xff] %v293_v43  ;;  %v170_v59 = vld [vmem:[%s529_s17 + $0xb8] sm:$0xff]  ;;  %v171_v2 = vld [vmem:[%s529_s17 + $0xc0] sm:$0xff]  ;;  %v172_v3 = vld [vmem:[%s529_s17 + $0xc8] sm:$0xff] }
  0x1a   : > { %358 = vst [vmem:[%s548_s22 + $0x48] sm:$0xff] %v294_v44  ;;  %359 = vst [vmem:[%s548_s22 + $0x50] sm:$0xff] %v295_v45  ;;  %v299_v55 = vadd.f32 %v534_v1, %v230_v46  ;;  %v232_v56 = vmul.f32 %v524_v0, %v163_v40  ;;  %v233_v57 = vmul.f32 %v524_v0, %v164_v41  ;;  %v173_v4 = vld [vmem:[%s529_s17 + $0xd0] sm:$0xff]  ;;  %v174_v9 = vld [vmem:[%s529_s17 + $0xd8] sm:$0xff] }
  0x1b   : > { %v234_v58 = vmul.f32 %v524_v0, %v165_v42  ;;  %360 = vst [vmem:[%s548_s22 + $0x58] sm:$0xff] %v296_v50  ;;  %361 = vst [vmem:[%s548_s22 + $0x60] sm:$0xff] %v297_v51  ;;  %v300_v60 = vadd.f32 %v534_v1, %v231_v53  ;;  %v235_v61 = vmul.f32 %v524_v0, %v166_v47  ;;  %v175_v10 = vld [vmem:[%s529_s17 + $0xe0] sm:$0xff]  ;;  %v176_v11 = vld [vmem:[%s529_s17 + $0xe8] sm:$0xff] }
  0x1c   : > { %362 = vst [vmem:[%s548_s22 + $0x68] sm:$0xff] %v298_v52  ;;  %v236_v62 = vmul.f32 %v524_v0, %v167_v48  ;;  %v237_v63 = vmul.f32 %v524_v0, %v168_v49  ;;  %363 = vst [vmem:[%s548_s22 + $0x70] sm:$0xff] %v299_v55  ;;  %v301_v5 = vadd.f32 %v534_v1, %v232_v56  ;;  %v177_v16 = vld [vmem:[%s529_s17 + $0xf0] sm:$0xff]  ;;  %v178_v21 = vld [vmem:[%s529_s17 + $0xf8] sm:$0xff] }
  0x1d   : > { %v302_v6 = vadd.f32 %v534_v1, %v233_v57  ;;  %v303_v7 = vadd.f32 %v534_v1, %v234_v58  ;;  %v238_v8 = vmul.f32 %v524_v0, %v169_v54  ;;  %364 = vst [vmem:[%s548_s22 + $0x78] sm:$0xff] %v300_v60  ;;  %v304_v12 = vadd.f32 %v534_v1, %v235_v61  ;;  %v179_v26 = vld [vmem:[%s529_s17 + $0x100] sm:$0xff]  ;;  %v180_v27 = vld [vmem:[%s529_s17 + $0x108] sm:$0xff]  ;;  %v181_v28 = vld [vmem:[%s529_s17 + $0x110] sm:$0xff] }
  0x1e   : > { %v305_v13 = vadd.f32 %v534_v1, %v236_v62  ;;  %v306_v14 = vadd.f32 %v534_v1, %v237_v63  ;;  %v239_v15 = vmul.f32 %v524_v0, %v170_v59  ;;  %365 = vst [vmem:[%s548_s22 + $0x80] sm:$0xff] %v301_v5  ;;  %v240_v18 = vmul.f32 %v524_v0, %v171_v2  ;;  %v182_v33 = vld [vmem:[%s529_s17 + $0x118] sm:$0xff]  ;;  %v183_v34 = vld [vmem:[%s529_s17 + $0x120] sm:$0xff]  ;;  %v184_v35 = vld [vmem:[%s529_s17 + $0x128] sm:$0xff] }
  0x1f   : > { %366 = vst [vmem:[%s548_s22 + $0x88] sm:$0xff] %v302_v6  ;;  %367 = vst [vmem:[%s548_s22 + $0x90] sm:$0xff] %v303_v7  ;;  %v307_v17 = vadd.f32 %v534_v1, %v238_v8  ;;  %v241_v19 = vmul.f32 %v524_v0, %v172_v3  ;;  %v242_v20 = vmul.f32 %v524_v0, %v173_v4  ;;  %v185_v40 = vld [vmem:[%s529_s17 + $0x130] sm:$0xff]  ;;  %v186_v45 = vld [vmem:[%s529_s17 + $0x138] sm:$0xff] }
  0x20   : > { %368 = vst [vmem:[%s548_s22 + $0x98] sm:$0xff] %v304_v12  ;;  %369 = vst [vmem:[%s548_s22 + $0xa0] sm:$0xff] %v305_v13  ;;  %v308_v22 = vadd.f32 %v534_v1, %v239_v15  ;;  %v243_v23 = vmul.f32 %v524_v0, %v174_v9  ;;  %v244_v24 = vmul.f32 %v524_v0, %v175_v10  ;;  %v187_v50 = vld [vmem:[%s529_s17 + $0x140] sm:$0xff]  ;;  %v188_v51 = vld [vmem:[%s529_s17 + $0x148] sm:$0xff] }
  0x21   : > { %370 = vst [vmem:[%s548_s22 + $0xa8] sm:$0xff] %v306_v14  ;;  %v245_v25 = vmul.f32 %v524_v0, %v176_v11  ;;  %371 = vst [vmem:[%s548_s22 + $0xb0] sm:$0xff] %v307_v17  ;;  %v309_v29 = vadd.f32 %v534_v1, %v240_v18  ;;  %v310_v30 = vadd.f32 %v534_v1, %v241_v19  ;;  %v189_v52 = vld [vmem:[%s529_s17 + $0x150] sm:$0xff]  ;;  %v190_v57 = vld [vmem:[%s529_s17 + $0x158] sm:$0xff] }
  0x22   : > { %v311_v31 = vadd.f32 %v534_v1, %v242_v20  ;;  %v246_v32 = vmul.f32 %v524_v0, %v177_v16  ;;  %372 = vst [vmem:[%s548_s22 + $0xb8] sm:$0xff] %v308_v22  ;;  %v312_v36 = vadd.f32 %v534_v1, %v243_v23  ;;  %v313_v37 = vadd.f32 %v534_v1, %v244_v24  ;;  %v191_v58 = vld [vmem:[%s529_s17 + $0x160] sm:$0xff]  ;;  %v192_v59 = vld [vmem:[%s529_s17 + $0x168] sm:$0xff]  ;;  %v193_v2 = vld [vmem:[%s529_s17 + $0x170] sm:$0xff] }
  0x23   : > { %v314_v38 = vadd.f32 %v534_v1, %v245_v25  ;;  %v247_v39 = vmul.f32 %v524_v0, %v178_v21  ;;  %373 = vst [vmem:[%s548_s22 + $0xc0] sm:$0xff] %v309_v29  ;;  %374 = vst [vmem:[%s548_s22 + $0xc8] sm:$0xff] %v310_v30  ;;  %v248_v42 = vmul.f32 %v524_v0, %v179_v26  ;;  %v194_v7 = vld [vmem:[%s529_s17 + $0x178] sm:$0xff]  ;;  %v195_v12 = vld [vmem:[%s529_s17 + $0x180] sm:$0xff] }
  0x24   : > { %375 = vst [vmem:[%s548_s22 + $0xd0] sm:$0xff] %v311_v31  ;;  %v315_v41 = vadd.f32 %v534_v1, %v246_v32  ;;  %v249_v43 = vmul.f32 %v524_v0, %v180_v27  ;;  %v250_v44 = vmul.f32 %v524_v0, %v181_v28  ;;  %376 = vst [vmem:[%s548_s22 + $0xd8] sm:$0xff] %v312_v36  ;;  %v196_v13 = vld [vmem:[%s529_s17 + $0x188] sm:$0xff]  ;;  %v197_v14 = vld [vmem:[%s529_s17 + $0x190] sm:$0xff] }
  0x25   : > { %377 = vst [vmem:[%s548_s22 + $0xe0] sm:$0xff] %v313_v37  ;;  %378 = vst [vmem:[%s548_s22 + $0xe8] sm:$0xff] %v314_v38  ;;  %v316_v46 = vadd.f32 %v534_v1, %v247_v39  ;;  %v251_v47 = vmul.f32 %v524_v0, %v182_v33  ;;  %v252_v48 = vmul.f32 %v524_v0, %v183_v34  ;;  %v198_v19 = vld [vmem:[%s529_s17 + $0x198] sm:$0xff]  ;;  %v199_v20 = vld [vmem:[%s529_s17 + $0x1a0] sm:$0xff] }
  0x26   : > { %v253_v49 = vmul.f32 %v524_v0, %v184_v35  ;;  %379 = vst [vmem:[%s548_s22 + $0xf0] sm:$0xff] %v315_v41  ;;  %v317_v53 = vadd.f32 %v534_v1, %v248_v42  ;;  %v318_v54 = vadd.f32 %v534_v1, %v249_v43  ;;  %v319_v55 = vadd.f32 %v534_v1, %v250_v44  ;;  %v200_v21 = vld [vmem:[%s529_s17 + $0x1a8] sm:$0xff]  ;;  %v201_v26 = vld [vmem:[%s529_s17 + $0x1b0] sm:$0xff]  ;;  %v202_v31 = vld [vmem:[%s529_s17 + $0x1b8] sm:$0xff] }
  0x27   : > { %v254_v56 = vmul.f32 %v524_v0, %v185_v40  ;;  %380 = vst [vmem:[%s548_s22 + $0xf8] sm:$0xff] %v316_v46  ;;  %v320_v60 = vadd.f32 %v534_v1, %v251_v47  ;;  %v321_v61 = vadd.f32 %v534_v1, %v252_v48  ;;  %v255_v63 = vmul.f32 %v524_v0, %v186_v45  ;;  %v203_v36 = vld [vmem:[%s529_s17 + $0x1c0] sm:$0xff]  ;;  %v204_v37 = vld [vmem:[%s529_s17 + $0x1c8] sm:$0xff]  ;;  %v205_v38 = vld [vmem:[%s529_s17 + $0x1d0] sm:$0xff] }
  0x28   : > { %v322_v62 = vadd.f32 %v534_v1, %v253_v49  ;;  %381 = vst [vmem:[%s548_s22 + $0x100] sm:$0xff] %v317_v53  ;;  %382 = vst [vmem:[%s548_s22 + $0x108] sm:$0xff] %v318_v54  ;;  %v256_v4 = vmul.f32 %v524_v0, %v187_v50  ;;  %v257_v5 = vmul.f32 %v524_v0, %v188_v51  ;;  %v206_v43 = vld [vmem:[%s529_s17 + $0x1d8] sm:$0xff]  ;;  %v207_v44 = vld [vmem:[%s529_s17 + $0x1e0] sm:$0xff] }
  0x29   : > { %383 = vst [vmem:[%s548_s22 + $0x110] sm:$0xff] %v319_v55  ;;  %v323_v3 = vadd.f32 %v534_v1, %v254_v56  ;;  %v258_v6 = vmul.f32 %v524_v0, %v189_v52  ;;  %384 = vst [vmem:[%s548_s22 + $0x118] sm:$0xff] %v320_v60  ;;  %v324_v8 = vadd.f32 %v534_v1, %v255_v63  ;;  %v208_v45 = vld [vmem:[%s529_s17 + $0x1e8] sm:$0xff]  ;;  %v209_v50 = vld [vmem:[%s529_s17 + $0x1f0] sm:$0xff] }
  0x2a   : > { %385 = vst [vmem:[%s548_s22 + $0x120] sm:$0xff] %v321_v61  ;;  %386 = vst [vmem:[%s548_s22 + $0x128] sm:$0xff] %v322_v62  ;;  %v259_v9 = vmul.f32 %v524_v0, %v190_v57  ;;  %v260_v10 = vmul.f32 %v524_v0, %v191_v58  ;;  %v261_v11 = vmul.f32 %v524_v0, %v192_v59  ;;  %v210_v55 = vld [vmem:[%s529_s17 + $0x1f8] sm:$0xff] }
  0x2b   : > { %387 = vst [vmem:[%s548_s22 + $0x130] sm:$0xff] %v323_v3  ;;  %v325_v15 = vadd.f32 %v534_v1, %v256_v4  ;;  %v326_v16 = vadd.f32 %v534_v1, %v257_v5  ;;  %v327_v17 = vadd.f32 %v534_v1, %v258_v6  ;;  %v262_v18 = vmul.f32 %v524_v0, %v193_v2 }
  0x2c   : > { %388 = vst [vmem:[%s548_s22 + $0x138] sm:$0xff] %v324_v8  ;;  %v328_v22 = vadd.f32 %v534_v1, %v259_v9  ;;  %v329_v23 = vadd.f32 %v534_v1, %v260_v10  ;;  %v330_v24 = vadd.f32 %v534_v1, %v261_v11  ;;  %v263_v25 = vmul.f32 %v524_v0, %v194_v7 }
  0x2d   : > { %389 = vst [vmem:[%s548_s22 + $0x140] sm:$0xff] %v325_v15  ;;  %390 = vst [vmem:[%s548_s22 + $0x148] sm:$0xff] %v326_v16  ;;  %v331_v27 = vadd.f32 %v534_v1, %v262_v18  ;;  %v264_v28 = vmul.f32 %v524_v0, %v195_v12  ;;  %v265_v29 = vmul.f32 %v524_v0, %v196_v13 }
  0x2e   : > { %391 = vst [vmem:[%s548_s22 + $0x150] sm:$0xff] %v327_v17  ;;  %v266_v30 = vmul.f32 %v524_v0, %v197_v14  ;;  %392 = vst [vmem:[%s548_s22 + $0x158] sm:$0xff] %v328_v22  ;;  %v332_v32 = vadd.f32 %v534_v1, %v263_v25  ;;  %v267_v33 = vmul.f32 %v524_v0, %v198_v19 }
  0x2f   : > { %393 = vst [vmem:[%s548_s22 + $0x160] sm:$0xff] %v329_v23  ;;  %394 = vst [vmem:[%s548_s22 + $0x168] sm:$0xff] %v330_v24  ;;  %v268_v34 = vmul.f32 %v524_v0, %v199_v20  ;;  %v269_v35 = vmul.f32 %v524_v0, %v200_v21  ;;  %v333_v39 = vadd.f32 %v534_v1, %v264_v28 }
  0x30   : > { %395 = vst [vmem:[%s548_s22 + $0x170] sm:$0xff] %v331_v27  ;;  %v334_v40 = vadd.f32 %v534_v1, %v265_v29  ;;  %v335_v41 = vadd.f32 %v534_v1, %v266_v30  ;;  %v270_v42 = vmul.f32 %v524_v0, %v201_v26  ;;  %396 = vst [vmem:[%s548_s22 + $0x178] sm:$0xff] %v332_v32 }
  0x31   : > { %v336_v46 = vadd.f32 %v534_v1, %v267_v33  ;;  %v337_v47 = vadd.f32 %v534_v1, %v268_v34  ;;  %v338_v48 = vadd.f32 %v534_v1, %v269_v35  ;;  %v271_v49 = vmul.f32 %v524_v0, %v202_v31  ;;  %397 = vst [vmem:[%s548_s22 + $0x180] sm:$0xff] %v333_v39 }
  0x32   : > { %398 = vst [vmem:[%s548_s22 + $0x188] sm:$0xff] %v334_v40  ;;  %399 = vst [vmem:[%s548_s22 + $0x190] sm:$0xff] %v335_v41  ;;  %v339_v51 = vadd.f32 %v534_v1, %v270_v42  ;;  %v272_v52 = vmul.f32 %v524_v0, %v203_v36  ;;  %v273_v53 = vmul.f32 %v524_v0, %v204_v37 }
  0x33   : > { %v274_v54 = vmul.f32 %v524_v0, %v205_v38  ;;  %400 = vst [vmem:[%s548_s22 + $0x198] sm:$0xff] %v336_v46  ;;  %401 = vst [vmem:[%s548_s22 + $0x1a0] sm:$0xff] %v337_v47  ;;  %v340_v56 = vadd.f32 %v534_v1, %v271_v49  ;;  %v275_v57 = vmul.f32 %v524_v0, %v206_v43 }
  0x34   : > { %402 = vst [vmem:[%s548_s22 + $0x1a8] sm:$0xff] %v338_v48  ;;  %v276_v58 = vmul.f32 %v524_v0, %v207_v44  ;;  %v277_v59 = vmul.f32 %v524_v0, %v208_v45  ;;  %403 = vst [vmem:[%s548_s22 + $0x1b0] sm:$0xff] %v339_v51  ;;  %v341_v60 = vadd.f32 %v534_v1, %v272_v52 }
  0x35   : > { %v342_v61 = vadd.f32 %v534_v1, %v273_v53  ;;  %v343_v62 = vadd.f32 %v534_v1, %v274_v54  ;;  %v278_v63 = vmul.f32 %v524_v0, %v209_v50  ;;  %404 = vst [vmem:[%s548_s22 + $0x1b8] sm:$0xff] %v340_v56  ;;  %v344_v2 = vadd.f32 %v534_v1, %v275_v57 }
  0x36   : > { %v345_v3 = vadd.f32 %v534_v1, %v276_v58  ;;  %v346_v4 = vadd.f32 %v534_v1, %v277_v59  ;;  %v279_v5 = vmul.f32 %v524_v0, %v210_v55  ;;  %405 = vst [vmem:[%s548_s22 + $0x1c0] sm:$0xff] %v341_v60 }
  0x37   : > { %406 = vst [vmem:[%s548_s22 + $0x1c8] sm:$0xff] %v342_v61  ;;  %407 = vst [vmem:[%s548_s22 + $0x1d0] sm:$0xff] %v343_v62  ;;  %v347_v6 = vadd.f32 %v534_v1, %v278_v63 }
  0x38   : > { %408 = vst [vmem:[%s548_s22 + $0x1d8] sm:$0xff] %v344_v2  ;;  %409 = vst [vmem:[%s548_s22 + $0x1e0] sm:$0xff] %v345_v3  ;;  %v348_v7 = vadd.f32 %v534_v1, %v279_v5 }
  0x39   : > { %410 = vst [vmem:[%s548_s22 + $0x1e8] sm:$0xff] %v346_v4  ;;  %411 = vst [vmem:[%s548_s22 + $0x1f0] sm:$0xff] %v347_v6 }
  0x3a   : > { %412 = vst [vmem:[%s548_s22 + $0x1f8] sm:$0xff] %v348_v7 }
  0x3b PF: > { %s12_s9 = sadd.s32 1, %s496_s9  }
  0x3c   : > { %p9_p4 = scmp.ge.s32.totalorder %s12_s9, 5  }
  0x3e   :  { %11 = sbr.rel (!%p9_p4) target bundleno = 1 (0x1), region = 58 }

// kernel: cra_forward.30
= control target key start
LH: loop header
LB: loop body
LE: loop exit
PB: predicated region body
PF: predicated region fallthrough
CT: control target
= control target key end

     0   :  { %s1421_s15 = smov 0   ;;  %s1776_s0 = inlined_call_operand.vmem [shape: bf16[1536,4], index: 0, kind: input, shape index: {}]   ;;  %s1777_s1 = inlined_call_operand.vmem [shape: bf16[4,128], index: 1, kind: input, shape index: {}]   ;;  %s1778_s2 = inlined_call_operand.vmem [shape: f32[1536,128], index: 2, kind: output, shape index: {0}]   ;;  %s1779_s3 = inlined_call_operand.vmem [shape: f32[1,128], index: 3, kind: output, shape index: {1}]   ;;  %s1780_s4 = inlined_call_operand.vmem [shape: f32[1,128], index: 4, kind: output, shape index: {2}]  }
   0x1 LB: > { %s1427_s16 = sadd.s32 4294967295, %s1393_s15   ;;  %p1170_p0 = scmp.ge.s32.totalorder %s1393_s15, 1  ;;  %s1393_s15 = sphi %s1421_s15, %s15_s15  }
   0x2   : > { %p158_p1 = scmp.lt.s32.totalorder %s1393_s15, 4 }
   0x4   : > { %p159_p2 = pnand %p1170_p0, %p158_p1 }
   0x5   : > { %s1171_s17 = sshll.u32 (!%p159_p2), %s1427_s16, 6  ;;  %p1175_p4 = scmp.ne.s32.totalorder (!%p159_p2), %s1427_s16, 0 }
   0x6   : > { %162 = sbr.rel (%p159_p2) target bundleno = 391 (0x187), region = 28  ;;  %p185_p3 = scmp.lt.s32.totalorder (!%p159_p2), %s1171_s17, 191 }
   0xd   : > { %s1782_s17 = smov (!%p185_p3, %s1171_s17), 191  ;;  %200 = sbr.rel (%p1175_p4) target bundleno = 20 (0x14), region = 32 }
   0xe   : > { %s1172_s18 = sshll.u32 %s1782_s17, 2  ;;  %s1174_s19 = sshll.u32 %s1782_s17, 3  ;;  %v1395_v0 = vmov (!%p1175_p4), 0.0  }
   0xf   : > { %s1435_s22 = scalar_lea.vmem %s1776_s0, %s1172_s18  ;;  %s1440_s25 = scalar_lea.vmem %s1778_s2, %s1174_s19  ;;  %201 = vst [vmem:[#allocation2] sm:$0x1] (!%p1175_p4), %v1395_v0  ;;  %202 = vst [vmem:[#allocation3] sm:$0x1] (!%p1175_p4), %v1395_v0 }
  0x14 PF: > { %v267_v1 = vld [vmem:[%s1777_s1] sm:$0x3]  ;;  %vm525_vm0 = vcmask 1041408   ;;  %vm428_vm1 = vcmask 31744   ;;  %v1356_v4 = vld [vmem:[%s1435_s22 + $0x8] sm:$0xff]   ;;  %v1357_v5 = vld [vmem:[%s1435_s22 + $0x10] sm:$0xff]  }
  0x15   : > { %v1355_v2 = vld [vmem:[%s1435_s22] sm:$0xff]   ;;  %1344 = vmatprep.subr.msk.bf16.mxu0 %vm525_vm0, %v267_v1  ;;  %v527_v3 = vsel %vm525_vm0, %v267_v1, 0  ;;  %1345 = vmatprep.subr.msk.bf16.mxu1 %vm525_vm0, %v267_v1  ;;  %v1358_v6 = vld [vmem:[%s1435_s22 + $0x18] sm:$0xff]   ;;  %v1360_v8 = vld [vmem:[%s1435_s22 + $0x28] sm:$0xff]   ;;  %p1240_p5 = scmp.ne.s32.totalorder %s1427_s16, 2 }
  0x16   : > { %1277 = vmatpush3.bf16.msra.mxu0 %v527_v3  ;;  %1278 = vmatprep.mubr.msk.bf16.mxu0 %vm428_vm1, %v1355_v2  ;;  %v1359_v7 = vld [vmem:[%s1435_s22 + $0x20] sm:$0xff]   ;;  %v1361_v9 = vld [vmem:[%s1435_s22 + $0x30] sm:$0xff]   ;;  %v1372_v11 = vld [vmem:[%s1435_s22 + $0x88] sm:$0xff]  }
  0x17   : > { %1343 = vmatpush3.bf16.msra.mxu1 %v527_v3  ;;  %v1371_v10 = vld [vmem:[%s1435_s22 + $0x80] sm:$0xff]   ;;  %v1373_v12 = vld [vmem:[%s1435_s22 + $0x90] sm:$0xff]   ;;  %v1362_v13 = vld [vmem:[%s1435_s22 + $0x38] sm:$0xff]  }
  0x18   : > { %1310 = vmatprep.mubr.msk.bf16.mxu1 %vm428_vm1, %v1371_v10  ;;  %v1374_v14 = vld [vmem:[%s1435_s22 + $0x98] sm:$0xff]   ;;  %v1375_v15 = vld [vmem:[%s1435_s22 + $0xa0] sm:$0xff]   ;;  %v1376_v17 = vld [vmem:[%s1435_s22 + $0xa8] sm:$0xff]  }
  0x19   : > { %1279 = vmatmul.mubr.msk.bf16.vlgmr.msra.gmra.mrb[0].mxu0 %vm428_vm1, %v1356_v4  ;;  %v1363_v16 = vld [vmem:[%s1435_s22 + $0x40] sm:$0xff]   ;;  %v1364_v18 = vld [vmem:[%s1435_s22 + $0x48] sm:$0xff]   ;;  %v1377_v19 = vld [vmem:[%s1435_s22 + $0xb0] sm:$0xff]  }
  0x1a   : > { %1282 = vmatprep.mubr.msk.bf16.mxu0 %vm428_vm1, %v1357_v5  ;;  %1311 = vmatmul.mubr.msk.bf16.vlgmr.msra.gmra.mrb[0].mxu1 %vm428_vm1, %v1372_v11  ;;  %v1365_v20 = vld [vmem:[%s1435_s22 + $0x50] sm:$0xff]   ;;  %v1378_v21 = vld [vmem:[%s1435_s22 + $0xb8] sm:$0xff]   ;;  %v1379_v23 = vld [vmem:[%s1435_s22 + $0xc0] sm:$0xff]  }
  0x1b   : > { %1314 = vmatprep.mubr.msk.bf16.mxu1 %vm428_vm1, %v1373_v12  ;;  %v1366_v22 = vld [vmem:[%s1435_s22 + $0x58] sm:$0xff]   ;;  %v1367_v24 = vld [vmem:[%s1435_s22 + $0x60] sm:$0xff]   ;;  %v1380_v25 = vld [vmem:[%s1435_s22 + $0xc8] sm:$0xff]  }
  0x1c   : > { %v1368_v26 = vld [vmem:[%s1435_s22 + $0x68] sm:$0xff]   ;;  %v1381_v27 = vld [vmem:[%s1435_s22 + $0xd0] sm:$0xff]   ;;  %v1382_v29 = vld [vmem:[%s1435_s22 + $0xd8] sm:$0xff]  }
  0x1d   : > { %v1369_v28 = vld [vmem:[%s1435_s22 + $0x70] sm:$0xff]   ;;  %v1370_v30 = vld [vmem:[%s1435_s22 + $0x78] sm:$0xff]   ;;  %v1383_v31 = vld [vmem:[%s1435_s22 + $0xe0] sm:$0xff]  }
  0x1e   : > { %v1384_v32 = vld [vmem:[%s1435_s22 + $0xe8] sm:$0xff]   ;;  %v1385_v33 = vld [vmem:[%s1435_s22 + $0xf0] sm:$0xff]   ;;  %v1386_v34 = vld [vmem:[%s1435_s22 + $0xf8] sm:$0xff]  }
  0x21   : > { %1283 = vmatmul.mubr.msk.bf16.gmra.mrb[4].mxu0 %vm428_vm1, %v1358_v6 }
  0x22   : > { %1286 = vmatprep.mubr.msk.bf16.mxu0 %vm428_vm1, %v1359_v7  ;;  %1315 = vmatmul.mubr.msk.bf16.gmra.mrb[4].mxu1 %vm428_vm1, %v1374_v14 }
  0x23   : > { %1318 = vmatprep.mubr.msk.bf16.mxu1 %vm428_vm1, %v1375_v15 }
  0x29   : > { %1287 = vmatmul.mubr.msk.bf16.gmra.mrb[8].mxu0 %vm428_vm1, %v1360_v8 }
  0x2a   : > { %1290 = vmatprep.mubr.msk.bf16.mxu0 %vm428_vm1, %v1361_v9  ;;  %1319 = vmatmul.mubr.msk.bf16.gmra.mrb[8].mxu1 %vm428_vm1, %v1376_v17 }
  0x2b   : > { %1322 = vmatprep.mubr.msk.bf16.mxu1 %vm428_vm1, %v1377_v19 }
  0x31   : > { %1291 = vmatmul.mubr.msk.bf16.gmra.mrb[12].mxu0 %vm428_vm1, %v1362_v13 }
  0x32   : > { %1294 = vmatprep.mubr.msk.bf16.mxu0 %vm428_vm1, %v1363_v16  ;;  %1323 = vmatmul.mubr.msk.bf16.gmra.mrb[12].mxu1 %vm428_vm1, %v1378_v21 }
  0x33   : > { %1326 = vmatprep.mubr.msk.bf16.mxu1 %vm428_vm1, %v1379_v23 }
  0x39   : > { %1295 = vmatmul.mubr.msk.bf16.gmra.mrb[16].mxu0 %vm428_vm1, %v1364_v18 }
  0x3a   : > { %1298 = vmatprep.mubr.msk.bf16.mxu0 %vm428_vm1, %v1365_v20  ;;  %1327 = vmatmul.mubr.msk.bf16.gmra.mrb[16].mxu1 %vm428_vm1, %v1380_v25 }
  0x3b   : > { %1330 = vmatprep.mubr.msk.bf16.mxu1 %vm428_vm1, %v1381_v27 }
  0x41   : > { %1299 = vmatmul.mubr.msk.bf16.gmra.mrb[20].mxu0 %vm428_vm1, %v1366_v22 }
  0x42   : > { %1302 = vmatprep.mubr.msk.bf16.mxu0 %vm428_vm1, %v1367_v24  ;;  %1331 = vmatmul.mubr.msk.bf16.gmra.mrb[20].mxu1 %vm428_vm1, %v1382_v29 }
  0x43   : > { %1334 = vmatprep.mubr.msk.bf16.mxu1 %vm428_vm1, %v1383_v31 }
  0x49   : > { %1303 = vmatmul.mubr.msk.bf16.gmra.mrb[24].mxu0 %vm428_vm1, %v1368_v26 }
  0x4a   : > { %1306 = vmatprep.mubr.msk.bf16.mxu0 %vm428_vm1, %v1369_v28  ;;  %1335 = vmatmul.mubr.msk.bf16.gmra.mrb[24].mxu1 %vm428_vm1, %v1384_v32 }
  0x4b   : > { %1338 = vmatprep.mubr.msk.bf16.mxu1 %vm428_vm1, %v1385_v33 }
  0x51   : > { %1307 = vmatmul.mubr.msk.bf16.gmra.mrb[28].mxu0 %vm428_vm1, %v1370_v30 }
  0x52   : > { %1339 = vmatmul.mubr.msk.bf16.gmra.mrb[28].mxu1 %vm428_vm1, %v1386_v34 }
  0xec   : > { %v1280_v35 = vpop.f32.mrb[0].mxu0 }
  0xed   : > { %820 = vst [vmem:[%s1440_s25 + $0x10] sm:$0xff] %v1280_v35  ;;  %v563_v36 = vpop.f32.mrb[1].mxu0  ;;  %v957_v42 = vmul.f32 %v1280_v35, %v1280_v35  ;;  %v1518_v61 = vpop.f32.mrb[0].mxu1 }
  0xee   : > { %818 = vst [vmem:[%s1440_s25] sm:$0xff] %v563_v36  ;;  %v1281_v37 = vpop.f32.mrb[2].mxu0  ;;  %v955_v39 = vmul.f32 %v563_v36, %v563_v36  ;;  %852 = vst [vmem:[%s1440_s25 + $0x110] sm:$0xff] %v1518_v61  ;;  %v1522_v2 = vpop.f32.mrb[1].mxu1 }
  0xef   : > { %821 = vst [vmem:[%s1440_s25 + $0x18] sm:$0xff] %v1281_v37  ;;  %v566_v38 = vpop.f32.mrb[3].mxu0  ;;  %v958_v45 = vmul.f32 %v1281_v37, %v1281_v37  ;;  %850 = vst [vmem:[%s1440_s25 + $0x100] sm:$0xff] %v1522_v2  ;;  %v1527_v4 = vpop.f32.mrb[2].mxu1 }
  0xf0   : > { %819 = vst [vmem:[%s1440_s25 + $0x8] sm:$0xff] %v566_v38  ;;  %v883_v40 = vadd.f32 %v566_v38, %v563_v36  ;;  %v956_v41 = vmul.f32 %v566_v38, %v566_v38  ;;  %853 = vst [vmem:[%s1440_s25 + $0x118] sm:$0xff] %v1527_v4  ;;  %v1532_v9 = vpop.f32.mrb[3].mxu1 }
  0xf1   : > { %851 = vst [vmem:[%s1440_s25 + $0x108] sm:$0xff] %v1532_v9 }
  0xf2   : > { %v884_v43 = vadd.f32 %v1280_v35, %v883_v40  ;;  %v1019_v44 = vadd.f32 %v956_v41, %v955_v39 }
  0xf4   : > { %v1020_v46 = vadd.f32 %v1019_v44, %v957_v42  ;;  %v1284_v47 = vpop.f32.mrb[4].mxu0  ;;  %v885_v48 = vadd.f32 %v1281_v37, %v884_v43 }
  0xf5   : > { %824 = vst [vmem:[%s1440_s25 + $0x30] sm:$0xff] %v1284_v47  ;;  %v579_v49 = vpop.f32.mrb[5].mxu0  ;;  %v961_v58 = vmul.f32 %v1284_v47, %v1284_v47  ;;  %v1538_v17 = vpop.f32.mrb[4].mxu1 }
  0xf6   : > { %822 = vst [vmem:[%s1440_s25 + $0x20] sm:$0xff] %v579_v49  ;;  %v886_v50 = vadd.f32 %v885_v48, %v579_v49  ;;  %v959_v51 = vmul.f32 %v579_v49, %v579_v49  ;;  %v1021_v52 = vadd.f32 %v1020_v46, %v958_v45  ;;  %v1285_v53 = vpop.f32.mrb[6].mxu0  ;;  %856 = vst [vmem:[%s1440_s25 + $0x130] sm:$0xff] %v1538_v17  ;;  %v1542_v22 = vpop.f32.mrb[5].mxu1 }
  0xf7   : > { %825 = vst [vmem:[%s1440_s25 + $0x38] sm:$0xff] %v1285_v53  ;;  %v582_v54 = vpop.f32.mrb[7].mxu0  ;;  %v962_v62 = vmul.f32 %v1285_v53, %v1285_v53  ;;  %854 = vst [vmem:[%s1440_s25 + $0x120] sm:$0xff] %v1542_v22  ;;  %v1547_v24 = vpop.f32.mrb[6].mxu1 }
  0xf8   : > { %v1022_v55 = vadd.f32 %v1021_v52, %v959_v51  ;;  %823 = vst [vmem:[%s1440_s25 + $0x28] sm:$0xff] %v582_v54  ;;  %v887_v56 = vadd.f32 %v886_v50, %v582_v54  ;;  %v960_v57 = vmul.f32 %v582_v54, %v582_v54  ;;  %857 = vst [vmem:[%s1440_s25 + $0x138] sm:$0xff] %v1547_v24  ;;  %v1552_v29 = vpop.f32.mrb[7].mxu1 }
  0xf9   : > { %855 = vst [vmem:[%s1440_s25 + $0x128] sm:$0xff] %v1552_v29 }
  0xfa   : > { %v888_v59 = vadd.f32 %v1284_v47, %v887_v56  ;;  %v1023_v60 = vadd.f32 %v1022_v55, %v960_v57 }
  0xfc   : > { %v1024_v63 = vadd.f32 %v1023_v60, %v961_v58  ;;  %v1288_v0 = vpop.f32.mrb[8].mxu0  ;;  %v889_v1 = vadd.f32 %v1285_v53, %v888_v59 }
  0xfd   : > { %828 = vst [vmem:[%s1440_s25 + $0x50] sm:$0xff] %v1288_v0  ;;  %v595_v3 = vpop.f32.mrb[9].mxu0  ;;  %v965_v14 = vmul.f32 %v1288_v0, %v1288_v0  ;;  %v1558_v37 = vpop.f32.mrb[8].mxu1 }
  0xfe   : > { %826 = vst [vmem:[%s1440_s25 + $0x40] sm:$0xff] %v595_v3  ;;  %v890_v5 = vadd.f32 %v889_v1, %v595_v3  ;;  %v963_v6 = vmul.f32 %v595_v3, %v595_v3  ;;  %v1025_v7 = vadd.f32 %v1024_v63, %v962_v62  ;;  %v1289_v8 = vpop.f32.mrb[10].mxu0  ;;  %860 = vst [vmem:[%s1440_s25 + $0x150] sm:$0xff] %v1558_v37  ;;  %v1562_v42 = vpop.f32.mrb[9].mxu1 }
  0xff   : > { %829 = vst [vmem:[%s1440_s25 + $0x58] sm:$0xff] %v1289_v8  ;;  %v598_v10 = vpop.f32.mrb[11].mxu0  ;;  %v966_v18 = vmul.f32 %v1289_v8, %v1289_v8  ;;  %858 = vst [vmem:[%s1440_s25 + $0x140] sm:$0xff] %v1562_v42  ;;  %v1567_v44 = vpop.f32.mrb[10].mxu1 }
 0x100   : > { %v1026_v11 = vadd.f32 %v1025_v7, %v963_v6  ;;  %827 = vst [vmem:[%s1440_s25 + $0x48] sm:$0xff] %v598_v10  ;;  %v891_v12 = vadd.f32 %v890_v5, %v598_v10  ;;  %v964_v13 = vmul.f32 %v598_v10, %v598_v10  ;;  %861 = vst [vmem:[%s1440_s25 + $0x158] sm:$0xff] %v1567_v44  ;;  %v1572_v49 = vpop.f32.mrb[11].mxu1 }
 0x101   : > { %859 = vst [vmem:[%s1440_s25 + $0x148] sm:$0xff] %v1572_v49 }
 0x102   : > { %v892_v15 = vadd.f32 %v1288_v0, %v891_v12  ;;  %v1027_v16 = vadd.f32 %v1026_v11, %v964_v13 }
 0x104   : > { %v1028_v19 = vadd.f32 %v1027_v16, %v965_v14  ;;  %v1292_v20 = vpop.f32.mrb[12].mxu0  ;;  %v893_v21 = vadd.f32 %v1289_v8, %v892_v15 }
 0x105   : > { %832 = vst [vmem:[%s1440_s25 + $0x70] sm:$0xff] %v1292_v20  ;;  %v611_v23 = vpop.f32.mrb[13].mxu0  ;;  %v969_v34 = vmul.f32 %v1292_v20, %v1292_v20  ;;  %v1578_v57 = vpop.f32.mrb[12].mxu1 }
 0x106   : > { %830 = vst [vmem:[%s1440_s25 + $0x60] sm:$0xff] %v611_v23  ;;  %v894_v25 = vadd.f32 %v893_v21, %v611_v23  ;;  %v967_v26 = vmul.f32 %v611_v23, %v611_v23  ;;  %v1029_v27 = vadd.f32 %v1028_v19, %v966_v18  ;;  %v1293_v28 = vpop.f32.mrb[14].mxu0  ;;  %864 = vst [vmem:[%s1440_s25 + $0x170] sm:$0xff] %v1578_v57  ;;  %v1582_v63 = vpop.f32.mrb[13].mxu1 }
 0x107   : > { %833 = vst [vmem:[%s1440_s25 + $0x78] sm:$0xff] %v1293_v28  ;;  %v614_v30 = vpop.f32.mrb[15].mxu0  ;;  %v970_v38 = vmul.f32 %v1293_v28, %v1293_v28  ;;  %862 = vst [vmem:[%s1440_s25 + $0x160] sm:$0xff] %v1582_v63  ;;  %v1587_v1 = vpop.f32.mrb[14].mxu1 }
 0x108   : > { %v1030_v31 = vadd.f32 %v1029_v27, %v967_v26  ;;  %831 = vst [vmem:[%s1440_s25 + $0x68] sm:$0xff] %v614_v30  ;;  %v895_v32 = vadd.f32 %v894_v25, %v614_v30  ;;  %v968_v33 = vmul.f32 %v614_v30, %v614_v30  ;;  %865 = vst [vmem:[%s1440_s25 + $0x178] sm:$0xff] %v1587_v1  ;;  %v1592_v8 = vpop.f32.mrb[15].mxu1 }
 0x109   : > { %863 = vst [vmem:[%s1440_s25 + $0x168] sm:$0xff] %v1592_v8 }
 0x10a   : > { %v896_v35 = vadd.f32 %v1292_v20, %v895_v32  ;;  %v1031_v36 = vadd.f32 %v1030_v31, %v968_v33 }
 0x10c   : > { %v1032_v39 = vadd.f32 %v1031_v36, %v969_v34  ;;  %v1296_v40 = vpop.f32.mrb[16].mxu0  ;;  %v897_v41 = vadd.f32 %v1293_v28, %v896_v35 }
 0x10d   : > { %836 = vst [vmem:[%s1440_s25 + $0x90] sm:$0xff] %v1296_v40  ;;  %v627_v43 = vpop.f32.mrb[17].mxu0  ;;  %v973_v54 = vmul.f32 %v1296_v40, %v1296_v40  ;;  %v1598_v18 = vpop.f32.mrb[16].mxu1 }
 0x10e   : > { %834 = vst [vmem:[%s1440_s25 + $0x80] sm:$0xff] %v627_v43  ;;  %v898_v45 = vadd.f32 %v897_v41, %v627_v43  ;;  %v971_v46 = vmul.f32 %v627_v43, %v627_v43  ;;  %v1033_v47 = vadd.f32 %v1032_v39, %v970_v38  ;;  %v1297_v48 = vpop.f32.mrb[18].mxu0  ;;  %868 = vst [vmem:[%s1440_s25 + $0x190] sm:$0xff] %v1598_v18  ;;  %v1602_v25 = vpop.f32.mrb[17].mxu1 }
 0x10f   : > { %837 = vst [vmem:[%s1440_s25 + $0x98] sm:$0xff] %v1297_v48  ;;  %v630_v50 = vpop.f32.mrb[19].mxu0  ;;  %v974_v58 = vmul.f32 %v1297_v48, %v1297_v48  ;;  %866 = vst [vmem:[%s1440_s25 + $0x180] sm:$0xff] %v1602_v25  ;;  %v1607_v27 = vpop.f32.mrb[18].mxu1 }
 0x110   : > { %v1034_v51 = vadd.f32 %v1033_v47, %v971_v46  ;;  %835 = vst [vmem:[%s1440_s25 + $0x88] sm:$0xff] %v630_v50  ;;  %v899_v52 = vadd.f32 %v898_v45, %v630_v50  ;;  %v972_v53 = vmul.f32 %v630_v50, %v630_v50  ;;  %869 = vst [vmem:[%s1440_s25 + $0x198] sm:$0xff] %v1607_v27  ;;  %v1612_v33 = vpop.f32.mrb[19].mxu1 }
 0x111   : > { %867 = vst [vmem:[%s1440_s25 + $0x188] sm:$0xff] %v1612_v33 }
 0x112   : > { %v900_v55 = vadd.f32 %v1296_v40, %v899_v52  ;;  %v1035_v56 = vadd.f32 %v1034_v51, %v972_v53 }
 0x114   : > { %v1036_v59 = vadd.f32 %v1035_v56, %v973_v54  ;;  %v1300_v60 = vpop.f32.mrb[20].mxu0  ;;  %v901_v62 = vadd.f32 %v1297_v48, %v900_v55 }
 0x115   : > { %840 = vst [vmem:[%s1440_s25 + $0xb0] sm:$0xff] %v1300_v60  ;;  %v643_v0 = vpop.f32.mrb[21].mxu0  ;;  %v977_v14 = vmul.f32 %v1300_v60, %v1300_v60  ;;  %v1618_v43 = vpop.f32.mrb[20].mxu1 }
 0x116   : > { %838 = vst [vmem:[%s1440_s25 + $0xa0] sm:$0xff] %v643_v0  ;;  %v902_v3 = vadd.f32 %v901_v62, %v643_v0  ;;  %v975_v5 = vmul.f32 %v643_v0, %v643_v0  ;;  %v1037_v6 = vadd.f32 %v1036_v59, %v974_v58  ;;  %v1301_v7 = vpop.f32.mrb[22].mxu0  ;;  %872 = vst [vmem:[%s1440_s25 + $0x1b0] sm:$0xff] %v1618_v43  ;;  %v1622_v50 = vpop.f32.mrb[21].mxu1 }
 0x117   : > { %841 = vst [vmem:[%s1440_s25 + $0xb8] sm:$0xff] %v1301_v7  ;;  %v646_v10 = vpop.f32.mrb[23].mxu0  ;;  %v978_v19 = vmul.f32 %v1301_v7, %v1301_v7  ;;  %870 = vst [vmem:[%s1440_s25 + $0x1a0] sm:$0xff] %v1622_v50  ;;  %v1627_v52 = vpop.f32.mrb[22].mxu1 }
 0x118   : > { %v1038_v11 = vadd.f32 %v1037_v6, %v975_v5  ;;  %839 = vst [vmem:[%s1440_s25 + $0xa8] sm:$0xff] %v646_v10  ;;  %v903_v12 = vadd.f32 %v902_v3, %v646_v10  ;;  %v976_v13 = vmul.f32 %v646_v10, %v646_v10  ;;  %873 = vst [vmem:[%s1440_s25 + $0x1b8] sm:$0xff] %v1627_v52  ;;  %v1632_v58 = vpop.f32.mrb[23].mxu1 }
 0x119   : > { %871 = vst [vmem:[%s1440_s25 + $0x1a8] sm:$0xff] %v1632_v58 }
 0x11a   : > { %v904_v15 = vadd.f32 %v1300_v60, %v903_v12  ;;  %v1039_v16 = vadd.f32 %v1038_v11, %v976_v13  ;;  %v987_v13 = vmul.f32 %v1522_v2, %v1522_v2 }
 0x11c   : > { %v1040_v20 = vadd.f32 %v1039_v16, %v977_v14  ;;  %v1304_v21 = vpop.f32.mrb[24].mxu0  ;;  %v905_v23 = vadd.f32 %v1301_v7, %v904_v15 }
 0x11d   : > { %844 = vst [vmem:[%s1440_s25 + $0xd0] sm:$0xff] %v1304_v21  ;;  %v659_v26 = vpop.f32.mrb[25].mxu0  ;;  %v981_v39 = vmul.f32 %v1304_v21, %v1304_v21  ;;  %v1638_v7 = vpop.f32.mrb[24].mxu1 }
 0x11e   : > { %842 = vst [vmem:[%s1440_s25 + $0xc0] sm:$0xff] %v659_v26  ;;  %v906_v28 = vadd.f32 %v905_v23, %v659_v26  ;;  %v979_v30 = vmul.f32 %v659_v26, %v659_v26  ;;  %v1041_v31 = vadd.f32 %v1040_v20, %v978_v19  ;;  %v1305_v32 = vpop.f32.mrb[26].mxu0  ;;  %876 = vst [vmem:[%s1440_s25 + $0x1d0] sm:$0xff] %v1638_v7  ;;  %v1644_v14 = vpop.f32.mrb[25].mxu1 }
 0x11f   : > { %845 = vst [vmem:[%s1440_s25 + $0xd8] sm:$0xff] %v1305_v32  ;;  %v662_v34 = vpop.f32.mrb[27].mxu0  ;;  %v982_v45 = vmul.f32 %v1305_v32, %v1305_v32  ;;  %874 = vst [vmem:[%s1440_s25 + $0x1c0] sm:$0xff] %v1644_v14  ;;  %v1648_v15 = vpop.f32.mrb[26].mxu1  ;;  %v988_v26 = vmul.f32 %v1532_v9, %v1532_v9 }
 0x120   : > { %v1042_v35 = vadd.f32 %v1041_v31, %v979_v30  ;;  %843 = vst [vmem:[%s1440_s25 + $0xc8] sm:$0xff] %v662_v34  ;;  %v907_v36 = vadd.f32 %v906_v28, %v662_v34  ;;  %v980_v38 = vmul.f32 %v662_v34, %v662_v34  ;;  %877 = vst [vmem:[%s1440_s25 + $0x1d8] sm:$0xff] %v1648_v15  ;;  %v1653_v20 = vpop.f32.mrb[27].mxu1 }
 0x121   : > { %875 = vst [vmem:[%s1440_s25 + $0x1c8] sm:$0xff] %v1653_v20  ;;  %v989_v28 = vmul.f32 %v1518_v61, %v1518_v61 }
 0x122   : > { %v908_v40 = vadd.f32 %v1304_v21, %v907_v36  ;;  %v1043_v41 = vadd.f32 %v1042_v35, %v980_v38  ;;  %v991_v36 = vmul.f32 %v1542_v22, %v1542_v22 }
 0x124   : > { %v1044_v46 = vadd.f32 %v1043_v41, %v981_v39  ;;  %v1308_v47 = vpop.f32.mrb[28].mxu0  ;;  %v909_v48 = vadd.f32 %v1305_v32, %v908_v40  ;;  %v990_v32 = vmul.f32 %v1527_v4, %v1527_v4 }
 0x125   : > { %848 = vst [vmem:[%s1440_s25 + $0xf0] sm:$0xff] %v1308_v47  ;;  %v675_v51 = vpop.f32.mrb[29].mxu0  ;;  %v985_v3 = vmul.f32 %v1308_v47, %v1308_v47  ;;  %v1663_v31 = vpop.f32.mrb[28].mxu1 }
 0x126   : > { %846 = vst [vmem:[%s1440_s25 + $0xe0] sm:$0xff] %v675_v51  ;;  %v910_v53 = vadd.f32 %v909_v48, %v675_v51  ;;  %v983_v54 = vmul.f32 %v675_v51, %v675_v51  ;;  %v1045_v55 = vadd.f32 %v1044_v46, %v982_v45  ;;  %v1309_v56 = vpop.f32.mrb[30].mxu0  ;;  %880 = vst [vmem:[%s1440_s25 + $0x1f0] sm:$0xff] %v1663_v31 }
 0x127   : > { %849 = vst [vmem:[%s1440_s25 + $0xf8] sm:$0xff] %v1309_v56  ;;  %v678_v59 = vpop.f32.mrb[31].mxu0  ;;  %v986_v10 = vmul.f32 %v1309_v56, %v1309_v56  ;;  %v992_v45 = vmul.f32 %v1552_v29, %v1552_v29  ;;  %v993_v46 = vmul.f32 %v1538_v17, %v1538_v17 }
 0x128   : > { %v1046_v60 = vadd.f32 %v1045_v55, %v983_v54  ;;  %847 = vst [vmem:[%s1440_s25 + $0xe8] sm:$0xff] %v678_v59  ;;  %v911_v62 = vadd.f32 %v910_v53, %v678_v59  ;;  %v984_v0 = vmul.f32 %v678_v59, %v678_v59  ;;  %v995_v54 = vmul.f32 %v1562_v42, %v1562_v42 }
 0x12a   : > { %v912_v5 = vadd.f32 %v1308_v47, %v911_v62  ;;  %v1047_v6 = vadd.f32 %v1046_v60, %v984_v0  ;;  %v996_v60 = vmul.f32 %v1572_v49, %v1572_v49 }
 0x12c   : > { %v1048_v11 = vadd.f32 %v1047_v6, %v985_v3  ;;  %v913_v12 = vadd.f32 %v1309_v56, %v912_v5 }
 0x12e   : > { %v914_v16 = vadd.f32 %v913_v12, %v1522_v2  ;;  %v1049_v19 = vadd.f32 %v1048_v11, %v986_v10  ;;  %v1000_v12 = vmul.f32 %v1592_v8, %v1592_v8 }
 0x130   : > { %v1050_v21 = vadd.f32 %v1049_v19, %v987_v13  ;;  %v915_v23 = vadd.f32 %v914_v16, %v1532_v9  ;;  %v1672_v9 = vpop.f32.mrb[29].mxu1 }
 0x131   : > { %878 = vst [vmem:[%s1440_s25 + $0x1e0] sm:$0xff] %v1672_v9  ;;  %v1676_v38 = vpop.f32.mrb[30].mxu1 }
 0x132   : > { %v916_v2 = vadd.f32 %v1518_v61, %v915_v23  ;;  %v1051_v30 = vadd.f32 %v1050_v21, %v988_v26  ;;  %881 = vst [vmem:[%s1440_s25 + $0x1f8] sm:$0xff] %v1676_v38  ;;  %v1681_v40 = vpop.f32.mrb[31].mxu1 }
 0x133   : > { %879 = vst [vmem:[%s1440_s25 + $0x1e8] sm:$0xff] %v1681_v40 }
 0x134   : > { %v1052_v34 = vadd.f32 %v1051_v30, %v989_v28  ;;  %v917_v35 = vadd.f32 %v1527_v4, %v916_v2  ;;  %v1004_v2 = vmul.f32 %v1612_v33, %v1612_v33 }
 0x136   : > { %v918_v61 = vadd.f32 %v917_v35, %v1542_v22  ;;  %v1053_v39 = vadd.f32 %v1052_v34, %v990_v32  ;;  %v994_v22 = vmul.f32 %v1547_v24, %v1547_v24 }
 0x138   : > { %v1054_v4 = vadd.f32 %v1053_v39, %v991_v36  ;;  %v919_v41 = vadd.f32 %v918_v61, %v1552_v29 }
 0x13a   : > { %v920_v47 = vadd.f32 %v1538_v17, %v919_v41  ;;  %v1055_v48 = vadd.f32 %v1054_v4, %v992_v45  ;;  %v997_v17 = vmul.f32 %v1558_v37, %v1558_v37  ;;  %v1008_v4 = vmul.f32 %v1632_v58, %v1632_v58 }
 0x13c   : > { %v1056_v51 = vadd.f32 %v1055_v48, %v993_v46  ;;  %v921_v53 = vadd.f32 %v1547_v24, %v920_v47  ;;  %v998_v24 = vmul.f32 %v1567_v44, %v1567_v44 }
 0x13e   : > { %v922_v55 = vadd.f32 %v921_v53, %v1562_v42  ;;  %v1057_v56 = vadd.f32 %v1056_v51, %v994_v22  ;;  %v999_v42 = vmul.f32 %v1582_v63, %v1582_v63  ;;  %v1012_v53 = vmul.f32 %v1653_v20, %v1653_v20 }
 0x140   : > { %v1058_v59 = vadd.f32 %v1057_v56, %v995_v54  ;;  %v923_v29 = vadd.f32 %v922_v55, %v1572_v49 }
 0x142   : > { %v924_v62 = vadd.f32 %v1558_v37, %v923_v29  ;;  %v1059_v0 = vadd.f32 %v1058_v59, %v996_v60  ;;  %v1001_v37 = vmul.f32 %v1578_v57, %v1578_v57 }
 0x144   : > { %v1060_v3 = vadd.f32 %v1059_v0, %v997_v17  ;;  %v925_v5 = vadd.f32 %v1567_v44, %v924_v62  ;;  %v1002_v44 = vmul.f32 %v1587_v1, %v1587_v1  ;;  %v1016_v62 = vmul.f32 %v1681_v40, %v1681_v40 }
 0x146   : > { %v926_v6 = vadd.f32 %v925_v5, %v1582_v63  ;;  %v1061_v10 = vadd.f32 %v1060_v3, %v998_v24  ;;  %v1003_v63 = vmul.f32 %v1602_v25, %v1602_v25 }
 0x148   : > { %v1062_v11 = vadd.f32 %v1061_v10, %v999_v42  ;;  %v927_v49 = vadd.f32 %v926_v6, %v1592_v8 }
 0x14a   : > { %v928_v13 = vadd.f32 %v1578_v57, %v927_v49  ;;  %v1063_v16 = vadd.f32 %v1062_v11, %v1000_v12  ;;  %v1005_v57 = vmul.f32 %v1598_v18, %v1598_v18 }
 0x14c   : > { %v1064_v19 = vadd.f32 %v1063_v16, %v1001_v37  ;;  %v929_v21 = vadd.f32 %v1587_v1, %v928_v13  ;;  %v1006_v1 = vmul.f32 %v1607_v27, %v1607_v27  ;;  %v882_v16 = vld [vmem:[#allocation2] sm:$0x1] }
 0x14e   : > { %v930_v23 = vadd.f32 %v929_v21, %v1602_v25  ;;  %v1065_v26 = vadd.f32 %v1064_v19, %v1002_v44  ;;  %v1007_v25 = vmul.f32 %v1622_v50, %v1622_v50  ;;  %v954_v19 = vld [vmem:[#allocation3] sm:$0x1] }
 0x150   : > { %v1066_v28 = vadd.f32 %v1065_v26, %v1003_v63  ;;  %v931_v8 = vadd.f32 %v930_v23, %v1612_v33 }
 0x152   : > { %v932_v30 = vadd.f32 %v1598_v18, %v931_v8  ;;  %v1067_v32 = vadd.f32 %v1066_v28, %v1004_v2  ;;  %v1009_v18 = vmul.f32 %v1618_v43, %v1618_v43 }
 0x154   : > { %v1068_v34 = vadd.f32 %v1067_v32, %v1005_v57  ;;  %v933_v35 = vadd.f32 %v1607_v27, %v932_v30  ;;  %v1010_v27 = vmul.f32 %v1627_v52, %v1627_v52 }
 0x156   : > { %v934_v36 = vadd.f32 %v933_v35, %v1622_v50  ;;  %v1069_v61 = vadd.f32 %v1068_v34, %v1006_v1  ;;  %v1011_v50 = vmul.f32 %v1644_v14, %v1644_v14 }
 0x158   : > { %v1070_v39 = vadd.f32 %v1069_v61, %v1007_v25  ;;  %v935_v33 = vadd.f32 %v934_v36, %v1632_v58 }
 0x15a   : > { %v936_v41 = vadd.f32 %v1618_v43, %v935_v33  ;;  %v1071_v45 = vadd.f32 %v1070_v39, %v1008_v4  ;;  %v1013_v43 = vmul.f32 %v1638_v7, %v1638_v7 }
 0x15c   : > { %v1072_v46 = vadd.f32 %v1071_v45, %v1009_v18  ;;  %v937_v47 = vadd.f32 %v1627_v52, %v936_v41  ;;  %v1014_v52 = vmul.f32 %v1648_v15, %v1648_v15 }
 0x15e   : > { %v938_v48 = vadd.f32 %v937_v47, %v1644_v14  ;;  %v1073_v22 = vadd.f32 %v1072_v46, %v1010_v27  ;;  %v1015_v14 = vmul.f32 %v1672_v9, %v1672_v9 }
 0x160   : > { %v1074_v51 = vadd.f32 %v1073_v22, %v1011_v50  ;;  %v939_v58 = vadd.f32 %v938_v48, %v1653_v20 }
 0x162   : > { %v940_v54 = vadd.f32 %v1638_v7, %v939_v58  ;;  %v1075_v55 = vadd.f32 %v1074_v51, %v1012_v53  ;;  %v1017_v7 = vmul.f32 %v1663_v31, %v1663_v31 }
 0x164   : > { %v1076_v56 = vadd.f32 %v1075_v55, %v1013_v43  ;;  %v941_v59 = vadd.f32 %v1648_v15, %v940_v54  ;;  %v1018_v15 = vmul.f32 %v1676_v38, %v1676_v38 }
 0x166   : > { %v942_v29 = vadd.f32 %v941_v59, %v1672_v9  ;;  %v1077_v60 = vadd.f32 %v1076_v56, %v1014_v52 }
 0x168   : > { %v1078_v17 = vadd.f32 %v1077_v60, %v1015_v14  ;;  %v943_v20 = vadd.f32 %v942_v29, %v1681_v40 }
 0x16a   : > { %v944_v0 = vadd.f32 %v1663_v31, %v943_v20  ;;  %v1079_v24 = vadd.f32 %v1078_v17, %v1016_v62 }
 0x16c   : > { %v945_v3 = vadd.f32 %v1676_v38, %v944_v0  ;;  %v1080_v5 = vadd.f32 %v1079_v24, %v1017_v7 }
 0x16e   : > { %v946_v9 = vrot.slane %v945_v3, 4  ;;  %v1081_v42 = vadd.f32 %v1080_v5, %v1018_v15 }
 0x170   : > { %v947_v6 = vadd.f32 %v946_v9, %v945_v3  ;;  %v1082_v10 = vrot.slane %v1081_v42, 4 }
 0x172   : > { %v948_v11 = vrot.slane %v947_v6, 2  ;;  %v1083_v49 = vadd.f32 %v1082_v10, %v1081_v42 }
 0x174   : > { %v949_v12 = vadd.f32 %v948_v11, %v947_v6  ;;  %v1084_v40 = vrot.slane %v1083_v49, 2 }
 0x176   : > { %v950_v37 = vrot.slane %v949_v12, 1  ;;  %v1085_v13 = vadd.f32 %v1084_v40, %v1083_v49 }
 0x178   : > { %v951_v44 = vadd.f32 %v950_v37, %v949_v12  ;;  %v1086_v31 = vrot.slane %v1085_v13, 1  ;;  %1093 = sbr.rel (%p1240_p5) target bundleno = 391 (0x187), region = 36 }
 0x17a   : > { %v952_v21 = vadd.f32 %v951_v44, %v882_v16  ;;  %v1087_v63 = vadd.f32 %v1086_v31, %v1085_v13 }
 0x17c   : > { %953 = vst [vmem:[#allocation2] sm:$0x1] %v952_v21  ;;  %v1088_v23 = vadd.f32 %v1087_v63, %v954_v19 }
 0x17e   : > { %1089 = vst [vmem:[#allocation3] sm:$0x1] %v1088_v23 }
 0x183   : > { %v1094_v38 = vld [vmem:[#allocation2] sm:$0x1] }
 0x184   : > { %1095 = vst [vmem:[%s1779_s3] sm:$0x1] %v1094_v38 }
 0x185   : > { %v1096_v26 = vld [vmem:[#allocation3] sm:$0x1] }
 0x186   : > { %1097 = vst [vmem:[%s1780_s4] sm:$0x1] %v1096_v26 }
 0x187 PF: > { %s15_s15 = sadd.s32 1, %s1393_s15  }
 0x188   : > { %p12_p6 = scmp.ge.s32.totalorder %s15_s15, 5  }
 0x18a   :  { %14 = sbr.rel (!%p12_p6) target bundleno = 1 (0x1), region = 82 }

// kernel: cra_forward.32
= control target key start
LH: loop header
LB: loop body
LE: loop exit
PB: predicated region body
PF: predicated region fallthrough
CT: control target
= control target key end

     0   :  { %s1486_s15 = smov 0   ;;  %s1853_s0 = inlined_call_operand.vmem [shape: bf16[1536,72], index: 0, kind: input, shape index: {}]   ;;  %s1854_s1 = inlined_call_operand.vmem [shape: bf16[72,128], index: 1, kind: input, shape index: {}]   ;;  %s1855_s2 = inlined_call_operand.vmem [shape: f32[1536,128], index: 2, kind: output, shape index: {0}]   ;;  %s1856_s3 = inlined_call_operand.vmem [shape: f32[1,128], index: 3, kind: output, shape index: {1}]   ;;  %s1857_s4 = inlined_call_operand.vmem [shape: f32[1,128], index: 4, kind: output, shape index: {2}]  }
   0x1 LB: > { %s1492_s16 = sadd.s32 4294967295, %s1458_s15   ;;  %p1205_p0 = scmp.ge.s32.totalorder %s1458_s15, 1  ;;  %s1458_s15 = sphi %s1486_s15, %s15_s15  }
   0x2   : > { %p158_p1 = scmp.lt.s32.totalorder %s1458_s15, 4 }
   0x4   : > { %p159_p2 = pnand %p1205_p0, %p158_p1 }
   0x5   : > { %s1206_s17 = sshll.u32 (!%p159_p2), %s1492_s16, 6  ;;  %p1210_p4 = scmp.ne.s32.totalorder (!%p159_p2), %s1492_s16, 0 }
   0x6   : > { %162 = sbr.rel (%p159_p2) target bundleno = 407 (0x197), region = 28  ;;  %p185_p3 = scmp.lt.s32.totalorder (!%p159_p2), %s1206_s17, 191 }
   0xd   : > { %s1859_s17 = smov (!%p185_p3, %s1206_s17), 191  ;;  %200 = sbr.rel (%p1210_p4) target bundleno = 20 (0x14), region = 32 }
   0xe   : > { %s1207_s18 = sshll.u32 %s1859_s17, 2  ;;  %s1209_s19 = sshll.u32 %s1859_s17, 3  ;;  %v1460_v0 = vmov (!%p1210_p4), 0.0  }
   0xf   : > { %s1500_s22 = scalar_lea.vmem %s1853_s0, %s1207_s18  ;;  %s1505_s25 = scalar_lea.vmem %s1855_s2, %s1209_s19  ;;  %201 = vst [vmem:[#allocation2] sm:$0x1] (!%p1210_p4), %v1460_v0  ;;  %202 = vst [vmem:[#allocation3] sm:$0x1] (!%p1210_p4), %v1460_v0 }
  0x14 PF: > { %v1415_v1 = vld [vmem:[%s1854_s1] sm:$0xff]   ;;  %v1416_v2 = vld [vmem:[%s1854_s1 + $0x8] sm:$0xff]   ;;  %v1417_v3 = vld [vmem:[%s1854_s1 + $0x10] sm:$0xff]   ;;  %vm463_vm0 = vcmask 588800   ;;  %vm560_vm1 = vcmask 1043456   ;;  %p1280_p5 = scmp.ne.s32.totalorder %s1492_s16, 2 }
  0x15   : > { %1320 = vmatprep.subr.bf16.mxu0 %v1415_v1  ;;  %1394 = vmatprep.subr.bf16.mxu1 %v1415_v1  ;;  %v1420_v4 = vld [vmem:[%s1500_s22] sm:$0xff]   ;;  %v1418_v5 = vld [vmem:[%s1854_s1 + $0x18] sm:$0xff]   ;;  %v1421_v8 = vld [vmem:[%s1500_s22 + $0x8] sm:$0xff]  }
  0x16   : > { %1321 = vmatpush3.bf16.msra.mxu0 %v1415_v1  ;;  %1399 = vmatpush3.bf16.msra.mxu1 %v1415_v1  ;;  %v1419_v6 = vld [vmem:[%s1854_s1 + $0x20] ss:$0 sps:$4 sm:$0xff]   ;;  %v1422_v9 = vld [vmem:[%s1500_s22 + $0x10] sm:$0xff]   ;;  %v1437_v11 = vld [vmem:[%s1500_s22 + $0x88] sm:$0xff]  }
  0x17   : > { %1322 = vmatprep.subr.bf16.mxu0 %v1416_v2  ;;  %1395 = vmatprep.subr.bf16.mxu1 %v1416_v2  ;;  %v562_v7 = vsel %vm560_vm1, %v1419_v6, 0  ;;  %v1436_v10 = vld [vmem:[%s1500_s22 + $0x80] sm:$0xff]   ;;  %v1438_v12 = vld [vmem:[%s1500_s22 + $0x90] sm:$0xff]   ;;  %v1423_v13 = vld [vmem:[%s1500_s22 + $0x18] sm:$0xff]  }
  0x18   : > { %1330 = vmatprep.mubr.msk.bf16.mxu0 %vm463_vm0, %v1420_v4  ;;  %1362 = vmatprep.mubr.msk.bf16.mxu1 %vm463_vm0, %v1436_v10  ;;  %v1424_v14 = vld [vmem:[%s1500_s22 + $0x20] sm:$0xff]   ;;  %v1439_v15 = vld [vmem:[%s1500_s22 + $0x98] sm:$0xff]   ;;  %v1425_v17 = vld [vmem:[%s1500_s22 + $0x28] sm:$0xff]  }
  0x19   : > { %v1440_v16 = vld [vmem:[%s1500_s22 + $0xa0] sm:$0xff]   ;;  %v1426_v18 = vld [vmem:[%s1500_s22 + $0x30] sm:$0xff]   ;;  %v1441_v19 = vld [vmem:[%s1500_s22 + $0xa8] sm:$0xff]  }
  0x1a   : > { %1323 = vmatpush3.bf16.msra.mxu0 %v1416_v2  ;;  %1400 = vmatpush3.bf16.msra.mxu1 %v1416_v2  ;;  %v1442_v20 = vld [vmem:[%s1500_s22 + $0xb0] sm:$0xff]   ;;  %v1427_v21 = vld [vmem:[%s1500_s22 + $0x38] sm:$0xff]   ;;  %v1428_v22 = vld [vmem:[%s1500_s22 + $0x40] sm:$0xff]  }
  0x1b   : > { %1324 = vmatprep.subr.bf16.mxu0 %v1417_v3  ;;  %1396 = vmatprep.subr.bf16.mxu1 %v1417_v3  ;;  %v1443_v23 = vld [vmem:[%s1500_s22 + $0xb8] sm:$0xff]   ;;  %v1444_v24 = vld [vmem:[%s1500_s22 + $0xc0] sm:$0xff]   ;;  %v1429_v25 = vld [vmem:[%s1500_s22 + $0x48] sm:$0xff]  }
  0x1c   : > { %v1430_v26 = vld [vmem:[%s1500_s22 + $0x50] sm:$0xff]   ;;  %v1445_v27 = vld [vmem:[%s1500_s22 + $0xc8] sm:$0xff]   ;;  %v1431_v29 = vld [vmem:[%s1500_s22 + $0x58] sm:$0xff]  }
  0x1d   : > { %v1446_v28 = vld [vmem:[%s1500_s22 + $0xd0] sm:$0xff]   ;;  %v1432_v30 = vld [vmem:[%s1500_s22 + $0x60] sm:$0xff]   ;;  %v1447_v31 = vld [vmem:[%s1500_s22 + $0xd8] sm:$0xff]  }
  0x1e   : > { %1325 = vmatpush3.bf16.msra.mxu0 %v1417_v3  ;;  %1401 = vmatpush3.bf16.msra.mxu1 %v1417_v3  ;;  %v1448_v32 = vld [vmem:[%s1500_s22 + $0xe0] sm:$0xff]   ;;  %v1433_v33 = vld [vmem:[%s1500_s22 + $0x68] sm:$0xff]   ;;  %v1434_v34 = vld [vmem:[%s1500_s22 + $0x70] sm:$0xff]  }
  0x1f   : > { %1326 = vmatprep.subr.bf16.mxu0 %v1418_v5  ;;  %1397 = vmatprep.subr.bf16.mxu1 %v1418_v5  ;;  %v1449_v35 = vld [vmem:[%s1500_s22 + $0xe8] sm:$0xff]   ;;  %v1450_v36 = vld [vmem:[%s1500_s22 + $0xf0] sm:$0xff]   ;;  %v1435_v37 = vld [vmem:[%s1500_s22 + $0x78] sm:$0xff]  }
  0x20   : > { %v1451_v38 = vld [vmem:[%s1500_s22 + $0xf8] sm:$0xff]  }
  0x22   : > { %1327 = vmatpush3.bf16.msra.mxu0 %v1418_v5  ;;  %1402 = vmatpush3.bf16.msra.mxu1 %v1418_v5 }
  0x23   : > { %1404 = vmatprep.subr.msk.bf16.mxu0 %vm560_vm1, %v1419_v6  ;;  %1405 = vmatprep.subr.msk.bf16.mxu1 %vm560_vm1, %v1419_v6 }
  0x26   : > { %1329 = vmatpush3.bf16.msra.mxu0 %v562_v7  ;;  %1403 = vmatpush3.bf16.msra.mxu1 %v562_v7 }
  0x29   : > { %1331 = vmatmul.mubr.msk.bf16.vlgmr.msra.gmra.mrb[0].mxu0 %vm463_vm0, %v1421_v8  ;;  %1363 = vmatmul.mubr.msk.bf16.vlgmr.msra.gmra.mrb[0].mxu1 %vm463_vm0, %v1437_v11 }
  0x2a   : > { %1334 = vmatprep.mubr.msk.bf16.mxu0 %vm463_vm0, %v1422_v9  ;;  %1366 = vmatprep.mubr.msk.bf16.mxu1 %vm463_vm0, %v1438_v12 }
  0x31   : > { %1335 = vmatmul.mubr.msk.bf16.gmra.mrb[4].mxu0 %vm463_vm0, %v1423_v13  ;;  %1367 = vmatmul.mubr.msk.bf16.gmra.mrb[4].mxu1 %vm463_vm0, %v1439_v15 }
  0x32   : > { %1338 = vmatprep.mubr.msk.bf16.mxu0 %vm463_vm0, %v1424_v14  ;;  %1370 = vmatprep.mubr.msk.bf16.mxu1 %vm463_vm0, %v1440_v16 }
  0x39   : > { %1339 = vmatmul.mubr.msk.bf16.gmra.mrb[8].mxu0 %vm463_vm0, %v1425_v17  ;;  %1371 = vmatmul.mubr.msk.bf16.gmra.mrb[8].mxu1 %vm463_vm0, %v1441_v19 }
  0x3a   : > { %1342 = vmatprep.mubr.msk.bf16.mxu0 %vm463_vm0, %v1426_v18  ;;  %1374 = vmatprep.mubr.msk.bf16.mxu1 %vm463_vm0, %v1442_v20 }
  0x41   : > { %1343 = vmatmul.mubr.msk.bf16.gmra.mrb[12].mxu0 %vm463_vm0, %v1427_v21  ;;  %1375 = vmatmul.mubr.msk.bf16.gmra.mrb[12].mxu1 %vm463_vm0, %v1443_v23 }
  0x42   : > { %1346 = vmatprep.mubr.msk.bf16.mxu0 %vm463_vm0, %v1428_v22  ;;  %1378 = vmatprep.mubr.msk.bf16.mxu1 %vm463_vm0, %v1444_v24 }
  0x49   : > { %1347 = vmatmul.mubr.msk.bf16.gmra.mrb[16].mxu0 %vm463_vm0, %v1429_v25  ;;  %1379 = vmatmul.mubr.msk.bf16.gmra.mrb[16].mxu1 %vm463_vm0, %v1445_v27 }
  0x4a   : > { %1350 = vmatprep.mubr.msk.bf16.mxu0 %vm463_vm0, %v1430_v26  ;;  %1382 = vmatprep.mubr.msk.bf16.mxu1 %vm463_vm0, %v1446_v28 }
  0x51   : > { %1351 = vmatmul.mubr.msk.bf16.gmra.mrb[20].mxu0 %vm463_vm0, %v1431_v29  ;;  %1383 = vmatmul.mubr.msk.bf16.gmra.mrb[20].mxu1 %vm463_vm0, %v1447_v31 }
  0x52   : > { %1354 = vmatprep.mubr.msk.bf16.mxu0 %vm463_vm0, %v1432_v30  ;;  %1386 = vmatprep.mubr.msk.bf16.mxu1 %vm463_vm0, %v1448_v32 }
  0x59   : > { %1355 = vmatmul.mubr.msk.bf16.gmra.mrb[24].mxu0 %vm463_vm0, %v1433_v33  ;;  %1387 = vmatmul.mubr.msk.bf16.gmra.mrb[24].mxu1 %vm463_vm0, %v1449_v35 }
  0x5a   : > { %1358 = vmatprep.mubr.msk.bf16.mxu0 %vm463_vm0, %v1434_v34  ;;  %1390 = vmatprep.mubr.msk.bf16.mxu1 %vm463_vm0, %v1450_v36 }
  0x61   : > { %1359 = vmatmul.mubr.msk.bf16.gmra.mrb[28].mxu0 %vm463_vm0, %v1435_v37  ;;  %1391 = vmatmul.mubr.msk.bf16.gmra.mrb[28].mxu1 %vm463_vm0, %v1451_v38 }
  0xfc   : > { %v1332_v39 = vpop.f32.mrb[0].mxu0  ;;  %v1589_v42 = vpop.f32.mrb[0].mxu1 }
  0xfd   : > { %855 = vst [vmem:[%s1505_s25 + $0x10] sm:$0xff] %v1332_v39  ;;  %v598_v40 = vpop.f32.mrb[1].mxu0  ;;  %887 = vst [vmem:[%s1505_s25 + $0x110] sm:$0xff] %v1589_v42  ;;  %v1594_v44 = vpop.f32.mrb[1].mxu1  ;;  %v992_v50 = vmul.f32 %v1332_v39, %v1332_v39 }
  0xfe   : > { %853 = vst [vmem:[%s1505_s25] sm:$0xff] %v598_v40  ;;  %v1333_v41 = vpop.f32.mrb[2].mxu0  ;;  %v990_v45 = vmul.f32 %v598_v40, %v598_v40  ;;  %885 = vst [vmem:[%s1505_s25 + $0x100] sm:$0xff] %v1594_v44  ;;  %v1599_v48 = vpop.f32.mrb[2].mxu1 }
  0xff   : > { %856 = vst [vmem:[%s1505_s25 + $0x18] sm:$0xff] %v1333_v41  ;;  %v601_v43 = vpop.f32.mrb[3].mxu0  ;;  %888 = vst [vmem:[%s1505_s25 + $0x118] sm:$0xff] %v1599_v48  ;;  %v1603_v49 = vpop.f32.mrb[3].mxu1  ;;  %v993_v53 = vmul.f32 %v1333_v41, %v1333_v41 }
 0x100   : > { %854 = vst [vmem:[%s1505_s25 + $0x8] sm:$0xff] %v601_v43  ;;  %v918_v46 = vadd.f32 %v601_v43, %v598_v40  ;;  %v991_v47 = vmul.f32 %v601_v43, %v601_v43  ;;  %886 = vst [vmem:[%s1505_s25 + $0x108] sm:$0xff] %v1603_v49 }
 0x102   : > { %v919_v51 = vadd.f32 %v1332_v39, %v918_v46  ;;  %v1054_v52 = vadd.f32 %v991_v47, %v990_v45 }
 0x104   : > { %v1055_v54 = vadd.f32 %v1054_v52, %v992_v50  ;;  %v1336_v55 = vpop.f32.mrb[4].mxu0  ;;  %v920_v56 = vadd.f32 %v1333_v41, %v919_v51  ;;  %v1609_v62 = vpop.f32.mrb[4].mxu1 }
 0x105   : > { %859 = vst [vmem:[%s1505_s25 + $0x30] sm:$0xff] %v1336_v55  ;;  %v614_v57 = vpop.f32.mrb[5].mxu0  ;;  %891 = vst [vmem:[%s1505_s25 + $0x130] sm:$0xff] %v1609_v62  ;;  %v1614_v0 = vpop.f32.mrb[5].mxu1  ;;  %v996_v6 = vmul.f32 %v1336_v55, %v1336_v55 }
 0x106   : > { %857 = vst [vmem:[%s1505_s25 + $0x20] sm:$0xff] %v614_v57  ;;  %v921_v58 = vadd.f32 %v920_v56, %v614_v57  ;;  %v994_v59 = vmul.f32 %v614_v57, %v614_v57  ;;  %v1056_v60 = vadd.f32 %v1055_v54, %v993_v53  ;;  %v1337_v61 = vpop.f32.mrb[6].mxu0  ;;  %889 = vst [vmem:[%s1505_s25 + $0x120] sm:$0xff] %v1614_v0  ;;  %v1619_v4 = vpop.f32.mrb[6].mxu1 }
 0x107   : > { %860 = vst [vmem:[%s1505_s25 + $0x38] sm:$0xff] %v1337_v61  ;;  %v617_v63 = vpop.f32.mrb[7].mxu0  ;;  %892 = vst [vmem:[%s1505_s25 + $0x138] sm:$0xff] %v1619_v4  ;;  %v1623_v5 = vpop.f32.mrb[7].mxu1  ;;  %v997_v9 = vmul.f32 %v1337_v61, %v1337_v61 }
 0x108   : > { %v1057_v1 = vadd.f32 %v1056_v60, %v994_v59  ;;  %858 = vst [vmem:[%s1505_s25 + $0x28] sm:$0xff] %v617_v63  ;;  %v922_v2 = vadd.f32 %v921_v58, %v617_v63  ;;  %v995_v3 = vmul.f32 %v617_v63, %v617_v63  ;;  %890 = vst [vmem:[%s1505_s25 + $0x128] sm:$0xff] %v1623_v5 }
 0x10a   : > { %v923_v7 = vadd.f32 %v1336_v55, %v922_v2  ;;  %v1058_v8 = vadd.f32 %v1057_v1, %v995_v3 }
 0x10c   : > { %v1059_v10 = vadd.f32 %v1058_v8, %v996_v6  ;;  %v1340_v11 = vpop.f32.mrb[8].mxu0  ;;  %v924_v12 = vadd.f32 %v1337_v61, %v923_v7  ;;  %v1629_v18 = vpop.f32.mrb[8].mxu1 }
 0x10d   : > { %863 = vst [vmem:[%s1505_s25 + $0x50] sm:$0xff] %v1340_v11  ;;  %v630_v13 = vpop.f32.mrb[9].mxu0  ;;  %895 = vst [vmem:[%s1505_s25 + $0x150] sm:$0xff] %v1629_v18  ;;  %v1634_v20 = vpop.f32.mrb[9].mxu1  ;;  %v1000_v26 = vmul.f32 %v1340_v11, %v1340_v11 }
 0x10e   : > { %861 = vst [vmem:[%s1505_s25 + $0x40] sm:$0xff] %v630_v13  ;;  %v925_v14 = vadd.f32 %v924_v12, %v630_v13  ;;  %v998_v15 = vmul.f32 %v630_v13, %v630_v13  ;;  %v1060_v16 = vadd.f32 %v1059_v10, %v997_v9  ;;  %v1341_v17 = vpop.f32.mrb[10].mxu0  ;;  %893 = vst [vmem:[%s1505_s25 + $0x140] sm:$0xff] %v1634_v20  ;;  %v1639_v24 = vpop.f32.mrb[10].mxu1 }
 0x10f   : > { %864 = vst [vmem:[%s1505_s25 + $0x58] sm:$0xff] %v1341_v17  ;;  %v633_v19 = vpop.f32.mrb[11].mxu0  ;;  %896 = vst [vmem:[%s1505_s25 + $0x158] sm:$0xff] %v1639_v24  ;;  %v1643_v25 = vpop.f32.mrb[11].mxu1  ;;  %v1001_v29 = vmul.f32 %v1341_v17, %v1341_v17 }
 0x110   : > { %v1061_v21 = vadd.f32 %v1060_v16, %v998_v15  ;;  %862 = vst [vmem:[%s1505_s25 + $0x48] sm:$0xff] %v633_v19  ;;  %v926_v22 = vadd.f32 %v925_v14, %v633_v19  ;;  %v999_v23 = vmul.f32 %v633_v19, %v633_v19  ;;  %894 = vst [vmem:[%s1505_s25 + $0x148] sm:$0xff] %v1643_v25 }
 0x112   : > { %v927_v27 = vadd.f32 %v1340_v11, %v926_v22  ;;  %v1062_v28 = vadd.f32 %v1061_v21, %v999_v23 }
 0x114   : > { %v1063_v30 = vadd.f32 %v1062_v28, %v1000_v26  ;;  %v1344_v31 = vpop.f32.mrb[12].mxu0  ;;  %v928_v32 = vadd.f32 %v1341_v17, %v927_v27  ;;  %v1649_v38 = vpop.f32.mrb[12].mxu1 }
 0x115   : > { %867 = vst [vmem:[%s1505_s25 + $0x70] sm:$0xff] %v1344_v31  ;;  %v646_v33 = vpop.f32.mrb[13].mxu0  ;;  %899 = vst [vmem:[%s1505_s25 + $0x170] sm:$0xff] %v1649_v38  ;;  %v1654_v40 = vpop.f32.mrb[13].mxu1  ;;  %v1004_v50 = vmul.f32 %v1344_v31, %v1344_v31 }
 0x116   : > { %865 = vst [vmem:[%s1505_s25 + $0x60] sm:$0xff] %v646_v33  ;;  %v929_v34 = vadd.f32 %v928_v32, %v646_v33  ;;  %v1002_v35 = vmul.f32 %v646_v33, %v646_v33  ;;  %v1064_v36 = vadd.f32 %v1063_v30, %v1001_v29  ;;  %v1345_v37 = vpop.f32.mrb[14].mxu0  ;;  %897 = vst [vmem:[%s1505_s25 + $0x160] sm:$0xff] %v1654_v40  ;;  %v1659_v46 = vpop.f32.mrb[14].mxu1 }
 0x117   : > { %868 = vst [vmem:[%s1505_s25 + $0x78] sm:$0xff] %v1345_v37  ;;  %v649_v39 = vpop.f32.mrb[15].mxu0  ;;  %900 = vst [vmem:[%s1505_s25 + $0x178] sm:$0xff] %v1659_v46  ;;  %v1663_v47 = vpop.f32.mrb[15].mxu1  ;;  %v1005_v53 = vmul.f32 %v1345_v37, %v1345_v37 }
 0x118   : > { %v1065_v41 = vadd.f32 %v1064_v36, %v1002_v35  ;;  %866 = vst [vmem:[%s1505_s25 + $0x68] sm:$0xff] %v649_v39  ;;  %v930_v43 = vadd.f32 %v929_v34, %v649_v39  ;;  %v1003_v45 = vmul.f32 %v649_v39, %v649_v39  ;;  %898 = vst [vmem:[%s1505_s25 + $0x168] sm:$0xff] %v1663_v47 }
 0x11a   : > { %v931_v51 = vadd.f32 %v1344_v31, %v930_v43  ;;  %v1066_v52 = vadd.f32 %v1065_v41, %v1003_v45 }
 0x11c   : > { %v1067_v54 = vadd.f32 %v1066_v52, %v1004_v50  ;;  %v1348_v55 = vpop.f32.mrb[16].mxu0  ;;  %v932_v56 = vadd.f32 %v1345_v37, %v931_v51  ;;  %v1669_v63 = vpop.f32.mrb[16].mxu1 }
 0x11d   : > { %871 = vst [vmem:[%s1505_s25 + $0x90] sm:$0xff] %v1348_v55  ;;  %v662_v57 = vpop.f32.mrb[17].mxu0  ;;  %903 = vst [vmem:[%s1505_s25 + $0x190] sm:$0xff] %v1669_v63  ;;  %v1674_v2 = vpop.f32.mrb[17].mxu1  ;;  %v1008_v10 = vmul.f32 %v1348_v55, %v1348_v55 }
 0x11e   : > { %869 = vst [vmem:[%s1505_s25 + $0x80] sm:$0xff] %v662_v57  ;;  %v933_v58 = vadd.f32 %v932_v56, %v662_v57  ;;  %v1006_v59 = vmul.f32 %v662_v57, %v662_v57  ;;  %v1068_v60 = vadd.f32 %v1067_v54, %v1005_v53  ;;  %v1349_v61 = vpop.f32.mrb[18].mxu0  ;;  %901 = vst [vmem:[%s1505_s25 + $0x180] sm:$0xff] %v1674_v2  ;;  %v1679_v8 = vpop.f32.mrb[18].mxu1 }
 0x11f   : > { %872 = vst [vmem:[%s1505_s25 + $0x98] sm:$0xff] %v1349_v61  ;;  %v665_v1 = vpop.f32.mrb[19].mxu0  ;;  %904 = vst [vmem:[%s1505_s25 + $0x198] sm:$0xff] %v1679_v8  ;;  %v1683_v9 = vpop.f32.mrb[19].mxu1  ;;  %v1009_v13 = vmul.f32 %v1349_v61, %v1349_v61 }
 0x120   : > { %v1069_v3 = vadd.f32 %v1068_v60, %v1006_v59  ;;  %870 = vst [vmem:[%s1505_s25 + $0x88] sm:$0xff] %v665_v1  ;;  %v934_v6 = vadd.f32 %v933_v58, %v665_v1  ;;  %v1007_v7 = vmul.f32 %v665_v1, %v665_v1  ;;  %902 = vst [vmem:[%s1505_s25 + $0x188] sm:$0xff] %v1683_v9 }
 0x122   : > { %v935_v11 = vadd.f32 %v1348_v55, %v934_v6  ;;  %v1070_v12 = vadd.f32 %v1069_v3, %v1007_v7 }
 0x124   : > { %v1071_v14 = vadd.f32 %v1070_v12, %v1008_v10  ;;  %v1352_v15 = vpop.f32.mrb[20].mxu0  ;;  %v936_v16 = vadd.f32 %v1349_v61, %v935_v11  ;;  %v1689_v26 = vpop.f32.mrb[20].mxu1 }
 0x125   : > { %875 = vst [vmem:[%s1505_s25 + $0xb0] sm:$0xff] %v1352_v15  ;;  %v678_v17 = vpop.f32.mrb[21].mxu0  ;;  %907 = vst [vmem:[%s1505_s25 + $0x1b0] sm:$0xff] %v1689_v26  ;;  %v1694_v28 = vpop.f32.mrb[21].mxu1  ;;  %v1012_v34 = vmul.f32 %v1352_v15, %v1352_v15 }
 0x126   : > { %873 = vst [vmem:[%s1505_s25 + $0xa0] sm:$0xff] %v678_v17  ;;  %v937_v19 = vadd.f32 %v936_v16, %v678_v17  ;;  %v1010_v21 = vmul.f32 %v678_v17, %v678_v17  ;;  %v1072_v22 = vadd.f32 %v1071_v14, %v1009_v13  ;;  %v1353_v23 = vpop.f32.mrb[22].mxu0  ;;  %905 = vst [vmem:[%s1505_s25 + $0x1a0] sm:$0xff] %v1694_v28  ;;  %v1699_v32 = vpop.f32.mrb[22].mxu1 }
 0x127   : > { %876 = vst [vmem:[%s1505_s25 + $0xb8] sm:$0xff] %v1353_v23  ;;  %v681_v27 = vpop.f32.mrb[23].mxu0  ;;  %908 = vst [vmem:[%s1505_s25 + $0x1b8] sm:$0xff] %v1699_v32  ;;  %v1703_v33 = vpop.f32.mrb[23].mxu1  ;;  %v1013_v37 = vmul.f32 %v1353_v23, %v1353_v23 }
 0x128   : > { %v1073_v29 = vadd.f32 %v1072_v22, %v1010_v21  ;;  %874 = vst [vmem:[%s1505_s25 + $0xa8] sm:$0xff] %v681_v27  ;;  %v938_v30 = vadd.f32 %v937_v19, %v681_v27  ;;  %v1011_v31 = vmul.f32 %v681_v27, %v681_v27  ;;  %906 = vst [vmem:[%s1505_s25 + $0x1a8] sm:$0xff] %v1703_v33 }
 0x12a   : > { %v939_v35 = vadd.f32 %v1352_v15, %v938_v30  ;;  %v1074_v36 = vadd.f32 %v1073_v29, %v1011_v31 }
 0x12c   : > { %v1075_v39 = vadd.f32 %v1074_v36, %v1012_v34  ;;  %v1356_v41 = vpop.f32.mrb[24].mxu0  ;;  %v940_v43 = vadd.f32 %v1353_v23, %v939_v35  ;;  %v1709_v54 = vpop.f32.mrb[24].mxu1 }
 0x12d   : > { %879 = vst [vmem:[%s1505_s25 + $0xd0] sm:$0xff] %v1356_v41  ;;  %v694_v45 = vpop.f32.mrb[25].mxu0  ;;  %911 = vst [vmem:[%s1505_s25 + $0x1d0] sm:$0xff] %v1709_v54  ;;  %v1714_v56 = vpop.f32.mrb[25].mxu1  ;;  %v1016_v1 = vmul.f32 %v1356_v41, %v1356_v41 }
 0x12e   : > { %877 = vst [vmem:[%s1505_s25 + $0xc0] sm:$0xff] %v694_v45  ;;  %v941_v50 = vadd.f32 %v940_v43, %v694_v45  ;;  %v1014_v51 = vmul.f32 %v694_v45, %v694_v45  ;;  %v1076_v52 = vadd.f32 %v1075_v39, %v1013_v37  ;;  %v1357_v53 = vpop.f32.mrb[26].mxu0  ;;  %909 = vst [vmem:[%s1505_s25 + $0x1c0] sm:$0xff] %v1714_v56  ;;  %v1719_v60 = vpop.f32.mrb[26].mxu1 }
 0x12f   : > { %880 = vst [vmem:[%s1505_s25 + $0xd8] sm:$0xff] %v1357_v53  ;;  %v697_v55 = vpop.f32.mrb[27].mxu0  ;;  %912 = vst [vmem:[%s1505_s25 + $0x1d8] sm:$0xff] %v1719_v60  ;;  %v1723_v61 = vpop.f32.mrb[27].mxu1  ;;  %v1017_v7 = vmul.f32 %v1357_v53, %v1357_v53  ;;  %v1022_v43 = vmul.f32 %v1594_v44, %v1594_v44 }
 0x130   : > { %v1077_v57 = vadd.f32 %v1076_v52, %v1014_v51  ;;  %878 = vst [vmem:[%s1505_s25 + $0xc8] sm:$0xff] %v697_v55  ;;  %v942_v58 = vadd.f32 %v941_v50, %v697_v55  ;;  %v1015_v59 = vmul.f32 %v697_v55, %v697_v55  ;;  %910 = vst [vmem:[%s1505_s25 + $0x1c8] sm:$0xff] %v1723_v61 }
 0x131   : > { %v1024_v55 = vmul.f32 %v1589_v42, %v1589_v42 }
 0x132   : > { %v943_v3 = vadd.f32 %v1356_v41, %v942_v58  ;;  %v1078_v6 = vadd.f32 %v1077_v57, %v1015_v59  ;;  %v1025_v59 = vmul.f32 %v1599_v48, %v1599_v48 }
 0x134   : > { %v1079_v10 = vadd.f32 %v1078_v6, %v1016_v1  ;;  %v1360_v11 = vpop.f32.mrb[28].mxu0  ;;  %v944_v12 = vadd.f32 %v1357_v53, %v943_v3  ;;  %v1729_v19 = vpop.f32.mrb[28].mxu1  ;;  %v1023_v53 = vmul.f32 %v1603_v49, %v1603_v49 }
 0x135   : > { %883 = vst [vmem:[%s1505_s25 + $0xf0] sm:$0xff] %v1360_v11  ;;  %v710_v13 = vpop.f32.mrb[29].mxu0  ;;  %915 = vst [vmem:[%s1505_s25 + $0x1f0] sm:$0xff] %v1729_v19  ;;  %v1734_v22 = vpop.f32.mrb[29].mxu1  ;;  %v1020_v34 = vmul.f32 %v1360_v11, %v1360_v11 }
 0x136   : > { %881 = vst [vmem:[%s1505_s25 + $0xe0] sm:$0xff] %v710_v13  ;;  %v945_v14 = vadd.f32 %v944_v12, %v710_v13  ;;  %v1018_v15 = vmul.f32 %v710_v13, %v710_v13  ;;  %v1080_v16 = vadd.f32 %v1079_v10, %v1017_v7  ;;  %v1361_v17 = vpop.f32.mrb[30].mxu0  ;;  %913 = vst [vmem:[%s1505_s25 + $0x1e0] sm:$0xff] %v1734_v22  ;;  %v1739_v30 = vpop.f32.mrb[30].mxu1 }
 0x137   : > { %884 = vst [vmem:[%s1505_s25 + $0xf8] sm:$0xff] %v1361_v17  ;;  %v713_v21 = vpop.f32.mrb[31].mxu0  ;;  %916 = vst [vmem:[%s1505_s25 + $0x1f8] sm:$0xff] %v1739_v30  ;;  %v1743_v31 = vpop.f32.mrb[31].mxu1  ;;  %v1021_v37 = vmul.f32 %v1361_v17, %v1361_v17 }
 0x138   : > { %v1081_v23 = vadd.f32 %v1080_v16, %v1018_v15  ;;  %882 = vst [vmem:[%s1505_s25 + $0xe8] sm:$0xff] %v713_v21  ;;  %v946_v27 = vadd.f32 %v945_v14, %v713_v21  ;;  %v1019_v29 = vmul.f32 %v713_v21, %v713_v21  ;;  %914 = vst [vmem:[%s1505_s25 + $0x1e8] sm:$0xff] %v1743_v31 }
 0x13a   : > { %v947_v35 = vadd.f32 %v1360_v11, %v946_v27  ;;  %v1082_v36 = vadd.f32 %v1081_v23, %v1019_v29  ;;  %v1027_v11 = vmul.f32 %v1623_v5, %v1623_v5  ;;  %v1031_v23 = vmul.f32 %v1643_v25, %v1643_v25 }
 0x13c   : > { %v1083_v39 = vadd.f32 %v1082_v36, %v1020_v34  ;;  %v948_v41 = vadd.f32 %v1361_v17, %v947_v35 }
 0x13e   : > { %v949_v45 = vadd.f32 %v948_v41, %v1594_v44  ;;  %v1084_v50 = vadd.f32 %v1083_v39, %v1021_v37  ;;  %v1026_v44 = vmul.f32 %v1614_v0, %v1614_v0  ;;  %v1035_v41 = vmul.f32 %v1663_v47, %v1663_v47 }
 0x140   : > { %v1085_v51 = vadd.f32 %v1084_v50, %v1022_v43  ;;  %v950_v52 = vadd.f32 %v949_v45, %v1603_v49 }
 0x142   : > { %v951_v57 = vadd.f32 %v1589_v42, %v950_v52  ;;  %v1086_v58 = vadd.f32 %v1085_v51, %v1023_v53  ;;  %v1028_v42 = vmul.f32 %v1609_v62, %v1609_v62 }
 0x144   : > { %v1087_v1 = vadd.f32 %v1086_v58, %v1024_v55  ;;  %v952_v3 = vadd.f32 %v1599_v48, %v951_v57  ;;  %v1029_v48 = vmul.f32 %v1619_v4, %v1619_v4  ;;  %v1039_v57 = vmul.f32 %v1683_v9, %v1683_v9 }
 0x146   : > { %v953_v6 = vadd.f32 %v952_v3, %v1614_v0  ;;  %v1088_v7 = vadd.f32 %v1087_v1, %v1025_v59  ;;  %v1030_v0 = vmul.f32 %v1634_v20, %v1634_v20 }
 0x148   : > { %v1089_v10 = vadd.f32 %v1088_v7, %v1026_v44  ;;  %v954_v49 = vadd.f32 %v953_v6, %v1623_v5 }
 0x14a   : > { %v955_v12 = vadd.f32 %v1609_v62, %v954_v49  ;;  %v1090_v13 = vadd.f32 %v1089_v10, %v1027_v11  ;;  %v1032_v62 = vmul.f32 %v1629_v18, %v1629_v18  ;;  %v1043_v10 = vmul.f32 %v1703_v33, %v1703_v33 }
 0x14c   : > { %v1091_v14 = vadd.f32 %v1090_v13, %v1028_v42  ;;  %v956_v15 = vadd.f32 %v1619_v4, %v955_v12  ;;  %v1033_v4 = vmul.f32 %v1639_v24, %v1639_v24 }
 0x14e   : > { %v957_v16 = vadd.f32 %v956_v15, %v1634_v20  ;;  %v1092_v17 = vadd.f32 %v1091_v14, %v1029_v48  ;;  %v1034_v20 = vmul.f32 %v1654_v40, %v1654_v40  ;;  %v1047_v15 = vmul.f32 %v1723_v61, %v1723_v61 }
 0x150   : > { %v1093_v21 = vadd.f32 %v1092_v17, %v1030_v0  ;;  %v958_v5 = vadd.f32 %v957_v16, %v1643_v25 }
 0x152   : > { %v959_v27 = vadd.f32 %v1629_v18, %v958_v5  ;;  %v1094_v29 = vadd.f32 %v1093_v21, %v1031_v23  ;;  %v1036_v18 = vmul.f32 %v1649_v38, %v1649_v38 }
 0x154   : > { %v1095_v34 = vadd.f32 %v1094_v29, %v1032_v62  ;;  %v960_v35 = vadd.f32 %v1639_v24, %v959_v27  ;;  %v1037_v24 = vmul.f32 %v1659_v46, %v1659_v46  ;;  %v1051_v27 = vmul.f32 %v1743_v31, %v1743_v31 }
 0x156   : > { %v961_v36 = vadd.f32 %v960_v35, %v1654_v40  ;;  %v1096_v37 = vadd.f32 %v1095_v34, %v1033_v4  ;;  %v1038_v40 = vmul.f32 %v1674_v2, %v1674_v2 }
 0x158   : > { %v1097_v39 = vadd.f32 %v1096_v37, %v1034_v20  ;;  %v962_v25 = vadd.f32 %v961_v36, %v1663_v47 }
 0x15a   : > { %v963_v43 = vadd.f32 %v1649_v38, %v962_v25  ;;  %v1098_v45 = vadd.f32 %v1097_v39, %v1035_v41  ;;  %v1040_v38 = vmul.f32 %v1669_v63, %v1669_v63 }
 0x15c   : > { %v1099_v50 = vadd.f32 %v1098_v45, %v1036_v18  ;;  %v964_v51 = vadd.f32 %v1659_v46, %v963_v43  ;;  %v1041_v46 = vmul.f32 %v1679_v8, %v1679_v8  ;;  %v917_v45 = vld [vmem:[#allocation2] sm:$0x1] }
 0x15e   : > { %v965_v52 = vadd.f32 %v964_v51, %v1674_v2  ;;  %v1100_v53 = vadd.f32 %v1099_v50, %v1037_v24  ;;  %v1042_v2 = vmul.f32 %v1694_v28, %v1694_v28  ;;  %v989_v50 = vld [vmem:[#allocation3] sm:$0x1] }
 0x160   : > { %v1101_v55 = vadd.f32 %v1100_v53, %v1038_v40  ;;  %v966_v47 = vadd.f32 %v965_v52, %v1683_v9 }
 0x162   : > { %v967_v58 = vadd.f32 %v1669_v63, %v966_v47  ;;  %v1102_v59 = vadd.f32 %v1101_v55, %v1039_v57  ;;  %v1044_v63 = vmul.f32 %v1689_v26, %v1689_v26 }
 0x164   : > { %v1103_v1 = vadd.f32 %v1102_v59, %v1040_v38  ;;  %v968_v3 = vadd.f32 %v1679_v8, %v967_v58  ;;  %v1045_v8 = vmul.f32 %v1699_v32, %v1699_v32 }
 0x166   : > { %v969_v44 = vadd.f32 %v968_v3, %v1694_v28  ;;  %v1104_v6 = vadd.f32 %v1103_v1, %v1041_v46  ;;  %v1046_v28 = vmul.f32 %v1714_v56, %v1714_v56 }
 0x168   : > { %v1105_v7 = vadd.f32 %v1104_v6, %v1042_v2  ;;  %v970_v9 = vadd.f32 %v969_v44, %v1703_v33 }
 0x16a   : > { %v971_v49 = vadd.f32 %v1689_v26, %v970_v9  ;;  %v1106_v11 = vadd.f32 %v1105_v7, %v1043_v10  ;;  %v1048_v26 = vmul.f32 %v1709_v54, %v1709_v54 }
 0x16c   : > { %v1107_v42 = vadd.f32 %v1106_v11, %v1044_v63  ;;  %v972_v12 = vadd.f32 %v1699_v32, %v971_v49  ;;  %v1049_v32 = vmul.f32 %v1719_v60, %v1719_v60 }
 0x16e   : > { %v973_v13 = vadd.f32 %v972_v12, %v1714_v56  ;;  %v1108_v48 = vadd.f32 %v1107_v42, %v1045_v8  ;;  %v1050_v56 = vmul.f32 %v1734_v22, %v1734_v22 }
 0x170   : > { %v1109_v14 = vadd.f32 %v1108_v48, %v1046_v28  ;;  %v974_v33 = vadd.f32 %v973_v13, %v1723_v61 }
 0x172   : > { %v975_v0 = vadd.f32 %v1709_v54, %v974_v33  ;;  %v1110_v16 = vadd.f32 %v1109_v14, %v1047_v15  ;;  %v1052_v54 = vmul.f32 %v1729_v19, %v1729_v19 }
 0x174   : > { %v1111_v17 = vadd.f32 %v1110_v16, %v1048_v26  ;;  %v976_v21 = vadd.f32 %v1719_v60, %v975_v0  ;;  %v1053_v60 = vmul.f32 %v1739_v30, %v1739_v30 }
 0x176   : > { %v977_v5 = vadd.f32 %v976_v21, %v1734_v22  ;;  %v1112_v23 = vadd.f32 %v1111_v17, %v1049_v32 }
 0x178   : > { %v1113_v62 = vadd.f32 %v1112_v23, %v1050_v56  ;;  %v978_v61 = vadd.f32 %v977_v5, %v1743_v31 }
 0x17a   : > { %v979_v29 = vadd.f32 %v1729_v19, %v978_v61  ;;  %v1114_v4 = vadd.f32 %v1113_v62, %v1051_v27 }
 0x17c   : > { %v980_v34 = vadd.f32 %v1739_v30, %v979_v29  ;;  %v1115_v35 = vadd.f32 %v1114_v4, %v1052_v54 }
 0x17e   : > { %v981_v22 = vrot.slane %v980_v34, 4  ;;  %v1116_v20 = vadd.f32 %v1115_v35, %v1053_v60 }
 0x180   : > { %v982_v36 = vadd.f32 %v981_v22, %v980_v34  ;;  %v1117_v37 = vrot.slane %v1116_v20, 4 }
 0x182   : > { %v983_v39 = vrot.slane %v982_v36, 2  ;;  %v1118_v25 = vadd.f32 %v1117_v37, %v1116_v20 }
 0x184   : > { %v984_v41 = vadd.f32 %v983_v39, %v982_v36  ;;  %v1119_v31 = vrot.slane %v1118_v25, 2 }
 0x186   : > { %v985_v18 = vrot.slane %v984_v41, 1  ;;  %v1120_v43 = vadd.f32 %v1119_v31, %v1118_v25 }
 0x188   : > { %v986_v24 = vadd.f32 %v985_v18, %v984_v41  ;;  %v1121_v19 = vrot.slane %v1120_v43, 1  ;;  %1128 = sbr.rel (%p1280_p5) target bundleno = 407 (0x197), region = 36 }
 0x18a   : > { %v987_v51 = vadd.f32 %v986_v24, %v917_v45  ;;  %v1122_v40 = vadd.f32 %v1121_v19, %v1120_v43 }
 0x18c   : > { %988 = vst [vmem:[#allocation2] sm:$0x1] %v987_v51  ;;  %v1123_v52 = vadd.f32 %v1122_v40, %v989_v50 }
 0x18e   : > { %1124 = vst [vmem:[#allocation3] sm:$0x1] %v1123_v52 }
 0x193   : > { %v1129_v30 = vld [vmem:[#allocation2] sm:$0x1] }
 0x194   : > { %1130 = vst [vmem:[%s1856_s3] sm:$0x1] %v1129_v30 }
 0x195   : > { %v1131_v53 = vld [vmem:[#allocation3] sm:$0x1] }
 0x196   : > { %1132 = vst [vmem:[%s1857_s4] sm:$0x1] %v1131_v53 }
 0x197 PF: > { %s15_s15 = sadd.s32 1, %s1458_s15  }
 0x198   : > { %p12_p6 = scmp.ge.s32.totalorder %s15_s15, 5  }
 0x19a   :  { %14 = sbr.rel (!%p12_p6) target bundleno = 1 (0x1), region = 82 }

// kernel: cra_forward.33
= control target key start
LH: loop header
LB: loop body
LE: loop exit
PB: predicated region body
PF: predicated region fallthrough
CT: control target
= control target key end

     0   :  { %s577_s9 = smov 0   ;;  %s864_s0 = inlined_call_operand.vmem [shape: f32[1536,128], index: 0, kind: input, shape index: {}]   ;;  %s865_s1 = inlined_call_operand.vmem [shape: f32[2,128], index: 1, kind: input, shape index: {}]   ;;  %s866_s2 = inlined_call_operand.vmem [shape: f32[1536,128], index: 2, kind: output, shape index: {}]  }
   0x1 LB: > { %s533_s10 = sadd.s32 4294967295, %s560_s9   ;;  %p537_p0 = scmp.ge.s32.totalorder %s560_s9, 1  ;;  %s560_s9 = sphi %s577_s9, %s12_s9  }
   0x2   : > { %p113_p1 = scmp.lt.s32.totalorder %s560_s9, 4 }
   0x4   : > { %p114_p2 = pnand %p537_p0, %p113_p1 }
   0x5   : > { %s538_s11 = sshll.u32 (!%p114_p2), %s533_s10, 6  ;;  %v588_v0 = vld [vmem:[%s865_s1] ss:$0 sm:$0xff] (!%p114_p2)  ;;  %v598_v1 = vld [vmem:[%s865_s1 + $0x1] ss:$0 sm:$0xff] (!%p114_p2) }
   0x6   : > { %117 = sbr.rel (%p114_p2) target bundleno = 70 (0x46), region = 28  ;;  %p136_p3 = scmp.lt.s32.totalorder (!%p114_p2), %s538_s11, 191 }
   0xd   : > { %s868_s11 = smov (!%p136_p3, %s538_s11), 191 }
   0xe   : > { %s539_s12 = sshll.u32 %s868_s11, 3 }
   0xf   : > { %s593_s17 = scalar_lea.vmem %s864_s0, %s539_s12  ;;  %s621_s22 = scalar_lea.vmem %s866_s2, %s539_s12 }
  0x10   : > { %v147_v2 = vld [vmem:[%s593_s17] sm:$0xff]  ;;  %v148_v3 = vld [vmem:[%s593_s17 + $0x8] sm:$0xff]  ;;  %v149_v4 = vld [vmem:[%s593_s17 + $0x10] sm:$0xff] }
  0x11   : > { %v216_v5 = vmul.f32 %v588_v0, %v147_v2  ;;  %v217_v6 = vmul.f32 %v588_v0, %v148_v3  ;;  %v218_v7 = vmul.f32 %v588_v0, %v149_v4  ;;  %v150_v8 = vld [vmem:[%s593_s17 + $0x18] sm:$0xff]  ;;  %v151_v9 = vld [vmem:[%s593_s17 + $0x20] sm:$0xff]  ;;  %v152_v10 = vld [vmem:[%s593_s17 + $0x28] sm:$0xff] }
  0x12   : > { %v219_v11 = vmul.f32 %v588_v0, %v150_v8  ;;  %v220_v12 = vmul.f32 %v588_v0, %v151_v9  ;;  %v221_v13 = vmul.f32 %v588_v0, %v152_v10  ;;  %v153_v14 = vld [vmem:[%s593_s17 + $0x30] sm:$0xff]  ;;  %v154_v15 = vld [vmem:[%s593_s17 + $0x38] sm:$0xff]  ;;  %v155_v24 = vld [vmem:[%s593_s17 + $0x40] sm:$0xff] }
  0x13   : > { %v285_v16 = vadd.f32 %v598_v1, %v216_v5  ;;  %v286_v17 = vadd.f32 %v598_v1, %v217_v6  ;;  %v287_v18 = vadd.f32 %v598_v1, %v218_v7  ;;  %v222_v19 = vmul.f32 %v588_v0, %v153_v14  ;;  %v156_v25 = vld [vmem:[%s593_s17 + $0x48] sm:$0xff]  ;;  %v157_v26 = vld [vmem:[%s593_s17 + $0x50] sm:$0xff]  ;;  %v158_v31 = vld [vmem:[%s593_s17 + $0x58] sm:$0xff] }
  0x14   : > { %v288_v20 = vadd.f32 %v598_v1, %v219_v11  ;;  %v289_v21 = vadd.f32 %v598_v1, %v220_v12  ;;  %v290_v22 = vadd.f32 %v598_v1, %v221_v13  ;;  %v223_v23 = vmul.f32 %v588_v0, %v154_v15  ;;  %v159_v32 = vld [vmem:[%s593_s17 + $0x60] sm:$0xff]  ;;  %v160_v33 = vld [vmem:[%s593_s17 + $0x68] sm:$0xff]  ;;  %v161_v38 = vld [vmem:[%s593_s17 + $0x70] sm:$0xff] }
  0x15   : > { %v349_v27 = vmax.f32 %v285_v16, 0.0  ;;  %v350_v28 = vmax.f32 %v286_v17, 0.0  ;;  %v351_v29 = vmax.f32 %v287_v18, 0.0  ;;  %v291_v30 = vadd.f32 %v598_v1, %v222_v19  ;;  %v162_v43 = vld [vmem:[%s593_s17 + $0x78] sm:$0xff]  ;;  %v163_v56 = vld [vmem:[%s593_s17 + $0x80] sm:$0xff]  ;;  %v164_v57 = vld [vmem:[%s593_s17 + $0x88] sm:$0xff] }
  0x16   : > { %v352_v34 = vmax.f32 %v288_v20, 0.0  ;;  %v353_v35 = vmax.f32 %v289_v21, 0.0  ;;  %v354_v36 = vmax.f32 %v290_v22, 0.0  ;;  %v292_v37 = vadd.f32 %v598_v1, %v223_v23  ;;  %v165_v58 = vld [vmem:[%s593_s17 + $0x90] sm:$0xff]  ;;  %v166_v63 = vld [vmem:[%s593_s17 + $0x98] sm:$0xff]  ;;  %v167_v2 = vld [vmem:[%s593_s17 + $0xa0] sm:$0xff] }
  0x17   : > { %413 = vst [vmem:[%s621_s22] sm:$0xff] %v349_v27  ;;  %414 = vst [vmem:[%s621_s22 + $0x8] sm:$0xff] %v350_v28  ;;  %v355_v39 = vmax.f32 %v291_v30, 0.0  ;;  %v224_v40 = vmul.f32 %v588_v0, %v155_v24  ;;  %v225_v41 = vmul.f32 %v588_v0, %v156_v25  ;;  %v226_v42 = vmul.f32 %v588_v0, %v157_v26  ;;  %v168_v3 = vld [vmem:[%s593_s17 + $0xa8] sm:$0xff]  ;;  %v169_v8 = vld [vmem:[%s593_s17 + $0xb0] sm:$0xff] }
  0x18   : > { %415 = vst [vmem:[%s621_s22 + $0x10] sm:$0xff] %v351_v29  ;;  %416 = vst [vmem:[%s621_s22 + $0x18] sm:$0xff] %v352_v34  ;;  %v356_v44 = vmax.f32 %v292_v37, 0.0  ;;  %v227_v45 = vmul.f32 %v588_v0, %v158_v31  ;;  %v228_v46 = vmul.f32 %v588_v0, %v159_v32  ;;  %v229_v47 = vmul.f32 %v588_v0, %v160_v33  ;;  %v170_v13 = vld [vmem:[%s593_s17 + $0xb8] sm:$0xff]  ;;  %v171_v26 = vld [vmem:[%s593_s17 + $0xc0] sm:$0xff] }
  0x19   : > { %417 = vst [vmem:[%s621_s22 + $0x20] sm:$0xff] %v353_v35  ;;  %418 = vst [vmem:[%s621_s22 + $0x28] sm:$0xff] %v354_v36  ;;  %v293_v48 = vadd.f32 %v598_v1, %v224_v40  ;;  %v294_v49 = vadd.f32 %v598_v1, %v225_v41  ;;  %v295_v50 = vadd.f32 %v598_v1, %v226_v42  ;;  %v172_v27 = vld [vmem:[%s593_s17 + $0xc8] sm:$0xff]  ;;  %v173_v28 = vld [vmem:[%s593_s17 + $0xd0] sm:$0xff] }
  0x1a   : > { %419 = vst [vmem:[%s621_s22 + $0x30] sm:$0xff] %v355_v39  ;;  %v230_v51 = vmul.f32 %v588_v0, %v161_v38  ;;  %420 = vst [vmem:[%s621_s22 + $0x38] sm:$0xff] %v356_v44  ;;  %v296_v52 = vadd.f32 %v598_v1, %v227_v45  ;;  %v297_v53 = vadd.f32 %v598_v1, %v228_v46  ;;  %v174_v33 = vld [vmem:[%s593_s17 + $0xd8] sm:$0xff]  ;;  %v175_v34 = vld [vmem:[%s593_s17 + $0xe0] sm:$0xff] }
  0x1b   : > { %v298_v54 = vadd.f32 %v598_v1, %v229_v47  ;;  %v231_v55 = vmul.f32 %v588_v0, %v162_v43  ;;  %v357_v59 = vmax.f32 %v293_v48, 0.0  ;;  %v358_v60 = vmax.f32 %v294_v49, 0.0  ;;  %v176_v35 = vld [vmem:[%s593_s17 + $0xe8] sm:$0xff]  ;;  %v177_v40 = vld [vmem:[%s593_s17 + $0xf0] sm:$0xff]  ;;  %v178_v45 = vld [vmem:[%s593_s17 + $0xf8] sm:$0xff] }
  0x1c   : > { %v359_v61 = vmax.f32 %v295_v50, 0.0  ;;  %v299_v62 = vadd.f32 %v598_v1, %v230_v51  ;;  %v360_v4 = vmax.f32 %v296_v52, 0.0  ;;  %v361_v5 = vmax.f32 %v297_v53, 0.0 }
  0x1d   : > { %v362_v6 = vmax.f32 %v298_v54, 0.0  ;;  %v300_v7 = vadd.f32 %v598_v1, %v231_v55  ;;  %421 = vst [vmem:[%s621_s22 + $0x40] sm:$0xff] %v357_v59  ;;  %422 = vst [vmem:[%s621_s22 + $0x48] sm:$0xff] %v358_v60  ;;  %v232_v10 = vmul.f32 %v588_v0, %v163_v56  ;;  %v233_v11 = vmul.f32 %v588_v0, %v164_v57  ;;  %v180_v59 = vld [vmem:[%s593_s17 + $0x108] sm:$0xff]  ;;  %v181_v60 = vld [vmem:[%s593_s17 + $0x110] sm:$0xff] }
  0x1e   : > { %423 = vst [vmem:[%s621_s22 + $0x50] sm:$0xff] %v359_v61  ;;  %v363_v9 = vmax.f32 %v299_v62, 0.0  ;;  %v234_v12 = vmul.f32 %v588_v0, %v165_v58  ;;  %424 = vst [vmem:[%s621_s22 + $0x58] sm:$0xff] %v360_v4  ;;  %v235_v15 = vmul.f32 %v588_v0, %v166_v63  ;;  %v236_v16 = vmul.f32 %v588_v0, %v167_v2  ;;  %v179_v58 = vld [vmem:[%s593_s17 + $0x100] sm:$0xff] }
  0x1f   : > { %425 = vst [vmem:[%s621_s22 + $0x60] sm:$0xff] %v361_v5  ;;  %426 = vst [vmem:[%s621_s22 + $0x68] sm:$0xff] %v362_v6  ;;  %v364_v14 = vmax.f32 %v300_v7, 0.0  ;;  %v237_v17 = vmul.f32 %v588_v0, %v168_v3  ;;  %v301_v18 = vadd.f32 %v598_v1, %v232_v10  ;;  %v302_v19 = vadd.f32 %v598_v1, %v233_v11  ;;  %v182_v3 = vld [vmem:[%s593_s17 + $0x118] sm:$0xff]  ;;  %v183_v4 = vld [vmem:[%s593_s17 + $0x120] sm:$0xff] }
  0x20   : > { %427 = vst [vmem:[%s621_s22 + $0x70] sm:$0xff] %v363_v9  ;;  %v303_v20 = vadd.f32 %v598_v1, %v234_v12  ;;  %v238_v21 = vmul.f32 %v588_v0, %v169_v8  ;;  %v304_v22 = vadd.f32 %v598_v1, %v235_v15  ;;  %v305_v23 = vadd.f32 %v598_v1, %v236_v16  ;;  %v184_v5 = vld [vmem:[%s593_s17 + $0x128] sm:$0xff]  ;;  %v185_v10 = vld [vmem:[%s593_s17 + $0x130] sm:$0xff]  ;;  %v186_v15 = vld [vmem:[%s593_s17 + $0x138] sm:$0xff] }
  0x21   : > { %428 = vst [vmem:[%s621_s22 + $0x78] sm:$0xff] %v364_v14  ;;  %v306_v24 = vadd.f32 %v598_v1, %v237_v17  ;;  %v239_v25 = vmul.f32 %v588_v0, %v170_v13  ;;  %v365_v29 = vmax.f32 %v301_v18, 0.0  ;;  %v366_v30 = vmax.f32 %v302_v19, 0.0 }
  0x22   : > { %v367_v31 = vmax.f32 %v303_v20, 0.0  ;;  %v307_v32 = vadd.f32 %v598_v1, %v238_v21  ;;  %v368_v36 = vmax.f32 %v304_v22, 0.0  ;;  %v369_v37 = vmax.f32 %v305_v23, 0.0 }
  0x23   : > { %v370_v38 = vmax.f32 %v306_v24, 0.0  ;;  %v308_v39 = vadd.f32 %v598_v1, %v239_v25  ;;  %429 = vst [vmem:[%s621_s22 + $0x80] sm:$0xff] %v365_v29  ;;  %430 = vst [vmem:[%s621_s22 + $0x88] sm:$0xff] %v366_v30  ;;  %v240_v42 = vmul.f32 %v588_v0, %v171_v26  ;;  %v241_v43 = vmul.f32 %v588_v0, %v172_v27  ;;  %v188_v29 = vld [vmem:[%s593_s17 + $0x148] sm:$0xff]  ;;  %v189_v30 = vld [vmem:[%s593_s17 + $0x150] sm:$0xff] }
  0x24   : > { %431 = vst [vmem:[%s621_s22 + $0x90] sm:$0xff] %v367_v31  ;;  %v371_v41 = vmax.f32 %v307_v32, 0.0  ;;  %v242_v44 = vmul.f32 %v588_v0, %v173_v28  ;;  %432 = vst [vmem:[%s621_s22 + $0x98] sm:$0xff] %v368_v36  ;;  %v243_v47 = vmul.f32 %v588_v0, %v174_v33  ;;  %v244_v48 = vmul.f32 %v588_v0, %v175_v34  ;;  %v187_v28 = vld [vmem:[%s593_s17 + $0x140] sm:$0xff] }
  0x25   : > { %433 = vst [vmem:[%s621_s22 + $0xa0] sm:$0xff] %v369_v37  ;;  %434 = vst [vmem:[%s621_s22 + $0xa8] sm:$0xff] %v370_v38  ;;  %v372_v46 = vmax.f32 %v308_v39, 0.0  ;;  %v245_v49 = vmul.f32 %v588_v0, %v176_v35  ;;  %v309_v50 = vadd.f32 %v598_v1, %v240_v42  ;;  %v310_v51 = vadd.f32 %v598_v1, %v241_v43  ;;  %v190_v35 = vld [vmem:[%s593_s17 + $0x158] sm:$0xff]  ;;  %v191_v36 = vld [vmem:[%s593_s17 + $0x160] sm:$0xff] }
  0x26   : > { %435 = vst [vmem:[%s621_s22 + $0xb0] sm:$0xff] %v371_v41  ;;  %v311_v52 = vadd.f32 %v598_v1, %v242_v44  ;;  %v246_v53 = vmul.f32 %v588_v0, %v177_v40  ;;  %v312_v54 = vadd.f32 %v598_v1, %v243_v47  ;;  %v313_v55 = vadd.f32 %v598_v1, %v244_v48  ;;  %v192_v37 = vld [vmem:[%s593_s17 + $0x168] sm:$0xff]  ;;  %v193_v42 = vld [vmem:[%s593_s17 + $0x170] sm:$0xff]  ;;  %v194_v47 = vld [vmem:[%s593_s17 + $0x178] sm:$0xff] }
  0x27   : > { %436 = vst [vmem:[%s621_s22 + $0xb8] sm:$0xff] %v372_v46  ;;  %v314_v56 = vadd.f32 %v598_v1, %v245_v49  ;;  %v247_v57 = vmul.f32 %v588_v0, %v178_v45  ;;  %v373_v61 = vmax.f32 %v309_v50, 0.0  ;;  %v374_v62 = vmax.f32 %v310_v51, 0.0 }
  0x28   : > { %v375_v63 = vmax.f32 %v311_v52, 0.0  ;;  %v315_v2 = vadd.f32 %v598_v1, %v246_v53  ;;  %v376_v6 = vmax.f32 %v312_v54, 0.0  ;;  %v377_v7 = vmax.f32 %v313_v55, 0.0 }
  0x29   : > { %v378_v8 = vmax.f32 %v314_v56, 0.0  ;;  %v316_v9 = vadd.f32 %v598_v1, %v247_v57  ;;  %437 = vst [vmem:[%s621_s22 + $0xc0] sm:$0xff] %v373_v61  ;;  %438 = vst [vmem:[%s621_s22 + $0xc8] sm:$0xff] %v374_v62  ;;  %v248_v12 = vmul.f32 %v588_v0, %v179_v58  ;;  %v249_v13 = vmul.f32 %v588_v0, %v180_v59  ;;  %v196_v61 = vld [vmem:[%s593_s17 + $0x188] sm:$0xff]  ;;  %v197_v62 = vld [vmem:[%s593_s17 + $0x190] sm:$0xff] }
  0x2a   : > { %439 = vst [vmem:[%s621_s22 + $0xd0] sm:$0xff] %v375_v63  ;;  %v379_v11 = vmax.f32 %v315_v2, 0.0  ;;  %v250_v14 = vmul.f32 %v588_v0, %v181_v60  ;;  %440 = vst [vmem:[%s621_s22 + $0xd8] sm:$0xff] %v376_v6  ;;  %v251_v17 = vmul.f32 %v588_v0, %v182_v3  ;;  %v252_v18 = vmul.f32 %v588_v0, %v183_v4  ;;  %v195_v60 = vld [vmem:[%s593_s17 + $0x180] sm:$0xff] }
  0x2b   : > { %441 = vst [vmem:[%s621_s22 + $0xe0] sm:$0xff] %v377_v7  ;;  %442 = vst [vmem:[%s621_s22 + $0xe8] sm:$0xff] %v378_v8  ;;  %v380_v16 = vmax.f32 %v316_v9, 0.0  ;;  %v253_v19 = vmul.f32 %v588_v0, %v184_v5  ;;  %v317_v20 = vadd.f32 %v598_v1, %v248_v12  ;;  %v318_v21 = vadd.f32 %v598_v1, %v249_v13  ;;  %v198_v5 = vld [vmem:[%s593_s17 + $0x198] sm:$0xff]  ;;  %v199_v6 = vld [vmem:[%s593_s17 + $0x1a0] sm:$0xff] }
  0x2c   : > { %443 = vst [vmem:[%s621_s22 + $0xf0] sm:$0xff] %v379_v11  ;;  %v319_v22 = vadd.f32 %v598_v1, %v250_v14  ;;  %v254_v23 = vmul.f32 %v588_v0, %v185_v10  ;;  %v320_v24 = vadd.f32 %v598_v1, %v251_v17  ;;  %v321_v25 = vadd.f32 %v598_v1, %v252_v18  ;;  %v200_v7 = vld [vmem:[%s593_s17 + $0x1a8] sm:$0xff]  ;;  %v201_v12 = vld [vmem:[%s593_s17 + $0x1b0] sm:$0xff]  ;;  %v202_v17 = vld [vmem:[%s593_s17 + $0x1b8] sm:$0xff] }
  0x2d   : > { %444 = vst [vmem:[%s621_s22 + $0xf8] sm:$0xff] %v380_v16  ;;  %v322_v26 = vadd.f32 %v598_v1, %v253_v19  ;;  %v255_v27 = vmul.f32 %v588_v0, %v186_v15  ;;  %v381_v31 = vmax.f32 %v317_v20, 0.0  ;;  %v382_v32 = vmax.f32 %v318_v21, 0.0 }
  0x2e   : > { %v383_v33 = vmax.f32 %v319_v22, 0.0  ;;  %v323_v34 = vadd.f32 %v598_v1, %v254_v23  ;;  %v384_v38 = vmax.f32 %v320_v24, 0.0  ;;  %v385_v39 = vmax.f32 %v321_v25, 0.0 }
  0x2f   : > { %v386_v40 = vmax.f32 %v322_v26, 0.0  ;;  %v324_v41 = vadd.f32 %v598_v1, %v255_v27  ;;  %445 = vst [vmem:[%s621_s22 + $0x100] sm:$0xff] %v381_v31  ;;  %446 = vst [vmem:[%s621_s22 + $0x108] sm:$0xff] %v382_v32  ;;  %v256_v44 = vmul.f32 %v588_v0, %v187_v28  ;;  %v257_v45 = vmul.f32 %v588_v0, %v188_v29  ;;  %v204_v31 = vld [vmem:[%s593_s17 + $0x1c8] sm:$0xff]  ;;  %v205_v32 = vld [vmem:[%s593_s17 + $0x1d0] sm:$0xff] }
  0x30   : > { %447 = vst [vmem:[%s621_s22 + $0x110] sm:$0xff] %v383_v33  ;;  %v387_v43 = vmax.f32 %v323_v34, 0.0  ;;  %v258_v46 = vmul.f32 %v588_v0, %v189_v30  ;;  %448 = vst [vmem:[%s621_s22 + $0x118] sm:$0xff] %v384_v38  ;;  %v259_v49 = vmul.f32 %v588_v0, %v190_v35  ;;  %v260_v50 = vmul.f32 %v588_v0, %v191_v36  ;;  %v203_v30 = vld [vmem:[%s593_s17 + $0x1c0] sm:$0xff] }
  0x31   : > { %449 = vst [vmem:[%s621_s22 + $0x120] sm:$0xff] %v385_v39  ;;  %450 = vst [vmem:[%s621_s22 + $0x128] sm:$0xff] %v386_v40  ;;  %v388_v48 = vmax.f32 %v324_v41, 0.0  ;;  %v261_v51 = vmul.f32 %v588_v0, %v192_v37  ;;  %v325_v52 = vadd.f32 %v598_v1, %v256_v44  ;;  %v326_v53 = vadd.f32 %v598_v1, %v257_v45  ;;  %v206_v37 = vld [vmem:[%s593_s17 + $0x1d8] sm:$0xff]  ;;  %v207_v38 = vld [vmem:[%s593_s17 + $0x1e0] sm:$0xff] }
  0x32   : > { %451 = vst [vmem:[%s621_s22 + $0x130] sm:$0xff] %v387_v43  ;;  %v327_v54 = vadd.f32 %v598_v1, %v258_v46  ;;  %v262_v55 = vmul.f32 %v588_v0, %v193_v42  ;;  %v328_v56 = vadd.f32 %v598_v1, %v259_v49  ;;  %v329_v57 = vadd.f32 %v598_v1, %v260_v50  ;;  %v208_v39 = vld [vmem:[%s593_s17 + $0x1e8] sm:$0xff]  ;;  %v209_v44 = vld [vmem:[%s593_s17 + $0x1f0] sm:$0xff]  ;;  %v210_v49 = vld [vmem:[%s593_s17 + $0x1f8] sm:$0xff] }
  0x33   : > { %452 = vst [vmem:[%s621_s22 + $0x138] sm:$0xff] %v388_v48  ;;  %v330_v58 = vadd.f32 %v598_v1, %v261_v51  ;;  %v263_v59 = vmul.f32 %v588_v0, %v194_v47  ;;  %v389_v63 = vmax.f32 %v325_v52, 0.0  ;;  %v390_v2 = vmax.f32 %v326_v53, 0.0 }
  0x34   : > { %v391_v3 = vmax.f32 %v327_v54, 0.0  ;;  %v331_v4 = vadd.f32 %v598_v1, %v262_v55  ;;  %v392_v8 = vmax.f32 %v328_v56, 0.0  ;;  %v393_v9 = vmax.f32 %v329_v57, 0.0 }
  0x35   : > { %v394_v10 = vmax.f32 %v330_v58, 0.0  ;;  %v332_v11 = vadd.f32 %v598_v1, %v263_v59  ;;  %453 = vst [vmem:[%s621_s22 + $0x140] sm:$0xff] %v389_v63  ;;  %454 = vst [vmem:[%s621_s22 + $0x148] sm:$0xff] %v390_v2  ;;  %v264_v14 = vmul.f32 %v588_v0, %v195_v60  ;;  %v265_v15 = vmul.f32 %v588_v0, %v196_v61 }
  0x36   : > { %455 = vst [vmem:[%s621_s22 + $0x150] sm:$0xff] %v391_v3  ;;  %v395_v13 = vmax.f32 %v331_v4, 0.0  ;;  %v266_v16 = vmul.f32 %v588_v0, %v197_v62  ;;  %456 = vst [vmem:[%s621_s22 + $0x158] sm:$0xff] %v392_v8  ;;  %v267_v19 = vmul.f32 %v588_v0, %v198_v5  ;;  %v268_v20 = vmul.f32 %v588_v0, %v199_v6 }
  0x37   : > { %457 = vst [vmem:[%s621_s22 + $0x160] sm:$0xff] %v393_v9  ;;  %458 = vst [vmem:[%s621_s22 + $0x168] sm:$0xff] %v394_v10  ;;  %v396_v18 = vmax.f32 %v332_v11, 0.0  ;;  %v269_v21 = vmul.f32 %v588_v0, %v200_v7  ;;  %v333_v22 = vadd.f32 %v598_v1, %v264_v14  ;;  %v334_v23 = vadd.f32 %v598_v1, %v265_v15 }
  0x38   : > { %459 = vst [vmem:[%s621_s22 + $0x170] sm:$0xff] %v395_v13  ;;  %v335_v24 = vadd.f32 %v598_v1, %v266_v16  ;;  %v270_v25 = vmul.f32 %v588_v0, %v201_v12  ;;  %v336_v26 = vadd.f32 %v598_v1, %v267_v19  ;;  %v337_v27 = vadd.f32 %v598_v1, %v268_v20 }
  0x39   : > { %460 = vst [vmem:[%s621_s22 + $0x178] sm:$0xff] %v396_v18  ;;  %v338_v28 = vadd.f32 %v598_v1, %v269_v21  ;;  %v271_v29 = vmul.f32 %v588_v0, %v202_v17  ;;  %v397_v33 = vmax.f32 %v333_v22, 0.0  ;;  %v398_v34 = vmax.f32 %v334_v23, 0.0 }
  0x3a   : > { %v399_v35 = vmax.f32 %v335_v24, 0.0  ;;  %v339_v36 = vadd.f32 %v598_v1, %v270_v25  ;;  %v400_v40 = vmax.f32 %v336_v26, 0.0  ;;  %v401_v41 = vmax.f32 %v337_v27, 0.0 }
  0x3b   : > { %v402_v42 = vmax.f32 %v338_v28, 0.0  ;;  %v340_v43 = vadd.f32 %v598_v1, %v271_v29  ;;  %461 = vst [vmem:[%s621_s22 + $0x180] sm:$0xff] %v397_v33  ;;  %462 = vst [vmem:[%s621_s22 + $0x188] sm:$0xff] %v398_v34  ;;  %v272_v46 = vmul.f32 %v588_v0, %v203_v30  ;;  %v273_v47 = vmul.f32 %v588_v0, %v204_v31 }
  0x3c   : > { %463 = vst [vmem:[%s621_s22 + $0x190] sm:$0xff] %v399_v35  ;;  %v403_v45 = vmax.f32 %v339_v36, 0.0  ;;  %v274_v48 = vmul.f32 %v588_v0, %v205_v32  ;;  %464 = vst [vmem:[%s621_s22 + $0x198] sm:$0xff] %v400_v40  ;;  %v275_v51 = vmul.f32 %v588_v0, %v206_v37  ;;  %v276_v52 = vmul.f32 %v588_v0, %v207_v38 }
  0x3d   : > { %465 = vst [vmem:[%s621_s22 + $0x1a0] sm:$0xff] %v401_v41  ;;  %466 = vst [vmem:[%s621_s22 + $0x1a8] sm:$0xff] %v402_v42  ;;  %v404_v50 = vmax.f32 %v340_v43, 0.0  ;;  %v277_v53 = vmul.f32 %v588_v0, %v208_v39  ;;  %v341_v54 = vadd.f32 %v598_v1, %v272_v46  ;;  %v342_v55 = vadd.f32 %v598_v1, %v273_v47 }
  0x3e   : > { %467 = vst [vmem:[%s621_s22 + $0x1b0] sm:$0xff] %v403_v45  ;;  %v343_v56 = vadd.f32 %v598_v1, %v274_v48  ;;  %v278_v57 = vmul.f32 %v588_v0, %v209_v44  ;;  %v344_v58 = vadd.f32 %v598_v1, %v275_v51  ;;  %v345_v59 = vadd.f32 %v598_v1, %v276_v52 }
  0x3f   : > { %468 = vst [vmem:[%s621_s22 + $0x1b8] sm:$0xff] %v404_v50  ;;  %v346_v60 = vadd.f32 %v598_v1, %v277_v53  ;;  %v279_v61 = vmul.f32 %v588_v0, %v210_v49  ;;  %v405_v62 = vmax.f32 %v341_v54, 0.0  ;;  %v406_v63 = vmax.f32 %v342_v55, 0.0 }
  0x40   : > { %v407_v2 = vmax.f32 %v343_v56, 0.0  ;;  %v347_v3 = vadd.f32 %v598_v1, %v278_v57  ;;  %v408_v4 = vmax.f32 %v344_v58, 0.0  ;;  %v409_v5 = vmax.f32 %v345_v59, 0.0 }
  0x41   : > { %v410_v6 = vmax.f32 %v346_v60, 0.0  ;;  %v348_v7 = vadd.f32 %v598_v1, %v279_v61  ;;  %469 = vst [vmem:[%s621_s22 + $0x1c0] sm:$0xff] %v405_v62  ;;  %470 = vst [vmem:[%s621_s22 + $0x1c8] sm:$0xff] %v406_v63 }
  0x42   : > { %471 = vst [vmem:[%s621_s22 + $0x1d0] sm:$0xff] %v407_v2  ;;  %v411_v8 = vmax.f32 %v347_v3, 0.0  ;;  %472 = vst [vmem:[%s621_s22 + $0x1d8] sm:$0xff] %v408_v4 }
  0x43   : > { %473 = vst [vmem:[%s621_s22 + $0x1e0] sm:$0xff] %v409_v5  ;;  %474 = vst [vmem:[%s621_s22 + $0x1e8] sm:$0xff] %v410_v6  ;;  %v412_v0 = vmax.f32 %v348_v7, 0.0 }
  0x44   : > { %475 = vst [vmem:[%s621_s22 + $0x1f0] sm:$0xff] %v411_v8 }
  0x45   : > { %476 = vst [vmem:[%s621_s22 + $0x1f8] sm:$0xff] %v412_v0 }
  0x46 PF: > { %s12_s9 = sadd.s32 1, %s560_s9  }
  0x47   : > { %p9_p4 = scmp.ge.s32.totalorder %s12_s9, 5  }
  0x49   :  { %11 = sbr.rel (!%p9_p4) target bundleno = 1 (0x1), region = 58 }

// kernel: cra_forward.34
= control target key start
LH: loop header
LB: loop body
LE: loop exit
PB: predicated region body
PF: predicated region fallthrough
CT: control target
= control target key end

     0   :  { %vm219_vm0 = vcmask 588800   ;;  %vm292_vm1 = vcmask 1043456   ;;  %s1243_s1 = inlined_call_operand.vmem [shape: bf16[72,128], index: 1, kind: input, shape index: {}]   ;;  %s1244_s0 = inlined_call_operand.vmem [shape: bf16[384,72], index: 0, kind: input, shape index: {}]   ;;  %s1245_s2 = inlined_call_operand.vmem [shape: f32[2,128], index: 2, kind: input, shape index: {}]   ;;  %s1246_s3 = inlined_call_operand.vmem [shape: f32[384,128], index: 3, kind: output, shape index: {}]  }
   0x1   :  { %v833_v0 = vld [vmem:[%s1243_s1] sm:$0xff]   ;;  %v834_v1 = vld [vmem:[%s1243_s1 + $0x8] sm:$0xff]   ;;  %v835_v2 = vld [vmem:[%s1243_s1 + $0x10] sm:$0xff]  }
   0x2   :  { %763 = vmatprep.subr.bf16.mxu0 %v833_v0  ;;  %821 = vmatprep.subr.bf16.mxu1 %v833_v0  ;;  %v838_v3 = vld [vmem:[%s1244_s0] sm:$0xff]   ;;  %v836_v5 = vld [vmem:[%s1243_s1 + $0x18] sm:$0xff]   ;;  %v840_v8 = vld [vmem:[%s1244_s0 + $0x8] sm:$0xff]  }
   0x3   :  { %764 = vmatpush3.bf16.msra.mxu0 %v833_v0  ;;  %826 = vmatpush3.bf16.msra.mxu1 %v833_v0  ;;  %v839_v4 = vld [vmem:[%s1244_s0 + $0x60] sm:$0xff]   ;;  %v841_v9 = vld [vmem:[%s1244_s0 + $0x68] sm:$0xff]   ;;  %v842_v10 = vld [vmem:[%s1244_s0 + $0x10] sm:$0xff]  }
   0x4   :  { %765 = vmatprep.subr.bf16.mxu0 %v834_v1  ;;  %822 = vmatprep.subr.bf16.mxu1 %v834_v1  ;;  %v837_v6 = vld [vmem:[%s1243_s1 + $0x20] ss:$0 sps:$4 sm:$0xff]   ;;  %v843_v11 = vld [vmem:[%s1244_s0 + $0x70] sm:$0xff]   ;;  %v844_v12 = vld [vmem:[%s1244_s0 + $0x18] sm:$0xff]  }
   0x5   :  { %773 = vmatprep.mubr.msk.bf16.mxu0 %vm219_vm0, %v838_v3  ;;  %797 = vmatprep.mubr.msk.bf16.mxu1 %vm219_vm0, %v839_v4  ;;  %v294_v7 = vsel %vm292_vm1, %v837_v6, 0  ;;  %v845_v13 = vld [vmem:[%s1244_s0 + $0x78] sm:$0xff]   ;;  %v846_v14 = vld [vmem:[%s1244_s0 + $0x20] sm:$0xff]   ;;  %v848_v16 = vld [vmem:[%s1244_s0 + $0x28] sm:$0xff]  }
   0x6   :  { %v847_v15 = vld [vmem:[%s1244_s0 + $0x80] sm:$0xff]   ;;  %v849_v17 = vld [vmem:[%s1244_s0 + $0x88] sm:$0xff]   ;;  %v850_v18 = vld [vmem:[%s1244_s0 + $0x30] sm:$0xff]  }
   0x7   :  { %766 = vmatpush3.bf16.msra.mxu0 %v834_v1  ;;  %827 = vmatpush3.bf16.msra.mxu1 %v834_v1  ;;  %v851_v19 = vld [vmem:[%s1244_s0 + $0x90] sm:$0xff]   ;;  %v852_v20 = vld [vmem:[%s1244_s0 + $0x38] sm:$0xff]   ;;  %v854_v22 = vld [vmem:[%s1244_s0 + $0x40] sm:$0xff]  }
   0x8   :  { %767 = vmatprep.subr.bf16.mxu0 %v835_v2  ;;  %823 = vmatprep.subr.bf16.mxu1 %v835_v2  ;;  %v853_v21 = vld [vmem:[%s1244_s0 + $0x98] sm:$0xff]   ;;  %v855_v23 = vld [vmem:[%s1244_s0 + $0xa0] sm:$0xff]   ;;  %v856_v24 = vld [vmem:[%s1244_s0 + $0x48] sm:$0xff]  }
   0x9   :  { %v857_v25 = vld [vmem:[%s1244_s0 + $0xa8] sm:$0xff]   ;;  %v858_v26 = vld [vmem:[%s1244_s0 + $0x50] sm:$0xff]   ;;  %v860_v28 = vld [vmem:[%s1244_s0 + $0x58] sm:$0xff]  }
   0xa   :  { %v859_v27 = vld [vmem:[%s1244_s0 + $0xb0] sm:$0xff]   ;;  %v861_v29 = vld [vmem:[%s1244_s0 + $0xb8] sm:$0xff]   ;;  %v996_v30 = vld [vmem:[%s1245_s2] ss:$0 sm:$0xff] }
   0xb   :  { %768 = vmatpush3.bf16.msra.mxu0 %v835_v2  ;;  %828 = vmatpush3.bf16.msra.mxu1 %v835_v2  ;;  %v1001_v32 = vld [vmem:[%s1245_s2 + $0x1] ss:$0 sm:$0xff] }
   0xc   :  { %769 = vmatprep.subr.bf16.mxu0 %v836_v5  ;;  %824 = vmatprep.subr.bf16.mxu1 %v836_v5 }
   0xf   :  { %770 = vmatpush3.bf16.msra.mxu0 %v836_v5  ;;  %829 = vmatpush3.bf16.msra.mxu1 %v836_v5 }
  0x10   :  { %831 = vmatprep.subr.msk.bf16.mxu0 %vm292_vm1, %v837_v6  ;;  %832 = vmatprep.subr.msk.bf16.mxu1 %vm292_vm1, %v837_v6 }
  0x13   :  { %772 = vmatpush3.bf16.msra.mxu0 %v294_v7  ;;  %830 = vmatpush3.bf16.msra.mxu1 %v294_v7 }
  0x16   :  { %774 = vmatmul.mubr.msk.bf16.vlgmr.msra.gmra.mrb[0].mxu0 %vm219_vm0, %v840_v8  ;;  %798 = vmatmul.mubr.msk.bf16.vlgmr.msra.gmra.mrb[0].mxu1 %vm219_vm0, %v841_v9 }
  0x17   :  { %777 = vmatprep.mubr.msk.bf16.mxu0 %vm219_vm0, %v842_v10  ;;  %801 = vmatprep.mubr.msk.bf16.mxu1 %vm219_vm0, %v843_v11 }
  0x1e   :  { %778 = vmatmul.mubr.msk.bf16.gmra.mrb[4].mxu0 %vm219_vm0, %v844_v12  ;;  %802 = vmatmul.mubr.msk.bf16.gmra.mrb[4].mxu1 %vm219_vm0, %v845_v13 }
  0x1f   :  { %781 = vmatprep.mubr.msk.bf16.mxu0 %vm219_vm0, %v846_v14  ;;  %805 = vmatprep.mubr.msk.bf16.mxu1 %vm219_vm0, %v847_v15 }
  0x26   :  { %782 = vmatmul.mubr.msk.bf16.gmra.mrb[8].mxu0 %vm219_vm0, %v848_v16  ;;  %806 = vmatmul.mubr.msk.bf16.gmra.mrb[8].mxu1 %vm219_vm0, %v849_v17 }
  0x27   :  { %785 = vmatprep.mubr.msk.bf16.mxu0 %vm219_vm0, %v850_v18  ;;  %809 = vmatprep.mubr.msk.bf16.mxu1 %vm219_vm0, %v851_v19 }
  0x2e   :  { %786 = vmatmul.mubr.msk.bf16.gmra.mrb[12].mxu0 %vm219_vm0, %v852_v20  ;;  %810 = vmatmul.mubr.msk.bf16.gmra.mrb[12].mxu1 %vm219_vm0, %v853_v21 }
  0x2f   :  { %789 = vmatprep.mubr.msk.bf16.mxu0 %vm219_vm0, %v854_v22  ;;  %813 = vmatprep.mubr.msk.bf16.mxu1 %vm219_vm0, %v855_v23 }
  0x36   :  { %790 = vmatmul.mubr.msk.bf16.gmra.mrb[16].mxu0 %vm219_vm0, %v856_v24  ;;  %814 = vmatmul.mubr.msk.bf16.gmra.mrb[16].mxu1 %vm219_vm0, %v857_v25 }
  0x37   :  { %793 = vmatprep.mubr.msk.bf16.mxu0 %vm219_vm0, %v858_v26  ;;  %817 = vmatprep.mubr.msk.bf16.mxu1 %vm219_vm0, %v859_v27 }
  0x3e   :  { %794 = vmatmul.mubr.msk.bf16.gmra.mrb[20].mxu0 %vm219_vm0, %v860_v28  ;;  %818 = vmatmul.mubr.msk.bf16.gmra.mrb[20].mxu1 %vm219_vm0, %v861_v29 }
  0xe9   :  { %v775_v31 = vpop.f32.mrb[0].mxu0  ;;  %v799_v33 = vpop.f32.mrb[0].mxu1 }
  0xea   :  { %v528_v34 = vmul.f32 %v775_v31, %v996_v30  ;;  %v552_v35 = vmul.f32 %v799_v33, %v996_v30  ;;  %v330_v36 = vpop.f32.mrb[1].mxu0  ;;  %v426_v37 = vpop.f32.mrb[1].mxu1 }
  0xeb   :  { %v526_v38 = vmul.f32 %v996_v30, %v330_v36  ;;  %v550_v39 = vmul.f32 %v996_v30, %v426_v37  ;;  %v776_v40 = vpop.f32.mrb[2].mxu0  ;;  %v800_v41 = vpop.f32.mrb[2].mxu1 }
  0xec   :  { %v581_v42 = vadd.f32 %v1001_v32, %v528_v34  ;;  %v605_v43 = vadd.f32 %v1001_v32, %v552_v35  ;;  %v529_v44 = vmul.f32 %v776_v40, %v996_v30  ;;  %v553_v45 = vmul.f32 %v800_v41, %v996_v30  ;;  %v333_v46 = vpop.f32.mrb[3].mxu0  ;;  %v429_v47 = vpop.f32.mrb[3].mxu1 }
  0xed   :  { %v579_v48 = vadd.f32 %v1001_v32, %v526_v38  ;;  %v603_v49 = vadd.f32 %v1001_v32, %v550_v39  ;;  %v527_v50 = vmul.f32 %v996_v30, %v333_v46  ;;  %v551_v51 = vmul.f32 %v996_v30, %v429_v47 }
  0xee   :  { %629 = vst [vmem:[%s1246_s3 + $0x10] sm:$0xff] %v581_v42  ;;  %653 = vst [vmem:[%s1246_s3 + $0xd0] sm:$0xff] %v605_v43  ;;  %v582_v52 = vadd.f32 %v1001_v32, %v529_v44  ;;  %v606_v53 = vadd.f32 %v1001_v32, %v553_v45 }
  0xef   :  { %627 = vst [vmem:[%s1246_s3] sm:$0xff] %v579_v48  ;;  %651 = vst [vmem:[%s1246_s3 + $0xc0] sm:$0xff] %v603_v49  ;;  %v580_v54 = vadd.f32 %v1001_v32, %v527_v50  ;;  %v604_v55 = vadd.f32 %v1001_v32, %v551_v51 }
  0xf0   :  { %630 = vst [vmem:[%s1246_s3 + $0x18] sm:$0xff] %v582_v52  ;;  %654 = vst [vmem:[%s1246_s3 + $0xd8] sm:$0xff] %v606_v53 }
  0xf1   :  { %628 = vst [vmem:[%s1246_s3 + $0x8] sm:$0xff] %v580_v54  ;;  %652 = vst [vmem:[%s1246_s3 + $0xc8] sm:$0xff] %v604_v55  ;;  %v779_v56 = vpop.f32.mrb[4].mxu0  ;;  %v803_v57 = vpop.f32.mrb[4].mxu1 }
  0xf2   :  { %v532_v58 = vmul.f32 %v779_v56, %v996_v30  ;;  %v556_v59 = vmul.f32 %v803_v57, %v996_v30  ;;  %v346_v60 = vpop.f32.mrb[5].mxu0  ;;  %v442_v61 = vpop.f32.mrb[5].mxu1 }
  0xf3   :  { %v530_v62 = vmul.f32 %v996_v30, %v346_v60  ;;  %v554_v63 = vmul.f32 %v996_v30, %v442_v61  ;;  %v780_v0 = vpop.f32.mrb[6].mxu0  ;;  %v804_v1 = vpop.f32.mrb[6].mxu1 }
  0xf4   :  { %v585_v2 = vadd.f32 %v1001_v32, %v532_v58  ;;  %v609_v3 = vadd.f32 %v1001_v32, %v556_v59  ;;  %v533_v4 = vmul.f32 %v780_v0, %v996_v30  ;;  %v557_v5 = vmul.f32 %v804_v1, %v996_v30  ;;  %v349_v6 = vpop.f32.mrb[7].mxu0  ;;  %v445_v7 = vpop.f32.mrb[7].mxu1 }
  0xf5   :  { %v583_v8 = vadd.f32 %v1001_v32, %v530_v62  ;;  %v607_v9 = vadd.f32 %v1001_v32, %v554_v63  ;;  %v531_v10 = vmul.f32 %v996_v30, %v349_v6  ;;  %v555_v11 = vmul.f32 %v996_v30, %v445_v7 }
  0xf6   :  { %633 = vst [vmem:[%s1246_s3 + $0x30] sm:$0xff] %v585_v2  ;;  %657 = vst [vmem:[%s1246_s3 + $0xf0] sm:$0xff] %v609_v3  ;;  %v586_v12 = vadd.f32 %v1001_v32, %v533_v4  ;;  %v610_v13 = vadd.f32 %v1001_v32, %v557_v5 }
  0xf7   :  { %631 = vst [vmem:[%s1246_s3 + $0x20] sm:$0xff] %v583_v8  ;;  %655 = vst [vmem:[%s1246_s3 + $0xe0] sm:$0xff] %v607_v9  ;;  %v584_v14 = vadd.f32 %v1001_v32, %v531_v10  ;;  %v608_v15 = vadd.f32 %v1001_v32, %v555_v11 }
  0xf8   :  { %634 = vst [vmem:[%s1246_s3 + $0x38] sm:$0xff] %v586_v12  ;;  %658 = vst [vmem:[%s1246_s3 + $0xf8] sm:$0xff] %v610_v13 }
  0xf9   :  { %632 = vst [vmem:[%s1246_s3 + $0x28] sm:$0xff] %v584_v14  ;;  %656 = vst [vmem:[%s1246_s3 + $0xe8] sm:$0xff] %v608_v15  ;;  %v783_v16 = vpop.f32.mrb[8].mxu0  ;;  %v807_v17 = vpop.f32.mrb[8].mxu1 }
  0xfa   :  { %v536_v18 = vmul.f32 %v783_v16, %v996_v30  ;;  %v560_v19 = vmul.f32 %v807_v17, %v996_v30  ;;  %v362_v20 = vpop.f32.mrb[9].mxu0  ;;  %v458_v21 = vpop.f32.mrb[9].mxu1 }
  0xfb   :  { %v534_v22 = vmul.f32 %v996_v30, %v362_v20  ;;  %v558_v23 = vmul.f32 %v996_v30, %v458_v21  ;;  %v784_v24 = vpop.f32.mrb[10].mxu0  ;;  %v808_v25 = vpop.f32.mrb[10].mxu1 }
  0xfc   :  { %v589_v26 = vadd.f32 %v1001_v32, %v536_v18  ;;  %v613_v27 = vadd.f32 %v1001_v32, %v560_v19  ;;  %v537_v28 = vmul.f32 %v784_v24, %v996_v30  ;;  %v561_v29 = vmul.f32 %v808_v25, %v996_v30  ;;  %v365_v31 = vpop.f32.mrb[11].mxu0  ;;  %v461_v33 = vpop.f32.mrb[11].mxu1 }
  0xfd   :  { %v587_v34 = vadd.f32 %v1001_v32, %v534_v22  ;;  %v611_v35 = vadd.f32 %v1001_v32, %v558_v23  ;;  %v535_v36 = vmul.f32 %v996_v30, %v365_v31  ;;  %v559_v37 = vmul.f32 %v996_v30, %v461_v33 }
  0xfe   :  { %637 = vst [vmem:[%s1246_s3 + $0x50] sm:$0xff] %v589_v26  ;;  %661 = vst [vmem:[%s1246_s3 + $0x110] sm:$0xff] %v613_v27  ;;  %v590_v38 = vadd.f32 %v1001_v32, %v537_v28  ;;  %v614_v39 = vadd.f32 %v1001_v32, %v561_v29 }
  0xff   :  { %635 = vst [vmem:[%s1246_s3 + $0x40] sm:$0xff] %v587_v34  ;;  %659 = vst [vmem:[%s1246_s3 + $0x100] sm:$0xff] %v611_v35  ;;  %v588_v40 = vadd.f32 %v1001_v32, %v535_v36  ;;  %v612_v41 = vadd.f32 %v1001_v32, %v559_v37 }
 0x100   :  { %638 = vst [vmem:[%s1246_s3 + $0x58] sm:$0xff] %v590_v38  ;;  %662 = vst [vmem:[%s1246_s3 + $0x118] sm:$0xff] %v614_v39 }
 0x101   :  { %636 = vst [vmem:[%s1246_s3 + $0x48] sm:$0xff] %v588_v40  ;;  %660 = vst [vmem:[%s1246_s3 + $0x108] sm:$0xff] %v612_v41  ;;  %v787_v42 = vpop.f32.mrb[12].mxu0  ;;  %v811_v43 = vpop.f32.mrb[12].mxu1 }
 0x102   :  { %v540_v44 = vmul.f32 %v787_v42, %v996_v30  ;;  %v564_v45 = vmul.f32 %v811_v43, %v996_v30  ;;  %v378_v46 = vpop.f32.mrb[13].mxu0  ;;  %v474_v47 = vpop.f32.mrb[13].mxu1 }
 0x103   :  { %v538_v48 = vmul.f32 %v996_v30, %v378_v46  ;;  %v562_v49 = vmul.f32 %v996_v30, %v474_v47  ;;  %v788_v50 = vpop.f32.mrb[14].mxu0  ;;  %v812_v51 = vpop.f32.mrb[14].mxu1 }
 0x104   :  { %v593_v52 = vadd.f32 %v1001_v32, %v540_v44  ;;  %v617_v53 = vadd.f32 %v1001_v32, %v564_v45  ;;  %v541_v54 = vmul.f32 %v788_v50, %v996_v30  ;;  %v565_v55 = vmul.f32 %v812_v51, %v996_v30  ;;  %v381_v56 = vpop.f32.mrb[15].mxu0  ;;  %v477_v57 = vpop.f32.mrb[15].mxu1 }
 0x105   :  { %v591_v58 = vadd.f32 %v1001_v32, %v538_v48  ;;  %v615_v59 = vadd.f32 %v1001_v32, %v562_v49  ;;  %v539_v60 = vmul.f32 %v996_v30, %v381_v56  ;;  %v563_v61 = vmul.f32 %v996_v30, %v477_v57 }
 0x106   :  { %641 = vst [vmem:[%s1246_s3 + $0x70] sm:$0xff] %v593_v52  ;;  %665 = vst [vmem:[%s1246_s3 + $0x130] sm:$0xff] %v617_v53  ;;  %v594_v62 = vadd.f32 %v1001_v32, %v541_v54  ;;  %v618_v63 = vadd.f32 %v1001_v32, %v565_v55 }
 0x107   :  { %639 = vst [vmem:[%s1246_s3 + $0x60] sm:$0xff] %v591_v58  ;;  %663 = vst [vmem:[%s1246_s3 + $0x120] sm:$0xff] %v615_v59  ;;  %v592_v0 = vadd.f32 %v1001_v32, %v539_v60  ;;  %v616_v1 = vadd.f32 %v1001_v32, %v563_v61 }
 0x108   :  { %642 = vst [vmem:[%s1246_s3 + $0x78] sm:$0xff] %v594_v62  ;;  %666 = vst [vmem:[%s1246_s3 + $0x138] sm:$0xff] %v618_v63 }
 0x109   :  { %640 = vst [vmem:[%s1246_s3 + $0x68] sm:$0xff] %v592_v0  ;;  %664 = vst [vmem:[%s1246_s3 + $0x128] sm:$0xff] %v616_v1  ;;  %v791_v2 = vpop.f32.mrb[16].mxu0  ;;  %v815_v3 = vpop.f32.mrb[16].mxu1 }
 0x10a   :  { %v544_v4 = vmul.f32 %v791_v2, %v996_v30  ;;  %v568_v5 = vmul.f32 %v815_v3, %v996_v30  ;;  %v394_v6 = vpop.f32.mrb[17].mxu0  ;;  %v490_v7 = vpop.f32.mrb[17].mxu1 }
 0x10b   :  { %v542_v8 = vmul.f32 %v996_v30, %v394_v6  ;;  %v566_v9 = vmul.f32 %v996_v30, %v490_v7  ;;  %v792_v10 = vpop.f32.mrb[18].mxu0  ;;  %v816_v11 = vpop.f32.mrb[18].mxu1 }
 0x10c   :  { %v597_v12 = vadd.f32 %v1001_v32, %v544_v4  ;;  %v621_v13 = vadd.f32 %v1001_v32, %v568_v5  ;;  %v545_v14 = vmul.f32 %v792_v10, %v996_v30  ;;  %v569_v15 = vmul.f32 %v816_v11, %v996_v30  ;;  %v397_v16 = vpop.f32.mrb[19].mxu0  ;;  %v493_v17 = vpop.f32.mrb[19].mxu1 }
 0x10d   :  { %v595_v18 = vadd.f32 %v1001_v32, %v542_v8  ;;  %v619_v19 = vadd.f32 %v1001_v32, %v566_v9  ;;  %v543_v20 = vmul.f32 %v996_v30, %v397_v16  ;;  %v567_v21 = vmul.f32 %v996_v30, %v493_v17 }
 0x10e   :  { %645 = vst [vmem:[%s1246_s3 + $0x90] sm:$0xff] %v597_v12  ;;  %669 = vst [vmem:[%s1246_s3 + $0x150] sm:$0xff] %v621_v13  ;;  %v598_v22 = vadd.f32 %v1001_v32, %v545_v14  ;;  %v622_v23 = vadd.f32 %v1001_v32, %v569_v15 }
 0x10f   :  { %643 = vst [vmem:[%s1246_s3 + $0x80] sm:$0xff] %v595_v18  ;;  %667 = vst [vmem:[%s1246_s3 + $0x140] sm:$0xff] %v619_v19  ;;  %v596_v24 = vadd.f32 %v1001_v32, %v543_v20  ;;  %v620_v25 = vadd.f32 %v1001_v32, %v567_v21 }
 0x110   :  { %646 = vst [vmem:[%s1246_s3 + $0x98] sm:$0xff] %v598_v22  ;;  %670 = vst [vmem:[%s1246_s3 + $0x158] sm:$0xff] %v622_v23 }
 0x111   :  { %644 = vst [vmem:[%s1246_s3 + $0x88] sm:$0xff] %v596_v24  ;;  %668 = vst [vmem:[%s1246_s3 + $0x148] sm:$0xff] %v620_v25  ;;  %v795_v26 = vpop.f32.mrb[20].mxu0  ;;  %v819_v27 = vpop.f32.mrb[20].mxu1 }
 0x112   :  { %v548_v28 = vmul.f32 %v795_v26, %v996_v30  ;;  %v572_v29 = vmul.f32 %v819_v27, %v996_v30  ;;  %v410_v31 = vpop.f32.mrb[21].mxu0  ;;  %v506_v33 = vpop.f32.mrb[21].mxu1 }
 0x113   :  { %v546_v34 = vmul.f32 %v996_v30, %v410_v31  ;;  %v570_v35 = vmul.f32 %v996_v30, %v506_v33  ;;  %v796_v36 = vpop.f32.mrb[22].mxu0  ;;  %v820_v37 = vpop.f32.mrb[22].mxu1 }
 0x114   :  { %v601_v38 = vadd.f32 %v1001_v32, %v548_v28  ;;  %v625_v39 = vadd.f32 %v1001_v32, %v572_v29  ;;  %v549_v40 = vmul.f32 %v796_v36, %v996_v30  ;;  %v573_v41 = vmul.f32 %v820_v37, %v996_v30  ;;  %v413_v42 = vpop.f32.mrb[23].mxu0  ;;  %v509_v43 = vpop.f32.mrb[23].mxu1 }
 0x115   :  { %v599_v44 = vadd.f32 %v1001_v32, %v546_v34  ;;  %v623_v45 = vadd.f32 %v1001_v32, %v570_v35  ;;  %v547_v46 = vmul.f32 %v996_v30, %v413_v42  ;;  %v571_v47 = vmul.f32 %v996_v30, %v509_v43 }
 0x116   :  { %649 = vst [vmem:[%s1246_s3 + $0xb0] sm:$0xff] %v601_v38  ;;  %673 = vst [vmem:[%s1246_s3 + $0x170] sm:$0xff] %v625_v39  ;;  %v602_v48 = vadd.f32 %v1001_v32, %v549_v40  ;;  %v626_v49 = vadd.f32 %v1001_v32, %v573_v41 }
 0x117   :  { %647 = vst [vmem:[%s1246_s3 + $0xa0] sm:$0xff] %v599_v44  ;;  %671 = vst [vmem:[%s1246_s3 + $0x160] sm:$0xff] %v623_v45  ;;  %v600_v30 = vadd.f32 %v1001_v32, %v547_v46  ;;  %v624_v50 = vadd.f32 %v1001_v32, %v571_v47 }
 0x118   :  { %650 = vst [vmem:[%s1246_s3 + $0xb8] sm:$0xff] %v602_v48  ;;  %674 = vst [vmem:[%s1246_s3 + $0x178] sm:$0xff] %v626_v49 }
 0x119   :  { %648 = vst [vmem:[%s1246_s3 + $0xa8] sm:$0xff] %v600_v30  ;;  %672 = vst [vmem:[%s1246_s3 + $0x168] sm:$0xff] %v624_v50 }

// kernel: cra_forward.45
= control target key start
LH: loop header
LB: loop body
LE: loop exit
PB: predicated region body
PF: predicated region fallthrough
CT: control target
= control target key end

     0   :  { %v1112_v0 = vmov 0   ;;  %vm385_vm0 = vcmask 588800   ;;  %vm458_vm1 = vcmask 1043456   ;;  %s1666_s1 = inlined_call_operand.vmem [shape: bf16[200,128], index: 1, kind: input, shape index: {}]   ;;  %s1667_s0 = inlined_call_operand.vmem [shape: bf16[384,200], index: 0, kind: input, shape index: {}]   ;;  %s1668_s2 = inlined_call_operand.vmem [shape: f32[384,128], index: 2, kind: output, shape index: {0}]   ;;  %s1669_s3 = inlined_call_operand.vmem [shape: f32[1,128], index: 3, kind: output, shape index: {1}]   ;;  %s1670_s4 = inlined_call_operand.vmem [shape: f32[1,128], index: 4, kind: output, shape index: {2}]  }
   0x1   :  { %462 = vmatprep.subr.bf16.mxu0 %v1112_v0  ;;  %v1027_v1 = vld [vmem:[%s1666_s1] sm:$0xff]   ;;  %999 = vmatprep.subr.bf16.mxu1 %v1112_v0  ;;  %v1028_v2 = vld [vmem:[%s1666_s1 + $0x8] sm:$0xff]   ;;  %v1029_v3 = vld [vmem:[%s1666_s1 + $0x10] sm:$0xff]  }
   0x2   :  { %463 = vmatpush1.bf16.msra.mxu0 %v1027_v1  ;;  %1012 = vmatpush1.bf16.msra.mxu1 %v1027_v1  ;;  %v1030_v4 = vld [vmem:[%s1666_s1 + $0x18] sm:$0xff]   ;;  %v1042_v5 = vld [vmem:[%s1667_s0 + $0x4] ss:$8 sps:$4 sm:$0xff]   ;;  %v1033_v9 = vld [vmem:[%s1666_s1 + $0x30] sm:$0xff]  }
   0x3   :  { %464 = vmatprep.subr.bf16.mxu0 %v1112_v0  ;;  %1000 = vmatprep.subr.bf16.mxu1 %v1112_v0  ;;  %v1031_v6 = vld [vmem:[%s1666_s1 + $0x20] sm:$0xff]   ;;  %v1032_v7 = vld [vmem:[%s1666_s1 + $0x28] sm:$0xff]   ;;  %v1034_v10 = vld [vmem:[%s1666_s1 + $0x38] sm:$0xff]  }
   0x4   :  { %975 = vmatprep.mubr.msk.bf16.mxu0 %vm385_vm0, %v1042_v5  ;;  %v1060_v8 = vld [vmem:[%s1667_s0 + $0xc4] ss:$8 sps:$4 sm:$0xff]   ;;  %v1037_v13 = vld [vmem:[%s1666_s1 + $0x50] sm:$0xff]   ;;  %v1038_v14 = vld [vmem:[%s1666_s1 + $0x58] sm:$0xff]  }
   0x5   :  { %987 = vmatprep.mubr.msk.bf16.mxu1 %vm385_vm0, %v1060_v8  ;;  %v1035_v11 = vld [vmem:[%s1666_s1 + $0x40] sm:$0xff]   ;;  %v1036_v12 = vld [vmem:[%s1666_s1 + $0x48] sm:$0xff]   ;;  %v1043_v19 = vld [vmem:[%s1667_s0 + $0x14] ss:$8 sps:$4 sm:$0xff]  }
   0x6   :  { %465 = vmatpush1.bf16.msra.mxu0 %v1028_v2  ;;  %1013 = vmatpush1.bf16.msra.mxu1 %v1028_v2  ;;  %v1039_v15 = vld [vmem:[%s1666_s1 + $0x60] ss:$0 sps:$4 sm:$0xff]   ;;  %v1064_v20 = vld [vmem:[%s1667_s0 + $0xd4] ss:$8 sps:$4 sm:$0xff]   ;;  %v1045_v21 = vld [vmem:[%s1667_s0 + $0x10] ss:$8 sps:$4 sm:$0xff]  }
   0x7   :  { %466 = vmatprep.subr.bf16.mxu0 %v1112_v0  ;;  %1001 = vmatprep.subr.bf16.mxu1 %v1112_v0  ;;  %v460_v16 = vsel %vm458_vm1, %v1039_v15, 0  ;;  %v1040_v17 = vld [vmem:[%s1667_s0] ss:$8 sps:$4 sm:$0xff]   ;;  %v1066_v22 = vld [vmem:[%s1667_s0 + $0xd0] ss:$8 sps:$4 sm:$0xff]  }
   0x8   :  { %v1058_v18 = vld [vmem:[%s1667_s0 + $0xc0] ss:$8 sps:$4 sm:$0xff]   ;;  %v1046_v23 = vld [vmem:[%s1667_s0 + $0x24] ss:$8 sps:$4 sm:$0xff]   ;;  %v1049_v27 = vld [vmem:[%s1667_s0 + $0x34] ss:$8 sps:$4 sm:$0xff]  }
   0x9   :  { %v1070_v24 = vld [vmem:[%s1667_s0 + $0xe4] ss:$8 sps:$4 sm:$0xff]   ;;  %v1048_v25 = vld [vmem:[%s1667_s0 + $0x20] ss:$8 sps:$4 sm:$0xff]   ;;  %v1076_v28 = vld [vmem:[%s1667_s0 + $0xf4] ss:$8 sps:$4 sm:$0xff]  }
   0xa   :  { %467 = vmatpush1.bf16.msra.mxu0 %v1029_v3  ;;  %1014 = vmatpush1.bf16.msra.mxu1 %v1029_v3  ;;  %v1072_v26 = vld [vmem:[%s1667_s0 + $0xe0] ss:$8 sps:$4 sm:$0xff]   ;;  %v1051_v29 = vld [vmem:[%s1667_s0 + $0x30] ss:$8 sps:$4 sm:$0xff]   ;;  %v1052_v31 = vld [vmem:[%s1667_s0 + $0x44] ss:$8 sps:$4 sm:$0xff]  }
   0xb   :  { %468 = vmatprep.subr.bf16.mxu0 %v1112_v0  ;;  %1002 = vmatprep.subr.bf16.mxu1 %v1112_v0  ;;  %v1078_v30 = vld [vmem:[%s1667_s0 + $0xf0] ss:$8 sps:$4 sm:$0xff]   ;;  %v1082_v32 = vld [vmem:[%s1667_s0 + $0x104] ss:$8 sps:$4 sm:$0xff]   ;;  %v1054_v33 = vld [vmem:[%s1667_s0 + $0x40] ss:$8 sps:$4 sm:$0xff]  }
   0xc   :  { %v1084_v34 = vld [vmem:[%s1667_s0 + $0x100] ss:$8 sps:$4 sm:$0xff]   ;;  %v1055_v35 = vld [vmem:[%s1667_s0 + $0x54] ss:$8 sps:$4 sm:$0xff]   ;;  %v1057_v37 = vld [vmem:[%s1667_s0 + $0x50] ss:$8 sps:$4 sm:$0xff]  }
   0xd   :  { %v1088_v36 = vld [vmem:[%s1667_s0 + $0x114] ss:$8 sps:$4 sm:$0xff]   ;;  %v1090_v38 = vld [vmem:[%s1667_s0 + $0x110] ss:$8 sps:$4 sm:$0xff]   ;;  %v1061_v39 = vld [vmem:[%s1667_s0 + $0x64] ss:$8 sps:$4 sm:$0xff]  }
   0xe   :  { %469 = vmatpush1.bf16.msra.mxu0 %v1030_v4  ;;  %1015 = vmatpush1.bf16.msra.mxu1 %v1030_v4  ;;  %v1094_v40 = vld [vmem:[%s1667_s0 + $0x124] ss:$8 sps:$4 sm:$0xff]   ;;  %v1063_v41 = vld [vmem:[%s1667_s0 + $0x60] ss:$8 sps:$4 sm:$0xff]   ;;  %v1067_v43 = vld [vmem:[%s1667_s0 + $0x74] ss:$8 sps:$4 sm:$0xff]  }
   0xf   :  { %470 = vmatprep.subr.bf16.mxu0 %v1112_v0  ;;  %1003 = vmatprep.subr.bf16.mxu1 %v1112_v0  ;;  %v1096_v42 = vld [vmem:[%s1667_s0 + $0x120] ss:$8 sps:$4 sm:$0xff]   ;;  %v1097_v44 = vld [vmem:[%s1667_s0 + $0x134] ss:$8 sps:$4 sm:$0xff]   ;;  %v1069_v45 = vld [vmem:[%s1667_s0 + $0x70] ss:$8 sps:$4 sm:$0xff]  }
  0x10   :  { %v1099_v46 = vld [vmem:[%s1667_s0 + $0x130] ss:$8 sps:$4 sm:$0xff]   ;;  %v1073_v47 = vld [vmem:[%s1667_s0 + $0x84] ss:$8 sps:$4 sm:$0xff]   ;;  %v1075_v49 = vld [vmem:[%s1667_s0 + $0x80] ss:$8 sps:$4 sm:$0xff]  }
  0x11   :  { %v1100_v48 = vld [vmem:[%s1667_s0 + $0x144] ss:$8 sps:$4 sm:$0xff]   ;;  %v1102_v50 = vld [vmem:[%s1667_s0 + $0x140] ss:$8 sps:$4 sm:$0xff]   ;;  %v1079_v51 = vld [vmem:[%s1667_s0 + $0x94] ss:$8 sps:$4 sm:$0xff]  }
  0x12   :  { %471 = vmatpush1.bf16.msra.mxu0 %v1031_v6  ;;  %1016 = vmatpush1.bf16.msra.mxu1 %v1031_v6  ;;  %v1103_v52 = vld [vmem:[%s1667_s0 + $0x154] ss:$8 sps:$4 sm:$0xff]   ;;  %v1081_v53 = vld [vmem:[%s1667_s0 + $0x90] ss:$8 sps:$4 sm:$0xff]   ;;  %v1085_v55 = vld [vmem:[%s1667_s0 + $0xa4] ss:$8 sps:$4 sm:$0xff]  }
  0x13   :  { %472 = vmatprep.subr.bf16.mxu0 %v1112_v0  ;;  %1004 = vmatprep.subr.bf16.mxu1 %v1112_v0  ;;  %v1105_v54 = vld [vmem:[%s1667_s0 + $0x150] ss:$8 sps:$4 sm:$0xff]   ;;  %v1106_v56 = vld [vmem:[%s1667_s0 + $0x164] ss:$8 sps:$4 sm:$0xff]   ;;  %v1087_v57 = vld [vmem:[%s1667_s0 + $0xa0] ss:$8 sps:$4 sm:$0xff]  }
  0x14   :  { %v1108_v58 = vld [vmem:[%s1667_s0 + $0x160] ss:$8 sps:$4 sm:$0xff]   ;;  %v1091_v59 = vld [vmem:[%s1667_s0 + $0xb4] ss:$8 sps:$4 sm:$0xff]   ;;  %v1093_v61 = vld [vmem:[%s1667_s0 + $0xb0] ss:$8 sps:$4 sm:$0xff]  }
  0x15   :  { %v1109_v60 = vld [vmem:[%s1667_s0 + $0x174] ss:$8 sps:$4 sm:$0xff]   ;;  %v1111_v62 = vld [vmem:[%s1667_s0 + $0x170] ss:$8 sps:$4 sm:$0xff]  }
  0x16   :  { %473 = vmatpush1.bf16.msra.mxu0 %v1032_v7  ;;  %1017 = vmatpush1.bf16.msra.mxu1 %v1032_v7 }
  0x17   :  { %474 = vmatprep.subr.bf16.mxu0 %v1112_v0  ;;  %1005 = vmatprep.subr.bf16.mxu1 %v1112_v0 }
  0x1a   :  { %475 = vmatpush1.bf16.msra.mxu0 %v1033_v9  ;;  %1018 = vmatpush1.bf16.msra.mxu1 %v1033_v9 }
  0x1b   :  { %476 = vmatprep.subr.bf16.mxu0 %v1112_v0  ;;  %1006 = vmatprep.subr.bf16.mxu1 %v1112_v0 }
  0x1e   :  { %477 = vmatpush1.bf16.msra.mxu0 %v1034_v10  ;;  %1019 = vmatpush1.bf16.msra.mxu1 %v1034_v10 }
  0x1f   :  { %478 = vmatprep.subr.bf16.mxu0 %v1112_v0  ;;  %1007 = vmatprep.subr.bf16.mxu1 %v1112_v0 }
  0x22   :  { %479 = vmatpush1.bf16.msra.mxu0 %v1035_v11  ;;  %1020 = vmatpush1.bf16.msra.mxu1 %v1035_v11 }
  0x23   :  { %480 = vmatprep.subr.bf16.mxu0 %v1112_v0  ;;  %1008 = vmatprep.subr.bf16.mxu1 %v1112_v0 }
  0x26   :  { %481 = vmatpush1.bf16.msra.mxu0 %v1036_v12  ;;  %1021 = vmatpush1.bf16.msra.mxu1 %v1036_v12 }
  0x27   :  { %482 = vmatprep.subr.bf16.mxu0 %v1112_v0  ;;  %1009 = vmatprep.subr.bf16.mxu1 %v1112_v0 }
  0x2a   :  { %483 = vmatpush1.bf16.msra.mxu0 %v1037_v13  ;;  %1022 = vmatpush1.bf16.msra.mxu1 %v1037_v13 }
  0x2b   :  { %484 = vmatprep.subr.bf16.mxu0 %v1112_v0  ;;  %1010 = vmatprep.subr.bf16.mxu1 %v1112_v0 }
  0x2e   :  { %485 = vmatpush1.bf16.msra.mxu0 %v1038_v14  ;;  %1023 = vmatpush1.bf16.msra.mxu1 %v1038_v14 }
  0x2f   :  { %486 = vmatprep.subr.bf16.mxu0 %v1112_v0  ;;  %1011 = vmatprep.subr.bf16.mxu1 %v1112_v0 }
  0x32   :  { %487 = vmatpush1.bf16.msra.mxu0 %v460_v16  ;;  %1024 = vmatpush1.bf16.msra.mxu1 %v460_v16 }
  0x35   :  { %495 = vmatmul.mubr.bf16.vlgmr.msra.gmra.mrb[0].mxu0 %v1040_v17  ;;  %591 = vmatmul.mubr.bf16.vlgmr.msra.gmra.mrb[0].mxu1 %v1058_v18 }
  0x36   :  { %976 = vmatprep.mubr.msk.bf16.mxu0 %vm385_vm0, %v1043_v19  ;;  %988 = vmatprep.mubr.msk.bf16.mxu1 %vm385_vm0, %v1064_v20 }
  0x3d   :  { %503 = vmatmul.mubr.bf16.gmra.mrb[4].mxu0 %v1045_v21  ;;  %599 = vmatmul.mubr.bf16.gmra.mrb[4].mxu1 %v1066_v22 }
  0x3e   :  { %977 = vmatprep.mubr.msk.bf16.mxu0 %vm385_vm0, %v1046_v23  ;;  %989 = vmatprep.mubr.msk.bf16.mxu1 %vm385_vm0, %v1070_v24 }
  0x45   :  { %511 = vmatmul.mubr.bf16.gmra.mrb[8].mxu0 %v1048_v25  ;;  %607 = vmatmul.mubr.bf16.gmra.mrb[8].mxu1 %v1072_v26  ;;  %v1113_v25 = vmov 0.0  }
  0x46   :  { %978 = vmatprep.mubr.msk.bf16.mxu0 %vm385_vm0, %v1049_v27  ;;  %990 = vmatprep.mubr.msk.bf16.mxu1 %vm385_vm0, %v1076_v28  ;;  %19 = vst [vmem:[#allocation2] sm:$0x1] %v1113_v25  ;;  %20 = vst [vmem:[#allocation3] sm:$0x1] %v1113_v25 }
  0x4d   :  { %519 = vmatmul.mubr.bf16.gmra.mrb[12].mxu0 %v1051_v29  ;;  %615 = vmatmul.mubr.bf16.gmra.mrb[12].mxu1 %v1078_v30 }
  0x4e   :  { %979 = vmatprep.mubr.msk.bf16.mxu0 %vm385_vm0, %v1052_v31  ;;  %991 = vmatprep.mubr.msk.bf16.mxu1 %vm385_vm0, %v1082_v32 }
  0x55   :  { %527 = vmatmul.mubr.bf16.gmra.mrb[16].mxu0 %v1054_v33  ;;  %623 = vmatmul.mubr.bf16.gmra.mrb[16].mxu1 %v1084_v34 }
  0x56   :  { %980 = vmatprep.mubr.msk.bf16.mxu0 %vm385_vm0, %v1055_v35  ;;  %992 = vmatprep.mubr.msk.bf16.mxu1 %vm385_vm0, %v1088_v36 }
  0x5d   :  { %535 = vmatmul.mubr.bf16.gmra.mrb[20].mxu0 %v1057_v37  ;;  %631 = vmatmul.mubr.bf16.gmra.mrb[20].mxu1 %v1090_v38 }
  0x5e   :  { %981 = vmatprep.mubr.msk.bf16.mxu0 %vm385_vm0, %v1061_v39  ;;  %993 = vmatprep.mubr.msk.bf16.mxu1 %vm385_vm0, %v1094_v40 }
  0x65   :  { %543 = vmatmul.mubr.bf16.gmra.mrb[24].mxu0 %v1063_v41  ;;  %639 = vmatmul.mubr.bf16.gmra.mrb[24].mxu1 %v1096_v42 }
  0x66   :  { %982 = vmatprep.mubr.msk.bf16.mxu0 %vm385_vm0, %v1067_v43  ;;  %994 = vmatprep.mubr.msk.bf16.mxu1 %vm385_vm0, %v1097_v44 }
  0x6d   :  { %551 = vmatmul.mubr.bf16.gmra.mrb[28].mxu0 %v1069_v45  ;;  %647 = vmatmul.mubr.bf16.gmra.mrb[28].mxu1 %v1099_v46 }
  0x6e   :  { %983 = vmatprep.mubr.msk.bf16.mxu0 %vm385_vm0, %v1073_v47  ;;  %995 = vmatprep.mubr.msk.bf16.mxu1 %vm385_vm0, %v1100_v48 }
  0x75   :  { %559 = vmatmul.mubr.bf16.gmra.mrb[32].mxu0 %v1075_v49  ;;  %655 = vmatmul.mubr.bf16.gmra.mrb[32].mxu1 %v1102_v50 }
  0x76   :  { %984 = vmatprep.mubr.msk.bf16.mxu0 %vm385_vm0, %v1079_v51  ;;  %996 = vmatprep.mubr.msk.bf16.mxu1 %vm385_vm0, %v1103_v52 }
  0x7d   :  { %567 = vmatmul.mubr.bf16.gmra.mrb[36].mxu0 %v1081_v53  ;;  %663 = vmatmul.mubr.bf16.gmra.mrb[36].mxu1 %v1105_v54 }
  0x7e   :  { %985 = vmatprep.mubr.msk.bf16.mxu0 %vm385_vm0, %v1085_v55  ;;  %997 = vmatprep.mubr.msk.bf16.mxu1 %vm385_vm0, %v1106_v56 }
  0x85   :  { %575 = vmatmul.mubr.bf16.gmra.mrb[40].mxu0 %v1087_v57  ;;  %671 = vmatmul.mubr.bf16.gmra.mrb[40].mxu1 %v1108_v58 }
  0x86   :  { %986 = vmatprep.mubr.msk.bf16.mxu0 %vm385_vm0, %v1091_v59  ;;  %998 = vmatprep.mubr.msk.bf16.mxu1 %vm385_vm0, %v1109_v60 }
  0x8d   :  { %583 = vmatmul.mubr.bf16.gmra.mrb[44].mxu0 %v1093_v61  ;;  %679 = vmatmul.mubr.bf16.gmra.mrb[44].mxu1 %v1111_v62 }
 0x108   :  { %v496_v63 = vpop.f32.mrb[0].mxu0  ;;  %v1372_v0 = vpop.f32.mrb[0].mxu1 }
 0x109   :  { %687 = vst [vmem:[%s1668_s2] sm:$0xff] %v496_v63  ;;  %v498_v1 = vpop.f32.mrb[1].mxu0  ;;  %711 = vst [vmem:[%s1668_s2 + $0xc0] sm:$0xff] %v1372_v0  ;;  %v594_v2 = vpop.f32.mrb[1].mxu1  ;;  %v792_v5 = vmul.f32 %v496_v63, %v496_v63 }
 0x10a   :  { %v499_v3 = vpop.f32.mrb[2].mxu0  ;;  %v1381_v4 = vpop.f32.mrb[2].mxu1 }
 0x10b   :  { %688 = vst [vmem:[%s1668_s2 + $0x8] sm:$0xff] %v499_v3  ;;  %v736_v6 = vadd.f32 %v499_v3, %v496_v63  ;;  %v793_v7 = vmul.f32 %v499_v3, %v499_v3  ;;  %v501_v8 = vpop.f32.mrb[3].mxu0  ;;  %712 = vst [vmem:[%s1668_s2 + $0xc8] sm:$0xff] %v1381_v4  ;;  %v597_v9 = vpop.f32.mrb[3].mxu1 }
 0x10d   :  { %v840_v10 = vadd.f32 %v793_v7, %v792_v5 }
 0x110   :  { %v504_v11 = vpop.f32.mrb[4].mxu0  ;;  %v1390_v12 = vpop.f32.mrb[4].mxu1 }
 0x111   :  { %689 = vst [vmem:[%s1668_s2 + $0x10] sm:$0xff] %v504_v11  ;;  %v737_v13 = vadd.f32 %v736_v6, %v504_v11  ;;  %v794_v14 = vmul.f32 %v504_v11, %v504_v11  ;;  %v506_v15 = vpop.f32.mrb[5].mxu0  ;;  %713 = vst [vmem:[%s1668_s2 + $0xd0] sm:$0xff] %v1390_v12  ;;  %v602_v16 = vpop.f32.mrb[5].mxu1 }
 0x112   :  { %v507_v17 = vpop.f32.mrb[6].mxu0  ;;  %v1399_v18 = vpop.f32.mrb[6].mxu1 }
 0x113   :  { %v841_v19 = vadd.f32 %v840_v10, %v794_v14  ;;  %690 = vst [vmem:[%s1668_s2 + $0x18] sm:$0xff] %v507_v17  ;;  %v738_v20 = vadd.f32 %v737_v13, %v507_v17  ;;  %v795_v21 = vmul.f32 %v507_v17, %v507_v17  ;;  %v509_v22 = vpop.f32.mrb[7].mxu0  ;;  %714 = vst [vmem:[%s1668_s2 + $0xd8] sm:$0xff] %v1399_v18  ;;  %v605_v23 = vpop.f32.mrb[7].mxu1 }
 0x115   :  { %v842_v24 = vadd.f32 %v841_v19, %v795_v21 }
 0x118   :  { %v512_v26 = vpop.f32.mrb[8].mxu0  ;;  %v1408_v27 = vpop.f32.mrb[8].mxu1 }
 0x119   :  { %691 = vst [vmem:[%s1668_s2 + $0x20] sm:$0xff] %v512_v26  ;;  %v739_v28 = vadd.f32 %v738_v20, %v512_v26  ;;  %v796_v29 = vmul.f32 %v512_v26, %v512_v26  ;;  %v514_v30 = vpop.f32.mrb[9].mxu0  ;;  %715 = vst [vmem:[%s1668_s2 + $0xe0] sm:$0xff] %v1408_v27  ;;  %v610_v31 = vpop.f32.mrb[9].mxu1 }
 0x11a   :  { %v515_v32 = vpop.f32.mrb[10].mxu0  ;;  %v1417_v33 = vpop.f32.mrb[10].mxu1 }
 0x11b   :  { %v843_v34 = vadd.f32 %v842_v24, %v796_v29  ;;  %692 = vst [vmem:[%s1668_s2 + $0x28] sm:$0xff] %v515_v32  ;;  %v740_v35 = vadd.f32 %v739_v28, %v515_v32  ;;  %v797_v36 = vmul.f32 %v515_v32, %v515_v32  ;;  %v517_v37 = vpop.f32.mrb[11].mxu0  ;;  %716 = vst [vmem:[%s1668_s2 + $0xe8] sm:$0xff] %v1417_v33  ;;  %v613_v38 = vpop.f32.mrb[11].mxu1 }
 0x11d   :  { %v844_v39 = vadd.f32 %v843_v34, %v797_v36 }
 0x120   :  { %v520_v40 = vpop.f32.mrb[12].mxu0  ;;  %v1426_v41 = vpop.f32.mrb[12].mxu1 }
 0x121   :  { %693 = vst [vmem:[%s1668_s2 + $0x30] sm:$0xff] %v520_v40  ;;  %v741_v42 = vadd.f32 %v740_v35, %v520_v40  ;;  %v798_v43 = vmul.f32 %v520_v40, %v520_v40  ;;  %v522_v44 = vpop.f32.mrb[13].mxu0  ;;  %717 = vst [vmem:[%s1668_s2 + $0xf0] sm:$0xff] %v1426_v41  ;;  %v618_v45 = vpop.f32.mrb[13].mxu1 }
 0x122   :  { %v523_v46 = vpop.f32.mrb[14].mxu0  ;;  %v1435_v47 = vpop.f32.mrb[14].mxu1 }
 0x123   :  { %v845_v48 = vadd.f32 %v844_v39, %v798_v43  ;;  %694 = vst [vmem:[%s1668_s2 + $0x38] sm:$0xff] %v523_v46  ;;  %v742_v49 = vadd.f32 %v741_v42, %v523_v46  ;;  %v799_v50 = vmul.f32 %v523_v46, %v523_v46  ;;  %v525_v51 = vpop.f32.mrb[15].mxu0  ;;  %718 = vst [vmem:[%s1668_s2 + $0xf8] sm:$0xff] %v1435_v47  ;;  %v621_v52 = vpop.f32.mrb[15].mxu1 }
 0x125   :  { %v846_v53 = vadd.f32 %v845_v48, %v799_v50 }
 0x128   :  { %v528_v54 = vpop.f32.mrb[16].mxu0  ;;  %v1444_v55 = vpop.f32.mrb[16].mxu1 }
 0x129   :  { %695 = vst [vmem:[%s1668_s2 + $0x40] sm:$0xff] %v528_v54  ;;  %v743_v56 = vadd.f32 %v742_v49, %v528_v54  ;;  %v800_v57 = vmul.f32 %v528_v54, %v528_v54  ;;  %v530_v58 = vpop.f32.mrb[17].mxu0  ;;  %719 = vst [vmem:[%s1668_s2 + $0x100] sm:$0xff] %v1444_v55  ;;  %v626_v59 = vpop.f32.mrb[17].mxu1 }
 0x12a   :  { %v531_v60 = vpop.f32.mrb[18].mxu0  ;;  %v1453_v61 = vpop.f32.mrb[18].mxu1 }
 0x12b   :  { %v847_v62 = vadd.f32 %v846_v53, %v800_v57  ;;  %696 = vst [vmem:[%s1668_s2 + $0x48] sm:$0xff] %v531_v60  ;;  %v744_v63 = vadd.f32 %v743_v56, %v531_v60  ;;  %v801_v1 = vmul.f32 %v531_v60, %v531_v60  ;;  %v533_v2 = vpop.f32.mrb[19].mxu0  ;;  %720 = vst [vmem:[%s1668_s2 + $0x108] sm:$0xff] %v1453_v61  ;;  %v629_v3 = vpop.f32.mrb[19].mxu1 }
 0x12d   :  { %v848_v5 = vadd.f32 %v847_v62, %v801_v1 }
 0x130   :  { %v536_v6 = vpop.f32.mrb[20].mxu0  ;;  %v1462_v7 = vpop.f32.mrb[20].mxu1 }
 0x131   :  { %697 = vst [vmem:[%s1668_s2 + $0x50] sm:$0xff] %v536_v6  ;;  %v745_v8 = vadd.f32 %v744_v63, %v536_v6  ;;  %v802_v9 = vmul.f32 %v536_v6, %v536_v6  ;;  %v538_v10 = vpop.f32.mrb[21].mxu0  ;;  %721 = vst [vmem:[%s1668_s2 + $0x110] sm:$0xff] %v1462_v7  ;;  %v634_v11 = vpop.f32.mrb[21].mxu1 }
 0x132   :  { %v539_v13 = vpop.f32.mrb[22].mxu0  ;;  %v1471_v14 = vpop.f32.mrb[22].mxu1 }
 0x133   :  { %v849_v15 = vadd.f32 %v848_v5, %v802_v9  ;;  %698 = vst [vmem:[%s1668_s2 + $0x58] sm:$0xff] %v539_v13  ;;  %v746_v16 = vadd.f32 %v745_v8, %v539_v13  ;;  %v803_v17 = vmul.f32 %v539_v13, %v539_v13  ;;  %v541_v19 = vpop.f32.mrb[23].mxu0  ;;  %722 = vst [vmem:[%s1668_s2 + $0x118] sm:$0xff] %v1471_v14  ;;  %v637_v20 = vpop.f32.mrb[23].mxu1 }
 0x135   :  { %v850_v21 = vadd.f32 %v849_v15, %v803_v17 }
 0x138   :  { %v544_v22 = vpop.f32.mrb[24].mxu0  ;;  %v1480_v23 = vpop.f32.mrb[24].mxu1 }
 0x139   :  { %699 = vst [vmem:[%s1668_s2 + $0x60] sm:$0xff] %v544_v22  ;;  %v747_v24 = vadd.f32 %v746_v16, %v544_v22  ;;  %v804_v25 = vmul.f32 %v544_v22, %v544_v22  ;;  %v546_v26 = vpop.f32.mrb[25].mxu0  ;;  %723 = vst [vmem:[%s1668_s2 + $0x120] sm:$0xff] %v1480_v23  ;;  %v642_v28 = vpop.f32.mrb[25].mxu1 }
 0x13a   :  { %v547_v29 = vpop.f32.mrb[26].mxu0  ;;  %v1489_v30 = vpop.f32.mrb[26].mxu1 }
 0x13b   :  { %v851_v31 = vadd.f32 %v850_v21, %v804_v25  ;;  %700 = vst [vmem:[%s1668_s2 + $0x68] sm:$0xff] %v547_v29  ;;  %v748_v32 = vadd.f32 %v747_v24, %v547_v29  ;;  %v805_v34 = vmul.f32 %v547_v29, %v547_v29  ;;  %v549_v35 = vpop.f32.mrb[27].mxu0  ;;  %724 = vst [vmem:[%s1668_s2 + $0x128] sm:$0xff] %v1489_v30  ;;  %v645_v36 = vpop.f32.mrb[27].mxu1 }
 0x13d   :  { %v852_v37 = vadd.f32 %v851_v31, %v805_v34 }
 0x140   :  { %v552_v38 = vpop.f32.mrb[28].mxu0  ;;  %v1498_v39 = vpop.f32.mrb[28].mxu1 }
 0x141   :  { %701 = vst [vmem:[%s1668_s2 + $0x70] sm:$0xff] %v552_v38  ;;  %v749_v40 = vadd.f32 %v748_v32, %v552_v38  ;;  %v806_v42 = vmul.f32 %v552_v38, %v552_v38  ;;  %v554_v43 = vpop.f32.mrb[29].mxu0  ;;  %725 = vst [vmem:[%s1668_s2 + $0x130] sm:$0xff] %v1498_v39  ;;  %v650_v44 = vpop.f32.mrb[29].mxu1 }
 0x142   :  { %v555_v45 = vpop.f32.mrb[30].mxu0  ;;  %v1507_v46 = vpop.f32.mrb[30].mxu1 }
 0x143   :  { %v853_v48 = vadd.f32 %v852_v37, %v806_v42  ;;  %702 = vst [vmem:[%s1668_s2 + $0x78] sm:$0xff] %v555_v45  ;;  %v750_v49 = vadd.f32 %v749_v40, %v555_v45  ;;  %v807_v50 = vmul.f32 %v555_v45, %v555_v45  ;;  %v557_v51 = vpop.f32.mrb[31].mxu0  ;;  %726 = vst [vmem:[%s1668_s2 + $0x138] sm:$0xff] %v1507_v46  ;;  %v653_v52 = vpop.f32.mrb[31].mxu1 }
 0x145   :  { %v854_v53 = vadd.f32 %v853_v48, %v807_v50 }
 0x148   :  { %v560_v54 = vpop.f32.mrb[32].mxu0  ;;  %v1516_v56 = vpop.f32.mrb[32].mxu1 }
 0x149   :  { %703 = vst [vmem:[%s1668_s2 + $0x80] sm:$0xff] %v560_v54  ;;  %v751_v57 = vadd.f32 %v750_v49, %v560_v54  ;;  %v808_v58 = vmul.f32 %v560_v54, %v560_v54  ;;  %v562_v59 = vpop.f32.mrb[33].mxu0  ;;  %727 = vst [vmem:[%s1668_s2 + $0x140] sm:$0xff] %v1516_v56  ;;  %v658_v60 = vpop.f32.mrb[33].mxu1 }
 0x14a   :  { %v563_v62 = vpop.f32.mrb[34].mxu0  ;;  %v1525_v63 = vpop.f32.mrb[34].mxu1 }
 0x14b   :  { %v855_v1 = vadd.f32 %v854_v53, %v808_v58  ;;  %704 = vst [vmem:[%s1668_s2 + $0x88] sm:$0xff] %v563_v62  ;;  %v752_v2 = vadd.f32 %v751_v57, %v563_v62  ;;  %v809_v3 = vmul.f32 %v563_v62, %v563_v62  ;;  %v565_v5 = vpop.f32.mrb[35].mxu0  ;;  %728 = vst [vmem:[%s1668_s2 + $0x148] sm:$0xff] %v1525_v63  ;;  %v661_v6 = vpop.f32.mrb[35].mxu1 }
 0x14c   :  { %v817_v6 = vmul.f32 %v1381_v4, %v1381_v4 }
 0x14d   :  { %v856_v8 = vadd.f32 %v855_v1, %v809_v3 }
 0x150   :  { %v568_v9 = vpop.f32.mrb[36].mxu0  ;;  %v1534_v10 = vpop.f32.mrb[36].mxu1 }
 0x151   :  { %705 = vst [vmem:[%s1668_s2 + $0x90] sm:$0xff] %v568_v9  ;;  %v753_v11 = vadd.f32 %v752_v2, %v568_v9  ;;  %v810_v13 = vmul.f32 %v568_v9, %v568_v9  ;;  %v570_v15 = vpop.f32.mrb[37].mxu0  ;;  %729 = vst [vmem:[%s1668_s2 + $0x150] sm:$0xff] %v1534_v10  ;;  %v666_v16 = vpop.f32.mrb[37].mxu1  ;;  %v816_v2 = vmul.f32 %v1372_v0, %v1372_v0 }
 0x152   :  { %v571_v17 = vpop.f32.mrb[38].mxu0  ;;  %v1543_v19 = vpop.f32.mrb[38].mxu1  ;;  %v819_v16 = vmul.f32 %v1399_v18, %v1399_v18 }
 0x153   :  { %v857_v20 = vadd.f32 %v856_v8, %v810_v13  ;;  %706 = vst [vmem:[%s1668_s2 + $0x98] sm:$0xff] %v571_v17  ;;  %v754_v21 = vadd.f32 %v753_v11, %v571_v17  ;;  %v811_v22 = vmul.f32 %v571_v17, %v571_v17  ;;  %v573_v24 = vpop.f32.mrb[39].mxu0  ;;  %730 = vst [vmem:[%s1668_s2 + $0x158] sm:$0xff] %v1543_v19  ;;  %v669_v25 = vpop.f32.mrb[39].mxu1 }
 0x154   :  { %v818_v11 = vmul.f32 %v1390_v12, %v1390_v12 }
 0x155   :  { %v858_v26 = vadd.f32 %v857_v20, %v811_v22 }
 0x158   :  { %v576_v28 = vpop.f32.mrb[40].mxu0  ;;  %v1552_v29 = vpop.f32.mrb[40].mxu1 }
 0x159   :  { %707 = vst [vmem:[%s1668_s2 + $0xa0] sm:$0xff] %v576_v28  ;;  %v755_v31 = vadd.f32 %v754_v21, %v576_v28  ;;  %v812_v32 = vmul.f32 %v576_v28, %v576_v28  ;;  %v578_v34 = vpop.f32.mrb[41].mxu0  ;;  %731 = vst [vmem:[%s1668_s2 + $0x160] sm:$0xff] %v1552_v29  ;;  %v674_v35 = vpop.f32.mrb[41].mxu1 }
 0x15a   :  { %v579_v36 = vpop.f32.mrb[42].mxu0  ;;  %v1561_v37 = vpop.f32.mrb[42].mxu1 }
 0x15b   :  { %v859_v38 = vadd.f32 %v858_v26, %v812_v32  ;;  %708 = vst [vmem:[%s1668_s2 + $0xa8] sm:$0xff] %v579_v36  ;;  %v756_v40 = vadd.f32 %v755_v31, %v579_v36  ;;  %v813_v42 = vmul.f32 %v579_v36, %v579_v36  ;;  %v581_v43 = vpop.f32.mrb[43].mxu0  ;;  %732 = vst [vmem:[%s1668_s2 + $0x168] sm:$0xff] %v1561_v37  ;;  %v677_v44 = vpop.f32.mrb[43].mxu1 }
 0x15d   :  { %v860_v45 = vadd.f32 %v859_v38, %v813_v42 }
 0x160   :  { %v584_v48 = vpop.f32.mrb[44].mxu0  ;;  %v1570_v49 = vpop.f32.mrb[44].mxu1 }
 0x161   :  { %709 = vst [vmem:[%s1668_s2 + $0xb0] sm:$0xff] %v584_v48  ;;  %v757_v50 = vadd.f32 %v756_v40, %v584_v48  ;;  %v814_v51 = vmul.f32 %v584_v48, %v584_v48  ;;  %v586_v52 = vpop.f32.mrb[45].mxu0  ;;  %733 = vst [vmem:[%s1668_s2 + $0x170] sm:$0xff] %v1570_v49  ;;  %v682_v53 = vpop.f32.mrb[45].mxu1 }
 0x162   :  { %v587_v54 = vpop.f32.mrb[46].mxu0  ;;  %v1579_v57 = vpop.f32.mrb[46].mxu1  ;;  %v830_v53 = vmul.f32 %v1498_v39, %v1498_v39 }
 0x163   :  { %v861_v58 = vadd.f32 %v860_v45, %v814_v51  ;;  %710 = vst [vmem:[%s1668_s2 + $0xb8] sm:$0xff] %v587_v54  ;;  %v758_v59 = vadd.f32 %v757_v50, %v587_v54  ;;  %v815_v60 = vmul.f32 %v587_v54, %v587_v54  ;;  %v589_v62 = vpop.f32.mrb[47].mxu0  ;;  %734 = vst [vmem:[%s1668_s2 + $0x178] sm:$0xff] %v1579_v57  ;;  %v685_v1 = vpop.f32.mrb[47].mxu1 }
 0x164   :  { %v828_v45 = vmul.f32 %v1480_v23, %v1480_v23  ;;  %v829_v51 = vmul.f32 %v1489_v30, %v1489_v30  ;;  %v833_v1 = vmul.f32 %v1525_v63, %v1525_v63 }
 0x165   :  { %v759_v3 = vadd.f32 %v758_v59, %v1372_v0  ;;  %v862_v5 = vadd.f32 %v861_v58, %v815_v60  ;;  %v820_v0 = vmul.f32 %v1408_v27, %v1408_v27  ;;  %v831_v58 = vmul.f32 %v1507_v46, %v1507_v46 }
 0x166   :  { %v832_v60 = vmul.f32 %v1516_v56, %v1516_v56 }
 0x167   :  { %v760_v8 = vadd.f32 %v759_v3, %v1381_v4  ;;  %v863_v9 = vadd.f32 %v862_v5, %v816_v2  ;;  %v821_v4 = vmul.f32 %v1417_v33, %v1417_v33  ;;  %v834_v3 = vmul.f32 %v1534_v10, %v1534_v10 }
 0x169   :  { %v761_v13 = vadd.f32 %v760_v8, %v1390_v12  ;;  %v864_v15 = vadd.f32 %v863_v9, %v817_v6  ;;  %v822_v12 = vmul.f32 %v1426_v41, %v1426_v41  ;;  %v835_v6 = vmul.f32 %v1543_v19, %v1543_v19 }
 0x16a   :  { %v836_v9 = vmul.f32 %v1552_v29, %v1552_v29 }
 0x16b   :  { %v762_v17 = vadd.f32 %v761_v13, %v1399_v18  ;;  %v865_v20 = vadd.f32 %v864_v15, %v818_v11  ;;  %v823_v18 = vmul.f32 %v1435_v47, %v1435_v47  ;;  %v837_v13 = vmul.f32 %v1561_v37, %v1561_v37 }
 0x16d   :  { %v763_v21 = vadd.f32 %v762_v17, %v1408_v27  ;;  %v866_v22 = vadd.f32 %v865_v20, %v819_v16  ;;  %v824_v27 = vmul.f32 %v1444_v55, %v1444_v55  ;;  %v839_v20 = vmul.f32 %v1579_v57, %v1579_v57 }
 0x16f   :  { %v764_v24 = vadd.f32 %v763_v21, %v1417_v33  ;;  %v867_v25 = vadd.f32 %v866_v22, %v820_v0  ;;  %v825_v33 = vmul.f32 %v1453_v61, %v1453_v61 }
 0x171   :  { %v868_v26 = vadd.f32 %v867_v25, %v821_v4  ;;  %v765_v28 = vadd.f32 %v764_v24, %v1426_v41  ;;  %v826_v41 = vmul.f32 %v1462_v7, %v1462_v7 }
 0x173   :  { %v766_v31 = vadd.f32 %v765_v28, %v1435_v47  ;;  %v869_v32 = vadd.f32 %v868_v26, %v822_v12  ;;  %v827_v47 = vmul.f32 %v1471_v14, %v1471_v14  ;;  %v735_v28 = vld [vmem:[#allocation2] sm:$0x1] }
 0x175   :  { %v767_v34 = vadd.f32 %v766_v31, %v1444_v55  ;;  %v870_v35 = vadd.f32 %v869_v32, %v823_v18 }
 0x177   :  { %v768_v36 = vadd.f32 %v767_v34, %v1453_v61  ;;  %v871_v38 = vadd.f32 %v870_v35, %v824_v27 }
 0x179   :  { %v769_v40 = vadd.f32 %v768_v36, %v1462_v7  ;;  %v872_v42 = vadd.f32 %v871_v38, %v825_v33 }
 0x17b   :  { %v770_v43 = vadd.f32 %v769_v40, %v1471_v14  ;;  %v873_v44 = vadd.f32 %v872_v42, %v826_v41 }
 0x17d   :  { %v771_v55 = vadd.f32 %v770_v43, %v1480_v23  ;;  %v874_v48 = vadd.f32 %v873_v44, %v827_v47 }
 0x17f   :  { %v875_v61 = vadd.f32 %v874_v48, %v828_v45  ;;  %v772_v50 = vadd.f32 %v771_v55, %v1489_v30 }
 0x181   :  { %v876_v7 = vadd.f32 %v875_v61, %v829_v51  ;;  %v773_v52 = vadd.f32 %v772_v50, %v1498_v39 }
 0x183   :  { %v877_v14 = vadd.f32 %v876_v7, %v830_v53  ;;  %v774_v54 = vadd.f32 %v773_v52, %v1507_v46 }
 0x185   :  { %v878_v23 = vadd.f32 %v877_v14, %v831_v58  ;;  %v775_v59 = vadd.f32 %v774_v54, %v1516_v56 }
 0x187   :  { %v879_v62 = vadd.f32 %v878_v23, %v832_v60  ;;  %v776_v30 = vadd.f32 %v775_v59, %v1525_v63 }
 0x189   :  { %v880_v2 = vadd.f32 %v879_v62, %v833_v1  ;;  %v777_v39 = vadd.f32 %v776_v30, %v1534_v10  ;;  %v838_v10 = vmul.f32 %v1570_v49, %v1570_v49 }
 0x18b   :  { %v881_v5 = vadd.f32 %v880_v2, %v834_v3  ;;  %v778_v46 = vadd.f32 %v777_v39, %v1543_v19 }
 0x18d   :  { %v882_v8 = vadd.f32 %v881_v5, %v835_v6  ;;  %v779_v56 = vadd.f32 %v778_v46, %v1552_v29 }
 0x18f   :  { %v883_v11 = vadd.f32 %v882_v8, %v836_v9  ;;  %v780_v63 = vadd.f32 %v779_v56, %v1561_v37 }
 0x191   :  { %v884_v15 = vadd.f32 %v883_v11, %v837_v13  ;;  %v781_v16 = vadd.f32 %v780_v63, %v1570_v49  ;;  %v791_v49 = vld [vmem:[#allocation3] sm:$0x1] }
 0x193   :  { %v885_v17 = vadd.f32 %v884_v15, %v838_v10  ;;  %v782_v19 = vadd.f32 %v781_v16, %v1579_v57 }
 0x195   :  { %v783_v0 = vrot.slane %v782_v19, 4  ;;  %v886_v29 = vadd.f32 %v885_v17, %v839_v20 }
 0x197   :  { %v784_v21 = vadd.f32 %v783_v0, %v782_v19  ;;  %v887_v22 = vrot.slane %v886_v29, 4 }
 0x199   :  { %v785_v4 = vrot.slane %v784_v21, 2  ;;  %v888_v24 = vadd.f32 %v887_v22, %v886_v29 }
 0x19b   :  { %v786_v25 = vadd.f32 %v785_v4, %v784_v21  ;;  %v889_v37 = vrot.slane %v888_v24, 2 }
 0x19d   :  { %v787_v12 = vrot.slane %v786_v25, 1  ;;  %v890_v26 = vadd.f32 %v889_v37, %v888_v24 }
 0x19f   :  { %v788_v18 = vadd.f32 %v787_v12, %v786_v25  ;;  %v891_v31 = vrot.slane %v890_v26, 1 }
 0x1a1   :  { %v789_v32 = vadd.f32 %v788_v18, %v735_v28  ;;  %v892_v27 = vadd.f32 %v891_v31, %v890_v26 }
 0x1a3   :  { %790 = vst [vmem:[#allocation2] sm:$0x1] %v789_v32  ;;  %v893_v34 = vadd.f32 %v892_v27, %v791_v49 }
 0x1a5   :  { %894 = vst [vmem:[#allocation3] sm:$0x1] %v893_v34 }
 0x1aa   :  { %v898_v57 = vld [vmem:[#allocation2] sm:$0x1] }
 0x1ab   :  { %899 = vst [vmem:[%s1669_s3] sm:$0x1] %v898_v57 }
 0x1ac   :  { %v900_v35 = vld [vmem:[#allocation3] sm:$0x1] }
 0x1ad   :  { %901 = vst [vmem:[%s1670_s4] sm:$0x1] %v900_v35 }

// kernel: cra_forward.46
= control target key start
LH: loop header
LB: loop body
LE: loop exit
PB: predicated region body
PF: predicated region fallthrough
CT: control target
= control target key end

     0   :  { %s1378_s0 = inlined_call_operand.vmem [shape: f32[384,128], index: 0, kind: input, shape index: {}]   ;;  %s1379_s1 = inlined_call_operand.vmem [shape: f32[2,128], index: 1, kind: input, shape index: {}]   ;;  %s1380_s2 = inlined_call_operand.vmem [shape: f32[384,128], index: 2, kind: output, shape index: {}]  }
   0x1   :  { %v11_v0 = vld [vmem:[%s1378_s0] sm:$0xff]  ;;  %v12_v4 = vld [vmem:[%s1378_s0 + $0x8] sm:$0xff]  ;;  %v13_v5 = vld [vmem:[%s1378_s0 + $0x10] sm:$0xff] }
   0x2   :  { %v768_v1 = vld [vmem:[%s1379_s1] ss:$0 sm:$0xff]  ;;  %v773_v2 = vld [vmem:[%s1379_s1 + $0x1] ss:$0 sm:$0xff]  ;;  %v14_v6 = vld [vmem:[%s1378_s0 + $0x18] sm:$0xff] }
   0x3   :  { %v64_v3 = vmul.f32 %v768_v1, %v11_v0  ;;  %v65_v7 = vmul.f32 %v768_v1, %v12_v4  ;;  %v66_v8 = vmul.f32 %v768_v1, %v13_v5  ;;  %v67_v9 = vmul.f32 %v768_v1, %v14_v6  ;;  %v15_v10 = vld [vmem:[%s1378_s0 + $0x20] sm:$0xff]  ;;  %v16_v11 = vld [vmem:[%s1378_s0 + $0x28] sm:$0xff]  ;;  %v17_v12 = vld [vmem:[%s1378_s0 + $0x30] sm:$0xff] }
   0x4   :  { %v68_v14 = vmul.f32 %v768_v1, %v15_v10  ;;  %v69_v15 = vmul.f32 %v768_v1, %v16_v11  ;;  %v70_v16 = vmul.f32 %v768_v1, %v17_v12  ;;  %v18_v17 = vld [vmem:[%s1378_s0 + $0x38] sm:$0xff]  ;;  %v19_v26 = vld [vmem:[%s1378_s0 + $0x40] sm:$0xff]  ;;  %v20_v31 = vld [vmem:[%s1378_s0 + $0x48] sm:$0xff] }
   0x5   :  { %v798_v13 = vadd.f32 %v773_v2, %v64_v3  ;;  %v807_v18 = vadd.f32 %v773_v2, %v65_v7  ;;  %v810_v19 = vadd.f32 %v773_v2, %v66_v8  ;;  %v813_v20 = vadd.f32 %v773_v2, %v67_v9  ;;  %v21_v32 = vld [vmem:[%s1378_s0 + $0x50] sm:$0xff]  ;;  %v22_v33 = vld [vmem:[%s1378_s0 + $0x58] sm:$0xff]  ;;  %v23_v38 = vld [vmem:[%s1378_s0 + $0x60] sm:$0xff] }
   0x6   :  { %v71_v21 = vmul.f32 %v768_v1, %v18_v17  ;;  %v818_v23 = vadd.f32 %v773_v2, %v68_v14  ;;  %v821_v24 = vadd.f32 %v773_v2, %v69_v15  ;;  %v824_v25 = vadd.f32 %v773_v2, %v70_v16  ;;  %v24_v52 = vld [vmem:[%s1378_s0 + $0x68] sm:$0xff]  ;;  %v25_v59 = vld [vmem:[%s1378_s0 + $0x70] sm:$0xff]  ;;  %v26_v4 = vld [vmem:[%s1378_s0 + $0x78] sm:$0xff] }
   0x7   :  { %v165_v22 = vsub.f32 0.0, %v798_v13  ;;  %v166_v27 = vsub.f32 0.0, %v807_v18  ;;  %v167_v28 = vsub.f32 0.0, %v810_v19  ;;  %v168_v29 = vsub.f32 0.0, %v813_v20  ;;  %v27_v8 = vld [vmem:[%s1378_s0 + $0x80] sm:$0xff]  ;;  %v28_v9 = vld [vmem:[%s1378_s0 + $0x88] sm:$0xff] }
   0x8   :  { %v833_v30 = vadd.f32 %v773_v2, %v71_v21  ;;  %v169_v35 = vsub.f32 0.0, %v818_v23  ;;  %v170_v36 = vsub.f32 0.0, %v821_v24  ;;  %v171_v37 = vsub.f32 0.0, %v824_v25  ;;  %v29_v10 = vld [vmem:[%s1378_s0 + $0x90] sm:$0xff] }
   0x9   :  { %v213_v34 = vmul.f32 1.442695, %v165_v22  ;;  %v215_v39 = vmul.f32 1.442695, %v166_v27  ;;  %v217_v40 = vmul.f32 1.442695, %v167_v28  ;;  %v72_v42 = vmul.f32 %v768_v1, %v19_v26 }
   0xa   :  { %v219_v41 = vmul.f32 1.442695, %v168_v29  ;;  %v221_v43 = vmul.f32 1.442695, %v169_v35  ;;  %v223_v44 = vmul.f32 1.442695, %v170_v36  ;;  %v73_v48 = vmul.f32 %v768_v1, %v20_v31 }
   0xb   :  { %555 = vpow2.f32 %v213_v34  ;;  %v225_v45 = vmul.f32 1.442695, %v171_v37  ;;  %v172_v46 = vsub.f32 0.0, %v833_v30  ;;  %v853_v47 = vadd.f32 %v773_v2, %v72_v42 }
   0xc   :  { %557 = vpow2.f32 %v215_v39  ;;  %v74_v49 = vmul.f32 %v768_v1, %v21_v32  ;;  %v75_v50 = vmul.f32 %v768_v1, %v22_v33  ;;  %v76_v51 = vmul.f32 %v768_v1, %v23_v38 }
   0xd   :  { %559 = vpow2.f32 %v217_v40  ;;  %v227_v53 = vmul.f32 1.442695, %v172_v46  ;;  %v173_v54 = vsub.f32 0.0, %v853_v47  ;;  %v864_v55 = vadd.f32 %v773_v2, %v73_v48 }
   0xe   :  { %561 = vpow2.f32 %v219_v41  ;;  %v867_v56 = vadd.f32 %v773_v2, %v74_v49  ;;  %v870_v57 = vadd.f32 %v773_v2, %v75_v50  ;;  %v873_v58 = vadd.f32 %v773_v2, %v76_v51  ;;  %v30_v50 = vld [vmem:[%s1378_s0 + $0x98] sm:$0xff]  ;;  %v31_v51 = vld [vmem:[%s1378_s0 + $0xa0] sm:$0xff] }
   0xf   :  { %563 = vpow2.f32 %v221_v43  ;;  %v229_v60 = vmul.f32 1.442695, %v173_v54  ;;  %v174_v61 = vsub.f32 0.0, %v864_v55  ;;  %v77_v62 = vmul.f32 %v768_v1, %v24_v52 }
  0x10   :  { %565 = vpow2.f32 %v223_v44  ;;  %v175_v63 = vsub.f32 0.0, %v867_v56  ;;  %v176_v0 = vsub.f32 0.0, %v870_v57  ;;  %v177_v3 = vsub.f32 0.0, %v873_v58 }
  0x11   :  { %567 = vpow2.f32 %v225_v45  ;;  %v231_v5 = vmul.f32 1.442695, %v174_v61  ;;  %v887_v6 = vadd.f32 %v773_v2, %v77_v62  ;;  %v78_v7 = vmul.f32 %v768_v1, %v25_v59 }
  0x12   :  { %569 = vpow2.f32 %v227_v53  ;;  %v233_v11 = vmul.f32 1.442695, %v175_v63  ;;  %v235_v12 = vmul.f32 1.442695, %v176_v0  ;;  %v237_v14 = vmul.f32 1.442695, %v177_v3 }
  0x13   :  { %571 = vpow2.f32 %v229_v60  ;;  %v178_v15 = vsub.f32 0.0, %v887_v6  ;;  %v901_v16 = vadd.f32 %v773_v2, %v78_v7  ;;  %v79_v17 = vmul.f32 %v768_v1, %v26_v4  ;;  %v32_v60 = vld [vmem:[%s1378_s0 + $0xa8] sm:$0xff] }
  0x14   :  { %573 = vpow2.f32 %v231_v5  ;;  %v80_v22 = vmul.f32 %v768_v1, %v27_v8  ;;  %v81_v26 = vmul.f32 %v768_v1, %v28_v9  ;;  %v82_v27 = vmul.f32 %v768_v1, %v29_v10  ;;  %v33_v8 = vld [vmem:[%s1378_s0 + $0xb0] sm:$0xff] }
  0x15   :  { %v556_v21 = vpop.eup %555  ;;  %575 = vpow2.f32 %v233_v11  ;;  %v907_v31 = vmul.f32 1.442695, %v178_v15  ;;  %v179_v32 = vsub.f32 0.0, %v901_v16  ;;  %v911_v35 = vadd.f32 %v773_v2, %v79_v17 }
  0x16   :  { %v558_v28 = vpop.eup %557  ;;  %v309_v29 = vadd.f32 1.0, %v556_v21  ;;  %577 = vpow2.f32 %v235_v12  ;;  %v914_v36 = vadd.f32 %v773_v2, %v80_v22  ;;  %v919_v40 = vadd.f32 %v773_v2, %v81_v26 }
  0x17   :  { %v560_v33 = vpop.eup %559  ;;  %v310_v34 = vadd.f32 1.0, %v558_v28  ;;  %579 = vpow2.f32 %v237_v14  ;;  %v916_v39 = vmul.f32 1.442695, %v179_v32  ;;  %v180_v43 = vsub.f32 0.0, %v911_v35 }
  0x18   :  { %v562_v37 = vpop.eup %561  ;;  %581 = vrcp.f32 %v309_v29  ;;  %v311_v38 = vadd.f32 1.0, %v560_v33  ;;  %v181_v44 = vsub.f32 0.0, %v914_v36  ;;  %v182_v48 = vsub.f32 0.0, %v919_v40 }
  0x19   :  { %v564_v41 = vpop.eup %563  ;;  %583 = vrcp.f32 %v310_v34  ;;  %v312_v42 = vadd.f32 1.0, %v562_v37  ;;  %v925_v49 = vadd.f32 %v773_v2, %v82_v27  ;;  %v933_v54 = vmul.f32 1.442695, %v180_v43  ;;  %v34_v43 = vld [vmem:[%s1378_s0 + $0xb8] sm:$0xff] }
  0x1a   :  { %v566_v45 = vpop.eup %565  ;;  %585 = vrcp.f32 %v311_v38  ;;  %v313_v46 = vadd.f32 1.0, %v564_v41  ;;  %v935_v59 = vmul.f32 1.442695, %v181_v44  ;;  %v940_v63 = vmul.f32 1.442695, %v182_v48  ;;  %v35_v44 = vld [vmem:[%s1378_s0 + $0xc0] sm:$0xff] }
  0x1b   :  { %v568_v52 = vpop.eup %567  ;;  %587 = vrcp.f32 %v312_v42  ;;  %v314_v53 = vadd.f32 1.0, %v566_v45  ;;  %v183_v0 = vsub.f32 0.0, %v925_v49  ;;  %v83_v5 = vmul.f32 %v768_v1, %v30_v50 }
  0x1c   :  { %v570_v61 = vpop.eup %569  ;;  %589 = vrcp.f32 %v313_v46  ;;  %v315_v62 = vadd.f32 1.0, %v568_v52  ;;  %v84_v7 = vmul.f32 %v768_v1, %v31_v51  ;;  %v85_v12 = vmul.f32 %v768_v1, %v32_v60  ;;  %v36_v51 = vld [vmem:[%s1378_s0 + $0xc8] sm:$0xff] }
  0x1d   :  { %v572_v3 = vpop.eup %571  ;;  %591 = vrcp.f32 %v314_v53  ;;  %v316_v4 = vadd.f32 1.0, %v570_v61  ;;  %v948_v11 = vmul.f32 1.442695, %v183_v0  ;;  %v952_v17 = vadd.f32 %v773_v2, %v83_v5 }
  0x1e   :  { %v574_v9 = vpop.eup %573  ;;  %593 = vrcp.f32 %v315_v62  ;;  %v317_v10 = vadd.f32 1.0, %v572_v3  ;;  %v955_v21 = vadd.f32 %v773_v2, %v84_v7  ;;  %v958_v27 = vadd.f32 %v773_v2, %v85_v12 }
  0x1f   :  { %v576_v14 = vpop.eup %575  ;;  %595 = vrcp.f32 %v316_v4  ;;  %v318_v15 = vadd.f32 1.0, %v574_v9  ;;  %v86_v28 = vmul.f32 %v768_v1, %v33_v8  ;;  %v184_v33 = vsub.f32 0.0, %v952_v17 }
  0x20   :  { %v578_v22 = vpop.eup %577  ;;  %597 = vrcp.f32 %v317_v10  ;;  %v319_v26 = vadd.f32 1.0, %v576_v14  ;;  %v185_v34 = vsub.f32 0.0, %v955_v21  ;;  %v186_v41 = vsub.f32 0.0, %v958_v27 }
  0x21   :  { %v580_v29 = vpop.eup %579  ;;  %599 = vrcp.f32 %v318_v15  ;;  %v320_v32 = vadd.f32 1.0, %v578_v22  ;;  %v965_v42 = vadd.f32 %v773_v2, %v86_v28  ;;  %v251_v48 = vmul.f32 1.442695, %v184_v33 }
  0x22   :  { %v582_v37 = vpop.eup %581  ;;  %601 = vrcp.f32 %v319_v26  ;;  %v321_v38 = vadd.f32 1.0, %v580_v29  ;;  %v253_v50 = vmul.f32 1.442695, %v185_v34  ;;  %v255_v60 = vmul.f32 1.442695, %v186_v41 }
  0x23   :  { %v584_v45 = vpop.eup %583  ;;  %v453_v46 = vmul.f32 %v582_v37, %v798_v13  ;;  %603 = vrcp.f32 %v320_v32  ;;  %v187_v61 = vsub.f32 0.0, %v965_v42  ;;  %v87_v0 = vmul.f32 %v768_v1, %v34_v43  ;;  %v40_v32 = vld [vmem:[%s1378_s0 + $0xe8] sm:$0xff] }
  0x24   :  { %v586_v52 = vpop.eup %585  ;;  %v454_v53 = vmul.f32 %v584_v45, %v807_v18  ;;  %605 = vrcp.f32 %v321_v38  ;;  %v88_v3 = vmul.f32 %v768_v1, %v35_v44  ;;  %v37_v18 = vld [vmem:[%s1378_s0 + $0xd0] sm:$0xff] }
  0x25   :  { %v588_v62 = vpop.eup %587  ;;  %501 = vst [vmem:[%s1380_s2] sm:$0xff] %v453_v46  ;;  %v455_v13 = vmul.f32 %v586_v52, %v810_v19  ;;  %607 = vpow2.f32 %v907_v31  ;;  %v257_v19 = vmul.f32 1.442695, %v187_v61  ;;  %v89_v31 = vmul.f32 %v768_v1, %v36_v51  ;;  %v41_v45 = vld [vmem:[%s1378_s0 + $0xf0] sm:$0xff] }
  0x26   :  { %v590_v4 = vpop.eup %589  ;;  %502 = vst [vmem:[%s1380_s2 + $0x8] sm:$0xff] %v454_v53  ;;  %v456_v5 = vmul.f32 %v588_v62, %v813_v20  ;;  %609 = vpow2.f32 %v916_v39  ;;  %v1001_v9 = vadd.f32 %v773_v2, %v87_v0  ;;  %v1004_v10 = vadd.f32 %v773_v2, %v88_v3 }
  0x27   :  { %v592_v7 = vpop.eup %591  ;;  %503 = vst [vmem:[%s1380_s2 + $0x10] sm:$0xff] %v455_v13  ;;  %v457_v8 = vmul.f32 %v590_v4, %v818_v23  ;;  %611 = vpow2.f32 %v933_v54  ;;  %v1012_v12 = vadd.f32 %v773_v2, %v89_v31  ;;  %v90_v23 = vmul.f32 %v768_v1, %v37_v18  ;;  %v42_v31 = vld [vmem:[%s1378_s0 + $0xf8] sm:$0xff] }
  0x28   :  { %v594_v20 = vpop.eup %593  ;;  %504 = vst [vmem:[%s1380_s2 + $0x18] sm:$0xff] %v456_v5  ;;  %v458_v39 = vmul.f32 %v592_v7, %v821_v24  ;;  %613 = vpow2.f32 %v935_v59  ;;  %v188_v15 = vsub.f32 0.0, %v1001_v9  ;;  %v189_v24 = vsub.f32 0.0, %v1004_v10  ;;  %v43_v7 = vld [vmem:[%s1378_s0 + $0x100] sm:$0xff] }
  0x29   :  { %v596_v54 = vpop.eup %595  ;;  %505 = vst [vmem:[%s1380_s2 + $0x20] sm:$0xff] %v457_v8  ;;  %v459_v14 = vmul.f32 %v594_v20, %v824_v25  ;;  %615 = vpow2.f32 %v940_v63  ;;  %v190_v26 = vsub.f32 0.0, %v1012_v12  ;;  %v1029_v28 = vadd.f32 %v773_v2, %v90_v23  ;;  %v38_v25 = vld [vmem:[%s1378_s0 + $0xd8] sm:$0xff]  ;;  %v39_v63 = vld [vmem:[%s1378_s0 + $0xe0] sm:$0xff] }
  0x2a   :  { %v598_v22 = vpop.eup %597  ;;  %506 = vst [vmem:[%s1380_s2 + $0x28] sm:$0xff] %v458_v39  ;;  %v460_v59 = vmul.f32 %v596_v54, %v833_v30  ;;  %617 = vpow2.f32 %v948_v11  ;;  %v259_v11 = vmul.f32 1.442695, %v188_v15  ;;  %v261_v37 = vmul.f32 1.442695, %v189_v24  ;;  %v44_v54 = vld [vmem:[%s1378_s0 + $0x108] sm:$0xff] }
  0x2b   :  { %v600_v29 = vpop.eup %599  ;;  %507 = vst [vmem:[%s1380_s2 + $0x30] sm:$0xff] %v459_v14  ;;  %v461_v30 = vmul.f32 %v598_v22, %v853_v47  ;;  %619 = vpow2.f32 %v251_v48  ;;  %v263_v38 = vmul.f32 1.442695, %v190_v26  ;;  %v91_v43 = vmul.f32 %v768_v1, %v38_v25 }
  0x2c   :  { %v602_v33 = vpop.eup %601  ;;  %508 = vst [vmem:[%s1380_s2 + $0x38] sm:$0xff] %v460_v59  ;;  %v462_v34 = vmul.f32 %v600_v29, %v864_v55  ;;  %621 = vpow2.f32 %v253_v50  ;;  %v92_v44 = vmul.f32 %v768_v1, %v39_v63  ;;  %v191_v48 = vsub.f32 0.0, %v1029_v28  ;;  %v45_v29 = vld [vmem:[%s1378_s0 + $0x110] sm:$0xff] }
  0x2d   :  { %v604_v41 = vpop.eup %603  ;;  %509 = vst [vmem:[%s1380_s2 + $0x40] sm:$0xff] %v461_v30  ;;  %v463_v47 = vmul.f32 %v602_v33, %v867_v56  ;;  %623 = vpow2.f32 %v255_v60  ;;  %v93_v56 = vmul.f32 %v768_v1, %v40_v32  ;;  %v1068_v52 = vadd.f32 %v773_v2, %v91_v43 }
  0x2e   :  { %v606_v55 = vpop.eup %605  ;;  %510 = vst [vmem:[%s1380_s2 + $0x48] sm:$0xff] %v462_v34  ;;  %v464_v46 = vmul.f32 %v604_v41, %v870_v57  ;;  %625 = vpow2.f32 %v257_v19  ;;  %v1071_v53 = vadd.f32 %v773_v2, %v92_v44  ;;  %v94_v62 = vmul.f32 %v768_v1, %v41_v45 }
  0x2f   :  { %v608_v50 = vpop.eup %607  ;;  %511 = vst [vmem:[%s1380_s2 + $0x50] sm:$0xff] %v463_v47  ;;  %v465_v51 = vmul.f32 %v606_v55, %v873_v58  ;;  %627 = vpow2.f32 %v259_v11  ;;  %v1077_v61 = vadd.f32 %v773_v2, %v93_v56  ;;  %v192_v0 = vsub.f32 0.0, %v1068_v52 }
  0x30   :  { %v610_v57 = vpop.eup %609  ;;  %512 = vst [vmem:[%s1380_s2 + $0x58] sm:$0xff] %v464_v46  ;;  %v322_v60 = vadd.f32 1.0, %v608_v50  ;;  %629 = vpow2.f32 %v261_v37  ;;  %v193_v3 = vsub.f32 0.0, %v1071_v53  ;;  %v1087_v19 = vadd.f32 %v773_v2, %v94_v62  ;;  %v46_v62 = vld [vmem:[%s1378_s0 + $0x118] sm:$0xff] }
  0x31   :  { %v612_v58 = vpop.eup %611  ;;  %513 = vst [vmem:[%s1380_s2 + $0x60] sm:$0xff] %v465_v51  ;;  %v323_v13 = vadd.f32 1.0, %v610_v57  ;;  %631 = vpow2.f32 %v263_v38  ;;  %v194_v5 = vsub.f32 0.0, %v1077_v61  ;;  %v1095_v39 = vmul.f32 1.442695, %v191_v48 }
  0x32   :  { %v614_v18 = vpop.eup %613  ;;  %633 = vrcp.f32 %v322_v60  ;;  %v324_v4 = vadd.f32 1.0, %v612_v58  ;;  %v1097_v23 = vmul.f32 1.442695, %v192_v0  ;;  %v1102_v24 = vmul.f32 1.442695, %v193_v3  ;;  %v47_v58 = vld [vmem:[%s1378_s0 + $0x120] sm:$0xff] }
  0x33   :  { %v616_v8 = vpop.eup %615  ;;  %635 = vrcp.f32 %v323_v13  ;;  %v325_v20 = vadd.f32 1.0, %v614_v18  ;;  %v1104_v22 = vmul.f32 1.442695, %v194_v5  ;;  %v95_v25 = vmul.f32 %v768_v1, %v42_v31 }
  0x34   :  { %v618_v14 = vpop.eup %617  ;;  %637 = vrcp.f32 %v324_v4  ;;  %v326_v15 = vadd.f32 1.0, %v616_v8  ;;  %v96_v63 = vmul.f32 %v768_v1, %v43_v7  ;;  %v195_v32 = vsub.f32 0.0, %v1087_v19  ;;  %v48_v4 = vld [vmem:[%s1378_s0 + $0x128] sm:$0xff] }
  0x35   :  { %v620_v59 = vpop.eup %619  ;;  %639 = vrcp.f32 %v325_v20  ;;  %v327_v26 = vadd.f32 1.0, %v618_v14  ;;  %v97_v33 = vmul.f32 %v768_v1, %v44_v54  ;;  %v1114_v38 = vadd.f32 %v773_v2, %v95_v25 }
  0x36   :  { %v622_v30 = vpop.eup %621  ;;  %641 = vrcp.f32 %v326_v15  ;;  %v328_v11 = vadd.f32 1.0, %v620_v59  ;;  %v1117_v41 = vadd.f32 %v773_v2, %v96_v63  ;;  %v98_v45 = vmul.f32 %v768_v1, %v45_v29  ;;  %v49_v59 = vld [vmem:[%s1378_s0 + $0x130] sm:$0xff] }
  0x37   :  { %v624_v34 = vpop.eup %623  ;;  %643 = vrcp.f32 %v327_v26  ;;  %v329_v37 = vadd.f32 1.0, %v622_v30  ;;  %v1120_v44 = vadd.f32 %v773_v2, %v97_v33  ;;  %v196_v48 = vsub.f32 0.0, %v1114_v38 }
  0x38   :  { %v626_v47 = vpop.eup %625  ;;  %645 = vrcp.f32 %v328_v11  ;;  %v330_v43 = vadd.f32 1.0, %v624_v34  ;;  %v197_v56 = vsub.f32 0.0, %v1117_v41  ;;  %v1127_v60 = vadd.f32 %v773_v2, %v98_v45 }
  0x39   :  { %v628_v55 = vpop.eup %627  ;;  %647 = vrcp.f32 %v329_v37  ;;  %v331_v46 = vadd.f32 1.0, %v626_v47  ;;  %v198_v57 = vsub.f32 0.0, %v1120_v44  ;;  %v273_v3 = vmul.f32 1.442695, %v195_v32 }
  0x3a   :  { %v630_v50 = vpop.eup %629  ;;  %649 = vrcp.f32 %v330_v43  ;;  %v332_v51 = vadd.f32 1.0, %v628_v55  ;;  %v275_v18 = vmul.f32 1.442695, %v196_v48  ;;  %v277_v7 = vmul.f32 1.442695, %v197_v56 }
  0x3b   :  { %v632_v13 = vpop.eup %631  ;;  %651 = vrcp.f32 %v331_v46  ;;  %v333_v0 = vadd.f32 1.0, %v630_v50  ;;  %v279_v8 = vmul.f32 1.442695, %v198_v57  ;;  %v99_v14 = vmul.f32 %v768_v1, %v46_v62 }
  0x3c   :  { %v634_v5 = vpop.eup %633  ;;  %653 = vrcp.f32 %v332_v51  ;;  %v334_v31 = vadd.f32 1.0, %v632_v13  ;;  %v100_v15 = vmul.f32 %v768_v1, %v47_v58  ;;  %v199_v63 = vsub.f32 0.0, %v1127_v60 }
  0x3d   :  { %v636_v20 = vpop.eup %635  ;;  %v466_v54 = vmul.f32 %v634_v5, %v887_v6  ;;  %655 = vrcp.f32 %v333_v0  ;;  %v101_v29 = vmul.f32 %v768_v1, %v48_v4  ;;  %v1153_v11 = vadd.f32 %v773_v2, %v99_v14 }
  0x3e   :  { %v638_v26 = vpop.eup %637  ;;  %v467_v25 = vmul.f32 %v636_v20, %v901_v16  ;;  %657 = vrcp.f32 %v334_v31  ;;  %v1156_v32 = vadd.f32 %v773_v2, %v100_v15  ;;  %v281_v46 = vmul.f32 1.442695, %v199_v63  ;;  %v53_v20 = vld [vmem:[%s1378_s0 + $0x150] sm:$0xff] }
  0x3f   :  { %v640_v30 = vpop.eup %639  ;;  %514 = vst [vmem:[%s1380_s2 + $0x68] sm:$0xff] %v466_v54  ;;  %v468_v6 = vmul.f32 %v638_v26, %v911_v35  ;;  %659 = vpow2.f32 %v1095_v39  ;;  %v1164_v34 = vadd.f32 %v773_v2, %v101_v29  ;;  %v102_v35 = vmul.f32 %v768_v1, %v49_v59 }
  0x40   :  { %v642_v16 = vpop.eup %641  ;;  %515 = vst [vmem:[%s1380_s2 + $0x70] sm:$0xff] %v467_v25  ;;  %v469_v33 = vmul.f32 %v640_v30, %v914_v36  ;;  %661 = vpow2.f32 %v1097_v23  ;;  %v200_v47 = vsub.f32 0.0, %v1153_v11  ;;  %v201_v36 = vsub.f32 0.0, %v1156_v32  ;;  %v55_v25 = vld [vmem:[%s1378_s0 + $0x160] sm:$0xff] }
  0x41   :  { %v644_v39 = vpop.eup %643  ;;  %516 = vst [vmem:[%s1380_s2 + $0x78] sm:$0xff] %v468_v6  ;;  %v470_v37 = vmul.f32 %v642_v16, %v919_v40  ;;  %663 = vpow2.f32 %v1102_v24  ;;  %v202_v45 = vsub.f32 0.0, %v1164_v34  ;;  %v1181_v55 = vadd.f32 %v773_v2, %v102_v35  ;;  %v56_v6 = vld [vmem:[%s1378_s0 + $0x168] sm:$0xff] }
  0x42   :  { %v646_v43 = vpop.eup %645  ;;  %517 = vst [vmem:[%s1380_s2 + $0x80] sm:$0xff] %v469_v33  ;;  %v471_v23 = vmul.f32 %v644_v39, %v925_v49  ;;  %665 = vpow2.f32 %v1104_v22  ;;  %v50_v49 = vld [vmem:[%s1378_s0 + $0x138] sm:$0xff]  ;;  %v283_v56 = vmul.f32 1.442695, %v200_v47  ;;  %v285_v62 = vmul.f32 1.442695, %v201_v36 }
  0x43   :  { %v648_v40 = vpop.eup %647  ;;  %518 = vst [vmem:[%s1380_s2 + $0x88] sm:$0xff] %v470_v37  ;;  %v472_v24 = vmul.f32 %v646_v43, %v952_v17  ;;  %667 = vpow2.f32 %v273_v3  ;;  %v203_v50 = vsub.f32 0.0, %v1181_v55  ;;  %v51_v17 = vld [vmem:[%s1378_s0 + $0x140] sm:$0xff]  ;;  %v287_v13 = vmul.f32 1.442695, %v202_v45  ;;  %v52_v3 = vld [vmem:[%s1378_s0 + $0x148] sm:$0xff] }
  0x44   :  { %v650_v48 = vpop.eup %649  ;;  %519 = vst [vmem:[%s1380_s2 + $0x90] sm:$0xff] %v471_v23  ;;  %v473_v22 = vmul.f32 %v648_v40, %v955_v21  ;;  %669 = vpow2.f32 %v275_v18  ;;  %v103_v0 = vmul.f32 %v768_v1, %v50_v49  ;;  %v104_v5 = vmul.f32 %v768_v1, %v51_v17  ;;  %v57_v37 = vld [vmem:[%s1378_s0 + $0x170] sm:$0xff] }
  0x45   :  { %v652_v51 = vpop.eup %651  ;;  %520 = vst [vmem:[%s1380_s2 + $0x98] sm:$0xff] %v472_v24  ;;  %v474_v57 = vmul.f32 %v650_v48, %v958_v27  ;;  %671 = vpow2.f32 %v277_v7  ;;  %v289_v4 = vmul.f32 1.442695, %v203_v50  ;;  %v106_v30 = vmul.f32 %v768_v1, %v53_v20 }
  0x46   :  { %v654_v58 = vpop.eup %653  ;;  %521 = vst [vmem:[%s1380_s2 + $0xa0] sm:$0xff] %v473_v22  ;;  %v475_v21 = vmul.f32 %v652_v51, %v965_v42  ;;  %673 = vpow2.f32 %v279_v8  ;;  %v1231_v14 = vadd.f32 %v773_v2, %v103_v0  ;;  %v1240_v26 = vadd.f32 %v773_v2, %v104_v5  ;;  %v58_v0 = vld [vmem:[%s1378_s0 + $0x178] sm:$0xff] }
  0x47   :  { %v656_v18 = vpop.eup %655  ;;  %522 = vst [vmem:[%s1380_s2 + $0xa8] sm:$0xff] %v474_v57  ;;  %v476_v27 = vmul.f32 %v654_v58, %v1001_v9  ;;  %675 = vpow2.f32 %v281_v46  ;;  %v105_v9 = vmul.f32 %v768_v1, %v52_v3  ;;  %v108_v23 = vmul.f32 %v768_v1, %v55_v25 }
  0x48   :  { %v658_v42 = vpop.eup %657  ;;  %523 = vst [vmem:[%s1380_s2 + $0xb0] sm:$0xff] %v475_v21  ;;  %v477_v31 = vmul.f32 %v656_v18, %v1004_v10  ;;  %677 = vpow2.f32 %v283_v56  ;;  %v204_v43 = vsub.f32 0.0, %v1231_v14  ;;  %v205_v24 = vsub.f32 0.0, %v1240_v26 }
  0x49   :  { %v660_v7 = vpop.eup %659  ;;  %524 = vst [vmem:[%s1380_s2 + $0xb8] sm:$0xff] %v476_v27  ;;  %v478_v8 = vmul.f32 %v658_v42, %v1012_v12  ;;  %679 = vpow2.f32 %v285_v62  ;;  %v54_v12 = vld [vmem:[%s1378_s0 + $0x158] sm:$0xff]  ;;  %v1250_v35 = vadd.f32 %v773_v2, %v105_v9  ;;  %v109_v46 = vmul.f32 %v768_v1, %v56_v6 }
  0x4a   :  { %v662_v54 = vpop.eup %661  ;;  %525 = vst [vmem:[%s1380_s2 + $0xc0] sm:$0xff] %v477_v31  ;;  %v335_v10 = vadd.f32 1.0, %v660_v7  ;;  %681 = vpow2.f32 %v287_v13  ;;  %v107_v39 = vmul.f32 %v768_v1, %v54_v12  ;;  %v1261_v22 = vadd.f32 %v773_v2, %v106_v30 }
  0x4b   :  { %v664_v15 = vpop.eup %663  ;;  %526 = vst [vmem:[%s1380_s2 + $0xc8] sm:$0xff] %v478_v8  ;;  %v336_v59 = vadd.f32 1.0, %v662_v54  ;;  %683 = vpow2.f32 %v289_v4  ;;  %v110_v56 = vmul.f32 %v768_v1, %v57_v37  ;;  %v206_v51 = vsub.f32 0.0, %v1250_v35 }
  0x4c   :  { %v666_v63 = vpop.eup %665  ;;  %685 = vrcp.f32 %v335_v10  ;;  %v337_v29 = vadd.f32 1.0, %v664_v15  ;;  %v1266_v57 = vadd.f32 %v773_v2, %v107_v39  ;;  %v291_v21 = vmul.f32 1.442695, %v204_v43 }
  0x4d   :  { %v668_v16 = vpop.eup %667  ;;  %687 = vrcp.f32 %v336_v59  ;;  %v338_v33 = vadd.f32 1.0, %v666_v63  ;;  %v1269_v13 = vadd.f32 %v773_v2, %v108_v23  ;;  %v293_v27 = vmul.f32 1.442695, %v205_v24 }
  0x4e   :  { %v670_v47 = vpop.eup %669  ;;  %689 = vrcp.f32 %v337_v29  ;;  %v339_v36 = vadd.f32 1.0, %v668_v16  ;;  %v1275_v4 = vadd.f32 %v773_v2, %v109_v46  ;;  %v207_v31 = vsub.f32 0.0, %v1261_v22 }
  0x4f   :  { %v672_v45 = vpop.eup %671  ;;  %691 = vrcp.f32 %v338_v33  ;;  %v340_v40 = vadd.f32 1.0, %v670_v47  ;;  %v1279_v7 = vadd.f32 %v773_v2, %v110_v56  ;;  %v208_v20 = vsub.f32 0.0, %v1266_v57 }
  0x50   :  { %v674_v49 = vpop.eup %673  ;;  %693 = vrcp.f32 %v339_v36  ;;  %v341_v48 = vadd.f32 1.0, %v672_v45  ;;  %v111_v54 = vmul.f32 %v768_v1, %v58_v0  ;;  %v295_v15 = vmul.f32 1.442695, %v206_v51 }
  0x51   :  { %v676_v50 = vpop.eup %675  ;;  %695 = vrcp.f32 %v340_v40  ;;  %v342_v17 = vadd.f32 1.0, %v674_v49  ;;  %v209_v59 = vsub.f32 0.0, %v1269_v13  ;;  %v210_v29 = vsub.f32 0.0, %v1275_v4 }
  0x52   :  { %v678_v62 = vpop.eup %677  ;;  %697 = vrcp.f32 %v341_v48  ;;  %v343_v58 = vadd.f32 1.0, %v676_v50  ;;  %v1287_v30 = vadd.f32 %v773_v2, %v111_v54  ;;  %v297_v1 = vmul.f32 1.442695, %v207_v31 }
  0x53   :  { %v680_v3 = vpop.eup %679  ;;  %699 = vrcp.f32 %v342_v17  ;;  %v344_v18 = vadd.f32 1.0, %v678_v62  ;;  %v211_v33 = vsub.f32 0.0, %v1279_v7  ;;  %v299_v37 = vmul.f32 1.442695, %v208_v20 }
  0x54   :  { %v682_v5 = vpop.eup %681  ;;  %701 = vrcp.f32 %v343_v58  ;;  %v345_v42 = vadd.f32 1.0, %v680_v3  ;;  %v212_v47 = vsub.f32 0.0, %v1287_v30  ;;  %v301_v36 = vmul.f32 1.442695, %v209_v59 }
  0x55   :  { %v684_v8 = vpop.eup %683  ;;  %703 = vrcp.f32 %v344_v18  ;;  %v346_v9 = vadd.f32 1.0, %v682_v5  ;;  %v303_v23 = vmul.f32 1.442695, %v210_v29 }
  0x56   :  { %v686_v10 = vpop.eup %685  ;;  %705 = vrcp.f32 %v345_v42  ;;  %v347_v12 = vadd.f32 1.0, %v684_v8 }
  0x57   :  { %v688_v25 = vpop.eup %687  ;;  %v479_v63 = vmul.f32 %v686_v10, %v1029_v28  ;;  %707 = vrcp.f32 %v346_v9 }
  0x58   :  { %v690_v6 = vpop.eup %689  ;;  %v480_v16 = vmul.f32 %v688_v25, %v1068_v52  ;;  %709 = vrcp.f32 %v347_v12 }
  0x59   :  { %v692_v39 = vpop.eup %691  ;;  %527 = vst [vmem:[%s1380_s2 + $0xd0] sm:$0xff] %v479_v63  ;;  %v481_v28 = vmul.f32 %v690_v6, %v1071_v53  ;;  %711 = vpow2.f32 %v291_v21 }
  0x5a   :  { %v694_v2 = vpop.eup %693  ;;  %528 = vst [vmem:[%s1380_s2 + $0xd8] sm:$0xff] %v480_v16  ;;  %v482_v52 = vmul.f32 %v692_v39, %v1077_v61  ;;  %713 = vpow2.f32 %v293_v27  ;;  %v305_v61 = vmul.f32 1.442695, %v211_v33 }
  0x5b   :  { %v696_v43 = vpop.eup %695  ;;  %529 = vst [vmem:[%s1380_s2 + $0xe0] sm:$0xff] %v481_v28  ;;  %v483_v53 = vmul.f32 %v694_v2, %v1087_v19  ;;  %715 = vpow2.f32 %v295_v15  ;;  %v307_v19 = vmul.f32 1.442695, %v212_v47 }
  0x5c   :  { %v698_v45 = vpop.eup %697  ;;  %530 = vst [vmem:[%s1380_s2 + $0xe8] sm:$0xff] %v482_v52  ;;  %v484_v40 = vmul.f32 %v696_v43, %v1114_v38  ;;  %717 = vpow2.f32 %v297_v1 }
  0x5d   :  { %v700_v24 = vpop.eup %699  ;;  %531 = vst [vmem:[%s1380_s2 + $0xf0] sm:$0xff] %v483_v53  ;;  %v485_v46 = vmul.f32 %v698_v45, %v1117_v41  ;;  %719 = vpow2.f32 %v299_v37 }
  0x5e   :  { %v702_v49 = vpop.eup %701  ;;  %532 = vst [vmem:[%s1380_s2 + $0xf8] sm:$0xff] %v484_v40  ;;  %v486_v48 = vmul.f32 %v700_v24, %v1120_v44  ;;  %721 = vpow2.f32 %v301_v36 }
  0x5f   :  { %v704_v38 = vpop.eup %703  ;;  %533 = vst [vmem:[%s1380_s2 + $0x100] sm:$0xff] %v485_v46  ;;  %v487_v56 = vmul.f32 %v702_v49, %v1127_v60  ;;  %723 = vpow2.f32 %v303_v23 }
  0x60   :  { %v706_v50 = vpop.eup %705  ;;  %534 = vst [vmem:[%s1380_s2 + $0x108] sm:$0xff] %v486_v48  ;;  %v488_v41 = vmul.f32 %v704_v38, %v1153_v11  ;;  %725 = vpow2.f32 %v305_v61 }
  0x61   :  { %v708_v17 = vpop.eup %707  ;;  %535 = vst [vmem:[%s1380_s2 + $0x110] sm:$0xff] %v487_v56  ;;  %v489_v44 = vmul.f32 %v706_v50, %v1156_v32  ;;  %727 = vpow2.f32 %v307_v19 }
  0x62   :  { %v710_v51 = vpop.eup %709  ;;  %536 = vst [vmem:[%s1380_s2 + $0x118] sm:$0xff] %v488_v41  ;;  %v490_v60 = vmul.f32 %v708_v17, %v1164_v34 }
  0x63   :  { %v712_v62 = vpop.eup %711  ;;  %537 = vst [vmem:[%s1380_s2 + $0x120] sm:$0xff] %v489_v44  ;;  %v491_v11 = vmul.f32 %v710_v51, %v1181_v55 }
  0x64   :  { %v714_v58 = vpop.eup %713  ;;  %538 = vst [vmem:[%s1380_s2 + $0x128] sm:$0xff] %v490_v60  ;;  %v348_v32 = vadd.f32 1.0, %v712_v62 }
  0x65   :  { %v716_v21 = vpop.eup %715  ;;  %539 = vst [vmem:[%s1380_s2 + $0x130] sm:$0xff] %v491_v11  ;;  %v349_v0 = vadd.f32 1.0, %v714_v58 }
  0x66   :  { %v718_v34 = vpop.eup %717  ;;  %729 = vrcp.f32 %v348_v32  ;;  %v350_v3 = vadd.f32 1.0, %v716_v21 }
  0x67   :  { %v720_v18 = vpop.eup %719  ;;  %731 = vrcp.f32 %v349_v0  ;;  %v351_v27 = vadd.f32 1.0, %v718_v34 }
  0x68   :  { %v722_v5 = vpop.eup %721  ;;  %733 = vrcp.f32 %v350_v3  ;;  %v352_v55 = vadd.f32 1.0, %v720_v18 }
  0x69   :  { %v724_v42 = vpop.eup %723  ;;  %735 = vrcp.f32 %v351_v27  ;;  %v353_v31 = vadd.f32 1.0, %v722_v5 }
  0x6a   :  { %v726_v8 = vpop.eup %725  ;;  %737 = vrcp.f32 %v352_v55  ;;  %v354_v9 = vadd.f32 1.0, %v724_v42 }
  0x6b   :  { %v728_v20 = vpop.eup %727  ;;  %739 = vrcp.f32 %v353_v31  ;;  %v355_v54 = vadd.f32 1.0, %v726_v8 }
  0x6c   :  { %741 = vrcp.f32 %v354_v9  ;;  %v356_v10 = vadd.f32 1.0, %v728_v20 }
  0x6d   :  { %743 = vrcp.f32 %v355_v54 }
  0x6e   :  { %745 = vrcp.f32 %v356_v10 }
  0x70   :  { %v730_v12 = vpop.eup %729 }
  0x71   :  { %v732_v15 = vpop.eup %731  ;;  %v492_v59 = vmul.f32 %v730_v12, %v1231_v14 }
  0x72   :  { %v734_v25 = vpop.eup %733  ;;  %v493_v63 = vmul.f32 %v732_v15, %v1240_v26 }
  0x73   :  { %v736_v29 = vpop.eup %735  ;;  %540 = vst [vmem:[%s1380_s2 + $0x138] sm:$0xff] %v492_v59  ;;  %v494_v6 = vmul.f32 %v734_v25, %v1250_v35 }
  0x74   :  { %v738_v16 = vpop.eup %737  ;;  %541 = vst [vmem:[%s1380_s2 + $0x140] sm:$0xff] %v493_v63  ;;  %v495_v1 = vmul.f32 %v736_v29, %v1261_v22 }
  0x75   :  { %v740_v33 = vpop.eup %739  ;;  %542 = vst [vmem:[%s1380_s2 + $0x148] sm:$0xff] %v494_v6  ;;  %v496_v14 = vmul.f32 %v738_v16, %v1266_v57 }
  0x76   :  { %v742_v26 = vpop.eup %741  ;;  %543 = vst [vmem:[%s1380_s2 + $0x150] sm:$0xff] %v495_v1  ;;  %v497_v35 = vmul.f32 %v740_v33, %v1269_v13 }
  0x77   :  { %v744_v39 = vpop.eup %743  ;;  %544 = vst [vmem:[%s1380_s2 + $0x158] sm:$0xff] %v496_v14  ;;  %v498_v22 = vmul.f32 %v742_v26, %v1275_v4 }
  0x78   :  { %v746_v28 = vpop.eup %745  ;;  %545 = vst [vmem:[%s1380_s2 + $0x160] sm:$0xff] %v497_v35  ;;  %v499_v57 = vmul.f32 %v744_v39, %v1279_v7 }
  0x79   :  { %546 = vst [vmem:[%s1380_s2 + $0x168] sm:$0xff] %v498_v22  ;;  %v500_v13 = vmul.f32 %v746_v28, %v1287_v30 }
  0x7a   :  { %547 = vst [vmem:[%s1380_s2 + $0x170] sm:$0xff] %v499_v57 }
  0x7b   :  { %548 = vst [vmem:[%s1380_s2 + $0x178] sm:$0xff] %v500_v13 }

// kernel: cra_forward.47
= control target key start
LH: loop header
LB: loop body
LE: loop exit
PB: predicated region body
PF: predicated region fallthrough
CT: control target
= control target key end

     0   :  { %vm209_vm0 = vcmask 293888   ;;  %vm282_vm1 = vcmask 1041408   ;;  %v906_v28 = vmov 0.0   ;;  %s1331_s1 = inlined_call_operand.vmem [shape: bf16[36,128], index: 1, kind: input, shape index: {}]   ;;  %s1332_s0 = inlined_call_operand.vmem [shape: bf16[384,36], index: 0, kind: input, shape index: {}]   ;;  %s1333_s2 = inlined_call_operand.vmem [shape: f32[384,128], index: 2, kind: output, shape index: {0}]   ;;  %s1334_s3 = inlined_call_operand.vmem [shape: f32[1,128], index: 3, kind: output, shape index: {1}]   ;;  %s1335_s4 = inlined_call_operand.vmem [shape: f32[1,128], index: 4, kind: output, shape index: {2}]  }
   0x1   :  { %v879_v0 = vld [vmem:[%s1331_s1] sm:$0xff]   ;;  %v880_v1 = vld [vmem:[%s1331_s1 + $0x8] sm:$0xff]   ;;  %v881_v2 = vld [vmem:[%s1331_s1 + $0x10] ss:$0 sps:$4 sm:$0x33]  }
   0x2   :  { %816 = vmatprep.subr.bf16.mxu0 %v879_v0  ;;  %v882_v3 = vld [vmem:[%s1332_s0] sm:$0xff]   ;;  %870 = vmatprep.subr.bf16.mxu1 %v879_v0  ;;  %v284_v4 = vsel %vm282_vm1, %v881_v2, 0  ;;  %v883_v5 = vld [vmem:[%s1332_s0 + $0x8] sm:$0xff]   ;;  %v884_v6 = vld [vmem:[%s1332_s0 + $0x10] sm:$0xff]   ;;  %19 = vst [vmem:[#allocation2] sm:$0x1] %v906_v28 }
   0x3   :  { %817 = vmatpush3.bf16.msra.mxu0 %v879_v0  ;;  %873 = vmatpush3.bf16.msra.mxu1 %v879_v0  ;;  %v894_v7 = vld [vmem:[%s1332_s0 + $0x60] sm:$0xff]   ;;  %v895_v8 = vld [vmem:[%s1332_s0 + $0x68] sm:$0xff]   ;;  %v896_v9 = vld [vmem:[%s1332_s0 + $0x70] sm:$0xff]   ;;  %20 = vst [vmem:[#allocation3] sm:$0x1] %v906_v28 }
   0x4   :  { %818 = vmatprep.subr.bf16.mxu0 %v880_v1  ;;  %822 = vmatprep.mubr.msk.bf16.mxu0 %vm209_vm0, %v882_v3  ;;  %v885_v10 = vld [vmem:[%s1332_s0 + $0x18] sm:$0xff]   ;;  %v886_v11 = vld [vmem:[%s1332_s0 + $0x20] sm:$0xff]   ;;  %v887_v14 = vld [vmem:[%s1332_s0 + $0x28] sm:$0xff]  }
   0x5   :  { %871 = vmatprep.subr.bf16.mxu1 %v880_v1  ;;  %846 = vmatprep.mubr.msk.bf16.mxu1 %vm209_vm0, %v894_v7  ;;  %v897_v12 = vld [vmem:[%s1332_s0 + $0x78] sm:$0xff]   ;;  %v898_v13 = vld [vmem:[%s1332_s0 + $0x80] sm:$0xff]   ;;  %v888_v15 = vld [vmem:[%s1332_s0 + $0x30] sm:$0xff]  }
   0x6   :  { %v899_v16 = vld [vmem:[%s1332_s0 + $0x88] sm:$0xff]   ;;  %v900_v17 = vld [vmem:[%s1332_s0 + $0x90] sm:$0xff]   ;;  %v889_v18 = vld [vmem:[%s1332_s0 + $0x38] sm:$0xff]  }
   0x7   :  { %819 = vmatpush3.bf16.msra.mxu0 %v880_v1  ;;  %874 = vmatpush3.bf16.msra.mxu1 %v880_v1  ;;  %v890_v19 = vld [vmem:[%s1332_s0 + $0x40] sm:$0xff]   ;;  %v901_v20 = vld [vmem:[%s1332_s0 + $0x98] sm:$0xff]   ;;  %v891_v22 = vld [vmem:[%s1332_s0 + $0x48] sm:$0xff]  }
   0x8   :  { %876 = vmatprep.subr.msk.bf16.mxu0 %vm282_vm1, %v881_v2  ;;  %877 = vmatprep.subr.msk.bf16.mxu1 %vm282_vm1, %v881_v2  ;;  %v902_v21 = vld [vmem:[%s1332_s0 + $0xa0] sm:$0xff]   ;;  %v892_v23 = vld [vmem:[%s1332_s0 + $0x50] sm:$0xff]   ;;  %v903_v24 = vld [vmem:[%s1332_s0 + $0xa8] sm:$0xff]  }
   0x9   :  { %v904_v25 = vld [vmem:[%s1332_s0 + $0xb0] sm:$0xff]   ;;  %v893_v26 = vld [vmem:[%s1332_s0 + $0x58] sm:$0xff]  }
   0xa   :  { %v905_v27 = vld [vmem:[%s1332_s0 + $0xb8] sm:$0xff]  }
   0xb   :  { %821 = vmatpush3.bf16.msra.mxu0 %v284_v4  ;;  %875 = vmatpush3.bf16.msra.mxu1 %v284_v4 }
   0xe   :  { %823 = vmatmul.mubr.msk.bf16.vlgmr.msra.gmra.mrb[0].mxu0 %vm209_vm0, %v883_v5  ;;  %847 = vmatmul.mubr.msk.bf16.vlgmr.msra.gmra.mrb[0].mxu1 %vm209_vm0, %v895_v8 }
   0xf   :  { %826 = vmatprep.mubr.msk.bf16.mxu0 %vm209_vm0, %v884_v6  ;;  %850 = vmatprep.mubr.msk.bf16.mxu1 %vm209_vm0, %v896_v9 }
  0x16   :  { %827 = vmatmul.mubr.msk.bf16.gmra.mrb[4].mxu0 %vm209_vm0, %v885_v10  ;;  %851 = vmatmul.mubr.msk.bf16.gmra.mrb[4].mxu1 %vm209_vm0, %v897_v12 }
  0x17   :  { %830 = vmatprep.mubr.msk.bf16.mxu0 %vm209_vm0, %v886_v11  ;;  %854 = vmatprep.mubr.msk.bf16.mxu1 %vm209_vm0, %v898_v13 }
  0x1e   :  { %831 = vmatmul.mubr.msk.bf16.gmra.mrb[8].mxu0 %vm209_vm0, %v887_v14  ;;  %855 = vmatmul.mubr.msk.bf16.gmra.mrb[8].mxu1 %vm209_vm0, %v899_v16 }
  0x1f   :  { %834 = vmatprep.mubr.msk.bf16.mxu0 %vm209_vm0, %v888_v15  ;;  %858 = vmatprep.mubr.msk.bf16.mxu1 %vm209_vm0, %v900_v17 }
  0x26   :  { %835 = vmatmul.mubr.msk.bf16.gmra.mrb[12].mxu0 %vm209_vm0, %v889_v18  ;;  %859 = vmatmul.mubr.msk.bf16.gmra.mrb[12].mxu1 %vm209_vm0, %v901_v20 }
  0x27   :  { %838 = vmatprep.mubr.msk.bf16.mxu0 %vm209_vm0, %v890_v19  ;;  %862 = vmatprep.mubr.msk.bf16.mxu1 %vm209_vm0, %v902_v21 }
  0x2e   :  { %839 = vmatmul.mubr.msk.bf16.gmra.mrb[16].mxu0 %vm209_vm0, %v891_v22  ;;  %863 = vmatmul.mubr.msk.bf16.gmra.mrb[16].mxu1 %vm209_vm0, %v903_v24 }
  0x2f   :  { %842 = vmatprep.mubr.msk.bf16.mxu0 %vm209_vm0, %v892_v23  ;;  %866 = vmatprep.mubr.msk.bf16.mxu1 %vm209_vm0, %v904_v25 }
  0x36   :  { %843 = vmatmul.mubr.msk.bf16.gmra.mrb[20].mxu0 %vm209_vm0, %v893_v26  ;;  %867 = vmatmul.mubr.msk.bf16.gmra.mrb[20].mxu1 %vm209_vm0, %v905_v27 }
  0xe1   :  { %v824_v29 = vpop.f32.mrb[0].mxu0  ;;  %v1049_v36 = vpop.f32.mrb[0].mxu1 }
  0xe2   :  { %513 = vst [vmem:[%s1333_s2 + $0x10] sm:$0xff] %v824_v29  ;;  %v320_v30 = vpop.f32.mrb[1].mxu0  ;;  %537 = vst [vmem:[%s1333_s2 + $0xd0] sm:$0xff] %v1049_v36  ;;  %v1055_v37 = vpop.f32.mrb[1].mxu1  ;;  %v618_v38 = vmul.f32 %v824_v29, %v824_v29 }
  0xe3   :  { %511 = vst [vmem:[%s1333_s2] sm:$0xff] %v320_v30  ;;  %v825_v31 = vpop.f32.mrb[2].mxu0  ;;  %v616_v33 = vmul.f32 %v320_v30, %v320_v30  ;;  %535 = vst [vmem:[%s1333_s2 + $0xc0] sm:$0xff] %v1055_v37  ;;  %v1061_v41 = vpop.f32.mrb[2].mxu1 }
  0xe4   :  { %514 = vst [vmem:[%s1333_s2 + $0x18] sm:$0xff] %v825_v31  ;;  %v323_v32 = vpop.f32.mrb[3].mxu0  ;;  %538 = vst [vmem:[%s1333_s2 + $0xd8] sm:$0xff] %v1061_v41  ;;  %v1067_v42 = vpop.f32.mrb[3].mxu1  ;;  %v619_v43 = vmul.f32 %v825_v31, %v825_v31 }
  0xe5   :  { %512 = vst [vmem:[%s1333_s2 + $0x8] sm:$0xff] %v323_v32  ;;  %v560_v34 = vadd.f32 %v323_v32, %v320_v30  ;;  %v617_v35 = vmul.f32 %v323_v32, %v323_v32  ;;  %536 = vst [vmem:[%s1333_s2 + $0xc8] sm:$0xff] %v1067_v42 }
  0xe7   :  { %v561_v39 = vadd.f32 %v824_v29, %v560_v34  ;;  %v664_v40 = vadd.f32 %v617_v35, %v616_v33 }
  0xe9   :  { %v665_v44 = vadd.f32 %v664_v40, %v618_v38  ;;  %v828_v45 = vpop.f32.mrb[4].mxu0  ;;  %v562_v46 = vadd.f32 %v825_v31, %v561_v39  ;;  %v1085_v56 = vpop.f32.mrb[4].mxu1 }
  0xea   :  { %517 = vst [vmem:[%s1333_s2 + $0x30] sm:$0xff] %v828_v45  ;;  %v336_v47 = vpop.f32.mrb[5].mxu0  ;;  %541 = vst [vmem:[%s1333_s2 + $0xf0] sm:$0xff] %v1085_v56  ;;  %v1091_v57 = vpop.f32.mrb[5].mxu1  ;;  %v622_v58 = vmul.f32 %v828_v45, %v828_v45 }
  0xeb   :  { %515 = vst [vmem:[%s1333_s2 + $0x20] sm:$0xff] %v336_v47  ;;  %v563_v48 = vadd.f32 %v562_v46, %v336_v47  ;;  %v620_v49 = vmul.f32 %v336_v47, %v336_v47  ;;  %v666_v50 = vadd.f32 %v665_v44, %v619_v43  ;;  %v829_v51 = vpop.f32.mrb[6].mxu0  ;;  %539 = vst [vmem:[%s1333_s2 + $0xe0] sm:$0xff] %v1091_v57  ;;  %v1097_v61 = vpop.f32.mrb[6].mxu1 }
  0xec   :  { %518 = vst [vmem:[%s1333_s2 + $0x38] sm:$0xff] %v829_v51  ;;  %v339_v52 = vpop.f32.mrb[7].mxu0  ;;  %542 = vst [vmem:[%s1333_s2 + $0xf8] sm:$0xff] %v1097_v61  ;;  %v1103_v62 = vpop.f32.mrb[7].mxu1  ;;  %v623_v63 = vmul.f32 %v829_v51, %v829_v51 }
  0xed   :  { %v667_v53 = vadd.f32 %v666_v50, %v620_v49  ;;  %516 = vst [vmem:[%s1333_s2 + $0x28] sm:$0xff] %v339_v52  ;;  %v564_v54 = vadd.f32 %v563_v48, %v339_v52  ;;  %v621_v55 = vmul.f32 %v339_v52, %v339_v52  ;;  %540 = vst [vmem:[%s1333_s2 + $0xe8] sm:$0xff] %v1103_v62 }
  0xef   :  { %v565_v59 = vadd.f32 %v828_v45, %v564_v54  ;;  %v668_v60 = vadd.f32 %v667_v53, %v621_v55 }
  0xf1   :  { %v669_v0 = vadd.f32 %v668_v60, %v622_v58  ;;  %v832_v1 = vpop.f32.mrb[8].mxu0  ;;  %v566_v2 = vadd.f32 %v829_v51, %v565_v59  ;;  %v1121_v12 = vpop.f32.mrb[8].mxu1 }
  0xf2   :  { %521 = vst [vmem:[%s1333_s2 + $0x50] sm:$0xff] %v832_v1  ;;  %v352_v3 = vpop.f32.mrb[9].mxu0  ;;  %545 = vst [vmem:[%s1333_s2 + $0x110] sm:$0xff] %v1121_v12  ;;  %v1127_v13 = vpop.f32.mrb[9].mxu1  ;;  %v626_v14 = vmul.f32 %v832_v1, %v832_v1 }
  0xf3   :  { %519 = vst [vmem:[%s1333_s2 + $0x40] sm:$0xff] %v352_v3  ;;  %v567_v4 = vadd.f32 %v566_v2, %v352_v3  ;;  %v624_v5 = vmul.f32 %v352_v3, %v352_v3  ;;  %v670_v6 = vadd.f32 %v669_v0, %v623_v63  ;;  %v833_v7 = vpop.f32.mrb[10].mxu0  ;;  %543 = vst [vmem:[%s1333_s2 + $0x100] sm:$0xff] %v1127_v13  ;;  %v1133_v17 = vpop.f32.mrb[10].mxu1 }
  0xf4   :  { %522 = vst [vmem:[%s1333_s2 + $0x58] sm:$0xff] %v833_v7  ;;  %v355_v8 = vpop.f32.mrb[11].mxu0  ;;  %546 = vst [vmem:[%s1333_s2 + $0x118] sm:$0xff] %v1133_v17  ;;  %v1139_v18 = vpop.f32.mrb[11].mxu1  ;;  %v627_v19 = vmul.f32 %v833_v7, %v833_v7 }
  0xf5   :  { %v671_v9 = vadd.f32 %v670_v6, %v624_v5  ;;  %520 = vst [vmem:[%s1333_s2 + $0x48] sm:$0xff] %v355_v8  ;;  %v568_v10 = vadd.f32 %v567_v4, %v355_v8  ;;  %v625_v11 = vmul.f32 %v355_v8, %v355_v8  ;;  %544 = vst [vmem:[%s1333_s2 + $0x108] sm:$0xff] %v1139_v18 }
  0xf7   :  { %v569_v15 = vadd.f32 %v832_v1, %v568_v10  ;;  %v672_v16 = vadd.f32 %v671_v9, %v625_v11 }
  0xf9   :  { %v673_v20 = vadd.f32 %v672_v16, %v626_v14  ;;  %v836_v21 = vpop.f32.mrb[12].mxu0  ;;  %v570_v22 = vadd.f32 %v833_v7, %v569_v15  ;;  %v1157_v32 = vpop.f32.mrb[12].mxu1 }
  0xfa   :  { %525 = vst [vmem:[%s1333_s2 + $0x70] sm:$0xff] %v836_v21  ;;  %v368_v23 = vpop.f32.mrb[13].mxu0  ;;  %549 = vst [vmem:[%s1333_s2 + $0x130] sm:$0xff] %v1157_v32  ;;  %v1163_v33 = vpop.f32.mrb[13].mxu1  ;;  %v630_v34 = vmul.f32 %v836_v21, %v836_v21 }
  0xfb   :  { %523 = vst [vmem:[%s1333_s2 + $0x60] sm:$0xff] %v368_v23  ;;  %v571_v24 = vadd.f32 %v570_v22, %v368_v23  ;;  %v628_v25 = vmul.f32 %v368_v23, %v368_v23  ;;  %v674_v26 = vadd.f32 %v673_v20, %v627_v19  ;;  %v837_v27 = vpop.f32.mrb[14].mxu0  ;;  %547 = vst [vmem:[%s1333_s2 + $0x120] sm:$0xff] %v1163_v33  ;;  %v1169_v39 = vpop.f32.mrb[14].mxu1 }
  0xfc   :  { %526 = vst [vmem:[%s1333_s2 + $0x78] sm:$0xff] %v837_v27  ;;  %v371_v28 = vpop.f32.mrb[15].mxu0  ;;  %550 = vst [vmem:[%s1333_s2 + $0x138] sm:$0xff] %v1169_v39  ;;  %v1175_v40 = vpop.f32.mrb[15].mxu1  ;;  %v631_v43 = vmul.f32 %v837_v27, %v837_v27 }
  0xfd   :  { %v675_v29 = vadd.f32 %v674_v26, %v628_v25  ;;  %524 = vst [vmem:[%s1333_s2 + $0x68] sm:$0xff] %v371_v28  ;;  %v572_v30 = vadd.f32 %v571_v24, %v371_v28  ;;  %v629_v31 = vmul.f32 %v371_v28, %v371_v28  ;;  %548 = vst [vmem:[%s1333_s2 + $0x128] sm:$0xff] %v1175_v40 }
  0xff   :  { %v573_v35 = vadd.f32 %v836_v21, %v572_v30  ;;  %v676_v38 = vadd.f32 %v675_v29, %v629_v31  ;;  %v640_v30 = vmul.f32 %v1055_v37, %v1055_v37 }
 0x101   :  { %v677_v44 = vadd.f32 %v676_v38, %v630_v34  ;;  %v840_v45 = vpop.f32.mrb[16].mxu0  ;;  %v574_v46 = vadd.f32 %v837_v27, %v573_v35  ;;  %v1193_v58 = vpop.f32.mrb[16].mxu1 }
 0x102   :  { %529 = vst [vmem:[%s1333_s2 + $0x90] sm:$0xff] %v840_v45  ;;  %v384_v47 = vpop.f32.mrb[17].mxu0  ;;  %553 = vst [vmem:[%s1333_s2 + $0x150] sm:$0xff] %v1193_v58  ;;  %v1199_v59 = vpop.f32.mrb[17].mxu1  ;;  %v634_v60 = vmul.f32 %v840_v45, %v840_v45 }
 0x103   :  { %527 = vst [vmem:[%s1333_s2 + $0x80] sm:$0xff] %v384_v47  ;;  %v575_v48 = vadd.f32 %v574_v46, %v384_v47  ;;  %v632_v49 = vmul.f32 %v384_v47, %v384_v47  ;;  %v678_v50 = vadd.f32 %v677_v44, %v631_v43  ;;  %v841_v51 = vpop.f32.mrb[18].mxu0  ;;  %551 = vst [vmem:[%s1333_s2 + $0x140] sm:$0xff] %v1199_v59  ;;  %v1205_v1 = vpop.f32.mrb[18].mxu1 }
 0x104   :  { %530 = vst [vmem:[%s1333_s2 + $0x98] sm:$0xff] %v841_v51  ;;  %v387_v52 = vpop.f32.mrb[19].mxu0  ;;  %554 = vst [vmem:[%s1333_s2 + $0x158] sm:$0xff] %v1205_v1  ;;  %v1211_v2 = vpop.f32.mrb[19].mxu1  ;;  %v635_v3 = vmul.f32 %v841_v51, %v841_v51  ;;  %v641_v43 = vmul.f32 %v1067_v42, %v1067_v42  ;;  %v642_v44 = vmul.f32 %v1049_v36, %v1049_v36 }
 0x105   :  { %v679_v53 = vadd.f32 %v678_v50, %v632_v49  ;;  %528 = vst [vmem:[%s1333_s2 + $0x88] sm:$0xff] %v387_v52  ;;  %v576_v54 = vadd.f32 %v575_v48, %v387_v52  ;;  %v633_v55 = vmul.f32 %v387_v52, %v387_v52  ;;  %552 = vst [vmem:[%s1333_s2 + $0x148] sm:$0xff] %v1211_v2 }
 0x106   :  { %v643_v47 = vmul.f32 %v1061_v41, %v1061_v41 }
 0x107   :  { %v577_v63 = vadd.f32 %v840_v45, %v576_v54  ;;  %v680_v0 = vadd.f32 %v679_v53, %v633_v55  ;;  %v645_v53 = vmul.f32 %v1103_v62, %v1103_v62 }
 0x109   :  { %v681_v4 = vadd.f32 %v680_v0, %v634_v60  ;;  %v844_v5 = vpop.f32.mrb[20].mxu0  ;;  %v578_v6 = vadd.f32 %v841_v51, %v577_v63  ;;  %v1229_v20 = vpop.f32.mrb[20].mxu1 }
 0x10a   :  { %533 = vst [vmem:[%s1333_s2 + $0xb0] sm:$0xff] %v844_v5  ;;  %v400_v7 = vpop.f32.mrb[21].mxu0  ;;  %557 = vst [vmem:[%s1333_s2 + $0x170] sm:$0xff] %v1229_v20  ;;  %v1235_v21 = vpop.f32.mrb[21].mxu1  ;;  %v638_v22 = vmul.f32 %v844_v5, %v844_v5 }
 0x10b   :  { %531 = vst [vmem:[%s1333_s2 + $0xa0] sm:$0xff] %v400_v7  ;;  %v579_v8 = vadd.f32 %v578_v6, %v400_v7  ;;  %v636_v9 = vmul.f32 %v400_v7, %v400_v7  ;;  %v682_v10 = vadd.f32 %v681_v4, %v635_v3  ;;  %v845_v11 = vpop.f32.mrb[22].mxu0  ;;  %555 = vst [vmem:[%s1333_s2 + $0x160] sm:$0xff] %v1235_v21  ;;  %v1241_v25 = vpop.f32.mrb[22].mxu1 }
 0x10c   :  { %534 = vst [vmem:[%s1333_s2 + $0xb8] sm:$0xff] %v845_v11  ;;  %v403_v14 = vpop.f32.mrb[23].mxu0  ;;  %558 = vst [vmem:[%s1333_s2 + $0x178] sm:$0xff] %v1241_v25  ;;  %v1247_v26 = vpop.f32.mrb[23].mxu1  ;;  %v639_v27 = vmul.f32 %v845_v11, %v845_v11 }
 0x10d   :  { %v683_v15 = vadd.f32 %v682_v10, %v636_v9  ;;  %532 = vst [vmem:[%s1333_s2 + $0xa8] sm:$0xff] %v403_v14  ;;  %v580_v16 = vadd.f32 %v579_v8, %v403_v14  ;;  %v637_v19 = vmul.f32 %v403_v14, %v403_v14  ;;  %556 = vst [vmem:[%s1333_s2 + $0x168] sm:$0xff] %v1247_v26 }
 0x10f   :  { %v581_v23 = vadd.f32 %v844_v5, %v580_v16  ;;  %v684_v24 = vadd.f32 %v683_v15, %v637_v19  ;;  %v649_v5 = vmul.f32 %v1139_v18, %v1139_v18  ;;  %v653_v15 = vmul.f32 %v1175_v40, %v1175_v40 }
 0x111   :  { %v685_v28 = vadd.f32 %v684_v24, %v638_v22  ;;  %v582_v29 = vadd.f32 %v845_v11, %v581_v23 }
 0x113   :  { %v583_v31 = vadd.f32 %v582_v29, %v1055_v37  ;;  %v686_v34 = vadd.f32 %v685_v28, %v639_v27  ;;  %v644_v37 = vmul.f32 %v1091_v57, %v1091_v57  ;;  %v657_v29 = vmul.f32 %v1211_v2, %v1211_v2 }
 0x115   :  { %v687_v35 = vadd.f32 %v686_v34, %v640_v30  ;;  %v584_v38 = vadd.f32 %v583_v31, %v1067_v42 }
 0x117   :  { %v585_v45 = vadd.f32 %v1049_v36, %v584_v38  ;;  %v688_v46 = vadd.f32 %v687_v35, %v641_v43  ;;  %v646_v36 = vmul.f32 %v1085_v56, %v1085_v56 }
 0x119   :  { %v689_v48 = vadd.f32 %v688_v46, %v642_v44  ;;  %v586_v49 = vadd.f32 %v1061_v41, %v585_v45  ;;  %v647_v41 = vmul.f32 %v1097_v61, %v1097_v61  ;;  %v661_v45 = vmul.f32 %v1247_v26, %v1247_v26 }
 0x11b   :  { %v587_v50 = vadd.f32 %v586_v49, %v1091_v57  ;;  %v690_v51 = vadd.f32 %v689_v48, %v643_v47  ;;  %v648_v57 = vmul.f32 %v1127_v13, %v1127_v13 }
 0x11d   :  { %v691_v52 = vadd.f32 %v690_v51, %v644_v37  ;;  %v588_v42 = vadd.f32 %v587_v50, %v1103_v62 }
 0x11f   :  { %v589_v54 = vadd.f32 %v1085_v56, %v588_v42  ;;  %v692_v55 = vadd.f32 %v691_v52, %v645_v53  ;;  %v650_v56 = vmul.f32 %v1121_v12, %v1121_v12 }
 0x121   :  { %v693_v60 = vadd.f32 %v692_v55, %v646_v36  ;;  %v590_v63 = vadd.f32 %v1097_v61, %v589_v54  ;;  %v651_v61 = vmul.f32 %v1133_v17, %v1133_v17  ;;  %v559_v55 = vld [vmem:[#allocation2] sm:$0x1] }
 0x123   :  { %v591_v0 = vadd.f32 %v590_v63, %v1127_v13  ;;  %v694_v3 = vadd.f32 %v693_v60, %v647_v41  ;;  %v652_v13 = vmul.f32 %v1163_v33, %v1163_v33  ;;  %v615_v60 = vld [vmem:[#allocation3] sm:$0x1] }
 0x125   :  { %v695_v4 = vadd.f32 %v694_v3, %v648_v57  ;;  %v592_v62 = vadd.f32 %v591_v0, %v1139_v18 }
 0x127   :  { %v593_v6 = vadd.f32 %v1121_v12, %v592_v62  ;;  %v696_v7 = vadd.f32 %v695_v4, %v649_v5  ;;  %v654_v12 = vmul.f32 %v1157_v32, %v1157_v32 }
 0x129   :  { %v697_v8 = vadd.f32 %v696_v7, %v650_v56  ;;  %v594_v9 = vadd.f32 %v1133_v17, %v593_v6  ;;  %v655_v17 = vmul.f32 %v1169_v39, %v1169_v39 }
 0x12b   :  { %v595_v10 = vadd.f32 %v594_v9, %v1163_v33  ;;  %v698_v11 = vadd.f32 %v697_v8, %v651_v61  ;;  %v656_v33 = vmul.f32 %v1199_v59, %v1199_v59 }
 0x12d   :  { %v699_v14 = vadd.f32 %v698_v11, %v652_v13  ;;  %v596_v18 = vadd.f32 %v595_v10, %v1175_v40 }
 0x12f   :  { %v597_v16 = vadd.f32 %v1157_v32, %v596_v18  ;;  %v700_v19 = vadd.f32 %v699_v14, %v653_v15  ;;  %v658_v32 = vmul.f32 %v1193_v58, %v1193_v58 }
 0x131   :  { %v701_v22 = vadd.f32 %v700_v19, %v654_v12  ;;  %v598_v23 = vadd.f32 %v1169_v39, %v597_v16  ;;  %v659_v39 = vmul.f32 %v1205_v1, %v1205_v1 }
 0x133   :  { %v599_v24 = vadd.f32 %v598_v23, %v1199_v59  ;;  %v702_v27 = vadd.f32 %v701_v22, %v655_v17  ;;  %v660_v59 = vmul.f32 %v1235_v21, %v1235_v21 }
 0x135   :  { %v703_v28 = vadd.f32 %v702_v27, %v656_v33  ;;  %v600_v40 = vadd.f32 %v599_v24, %v1211_v2 }
 0x137   :  { %v601_v30 = vadd.f32 %v1193_v58, %v600_v40  ;;  %v704_v31 = vadd.f32 %v703_v28, %v657_v29  ;;  %v662_v58 = vmul.f32 %v1229_v20, %v1229_v20 }
 0x139   :  { %v705_v34 = vadd.f32 %v704_v31, %v658_v32  ;;  %v602_v35 = vadd.f32 %v1205_v1, %v601_v30  ;;  %v663_v1 = vmul.f32 %v1241_v25, %v1241_v25 }
 0x13b   :  { %v603_v38 = vadd.f32 %v602_v35, %v1235_v21  ;;  %v706_v43 = vadd.f32 %v705_v34, %v659_v39 }
 0x13d   :  { %v707_v44 = vadd.f32 %v706_v43, %v660_v59  ;;  %v604_v2 = vadd.f32 %v603_v38, %v1247_v26 }
 0x13f   :  { %v605_v46 = vadd.f32 %v1229_v20, %v604_v2  ;;  %v708_v47 = vadd.f32 %v707_v44, %v661_v45 }
 0x141   :  { %v606_v48 = vadd.f32 %v1241_v25, %v605_v46  ;;  %v709_v49 = vadd.f32 %v708_v47, %v662_v58 }
 0x143   :  { %v607_v21 = vrot.slane %v606_v48, 4  ;;  %v710_v37 = vadd.f32 %v709_v49, %v663_v1 }
 0x145   :  { %v608_v50 = vadd.f32 %v607_v21, %v606_v48  ;;  %v711_v51 = vrot.slane %v710_v37, 4 }
 0x147   :  { %v609_v52 = vrot.slane %v608_v50, 2  ;;  %v712_v42 = vadd.f32 %v711_v51, %v710_v37 }
 0x149   :  { %v610_v53 = vadd.f32 %v609_v52, %v608_v50  ;;  %v713_v26 = vrot.slane %v712_v42, 2 }
 0x14b   :  { %v611_v36 = vrot.slane %v610_v53, 1  ;;  %v714_v54 = vadd.f32 %v713_v26, %v712_v42 }
 0x14d   :  { %v612_v41 = vadd.f32 %v611_v36, %v610_v53  ;;  %v715_v20 = vrot.slane %v714_v54, 1 }
 0x14f   :  { %v613_v63 = vadd.f32 %v612_v41, %v559_v55  ;;  %v716_v57 = vadd.f32 %v715_v20, %v714_v54 }
 0x151   :  { %614 = vst [vmem:[#allocation2] sm:$0x1] %v613_v63  ;;  %v717_v0 = vadd.f32 %v716_v57, %v615_v60 }
 0x153   :  { %718 = vst [vmem:[#allocation3] sm:$0x1] %v717_v0 }
 0x158   :  { %v722_v25 = vld [vmem:[#allocation2] sm:$0x1] }
 0x159   :  { %723 = vst [vmem:[%s1334_s3] sm:$0x1] %v722_v25 }
 0x15a   :  { %v724_v3 = vld [vmem:[#allocation3] sm:$0x1] }
 0x15b   :  { %725 = vst [vmem:[%s1335_s4] sm:$0x1] %v724_v3 }

// kernel: cra_forward.51
= control target key start
LH: loop header
LB: loop body
LE: loop exit
PB: predicated region body
PF: predicated region fallthrough
CT: control target
= control target key end

     0   :  { %v138_v3 = vmov 0.0   ;;  %vm19_vm0 = vcmask 130048   ;;  %v96_v8 = vlaneseq  ;;  %s186_s1 = inlined_call_operand.vmem [shape: f32[16,256], index: 1, kind: input, shape index: {}]   ;;  %s187_s0 = inlined_call_operand.vmem [shape: f32[8,16], index: 0, kind: input, shape index: {}]   ;;  %s188_s2 = inlined_call_operand.vmem [shape: f32[2,256], index: 2, kind: input, shape index: {}]   ;;  %s189_s3 = inlined_call_operand.vmem [shape: f32[8,256], index: 3, kind: output, shape index: {}]  }
   0x1   :  { %v16_v0 = vld [vmem:[%s186_s1 + $0x8] sm:$0xff]  ;;  %v18_v1 = vld [vmem:[%s186_s1 + $0x18] sm:$0xff]  ;;  %v15_v2 = vld [vmem:[%s186_s1] sm:$0xff]  ;;  %87 = vmatprep.mubr.f32.mxu0 %v138_v3 }
   0x2   :  { %v133_v4 = vpack.c.bf16 %v18_v1, %v16_v0  ;;  %v17_v5 = vld [vmem:[%s186_s1 + $0x10] sm:$0xff]  ;;  %v14_v7 = vld [vmem:[%s187_s0] sm:$0xff]  ;;  %v97_v9 = vshrl.u32 %v96_v8, 7 }
   0x3   :  { %v135_v6 = vpack.c.bf16 %v17_v5, %v15_v2  ;;  %v94_v11 = vld [vmem:[%s188_s2] ss:$2 sm:$0x3]  ;;  %v132_v13 = vld [vmem:[%s188_s2 + $0x1] ss:$2 sm:$0x3] }
   0x4   :  { %134 = vmatprep.subr.bf16.mxu0 %v133_v4  ;;  %v98_v10 = vsub.s32 0, %v97_v9  ;;  %v102_v12 = vsub.s32 1, %v97_v9 }
   0x5   :  { %136 = vmatpush1.bf16.msra.mxu0 %v135_v6 }
   0x6   :  { %v99_v14 = vrot.slane %v94_v11, %v98_v10  ;;  %v103_v15 = vrot.slane %v94_v11, %v102_v12  ;;  %v114_v16 = vrot.slane %v132_v13, %v98_v10  ;;  %v118_v18 = vrot.slane %v132_v13, %v102_v12 }
   0x8   :  { %131 = vmatmul.mubr.msk.f32.vlgmr.msra.gmra.mrb[0].mxu0 %vm19_vm0, %v14_v7 }
  0xdb   :  { %v89_v17 = vpop.f32.mrb[0].mxu0 }
  0xdc   :  { %v106_v19 = vmul.f32 %v99_v14, %v89_v17  ;;  %v91_v20 = vpop.f32.mrb[1].mxu0 }
  0xdd   :  { %v107_v21 = vmul.f32 %v103_v15, %v91_v20 }
  0xde   :  { %v121_v22 = vadd.f32 %v114_v16, %v106_v19 }
  0xdf   :  { %v122_v23 = vadd.f32 %v118_v18, %v107_v21 }
  0xe0   :  { %v123_v24 = vmax.f32 %v121_v22, 0.0 }
  0xe1   :  { %v124_v25 = vmax.f32 %v122_v23, 0.0 }
  0xe2   :  { %125 = vst [vmem:[%s189_s3] sm:$0xff] %v123_v24 }
  0xe3   :  { %126 = vst [vmem:[%s189_s3 + $0x8] sm:$0xff] %v124_v25 }

// kernel: cra_forward.41
= control target key start
LH: loop header
LB: loop body
LE: loop exit
PB: predicated region body
PF: predicated region fallthrough
CT: control target
= control target key end

     0   :  { %s335_s1 = inlined_call_operand.vmem [shape: f32[256,128], index: 1, kind: input, shape index: {}]   ;;  %s336_s0 = inlined_call_operand.vmem [shape: f32[8,256], index: 0, kind: input, shape index: {}]   ;;  %s337_s2 = inlined_call_operand.vmem [shape: f32[2,128], index: 2, kind: input, shape index: {}]   ;;  %s338_s3 = inlined_call_operand.vmem [shape: f32[8,128], index: 3, kind: output, shape index: {}]  }
   0x1   :  { %v32_v0 = vld [vmem:[%s335_s1 + $0x80] sm:$0xff]  ;;  %v33_v1 = vld [vmem:[%s335_s1 + $0x88] sm:$0xff]  ;;  %v34_v5 = vld [vmem:[%s335_s1 + $0x90] sm:$0xff] }
   0x2   :  { %v16_v2 = vld [vmem:[%s335_s1] sm:$0xff]  ;;  %v172_v3 = vpack.c.bf16 %v33_v1, %v32_v0  ;;  %v17_v4 = vld [vmem:[%s335_s1 + $0x8] sm:$0xff]  ;;  %v35_v6 = vld [vmem:[%s335_s1 + $0x98] sm:$0xff] }
   0x3   :  { %v174_v7 = vpack.c.bf16 %v17_v4, %v16_v2  ;;  %v176_v8 = vpack.c.bf16 %v35_v6, %v34_v5  ;;  %v18_v9 = vld [vmem:[%s335_s1 + $0x10] sm:$0xff]  ;;  %v19_v10 = vld [vmem:[%s335_s1 + $0x18] sm:$0xff]  ;;  %v36_v11 = vld [vmem:[%s335_s1 + $0xa0] sm:$0xff] }
   0x4   :  { %173 = vmatprep.subr.bf16.mxu0 %v172_v3  ;;  %v37_v12 = vld [vmem:[%s335_s1 + $0xa8] sm:$0xff]  ;;  %v178_v13 = vpack.c.bf16 %v19_v10, %v18_v9  ;;  %v20_v15 = vld [vmem:[%s335_s1 + $0x20] sm:$0xff]  ;;  %v38_v17 = vld [vmem:[%s335_s1 + $0xb0] sm:$0xff] }
   0x5   :  { %175 = vmatpush3.bf16.msra.mxu0 %v174_v7  ;;  %v180_v14 = vpack.c.bf16 %v37_v12, %v36_v11  ;;  %v21_v16 = vld [vmem:[%s335_s1 + $0x28] sm:$0xff]  ;;  %v39_v18 = vld [vmem:[%s335_s1 + $0xb8] sm:$0xff]  ;;  %v22_v21 = vld [vmem:[%s335_s1 + $0x30] sm:$0xff] }
   0x6   :  { %177 = vmatprep.subr.bf16.mxu0 %v176_v8  ;;  %v182_v19 = vpack.c.bf16 %v21_v16, %v20_v15  ;;  %v184_v20 = vpack.c.bf16 %v39_v18, %v38_v17  ;;  %v23_v22 = vld [vmem:[%s335_s1 + $0x38] sm:$0xff]  ;;  %v40_v23 = vld [vmem:[%s335_s1 + $0xc0] sm:$0xff]  ;;  %v41_v24 = vld [vmem:[%s335_s1 + $0xc8] sm:$0xff] }
   0x7   :  { %v15_v25 = vld [vmem:[%s336_s0 + $0x8] sm:$0xff]  ;;  %v186_v26 = vpack.c.bf16 %v23_v22, %v22_v21  ;;  %v188_v27 = vpack.c.bf16 %v41_v24, %v40_v23  ;;  %v24_v28 = vld [vmem:[%s335_s1 + $0x40] sm:$0xff]  ;;  %v42_v30 = vld [vmem:[%s335_s1 + $0xd0] sm:$0xff] }
   0x8   :  { %112 = vmatprep.mubr.f32.mxu0 %v15_v25  ;;  %v25_v29 = vld [vmem:[%s335_s1 + $0x48] sm:$0xff]  ;;  %v43_v31 = vld [vmem:[%s335_s1 + $0xd8] sm:$0xff]  ;;  %v26_v34 = vld [vmem:[%s335_s1 + $0x50] sm:$0xff] }
   0x9   :  { %179 = vmatpush3.bf16.msra.mxu0 %v178_v13  ;;  %v190_v32 = vpack.c.bf16 %v25_v29, %v24_v28  ;;  %v192_v33 = vpack.c.bf16 %v43_v31, %v42_v30  ;;  %v27_v35 = vld [vmem:[%s335_s1 + $0x58] sm:$0xff]  ;;  %v44_v36 = vld [vmem:[%s335_s1 + $0xe0] sm:$0xff]  ;;  %v45_v37 = vld [vmem:[%s335_s1 + $0xe8] sm:$0xff] }
   0xa   :  { %181 = vmatprep.subr.bf16.mxu0 %v180_v14  ;;  %v194_v38 = vpack.c.bf16 %v27_v35, %v26_v34  ;;  %v196_v39 = vpack.c.bf16 %v45_v37, %v44_v36  ;;  %v28_v40 = vld [vmem:[%s335_s1 + $0x60] sm:$0xff]  ;;  %v29_v41 = vld [vmem:[%s335_s1 + $0x68] sm:$0xff]  ;;  %v46_v42 = vld [vmem:[%s335_s1 + $0xf0] sm:$0xff] }
   0xb   :  { %v47_v43 = vld [vmem:[%s335_s1 + $0xf8] sm:$0xff]  ;;  %v198_v44 = vpack.c.bf16 %v29_v41, %v28_v40  ;;  %v30_v46 = vld [vmem:[%s335_s1 + $0x70] sm:$0xff]  ;;  %v14_v49 = vld [vmem:[%s336_s0] sm:$0xff] }
   0xc   :  { %v200_v45 = vpack.c.bf16 %v47_v43, %v46_v42  ;;  %v31_v47 = vld [vmem:[%s335_s1 + $0x78] sm:$0xff]  ;;  %v135_v52 = vld [vmem:[%s337_s2] ss:$0 sm:$0xff]  ;;  %v136_v54 = vld [vmem:[%s337_s2 + $0x1] ss:$0 sm:$0xff] }
   0xd   :  { %183 = vmatpush3.bf16.msra.mxu0 %v182_v19  ;;  %v202_v48 = vpack.c.bf16 %v31_v47, %v30_v46 }
   0xe   :  { %185 = vmatprep.subr.bf16.mxu0 %v184_v20 }
  0x11   :  { %187 = vmatpush3.bf16.msra.mxu0 %v186_v26 }
  0x12   :  { %189 = vmatprep.subr.bf16.mxu0 %v188_v27 }
  0x15   :  { %191 = vmatpush3.bf16.msra.mxu0 %v190_v32 }
  0x16   :  { %193 = vmatprep.subr.bf16.mxu0 %v192_v33 }
  0x19   :  { %195 = vmatpush3.bf16.msra.mxu0 %v194_v38 }
  0x1a   :  { %197 = vmatprep.subr.bf16.mxu0 %v196_v39 }
  0x1d   :  { %199 = vmatpush3.bf16.msra.mxu0 %v198_v44 }
  0x1e   :  { %201 = vmatprep.subr.bf16.mxu0 %v200_v45 }
  0x21   :  { %203 = vmatpush3.bf16.msra.mxu0 %v202_v48 }
  0x24   :  { %113 = vmatmul.mubr.f32.vlgmr.msra.gmra.mrb[0].mxu0 %v14_v49 }
  0xf7   :  { %v169_v50 = vpop.f32.mrb[0].mxu0 }
  0xf8   :  { %v170_v51 = vpop.f32.mrb[1].mxu0 }
  0xf9   :  { %v171_v53 = vadd.f32 %v170_v51, %v169_v50 }
  0xfb   :  { %v123_v55 = vmul.f32 %v171_v53, %v135_v52 }
  0xfd   :  { %v129_v56 = vadd.f32 %v136_v54, %v123_v55 }
  0xff   :  { %130 = vst [vmem:[%s338_s3] sm:$0xff] %v129_v56 }

// kernel: cra_forward.43
= control target key start
LH: loop header
LB: loop body
LE: loop exit
PB: predicated region body
PF: predicated region fallthrough
CT: control target
= control target key end

     0   :  { %vm225_vm0 = vcmask 588800   ;;  %vm298_vm1 = vcmask 1043456   ;;  %v936_v30 = vmov 0.0   ;;  %s1367_s1 = inlined_call_operand.vmem [shape: bf16[72,128], index: 1, kind: input, shape index: {}]   ;;  %s1368_s0 = inlined_call_operand.vmem [shape: bf16[384,72], index: 0, kind: input, shape index: {}]   ;;  %s1369_s2 = inlined_call_operand.vmem [shape: f32[384,128], index: 2, kind: output, shape index: {0}]   ;;  %s1370_s3 = inlined_call_operand.vmem [shape: f32[1,128], index: 3, kind: output, shape index: {1}]   ;;  %s1371_s4 = inlined_call_operand.vmem [shape: f32[1,128], index: 4, kind: output, shape index: {2}]  }
   0x1   :  { %v907_v0 = vld [vmem:[%s1367_s1] sm:$0xff]   ;;  %v908_v1 = vld [vmem:[%s1367_s1 + $0x8] sm:$0xff]   ;;  %v909_v2 = vld [vmem:[%s1367_s1 + $0x10] sm:$0xff]   ;;  %19 = vst [vmem:[#allocation2] sm:$0x1] %v936_v30 }
   0x2   :  { %836 = vmatprep.subr.bf16.mxu0 %v907_v0  ;;  %894 = vmatprep.subr.bf16.mxu1 %v907_v0  ;;  %v912_v3 = vld [vmem:[%s1368_s0] sm:$0xff]   ;;  %v910_v4 = vld [vmem:[%s1367_s1 + $0x18] sm:$0xff]   ;;  %v913_v7 = vld [vmem:[%s1368_s0 + $0x8] sm:$0xff]   ;;  %20 = vst [vmem:[#allocation3] sm:$0x1] %v936_v30 }
   0x3   :  { %837 = vmatpush3.bf16.msra.mxu0 %v907_v0  ;;  %899 = vmatpush3.bf16.msra.mxu1 %v907_v0  ;;  %v911_v5 = vld [vmem:[%s1367_s1 + $0x20] ss:$0 sps:$4 sm:$0xff]   ;;  %v914_v9 = vld [vmem:[%s1368_s0 + $0x10] sm:$0xff]   ;;  %v925_v10 = vld [vmem:[%s1368_s0 + $0x68] sm:$0xff]  }
   0x4   :  { %838 = vmatprep.subr.bf16.mxu0 %v908_v1  ;;  %895 = vmatprep.subr.bf16.mxu1 %v908_v1  ;;  %v300_v6 = vsel %vm298_vm1, %v911_v5, 0  ;;  %v924_v8 = vld [vmem:[%s1368_s0 + $0x60] sm:$0xff]   ;;  %v926_v11 = vld [vmem:[%s1368_s0 + $0x70] sm:$0xff]   ;;  %v915_v12 = vld [vmem:[%s1368_s0 + $0x18] sm:$0xff]  }
   0x5   :  { %846 = vmatprep.mubr.msk.bf16.mxu0 %vm225_vm0, %v912_v3  ;;  %870 = vmatprep.mubr.msk.bf16.mxu1 %vm225_vm0, %v924_v8  ;;  %v916_v13 = vld [vmem:[%s1368_s0 + $0x20] sm:$0xff]   ;;  %v927_v14 = vld [vmem:[%s1368_s0 + $0x78] sm:$0xff]   ;;  %v917_v16 = vld [vmem:[%s1368_s0 + $0x28] sm:$0xff]  }
   0x6   :  { %v928_v15 = vld [vmem:[%s1368_s0 + $0x80] sm:$0xff]   ;;  %v918_v17 = vld [vmem:[%s1368_s0 + $0x30] sm:$0xff]   ;;  %v929_v18 = vld [vmem:[%s1368_s0 + $0x88] sm:$0xff]  }
   0x7   :  { %839 = vmatpush3.bf16.msra.mxu0 %v908_v1  ;;  %900 = vmatpush3.bf16.msra.mxu1 %v908_v1  ;;  %v930_v19 = vld [vmem:[%s1368_s0 + $0x90] sm:$0xff]   ;;  %v919_v20 = vld [vmem:[%s1368_s0 + $0x38] sm:$0xff]   ;;  %v920_v21 = vld [vmem:[%s1368_s0 + $0x40] sm:$0xff]  }
   0x8   :  { %840 = vmatprep.subr.bf16.mxu0 %v909_v2  ;;  %896 = vmatprep.subr.bf16.mxu1 %v909_v2  ;;  %v931_v22 = vld [vmem:[%s1368_s0 + $0x98] sm:$0xff]   ;;  %v932_v23 = vld [vmem:[%s1368_s0 + $0xa0] sm:$0xff]   ;;  %v921_v24 = vld [vmem:[%s1368_s0 + $0x48] sm:$0xff]  }
   0x9   :  { %v922_v25 = vld [vmem:[%s1368_s0 + $0x50] sm:$0xff]   ;;  %v933_v26 = vld [vmem:[%s1368_s0 + $0xa8] sm:$0xff]   ;;  %v923_v28 = vld [vmem:[%s1368_s0 + $0x58] sm:$0xff]  }
   0xa   :  { %v934_v27 = vld [vmem:[%s1368_s0 + $0xb0] sm:$0xff]   ;;  %v935_v29 = vld [vmem:[%s1368_s0 + $0xb8] sm:$0xff]  }
   0xb   :  { %841 = vmatpush3.bf16.msra.mxu0 %v909_v2  ;;  %901 = vmatpush3.bf16.msra.mxu1 %v909_v2 }
   0xc   :  { %842 = vmatprep.subr.bf16.mxu0 %v910_v4  ;;  %897 = vmatprep.subr.bf16.mxu1 %v910_v4 }
   0xf   :  { %843 = vmatpush3.bf16.msra.mxu0 %v910_v4  ;;  %902 = vmatpush3.bf16.msra.mxu1 %v910_v4 }
  0x10   :  { %904 = vmatprep.subr.msk.bf16.mxu0 %vm298_vm1, %v911_v5  ;;  %905 = vmatprep.subr.msk.bf16.mxu1 %vm298_vm1, %v911_v5 }
  0x13   :  { %845 = vmatpush3.bf16.msra.mxu0 %v300_v6  ;;  %903 = vmatpush3.bf16.msra.mxu1 %v300_v6 }
  0x16   :  { %847 = vmatmul.mubr.msk.bf16.vlgmr.msra.gmra.mrb[0].mxu0 %vm225_vm0, %v913_v7  ;;  %871 = vmatmul.mubr.msk.bf16.vlgmr.msra.gmra.mrb[0].mxu1 %vm225_vm0, %v925_v10 }
  0x17   :  { %850 = vmatprep.mubr.msk.bf16.mxu0 %vm225_vm0, %v914_v9  ;;  %874 = vmatprep.mubr.msk.bf16.mxu1 %vm225_vm0, %v926_v11 }
  0x1e   :  { %851 = vmatmul.mubr.msk.bf16.gmra.mrb[4].mxu0 %vm225_vm0, %v915_v12  ;;  %875 = vmatmul.mubr.msk.bf16.gmra.mrb[4].mxu1 %vm225_vm0, %v927_v14 }
  0x1f   :  { %854 = vmatprep.mubr.msk.bf16.mxu0 %vm225_vm0, %v916_v13  ;;  %878 = vmatprep.mubr.msk.bf16.mxu1 %vm225_vm0, %v928_v15 }
  0x26   :  { %855 = vmatmul.mubr.msk.bf16.gmra.mrb[8].mxu0 %vm225_vm0, %v917_v16  ;;  %879 = vmatmul.mubr.msk.bf16.gmra.mrb[8].mxu1 %vm225_vm0, %v929_v18 }
  0x27   :  { %858 = vmatprep.mubr.msk.bf16.mxu0 %vm225_vm0, %v918_v17  ;;  %882 = vmatprep.mubr.msk.bf16.mxu1 %vm225_vm0, %v930_v19 }
  0x2e   :  { %859 = vmatmul.mubr.msk.bf16.gmra.mrb[12].mxu0 %vm225_vm0, %v919_v20  ;;  %883 = vmatmul.mubr.msk.bf16.gmra.mrb[12].mxu1 %vm225_vm0, %v931_v22 }
  0x2f   :  { %862 = vmatprep.mubr.msk.bf16.mxu0 %vm225_vm0, %v920_v21  ;;  %886 = vmatprep.mubr.msk.bf16.mxu1 %vm225_vm0, %v932_v23 }
  0x36   :  { %863 = vmatmul.mubr.msk.bf16.gmra.mrb[16].mxu0 %vm225_vm0, %v921_v24  ;;  %887 = vmatmul.mubr.msk.bf16.gmra.mrb[16].mxu1 %vm225_vm0, %v933_v26 }
  0x37   :  { %866 = vmatprep.mubr.msk.bf16.mxu0 %vm225_vm0, %v922_v25  ;;  %890 = vmatprep.mubr.msk.bf16.mxu1 %vm225_vm0, %v934_v27 }
  0x3e   :  { %867 = vmatmul.mubr.msk.bf16.gmra.mrb[20].mxu0 %vm225_vm0, %v923_v28  ;;  %891 = vmatmul.mubr.msk.bf16.gmra.mrb[20].mxu1 %vm225_vm0, %v935_v29 }
  0xe9   :  { %v848_v31 = vpop.f32.mrb[0].mxu0  ;;  %v1076_v33 = vpop.f32.mrb[0].mxu1 }
  0xea   :  { %529 = vst [vmem:[%s1369_s2 + $0x10] sm:$0xff] %v848_v31  ;;  %v336_v32 = vpop.f32.mrb[1].mxu0  ;;  %553 = vst [vmem:[%s1369_s2 + $0xd0] sm:$0xff] %v1076_v33  ;;  %v1085_v35 = vpop.f32.mrb[1].mxu1  ;;  %v634_v42 = vmul.f32 %v848_v31, %v848_v31 }
  0xeb   :  { %527 = vst [vmem:[%s1369_s2] sm:$0xff] %v336_v32  ;;  %v849_v34 = vpop.f32.mrb[2].mxu0  ;;  %551 = vst [vmem:[%s1369_s2 + $0xc0] sm:$0xff] %v1085_v35  ;;  %v1094_v37 = vpop.f32.mrb[2].mxu1  ;;  %v632_v38 = vmul.f32 %v336_v32, %v336_v32 }
  0xec   :  { %530 = vst [vmem:[%s1369_s2 + $0x18] sm:$0xff] %v849_v34  ;;  %v339_v36 = vpop.f32.mrb[3].mxu0  ;;  %554 = vst [vmem:[%s1369_s2 + $0xd8] sm:$0xff] %v1094_v37  ;;  %v1103_v41 = vpop.f32.mrb[3].mxu1  ;;  %v635_v45 = vmul.f32 %v849_v34, %v849_v34 }
  0xed   :  { %528 = vst [vmem:[%s1369_s2 + $0x8] sm:$0xff] %v339_v36  ;;  %v576_v39 = vadd.f32 %v339_v36, %v336_v32  ;;  %v633_v40 = vmul.f32 %v339_v36, %v339_v36  ;;  %552 = vst [vmem:[%s1369_s2 + $0xc8] sm:$0xff] %v1103_v41 }
  0xef   :  { %v577_v43 = vadd.f32 %v848_v31, %v576_v39  ;;  %v680_v44 = vadd.f32 %v633_v40, %v632_v38 }
  0xf1   :  { %v681_v46 = vadd.f32 %v680_v44, %v634_v42  ;;  %v852_v47 = vpop.f32.mrb[4].mxu0  ;;  %v578_v48 = vadd.f32 %v849_v34, %v577_v43  ;;  %v1112_v50 = vpop.f32.mrb[4].mxu1 }
  0xf2   :  { %533 = vst [vmem:[%s1369_s2 + $0x30] sm:$0xff] %v852_v47  ;;  %v352_v49 = vpop.f32.mrb[5].mxu0  ;;  %557 = vst [vmem:[%s1369_s2 + $0xf0] sm:$0xff] %v1112_v50  ;;  %v1121_v55 = vpop.f32.mrb[5].mxu1  ;;  %v638_v62 = vmul.f32 %v852_v47, %v852_v47 }
  0xf3   :  { %531 = vst [vmem:[%s1369_s2 + $0x20] sm:$0xff] %v352_v49  ;;  %v579_v51 = vadd.f32 %v578_v48, %v352_v49  ;;  %v636_v52 = vmul.f32 %v352_v49, %v352_v49  ;;  %v682_v53 = vadd.f32 %v681_v46, %v635_v45  ;;  %v853_v54 = vpop.f32.mrb[6].mxu0  ;;  %555 = vst [vmem:[%s1369_s2 + $0xe0] sm:$0xff] %v1121_v55  ;;  %v1130_v57 = vpop.f32.mrb[6].mxu1 }
  0xf4   :  { %534 = vst [vmem:[%s1369_s2 + $0x38] sm:$0xff] %v853_v54  ;;  %v355_v56 = vpop.f32.mrb[7].mxu0  ;;  %558 = vst [vmem:[%s1369_s2 + $0xf8] sm:$0xff] %v1130_v57  ;;  %v1139_v61 = vpop.f32.mrb[7].mxu1  ;;  %v639_v1 = vmul.f32 %v853_v54, %v853_v54 }
  0xf5   :  { %v683_v58 = vadd.f32 %v682_v53, %v636_v52  ;;  %532 = vst [vmem:[%s1369_s2 + $0x28] sm:$0xff] %v355_v56  ;;  %v580_v59 = vadd.f32 %v579_v51, %v355_v56  ;;  %v637_v60 = vmul.f32 %v355_v56, %v355_v56  ;;  %556 = vst [vmem:[%s1369_s2 + $0xe8] sm:$0xff] %v1139_v61 }
  0xf7   :  { %v581_v63 = vadd.f32 %v852_v47, %v580_v59  ;;  %v684_v0 = vadd.f32 %v683_v58, %v637_v60 }
  0xf9   :  { %v685_v2 = vadd.f32 %v684_v0, %v638_v62  ;;  %v856_v3 = vpop.f32.mrb[8].mxu0  ;;  %v582_v4 = vadd.f32 %v853_v54, %v581_v63  ;;  %v1148_v6 = vpop.f32.mrb[8].mxu1 }
  0xfa   :  { %537 = vst [vmem:[%s1369_s2 + $0x50] sm:$0xff] %v856_v3  ;;  %v368_v5 = vpop.f32.mrb[9].mxu0  ;;  %561 = vst [vmem:[%s1369_s2 + $0x110] sm:$0xff] %v1148_v6  ;;  %v1157_v11 = vpop.f32.mrb[9].mxu1  ;;  %v642_v18 = vmul.f32 %v856_v3, %v856_v3 }
  0xfb   :  { %535 = vst [vmem:[%s1369_s2 + $0x40] sm:$0xff] %v368_v5  ;;  %v583_v7 = vadd.f32 %v582_v4, %v368_v5  ;;  %v640_v8 = vmul.f32 %v368_v5, %v368_v5  ;;  %v686_v9 = vadd.f32 %v685_v2, %v639_v1  ;;  %v857_v10 = vpop.f32.mrb[10].mxu0  ;;  %559 = vst [vmem:[%s1369_s2 + $0x100] sm:$0xff] %v1157_v11  ;;  %v1166_v13 = vpop.f32.mrb[10].mxu1 }
  0xfc   :  { %538 = vst [vmem:[%s1369_s2 + $0x58] sm:$0xff] %v857_v10  ;;  %v371_v12 = vpop.f32.mrb[11].mxu0  ;;  %562 = vst [vmem:[%s1369_s2 + $0x118] sm:$0xff] %v1166_v13  ;;  %v1175_v17 = vpop.f32.mrb[11].mxu1  ;;  %v643_v21 = vmul.f32 %v857_v10, %v857_v10 }
  0xfd   :  { %v687_v14 = vadd.f32 %v686_v9, %v640_v8  ;;  %536 = vst [vmem:[%s1369_s2 + $0x48] sm:$0xff] %v371_v12  ;;  %v584_v15 = vadd.f32 %v583_v7, %v371_v12  ;;  %v641_v16 = vmul.f32 %v371_v12, %v371_v12  ;;  %560 = vst [vmem:[%s1369_s2 + $0x108] sm:$0xff] %v1175_v17 }
  0xff   :  { %v585_v19 = vadd.f32 %v856_v3, %v584_v15  ;;  %v688_v20 = vadd.f32 %v687_v14, %v641_v16 }
 0x101   :  { %v689_v22 = vadd.f32 %v688_v20, %v642_v18  ;;  %v860_v23 = vpop.f32.mrb[12].mxu0  ;;  %v586_v24 = vadd.f32 %v857_v10, %v585_v19  ;;  %v1184_v26 = vpop.f32.mrb[12].mxu1 }
 0x102   :  { %541 = vst [vmem:[%s1369_s2 + $0x70] sm:$0xff] %v860_v23  ;;  %v384_v25 = vpop.f32.mrb[13].mxu0  ;;  %565 = vst [vmem:[%s1369_s2 + $0x130] sm:$0xff] %v1184_v26  ;;  %v1193_v31 = vpop.f32.mrb[13].mxu1  ;;  %v646_v42 = vmul.f32 %v860_v23, %v860_v23 }
 0x103   :  { %539 = vst [vmem:[%s1369_s2 + $0x60] sm:$0xff] %v384_v25  ;;  %v587_v27 = vadd.f32 %v586_v24, %v384_v25  ;;  %v644_v28 = vmul.f32 %v384_v25, %v384_v25  ;;  %v690_v29 = vadd.f32 %v689_v22, %v643_v21  ;;  %v861_v30 = vpop.f32.mrb[14].mxu0  ;;  %563 = vst [vmem:[%s1369_s2 + $0x120] sm:$0xff] %v1193_v31  ;;  %v1202_v34 = vpop.f32.mrb[14].mxu1 }
 0x104   :  { %542 = vst [vmem:[%s1369_s2 + $0x78] sm:$0xff] %v861_v30  ;;  %v387_v32 = vpop.f32.mrb[15].mxu0  ;;  %566 = vst [vmem:[%s1369_s2 + $0x138] sm:$0xff] %v1202_v34  ;;  %v1211_v40 = vpop.f32.mrb[15].mxu1  ;;  %v647_v45 = vmul.f32 %v861_v30, %v861_v30 }
 0x105   :  { %v691_v36 = vadd.f32 %v690_v29, %v644_v28  ;;  %540 = vst [vmem:[%s1369_s2 + $0x68] sm:$0xff] %v387_v32  ;;  %v588_v38 = vadd.f32 %v587_v27, %v387_v32  ;;  %v645_v39 = vmul.f32 %v387_v32, %v387_v32  ;;  %564 = vst [vmem:[%s1369_s2 + $0x128] sm:$0xff] %v1211_v40 }
 0x107   :  { %v589_v43 = vadd.f32 %v860_v23, %v588_v38  ;;  %v692_v44 = vadd.f32 %v691_v36, %v645_v39  ;;  %v656_v38 = vmul.f32 %v1085_v35, %v1085_v35 }
 0x109   :  { %v693_v46 = vadd.f32 %v692_v44, %v646_v42  ;;  %v864_v47 = vpop.f32.mrb[16].mxu0  ;;  %v590_v48 = vadd.f32 %v861_v30, %v589_v43  ;;  %v1220_v51 = vpop.f32.mrb[16].mxu1 }
 0x10a   :  { %545 = vst [vmem:[%s1369_s2 + $0x90] sm:$0xff] %v864_v47  ;;  %v400_v49 = vpop.f32.mrb[17].mxu0  ;;  %569 = vst [vmem:[%s1369_s2 + $0x150] sm:$0xff] %v1220_v51  ;;  %v1229_v58 = vpop.f32.mrb[17].mxu1  ;;  %v650_v2 = vmul.f32 %v864_v47, %v864_v47 }
 0x10b   :  { %543 = vst [vmem:[%s1369_s2 + $0x80] sm:$0xff] %v400_v49  ;;  %v591_v52 = vadd.f32 %v590_v48, %v400_v49  ;;  %v648_v53 = vmul.f32 %v400_v49, %v400_v49  ;;  %v694_v54 = vadd.f32 %v693_v46, %v647_v45  ;;  %v865_v56 = vpop.f32.mrb[18].mxu0  ;;  %567 = vst [vmem:[%s1369_s2 + $0x140] sm:$0xff] %v1229_v58  ;;  %v1238_v60 = vpop.f32.mrb[18].mxu1 }
 0x10c   :  { %546 = vst [vmem:[%s1369_s2 + $0x98] sm:$0xff] %v865_v56  ;;  %v403_v59 = vpop.f32.mrb[19].mxu0  ;;  %570 = vst [vmem:[%s1369_s2 + $0x158] sm:$0xff] %v1238_v60  ;;  %v1247_v1 = vpop.f32.mrb[19].mxu1  ;;  %v651_v5 = vmul.f32 %v865_v56, %v865_v56  ;;  %v657_v45 = vmul.f32 %v1103_v41, %v1103_v41  ;;  %v658_v46 = vmul.f32 %v1076_v33, %v1076_v33 }
 0x10d   :  { %v695_v62 = vadd.f32 %v694_v54, %v648_v53  ;;  %544 = vst [vmem:[%s1369_s2 + $0x88] sm:$0xff] %v403_v59  ;;  %v592_v63 = vadd.f32 %v591_v52, %v403_v59  ;;  %v649_v0 = vmul.f32 %v403_v59, %v403_v59  ;;  %568 = vst [vmem:[%s1369_s2 + $0x148] sm:$0xff] %v1247_v1 }
 0x10e   :  { %v659_v49 = vmul.f32 %v1094_v37, %v1094_v37 }
 0x10f   :  { %v593_v3 = vadd.f32 %v864_v47, %v592_v63  ;;  %v696_v4 = vadd.f32 %v695_v62, %v649_v0  ;;  %v661_v62 = vmul.f32 %v1139_v61, %v1139_v61 }
 0x111   :  { %v697_v7 = vadd.f32 %v696_v4, %v650_v2  ;;  %v868_v8 = vpop.f32.mrb[20].mxu0  ;;  %v594_v9 = vadd.f32 %v865_v56, %v593_v3  ;;  %v1256_v12 = vpop.f32.mrb[20].mxu1 }
 0x112   :  { %549 = vst [vmem:[%s1369_s2 + $0xb0] sm:$0xff] %v868_v8  ;;  %v416_v10 = vpop.f32.mrb[21].mxu0  ;;  %573 = vst [vmem:[%s1369_s2 + $0x170] sm:$0xff] %v1256_v12  ;;  %v1265_v19 = vpop.f32.mrb[21].mxu1  ;;  %v654_v27 = vmul.f32 %v868_v8, %v868_v8 }
 0x113   :  { %547 = vst [vmem:[%s1369_s2 + $0xa0] sm:$0xff] %v416_v10  ;;  %v595_v14 = vadd.f32 %v594_v9, %v416_v10  ;;  %v652_v15 = vmul.f32 %v416_v10, %v416_v10  ;;  %v698_v16 = vadd.f32 %v697_v7, %v651_v5  ;;  %v869_v18 = vpop.f32.mrb[22].mxu0  ;;  %571 = vst [vmem:[%s1369_s2 + $0x160] sm:$0xff] %v1265_v19  ;;  %v1274_v21 = vpop.f32.mrb[22].mxu1 }
 0x114   :  { %550 = vst [vmem:[%s1369_s2 + $0xb8] sm:$0xff] %v869_v18  ;;  %v419_v20 = vpop.f32.mrb[23].mxu0  ;;  %574 = vst [vmem:[%s1369_s2 + $0x178] sm:$0xff] %v1274_v21  ;;  %v1283_v25 = vpop.f32.mrb[23].mxu1  ;;  %v655_v30 = vmul.f32 %v869_v18, %v869_v18 }
 0x115   :  { %v699_v22 = vadd.f32 %v698_v16, %v652_v15  ;;  %548 = vst [vmem:[%s1369_s2 + $0xa8] sm:$0xff] %v419_v20  ;;  %v596_v23 = vadd.f32 %v595_v14, %v419_v20  ;;  %v653_v24 = vmul.f32 %v419_v20, %v419_v20  ;;  %572 = vst [vmem:[%s1369_s2 + $0x168] sm:$0xff] %v1283_v25 }
 0x117   :  { %v597_v28 = vadd.f32 %v868_v8, %v596_v23  ;;  %v700_v29 = vadd.f32 %v699_v22, %v653_v24  ;;  %v665_v8 = vmul.f32 %v1175_v17, %v1175_v17  ;;  %v669_v22 = vmul.f32 %v1211_v40, %v1211_v40 }
 0x119   :  { %v701_v32 = vadd.f32 %v700_v29, %v654_v27  ;;  %v598_v36 = vadd.f32 %v869_v18, %v597_v28 }
 0x11b   :  { %v599_v39 = vadd.f32 %v598_v36, %v1085_v35  ;;  %v702_v42 = vadd.f32 %v701_v32, %v655_v30  ;;  %v660_v35 = vmul.f32 %v1121_v55, %v1121_v55  ;;  %v673_v36 = vmul.f32 %v1247_v1, %v1247_v1 }
 0x11d   :  { %v703_v43 = vadd.f32 %v702_v42, %v656_v38  ;;  %v600_v44 = vadd.f32 %v599_v39, %v1103_v41 }
 0x11f   :  { %v601_v47 = vadd.f32 %v1076_v33, %v600_v44  ;;  %v704_v48 = vadd.f32 %v703_v43, %v657_v45  ;;  %v662_v33 = vmul.f32 %v1112_v50, %v1112_v50 }
 0x121   :  { %v705_v52 = vadd.f32 %v704_v48, %v658_v46  ;;  %v602_v53 = vadd.f32 %v1094_v37, %v601_v47  ;;  %v663_v37 = vmul.f32 %v1130_v57, %v1130_v57  ;;  %v677_v47 = vmul.f32 %v1283_v25, %v1283_v25 }
 0x123   :  { %v603_v54 = vadd.f32 %v602_v53, %v1121_v55  ;;  %v706_v56 = vadd.f32 %v705_v52, %v659_v49  ;;  %v664_v55 = vmul.f32 %v1157_v11, %v1157_v11 }
 0x125   :  { %v707_v59 = vadd.f32 %v706_v56, %v660_v35  ;;  %v604_v41 = vadd.f32 %v603_v54, %v1139_v61 }
 0x127   :  { %v605_v63 = vadd.f32 %v1112_v50, %v604_v41  ;;  %v708_v0 = vadd.f32 %v707_v59, %v661_v62  ;;  %v666_v50 = vmul.f32 %v1148_v6, %v1148_v6 }
 0x129   :  { %v709_v2 = vadd.f32 %v708_v0, %v662_v33  ;;  %v606_v3 = vadd.f32 %v1130_v57, %v605_v63  ;;  %v667_v57 = vmul.f32 %v1166_v13, %v1166_v13  ;;  %v575_v0 = vld [vmem:[#allocation2] sm:$0x1] }
 0x12b   :  { %v607_v4 = vadd.f32 %v606_v3, %v1157_v11  ;;  %v710_v5 = vadd.f32 %v709_v2, %v663_v37  ;;  %v668_v11 = vmul.f32 %v1193_v31, %v1193_v31  ;;  %v631_v2 = vld [vmem:[#allocation3] sm:$0x1] }
 0x12d   :  { %v711_v7 = vadd.f32 %v710_v5, %v664_v55  ;;  %v608_v61 = vadd.f32 %v607_v4, %v1175_v17 }
 0x12f   :  { %v609_v9 = vadd.f32 %v1148_v6, %v608_v61  ;;  %v712_v10 = vadd.f32 %v711_v7, %v665_v8  ;;  %v670_v6 = vmul.f32 %v1184_v26, %v1184_v26 }
 0x131   :  { %v713_v14 = vadd.f32 %v712_v10, %v666_v50  ;;  %v610_v15 = vadd.f32 %v1166_v13, %v609_v9  ;;  %v671_v13 = vmul.f32 %v1202_v34, %v1202_v34 }
 0x133   :  { %v611_v16 = vadd.f32 %v610_v15, %v1193_v31  ;;  %v714_v18 = vadd.f32 %v713_v14, %v667_v57  ;;  %v672_v31 = vmul.f32 %v1229_v58, %v1229_v58 }
 0x135   :  { %v715_v20 = vadd.f32 %v714_v18, %v668_v11  ;;  %v612_v17 = vadd.f32 %v611_v16, %v1211_v40 }
 0x137   :  { %v613_v23 = vadd.f32 %v1184_v26, %v612_v17  ;;  %v716_v24 = vadd.f32 %v715_v20, %v669_v22  ;;  %v674_v26 = vmul.f32 %v1220_v51, %v1220_v51 }
 0x139   :  { %v717_v27 = vadd.f32 %v716_v24, %v670_v6  ;;  %v614_v28 = vadd.f32 %v1202_v34, %v613_v23  ;;  %v675_v34 = vmul.f32 %v1238_v60, %v1238_v60 }
 0x13b   :  { %v615_v29 = vadd.f32 %v614_v28, %v1229_v58  ;;  %v718_v30 = vadd.f32 %v717_v27, %v671_v13  ;;  %v676_v58 = vmul.f32 %v1265_v19, %v1265_v19 }
 0x13d   :  { %v719_v32 = vadd.f32 %v718_v30, %v672_v31  ;;  %v616_v40 = vadd.f32 %v615_v29, %v1247_v1 }
 0x13f   :  { %v617_v38 = vadd.f32 %v1220_v51, %v616_v40  ;;  %v720_v39 = vadd.f32 %v719_v32, %v673_v36  ;;  %v678_v51 = vmul.f32 %v1256_v12, %v1256_v12 }
 0x141   :  { %v721_v42 = vadd.f32 %v720_v39, %v674_v26  ;;  %v618_v43 = vadd.f32 %v1238_v60, %v617_v38  ;;  %v679_v60 = vmul.f32 %v1274_v21, %v1274_v21 }
 0x143   :  { %v619_v44 = vadd.f32 %v618_v43, %v1265_v19  ;;  %v722_v45 = vadd.f32 %v721_v42, %v675_v34 }
 0x145   :  { %v723_v46 = vadd.f32 %v722_v45, %v676_v58  ;;  %v620_v1 = vadd.f32 %v619_v44, %v1283_v25 }
 0x147   :  { %v621_v48 = vadd.f32 %v1256_v12, %v620_v1  ;;  %v724_v49 = vadd.f32 %v723_v46, %v677_v47 }
 0x149   :  { %v622_v52 = vadd.f32 %v1274_v21, %v621_v48  ;;  %v725_v53 = vadd.f32 %v724_v49, %v678_v51 }
 0x14b   :  { %v623_v19 = vrot.slane %v622_v52, 4  ;;  %v726_v35 = vadd.f32 %v725_v53, %v679_v60 }
 0x14d   :  { %v624_v54 = vadd.f32 %v623_v19, %v622_v52  ;;  %v727_v56 = vrot.slane %v726_v35, 4 }
 0x14f   :  { %v625_v59 = vrot.slane %v624_v54, 2  ;;  %v728_v41 = vadd.f32 %v727_v56, %v726_v35 }
 0x151   :  { %v626_v62 = vadd.f32 %v625_v59, %v624_v54  ;;  %v729_v25 = vrot.slane %v728_v41, 2 }
 0x153   :  { %v627_v33 = vrot.slane %v626_v62, 1  ;;  %v730_v63 = vadd.f32 %v729_v25, %v728_v41 }
 0x155   :  { %v628_v37 = vadd.f32 %v627_v33, %v626_v62  ;;  %v731_v12 = vrot.slane %v730_v63, 1 }
 0x157   :  { %v629_v3 = vadd.f32 %v628_v37, %v575_v0  ;;  %v732_v55 = vadd.f32 %v731_v12, %v730_v63 }
 0x159   :  { %630 = vst [vmem:[#allocation2] sm:$0x1] %v629_v3  ;;  %v733_v4 = vadd.f32 %v732_v55, %v631_v2 }
 0x15b   :  { %734 = vst [vmem:[#allocation3] sm:$0x1] %v733_v4 }
 0x160   :  { %v738_v21 = vld [vmem:[#allocation2] sm:$0x1] }
 0x161   :  { %739 = vst [vmem:[%s1370_s3] sm:$0x1] %v738_v21 }
 0x162   :  { %v740_v5 = vld [vmem:[#allocation3] sm:$0x1] }
 0x163   :  { %741 = vst [vmem:[%s1371_s4] sm:$0x1] %v740_v5 }

// kernel: cra_forward.59
= control target key start
LH: loop header
LB: loop body
LE: loop exit
PB: predicated region body
PF: predicated region fallthrough
CT: control target
= control target key end

     0   :  { %vm16_vm0 = vcmask 64512   ;;  %v129_v0 = vmov 0.0   ;;  %vm130_vm1 = vmmov 0   ;;  %s166_s1 = inlined_call_operand.vmem [shape: f32[8,128], index: 1, kind: input, shape index: {}]   ;;  %s167_s0 = inlined_call_operand.vmem [shape: f32[8,8], index: 0, kind: input, shape index: {}]   ;;  %s168_s2 = inlined_call_operand.vmem [shape: f32[2,128], index: 2, kind: input, shape index: {}]   ;;  %s169_s3 = inlined_call_operand.vmem [shape: f32[8,128], index: 3, kind: output, shape index: {}]  }
   0x1   :  { %118 = vmatprep.subr.mxu0 %v129_v0  ;;  %v15_v1 = vld [vmem:[%s166_s1] sm:$0xff]  ;;  %120 = vmatprep.mubr.msk.f32.mxu0 %vm130_vm1, %v129_v0 }
   0x2   :  { %v14_v2 = vld [vmem:[%s167_s0] sm:$0xff]  ;;  %119 = vmatpush3.msra.mxu0 %v15_v1 }
   0x3   :  { %121 = vmatmul.mubr.msk.f32.vlgmr.msra.gmra.mrb[0].mxu0 %vm16_vm0, %v14_v2  ;;  %v114_v3 = vld [vmem:[%s168_s2] ss:$0 sm:$0xff]  ;;  %v115_v5 = vld [vmem:[%s168_s2 + $0x1] ss:$0 sm:$0xff] }
  0xd6   :  { %v86_v4 = vpop.f32.mrb[0].mxu0 }
  0xd7   :  { %v95_v6 = vmul.f32 %v114_v3, %v86_v4  ;;  %v122_v7 = vpop.f32.mrb[1].mxu0 }
  0xd9   :  { %v101_v8 = vadd.f32 %v115_v5, %v95_v6 }
  0xdb   :  { %v102_v9 = vsub.f32 0.0, %v101_v8 }
  0xdd   :  { %v103_v10 = vmul.f32 1.442695, %v102_v9 }
  0xdf   :  { %125 = vpow2.f32 %v103_v10 }
  0xe9   :  { %v126_v11 = vpop.eup %125 }
  0xea   :  { %v105_v12 = vadd.f32 1.0, %v126_v11 }
  0xec   :  { %127 = vrcp.f32 %v105_v12 }
  0xf6   :  { %v128_v13 = vpop.eup %127 }
  0xf7   :  { %108 = vst [vmem:[%s169_s3] sm:$0xff] %v128_v13 }

</bundles_post_ra>
